<compile_context>
chip_gen: v6e
topology: v6e:2x2x1
jax: 0.10.0
libtpu: 0.0.40
codegen_flags: <defaults>
</compile_context>

<pallas_src>
import functools
import math

import jax
import jax.numpy as jnp
from jax.experimental import pallas as pl
from jax.experimental.pallas import tpu as pltpu

GRID = 7
SEQ = GRID * GRID          # 49 (fixed by the module: 7x7 grid / swin window)
SEQ_PAD = 56               # 49 padded to a multiple of 8 (sublane tile); extra
                           # key positions are masked, extra query rows dropped.
WIN = 7
LN_EPS = 1e-5              # PyTorch nn.LayerNorm default
NEG_INF = -1e30

# stacked per-layer weight ordering shared by init
_WEIGHT_NAMES = ('wqkv_d', 'bqkv_d', 'wo_d', 'bo_d', 'g_d', 'be_d',
                 'wqkv_p', 'bqkv_p', 'wo_p', 'bo_p', 'g_p', 'be_p',
                 'g_c', 'be_c',
                 'w1', 'b1', 'w2', 'b2', 'g_f', 'be_f')


# ----------------------------------------------------------------------------
# Pallas kernels
# ----------------------------------------------------------------------------
def _rel_proj_kernel(geo_ref, wdis_ref, bdis_ref, sin_ref, wpos_ref, bpos_ref,
                     dis_ref, pos_ref):
    """Both per-head relative-bias projections fused, lane-dense (h, 49*49)."""
    dis = (jnp.dot(wdis_ref[...], geo_ref[...],
                   preferred_element_type=jnp.float32) + bdis_ref[...])
    dis_ref[...] = jnp.maximum(dis, 0.0)                      # F.relu on dis only
    pos_ref[...] = (jnp.dot(wpos_ref[...], sin_ref[...],
                            preferred_element_type=jnp.float32) + bpos_ref[...])


def _encoder_kernel(x_ref, neg_ref, rel_dis_ref, rel_pos_ref,
                    wqkv_d_ref, bqkv_d_ref, wo_d_ref, bo_d_ref, g_d_ref, be_d_ref,
                    wqkv_p_ref, bqkv_p_ref, wo_p_ref, bo_p_ref, g_p_ref, be_p_ref,
                    g_c_ref, be_c_ref,
                    w1_ref, b1_ref, w2_ref, b2_ref, g_f_ref, be_f_ref,
                    out_ref, *, h, d_k, d_v, bt, nq, d_model):
    """One (batch-tile, layer) grid step of the MultiLevelEncoder stack (eval)."""
    layer = pl.program_id(1)

    # Activation is carried in the output block across the (inner) layer axis.
    @pl.when(layer == 0)
    def _():
        out_ref[...] = x_ref[...]

    hdk, hdv = h * d_k, h * d_v
    rows = bt * nq
    inv_d = 1.0 / d_model

    y3 = out_ref[...]                                  # (bt, nq, d_model) f32
    y2 = y3.reshape(rows, d_model)                     # layout-preserving (nq % 8 == 0)
    y2b = y2.astype(jnp.bfloat16)
    neg = neg_ref[...]                                 # (bt, 1, nq) additive key mask

    def ln(z, g_ref_, be_ref_):
        # single-pass mean / var over all rows at once
        mean = jnp.sum(z, axis=-1, keepdims=True) * inv_d
        var = jnp.sum(z * z, axis=-1, keepdims=True) * inv_d - mean * mean
        var = jnp.maximum(var, 0.0)
        return (z - mean) * jax.lax.rsqrt(var + LN_EPS) * g_ref_[...] + be_ref_[...]

    def mha(rel_ref, wqkv_ref, bqkv_ref, wo_ref, bo_ref, g_ref_, be_ref_):
        # fused QKV projection over the whole stacked tile (1/sqrt(d_k) folded in)
        qkv = (jnp.dot(y2b, wqkv_ref[...], preferred_element_type=jnp.float32)
               + bqkv_ref[...])                        # (rows, 2*hdk + hdv) f32
        qkv3 = qkv.reshape(bt, nq, 2 * hdk + hdv)
        o2 = jnp.zeros((rows, d_model), jnp.float32)
        for i in range(h):                             # heads (small), batched over bt
            qh = qkv3[:, :, i * d_k:(i + 1) * d_k]
            kh = qkv3[:, :, hdk + i * d_k: hdk + (i + 1) * d_k]
            vh = qkv3[:, :, 2 * hdk + i * d_v: 2 * hdk + (i + 1) * d_v]
            att = jnp.einsum('bqd,bkd->bqk',
                             qh.astype(jnp.bfloat16), kh.astype(jnp.bfloat16),
                             preferred_element_type=jnp.float32)   # (bt, nq, nq)
            att = att + rel_ref[i][None] + neg          # relative bias + key mask
            att = att - jnp.max(att, axis=-1, keepdims=True)
            p = jnp.exp(att)
            p = p * pl.reciprocal(jnp.sum(p, axis=-1, keepdims=True), approx=True)
            oh = jnp.einsum('bqk,bkd->bqd',
                            p.astype(jnp.bfloat16), vh.astype(jnp.bfloat16),
                            preferred_element_type=jnp.float32)    # (bt, nq, d_v)
            # per-head output projection accumulated (== concat(heads) @ wo)
            o2 = o2 + jnp.dot(oh.reshape(rows, d_v).astype(jnp.bfloat16),
                              wo_ref[i], preferred_element_type=jnp.float32)
        o2 = o2 + bo_ref[...]
        return ln(y2 + o2, g_ref_, be_ref_)             # LN(queries + attention)

    a_dis = mha(rel_dis_ref, wqkv_d_ref, bqkv_d_ref, wo_d_ref, bo_d_ref,
                g_d_ref, be_d_ref)
    a_pos = mha(rel_pos_ref, wqkv_p_ref, bqkv_p_ref, wo_p_ref, bo_p_ref,
                g_p_ref, be_p_ref)

    # EncoderLayer (eval): LN(queries + 0.5 * (att_dis + att_pos))
    att = ln(y2 + 0.5 * (a_dis + a_pos), g_c_ref, be_c_ref)
    # PositionWiseFeedForward: LN(att + fc2(relu(fc1(att))))
    hid = jnp.maximum(jnp.dot(att.astype(jnp.bfloat16), w1_ref[...],
                              preferred_element_type=jnp.float32) + b1_ref[...], 0.0)
    ff = (jnp.dot(hid.astype(jnp.bfloat16), w2_ref[...],
                  preferred_element_type=jnp.float32) + b2_ref[...])
    y_new = ln(att + ff, g_f_ref, be_f_ref)
    out_ref[...] = y_new.reshape(bt, nq, d_model)


# ----------------------------------------------------------------------------
# pallas_call wrappers
# ----------------------------------------------------------------------------
def rel_proj(geo_t, w_dis, b_dis, sin_t, w_pos, b_pos, *, h):
    """geo_t:(96,P)  sin_t:(32,P)  ->  ((h,P) relu'd dis bias, (h,P) pos bias)."""
    p_ = geo_t.shape[1]

    def cs(shape):
        n = len(shape)
        return pl.BlockSpec(shape, lambda i, _n=n: (0,) * _n)

    return pl.pallas_call(
        _rel_proj_kernel,
        out_shape=(jax.ShapeDtypeStruct((h, p_), jnp.float32),
                   jax.ShapeDtypeStruct((h, p_), jnp.float32)),
        grid=(1,),
        in_specs=[cs(geo_t.shape), cs(w_dis.shape), cs(b_dis.shape),
                  cs(sin_t.shape), cs(w_pos.shape), cs(b_pos.shape)],
        out_specs=(cs((h, p_)), cs((h, p_))),
        compiler_params=pltpu.CompilerParams(dimension_semantics=("arbitrary",)),
    )(geo_t, w_dis, b_dis, sin_t, w_pos, b_pos)


def encoder_stack(xp, neg, rel_dis, rel_pos, weights, *, h, d_k, d_v, bt, n_layers):
    bsp, nq, d_model = xp.shape
    kernel = functools.partial(_encoder_kernel, h=h, d_k=d_k, d_v=d_v, bt=bt,
                               nq=nq, d_model=d_model)

    def batch_spec(shape):
        n = len(shape)
        return pl.BlockSpec(shape, lambda b, l, _n=n: (b,) + (0,) * (_n - 1))

    def const_spec(shape):
        n = len(shape)
        return pl.BlockSpec(shape, lambda b, l, _n=n: (0,) * _n)

    def layer_spec(stacked_shape):
        n = len(stacked_shape)
        blk = (None,) + tuple(stacked_shape[1:])        # squeeze the layer dim
        return pl.BlockSpec(blk, lambda b, l, _n=n: (l,) + (0,) * (_n - 1))

    in_specs = ([batch_spec((bt, nq, d_model)),          # activations (init only)
                 batch_spec((bt, 1, nq)),                # additive key-padding mask
                 const_spec(rel_dis.shape),              # (h, nq, nq), fetched once
                 const_spec(rel_pos.shape)]
                + [layer_spec(w.shape) for w in weights])  # streamed per layer

    # scoped-VMEM budget from actual per-step block footprint (+ headroom)
    def nbytes(shape, dtype):
        sz = 1
        for s in shape:
            sz *= int(s)
        return sz * jnp.dtype(dtype).itemsize

    per_step = (2 * nbytes((bt, nq, d_model), jnp.float32)     # x + carried out block
                + nbytes((bt, 1, nq), jnp.float32)
                + nbytes(rel_dis.shape, rel_dis.dtype)
                + nbytes(rel_pos.shape, rel_pos.dtype)
                + sum(nbytes(w.shape[1:], w.dtype) for w in weights))
    vmem_limit = int(min(max(3 * per_step + (8 << 20), 32 << 20), 100 << 20))

    return pl.pallas_call(
        kernel,
        out_shape=jax.ShapeDtypeStruct((bsp, nq, d_model), jnp.float32),
        grid=(bsp // bt, n_layers),                      # layers innermost
        in_specs=in_specs,
        out_specs=pl.BlockSpec((bt, nq, d_model), lambda b, l: (b, 0, 0)),
        compiler_params=pltpu.CompilerParams(
            dimension_semantics=("parallel", "arbitrary"),
            vmem_limit_bytes=vmem_limit),
    )(xp, neg, rel_dis, rel_pos, *weights)


# ----------------------------------------------------------------------------
# Pure-JAX glue: batch-independent positional features (computed once)
# ----------------------------------------------------------------------------
def _relative_position_index():
    ch, cw = jnp.meshgrid(jnp.arange(WIN), jnp.arange(WIN), indexing='ij')
    coords = jnp.stack([ch.reshape(-1), cw.reshape(-1)])          # (2, 49)
    rel = coords[:, :, None] - coords[:, None, :]                 # (2, 49, 49)
    rel = rel.transpose(1, 2, 0) + (WIN - 1)
    return rel[..., 0] * (2 * WIN - 1) + rel[..., 1]              # (49, 49)


def _swin_cos_features(rel_table):
    """cos(bias * 70 / f), f = 1..32 — already transposed: (32, 49*49)."""
    idx = _relative_position_index()
    bias = rel_table[idx.reshape(-1), 0]                          # (2401,)
    inv_range = 1.0 / jnp.arange(1, 33, dtype=jnp.float32)        # (32,)
    return jnp.cos(inv_range[:, None] * (70.0 * bias)[None, :])   # (32, 2401)


def _grid_geometry_features(grid_size=GRID, dim_g=64, wave_len=1000.0):
    """GridRelationalEmbedding (batch independent) ++ ones(...,32) -> (96, 2401)."""
    a = jnp.arange(grid_size, dtype=jnp.float32)
    c1 = jnp.repeat(a, grid_size)
    c2 = jnp.tile(a, grid_size)
    x_min, y_min = c1 / grid_size, c2 / grid_size
    x_max, y_max = (c1 + 1.0) / grid_size, (c2 + 1.0) / grid_size
    cx = (x_min + x_max) * 0.5
    cy = (y_min + y_max) * 0.5
    tx = cx[:, None] - cx[None, :]
    ty = cy[:, None] - cy[None, :]
    clog = lambda t: jnp.log(jnp.maximum(jnp.abs(t * 0.5), 0.001))
    pos_mat = jnp.stack([clog(tx), clog(ty), clog(tx + ty),
                         clog(jnp.sqrt(tx * tx + ty * ty))], axis=-1)   # (49,49,4)
    feat_range = jnp.arange(dim_g // 8, dtype=jnp.float32)
    dim_mat = 1.0 / (wave_len ** (feat_range / (dim_g / 8.0)))          # (8,)
    mul = (100.0 * pos_mat)[..., None] * dim_mat                        # (49,49,4,8)
    mul = mul.reshape(SEQ, SEQ, dim_g // 2)                             # (49,49,32)
    emb = jnp.concatenate([jnp.sin(mul), jnp.cos(mul)], axis=-1)        # (49,49,64)
    feat = jnp.concatenate([emb, jnp.ones((SEQ, SEQ, 32), jnp.float32)], axis=-1)
    return feat.reshape(SEQ * SEQ, 96).T                                # (96, 2401)


# ----------------------------------------------------------------------------
# Deterministic parameter init (mirrors module __init__)
# ----------------------------------------------------------------------------
def _xavier_uniform(key, shape):
    in_dim, out_dim = shape
    bound = math.sqrt(6.0 / (in_dim + out_dim))
    return jax.random.uniform(key, shape, jnp.float32, -bound, bound)


def _default_linear(key, in_dim, out_dim):
    kw, kb = jax.random.split(key)
    bound = 1.0 / math.sqrt(in_dim)
    w = jax.random.uniform(kw, (in_dim, out_dim), jnp.float32, -bound, bound)
    b = jax.random.uniform(kb, (1, out_dim), jnp.float32, -bound, bound)
    return w, b


def _init_mha_fused(key, d_model, d_k, d_v, h):
    kq, kk, kv, ko = jax.random.split(key, 4)
    wq = _xavier_uniform(kq, (d_model, h * d_k))
    wk = _xavier_uniform(kk, (d_model, h * d_k))
    wv = _xavier_uniform(kv, (d_model, h * d_v))
    wqkv = jnp.concatenate([wq, wk, wv], axis=1)          # fused QKV weight
    bqkv = jnp.zeros((1, h * (2 * d_k + d_v)), jnp.float32)
    wo = _xavier_uniform(ko, (h * d_v, d_model))
    bo = jnp.zeros((1, d_model), jnp.float32)
    g = jnp.ones((1, d_model), jnp.float32)
    be = jnp.zeros((1, d_model), jnp.float32)
    return wqkv, bqkv, wo, bo, g, be


def init_multi_level_encoder(key, N, d_model, d_k, d_v, h, d_ff):
    keys = jax.random.split(key, N + 3)

    # WGs_pos / WGs_dis: h x nn.Linear(C, 1) stacked into (h, C) + (h, 1)
    kp = jax.random.split(keys[0], 2 * h)
    wp, bp, wd, bd = [], [], [], []
    for i in range(h):
        w, b = _default_linear(kp[i], 32, 1)
        wp.append(w[:, 0]); bp.append(b[0])
        w, b = _default_linear(kp[h + i], 96, 1)
        wd.append(w[:, 0]); bd.append(b[0])
    params = dict(
        w_pos=jnp.stack(wp), b_pos=jnp.stack(bp),
        w_dis=jnp.stack(wd), b_dis=jnp.stack(bd),
        rel_table=0.02 * jax.random.normal(
            keys[1], ((2 * WIN - 1) * (2 * WIN - 1), 1), jnp.float32),
    )

    per = {n: [] for n in _WEIGHT_NAMES}
    for i in range(N):
        k1, k2, k3, k4 = jax.random.split(keys[3 + i], 4)
        for tag, kk in (('d', k1), ('p', k2)):
            wqkv, bqkv, wo, bo, g, be = _init_mha_fused(kk, d_model, d_k, d_v, h)
            per['wqkv_' + tag].append(wqkv); per['bqkv_' + tag].append(bqkv)
            per['wo_' + tag].append(wo);     per['bo_' + tag].append(bo)
            per['g_' + tag].append(g);       per['be_' + tag].append(be)
        per['g_c'].append(jnp.ones((1, d_model), jnp.float32))
        per['be_c'].append(jnp.zeros((1, d_model), jnp.float32))
        w1, b1 = _default_linear(k3, d_model, d_ff)
        w2, b2 = _default_linear(k4, d_ff, d_model)
        per['w1'].append(w1); per['b1'].append(b1)
        per['w2'].append(w2); per['b2'].append(b2)
        per['g_f'].append(jnp.ones((1, d_model), jnp.float32))
        per['be_f'].append(jnp.zeros((1, d_model), jnp.float32))
    params.update({n: jnp.stack(v) for n, v in per.items()})
    return params


# ----------------------------------------------------------------------------
# Forward (MultiLevelEncoder.forward, eval mode)
# ----------------------------------------------------------------------------
def multi_level_encoder_forward(x, params, *, h, d_k, d_v, b_tile=8):
    bs, nq, d_model = x.shape
    assert nq == SEQ, "sequence length is fixed to 49 (7x7 grid) by the module"
    n_layers = params['w1'].shape[0]
    scale = 1.0 / math.sqrt(d_k)
    hdk = h * d_k
    pad_s = SEQ_PAD - SEQ

    # Relative-bias maps: batch independent, computed ONCE at (h, 49, 49) by a
    # single fused lane-dense Pallas call, then padded to the tiled seq length.
    sin_feat_t = _swin_cos_features(params['rel_table'])           # (32, 2401)
    geo_feat_t = _grid_geometry_features()                         # (96, 2401)
    rel_dis, rel_pos = rel_proj(geo_feat_t, params['w_dis'], params['b_dis'],
                                sin_feat_t, params['w_pos'], params['b_pos'], h=h)
    rel_dis = jnp.pad(rel_dis.reshape(h, SEQ, SEQ), ((0, 0), (0, pad_s), (0, pad_s)))
    rel_pos = jnp.pad(rel_pos.reshape(h, SEQ, SEQ), ((0, 0), (0, pad_s), (0, pad_s)))

    # padding mask: matches torch.sum(input == 0, -1) != 0
    key_is_pad = (jnp.sum((x == 0.0).astype(jnp.int32), axis=-1) != 0)   # (bs, 49)
    attention_mask = key_is_pad[:, None, None, :]                         # (bs,1,1,49)

    # batch tiling: >= 2 grid steps when bs >= 2 (both v7x TCs), bt*56 >= 256 for
    # large batches (MXU M-fill).  Padded rows / seq positions are fully masked.
    bt = max(1, min(b_tile, bs if bs < 2 else bs // 2))
    pad_b = (-bs) % bt
    xp = jnp.pad(x, ((0, pad_b), (0, pad_s), (0, 0)))
    kp = jnp.pad(key_is_pad, ((0, pad_b), (0, pad_s)), constant_values=True)
    neg = jnp.where(kp, NEG_INF, 0.0).astype(jnp.float32)[:, None, :]     # (bsp,1,56)

    # one-time weight transforms: fold 1/sqrt(d_k) into Q, per-head wo layout,
    # bf16 matmul weights (MXU fast path + half the streamed bytes)
    wqkv_d = params['wqkv_d'].at[:, :, :hdk].multiply(scale).astype(jnp.bfloat16)
    bqkv_d = params['bqkv_d'].at[:, :, :hdk].multiply(scale)
    wqkv_p = params['wqkv_p'].at[:, :, :hdk].multiply(scale).astype(jnp.bfloat16)
    bqkv_p = params['bqkv_p'].at[:, :, :hdk].multiply(scale)
    wo_d = params['wo_d'].reshape(n_layers, h, d_v, d_model).astype(jnp.bfloat16)
    wo_p = params['wo_p'].reshape(n_layers, h, d_v, d_model).astype(jnp.bfloat16)
    w1 = params['w1'].astype(jnp.bfloat16)
    w2 = params['w2'].astype(jnp.bfloat16)

    weights = [wqkv_d, bqkv_d, wo_d, params['bo_d'], params['g_d'], params['be_d'],
               wqkv_p, bqkv_p, wo_p, params['bo_p'], params['g_p'], params['be_p'],
               params['g_c'], params['be_c'],
               w1, params['b1'], w2, params['b2'], params['g_f'], params['be_f']]

    out = encoder_stack(xp, neg, rel_dis, rel_pos, weights,
                        h=h, d_k=d_k, d_v=d_v, bt=bt, n_layers=n_layers)
    return out[:bs, :SEQ], attention_mask


# ----------------------------------------------------------------------------
if __name__ == "__main__":
    # small config consistent with the module (seq=49 fixed, scaled-down widths)
    N, D_MODEL, D_K, D_V, H, D_FF = 2, 64, 16, 16, 4, 128
    BS = 4        # -> bt = 2: exercises the batched tile path and a 2-step grid

    key = jax.random.PRNGKey(0)
    k_in, k_par = jax.random.split(key)
    x = jax.random.normal(k_in, (BS, SEQ, D_MODEL), dtype=jnp.float32)
    params = init_multi_level_encoder(k_par, N, D_MODEL, D_K, D_V, H, D_FF)

    fwd = jax.jit(functools.partial(multi_level_encoder_forward,
                                    h=H, d_k=D_K, d_v=D_V))
    out, attn_mask = fwd(x, params)
    out = jax.block_until_ready(out)
    attn_mask = jax.block_until_ready(attn_mask)

    assert out.shape == (BS, SEQ, D_MODEL)
    assert attn_mask.shape == (BS, 1, 1, SEQ)
    assert bool(jnp.all(jnp.isfinite(out)))
    print("KERNEL_OK")
</pallas_src>

<mosaic_0001>
module attributes {stable_mosaic.version = 11 : i64} {
  func.func @_rel_proj_kernel(%arg0: i32, %arg1: memref<96x2401xf32, #tpu.memory_space<vmem>>, %arg2: memref<4x96xf32, #tpu.memory_space<vmem>>, %arg3: memref<4x1xf32, #tpu.memory_space<vmem>>, %arg4: memref<32x2401xf32, #tpu.memory_space<vmem>>, %arg5: memref<4x32xf32, #tpu.memory_space<vmem>>, %arg6: memref<4x1xf32, #tpu.memory_space<vmem>>, %arg7: memref<4x2401xf32, #tpu.memory_space<vmem>>, %arg8: memref<4x2401xf32, #tpu.memory_space<vmem>>) attributes {dimension_semantics = [#tpu.dimension_semantics<arbitrary>], iteration_bounds = array<i64: 1>, scalar_prefetch = 0 : i64, scratch_operands = 0 : i64, tpu.core_type = #tpu.core_type<tc>, window_params = [{pipeline_mode = #tpu.pipeline_mode<synchronous>, transform_indices = @transform_0, window_bounds = array<i64: 96, 2401>}, {pipeline_mode = #tpu.pipeline_mode<synchronous>, transform_indices = @transform_1, window_bounds = array<i64: 4, 96>}, {pipeline_mode = #tpu.pipeline_mode<synchronous>, transform_indices = @transform_2, window_bounds = array<i64: 4, 1>}, {pipeline_mode = #tpu.pipeline_mode<synchronous>, transform_indices = @transform_3, window_bounds = array<i64: 32, 2401>}, {pipeline_mode = #tpu.pipeline_mode<synchronous>, transform_indices = @transform_4, window_bounds = array<i64: 4, 32>}, {pipeline_mode = #tpu.pipeline_mode<synchronous>, transform_indices = @transform_5, window_bounds = array<i64: 4, 1>}, {pipeline_mode = #tpu.pipeline_mode<synchronous>, transform_indices = @transform_6, window_bounds = array<i64: 4, 2401>}, {pipeline_mode = #tpu.pipeline_mode<synchronous>, transform_indices = @transform_7, window_bounds = array<i64: 4, 2401>}]} {
    %c0 = arith.constant 0 : index
    %c0_0 = arith.constant 0 : index
    %0 = vector.load %arg2[%c0, %c0_0] : memref<4x96xf32, #tpu.memory_space<vmem>>, vector<4x96xf32>
    %c0_1 = arith.constant 0 : index
    %c0_2 = arith.constant 0 : index
    %1 = vector.load %arg1[%c0_1, %c0_2] : memref<96x2401xf32, #tpu.memory_space<vmem>>, vector<96x2401xf32>
    %cst = arith.constant dense<0.000000e+00> : vector<4x2401xf32>
    %2 = tpu.matmul %0, %1, %cst {dimension_numbers = #tpu.dot_dimension_numbers<[1], [0], [0], [1], [0, 0, 1, 1], [], []>} : vector<4x96xf32>, vector<96x2401xf32>, vector<4x2401xf32> -> vector<4x2401xf32>
    %c0_3 = arith.constant 0 : index
    %c0_4 = arith.constant 0 : index
    %3 = vector.load %arg3[%c0_3, %c0_4] : memref<4x1xf32, #tpu.memory_space<vmem>>, vector<4x1xf32>
    %4 = vector.broadcast %3 : vector<4x1xf32> to vector<4x2401xf32>
    %5 = arith.addf %2, %4 : vector<4x2401xf32>
    %cst_5 = arith.constant 0.000000e+00 : f32
    %6 = vector.broadcast %cst_5 : f32 to vector<4x2401xf32>
    %7 = arith.maximumf %5, %6 : vector<4x2401xf32>
    %c0_6 = arith.constant 0 : index
    %c0_7 = arith.constant 0 : index
    %8 = vector.load %arg7[%c0_6, %c0_7] : memref<4x2401xf32, #tpu.memory_space<vmem>>, vector<4x2401xf32>
    tpu.vector_store %arg7[%c0_6, %c0_7], %7 {strides = array<i32>} : memref<4x2401xf32, #tpu.memory_space<vmem>>, vector<4x2401xf32>,
    %c0_8 = arith.constant 0 : index
    %c0_9 = arith.constant 0 : index
    %9 = vector.load %arg5[%c0_8, %c0_9] : memref<4x32xf32, #tpu.memory_space<vmem>>, vector<4x32xf32>
    %c0_10 = arith.constant 0 : index
    %c0_11 = arith.constant 0 : index
    %10 = vector.load %arg4[%c0_10, %c0_11] : memref<32x2401xf32, #tpu.memory_space<vmem>>, vector<32x2401xf32>
    %cst_12 = arith.constant dense<0.000000e+00> : vector<4x2401xf32>
    %11 = tpu.matmul %9, %10, %cst_12 {dimension_numbers = #tpu.dot_dimension_numbers<[1], [0], [0], [1], [0, 0, 1, 1], [], []>} : vector<4x32xf32>, vector<32x2401xf32>, vector<4x2401xf32> -> vector<4x2401xf32>
    %c0_13 = arith.constant 0 : index
    %c0_14 = arith.constant 0 : index
    %12 = vector.load %arg6[%c0_13, %c0_14] : memref<4x1xf32, #tpu.memory_space<vmem>>, vector<4x1xf32>
    %13 = vector.broadcast %12 : vector<4x1xf32> to vector<4x2401xf32>
    %14 = arith.addf %11, %13 : vector<4x2401xf32>
    %c0_15 = arith.constant 0 : index
    %c0_16 = arith.constant 0 : index
    %15 = vector.load %arg8[%c0_15, %c0_16] : memref<4x2401xf32, #tpu.memory_space<vmem>>, vector<4x2401xf32>
    tpu.vector_store %arg8[%c0_15, %c0_16], %14 {strides = array<i32>} : memref<4x2401xf32, #tpu.memory_space<vmem>>, vector<4x2401xf32>,
    return
  }
  func.func @transform_0(%arg0: i32) -> (i32, i32) {
    %c0_i32 = arith.constant 0 : i32
    %c0_i32_0 = arith.constant 0 : i32
    %c0_i32_1 = arith.constant 0 : i32
    return %c0_i32, %c0_i32_0 : i32, i32
  }
  func.func @transform_1(%arg0: i32) -> (i32, i32) {
    %c0_i32 = arith.constant 0 : i32
    %c0_i32_0 = arith.constant 0 : i32
    %c0_i32_1 = arith.constant 0 : i32
    return %c0_i32, %c0_i32_0 : i32, i32
  }
  func.func @transform_2(%arg0: i32) -> (i32, i32) {
    %c0_i32 = arith.constant 0 : i32
    %c0_i32_0 = arith.constant 0 : i32
    %c0_i32_1 = arith.constant 0 : i32
    return %c0_i32, %c0_i32_0 : i32, i32
  }
  func.func @transform_3(%arg0: i32) -> (i32, i32) {
    %c0_i32 = arith.constant 0 : i32
    %c0_i32_0 = arith.constant 0 : i32
    %c0_i32_1 = arith.constant 0 : i32
    return %c0_i32, %c0_i32_0 : i32, i32
  }
  func.func @transform_4(%arg0: i32) -> (i32, i32) {
    %c0_i32 = arith.constant 0 : i32
    %c0_i32_0 = arith.constant 0 : i32
    %c0_i32_1 = arith.constant 0 : i32
    return %c0_i32, %c0_i32_0 : i32, i32
  }
  func.func @transform_5(%arg0: i32) -> (i32, i32) {
    %c0_i32 = arith.constant 0 : i32
    %c0_i32_0 = arith.constant 0 : i32
    %c0_i32_1 = arith.constant 0 : i32
    return %c0_i32, %c0_i32_0 : i32, i32
  }
  func.func @transform_6(%arg0: i32) -> (i32, i32) {
    %c0_i32 = arith.constant 0 : i32
    %c0_i32_0 = arith.constant 0 : i32
    %c0_i32_1 = arith.constant 0 : i32
    return %c0_i32, %c0_i32_0 : i32, i32
  }
  func.func @transform_7(%arg0: i32) -> (i32, i32) {
    %c0_i32 = arith.constant 0 : i32
    %c0_i32_0 = arith.constant 0 : i32
    %c0_i32_1 = arith.constant 0 : i32
    return %c0_i32, %c0_i32_0 : i32, i32
  }
}

module attributes {stable_mosaic.version = 11 : i64} {
  func.func @_encoder_kernel(%arg0: i32, %arg1: i32, %arg2: memref<2x56x64xf32, #tpu.memory_space<vmem>>, %arg3: memref<2x1x56xf32, #tpu.memory_space<vmem>>, %arg4: memref<4x56x56xf32, #tpu.memory_space<vmem>>, %arg5: memref<4x56x56xf32, #tpu.memory_space<vmem>>, %arg6: memref<1x64x192xbf16, #tpu.memory_space<vmem>>, %arg7: memref<1x1x192xf32, #tpu.memory_space<vmem>>, %arg8: memref<1x4x16x64xbf16, #tpu.memory_space<vmem>>, %arg9: memref<1x1x64xf32, #tpu.memory_space<vmem>>, %arg10: memref<1x1x64xf32, #tpu.memory_space<vmem>>, %arg11: memref<1x1x64xf32, #tpu.memory_space<vmem>>, %arg12: memref<1x64x192xbf16, #tpu.memory_space<vmem>>, %arg13: memref<1x1x192xf32, #tpu.memory_space<vmem>>, %arg14: memref<1x4x16x64xbf16, #tpu.memory_space<vmem>>, %arg15: memref<1x1x64xf32, #tpu.memory_space<vmem>>, %arg16: memref<1x1x64xf32, #tpu.memory_space<vmem>>, %arg17: memref<1x1x64xf32, #tpu.memory_space<vmem>>, %arg18: memref<1x1x64xf32, #tpu.memory_space<vmem>>, %arg19: memref<1x1x64xf32, #tpu.memory_space<vmem>>, %arg20: memref<1x64x128xbf16, #tpu.memory_space<vmem>>, %arg21: memref<1x1x128xf32, #tpu.memory_space<vmem>>, %arg22: memref<1x128x64xbf16, #tpu.memory_space<vmem>>, %arg23: memref<1x1x64xf32, #tpu.memory_space<vmem>>, %arg24: memref<1x1x64xf32, #tpu.memory_space<vmem>>, %arg25: memref<1x1x64xf32, #tpu.memory_space<vmem>>, %arg26: memref<2x56x64xf32, #tpu.memory_space<vmem>>) attributes {dimension_semantics = [#tpu.dimension_semantics<parallel>, #tpu.dimension_semantics<arbitrary>], iteration_bounds = array<i64: 2, 2>, scalar_prefetch = 0 : i64, scratch_operands = 0 : i64, tpu.core_type = #tpu.core_type<tc>, window_params = [{transform_indices = @transform_0, window_bounds = array<i64: 2, 56, 64>}, {transform_indices = @transform_1, window_bounds = array<i64: 2, 1, 56>}, {pipeline_mode = #tpu.pipeline_mode<synchronous>, transform_indices = @transform_2, window_bounds = array<i64: 4, 56, 56>}, {pipeline_mode = #tpu.pipeline_mode<synchronous>, transform_indices = @transform_3, window_bounds = array<i64: 4, 56, 56>}, {transform_indices = @transform_4, window_bounds = array<i64: 1, 64, 192>}, {transform_indices = @transform_5, window_bounds = array<i64: 1, 1, 192>}, {transform_indices = @transform_6, window_bounds = array<i64: 1, 4, 16, 64>}, {transform_indices = @transform_7, window_bounds = array<i64: 1, 1, 64>}, {transform_indices = @transform_8, window_bounds = array<i64: 1, 1, 64>}, {transform_indices = @transform_9, window_bounds = array<i64: 1, 1, 64>}, {transform_indices = @transform_10, window_bounds = array<i64: 1, 64, 192>}, {transform_indices = @transform_11, window_bounds = array<i64: 1, 1, 192>}, {transform_indices = @transform_12, window_bounds = array<i64: 1, 4, 16, 64>}, {transform_indices = @transform_13, window_bounds = array<i64: 1, 1, 64>}, {transform_indices = @transform_14, window_bounds = array<i64: 1, 1, 64>}, {transform_indices = @transform_15, window_bounds = array<i64: 1, 1, 64>}, {transform_indices = @transform_16, window_bounds = array<i64: 1, 1, 64>}, {transform_indices = @transform_17, window_bounds = array<i64: 1, 1, 64>}, {transform_indices = @transform_18, window_bounds = array<i64: 1, 64, 128>}, {transform_indices = @transform_19, window_bounds = array<i64: 1, 1, 128>}, {transform_indices = @transform_20, window_bounds = array<i64: 1, 128, 64>}, {transform_indices = @transform_21, window_bounds = array<i64: 1, 1, 64>}, {transform_indices = @transform_22, window_bounds = array<i64: 1, 1, 64>}, {transform_indices = @transform_23, window_bounds = array<i64: 1, 1, 64>}, {transform_indices = @transform_24, window_bounds = array<i64: 2, 56, 64>}]} {
    %c0_i32 = arith.constant 0 : i32
    %0 = arith.cmpi eq, %arg1, %c0_i32 : i32
    %1 = arith.extui %0 : i1 to i32
    %c0_i32_0 = arith.constant 0 : i32
    %2 = arith.cmpi ne, %1, %c0_i32_0 : i32
    scf.if %2 {
      %c0_187 = arith.constant 0 : index
      %c0_188 = arith.constant 0 : index
      %c0_189 = arith.constant 0 : index
      %428 = vector.load %arg2[%c0_187, %c0_188, %c0_189] : memref<2x56x64xf32, #tpu.memory_space<vmem>>, vector<2x56x64xf32>
      %c0_190 = arith.constant 0 : index
      %c0_191 = arith.constant 0 : index
      %c0_192 = arith.constant 0 : index
      %429 = vector.load %arg26[%c0_190, %c0_191, %c0_192] : memref<2x56x64xf32, #tpu.memory_space<vmem>>, vector<2x56x64xf32>
      tpu.vector_store %arg26[%c0_190, %c0_191, %c0_192], %428 {strides = array<i32>} : memref<2x56x64xf32, #tpu.memory_space<vmem>>, vector<2x56x64xf32>,
    } else {
    }
    %c0 = arith.constant 0 : index
    %c0_1 = arith.constant 0 : index
    %c0_2 = arith.constant 0 : index
    %3 = vector.load %arg26[%c0, %c0_1, %c0_2] : memref<2x56x64xf32, #tpu.memory_space<vmem>>, vector<2x56x64xf32>
    %4 = vector.shape_cast %3 : vector<2x56x64xf32> to vector<112x64xf32>
    %5 = arith.truncf %4 : vector<112x64xf32> to vector<112x64xbf16>
    %c0_3 = arith.constant 0 : index
    %c0_4 = arith.constant 0 : index
    %c0_5 = arith.constant 0 : index
    %6 = vector.load %arg3[%c0_3, %c0_4, %c0_5] : memref<2x1x56xf32, #tpu.memory_space<vmem>>, vector<2x1x56xf32>
    %c0_6 = arith.constant 0 : index
    %c0_7 = arith.constant 0 : index
    %c0_8 = arith.constant 0 : index
    %7 = vector.load %arg6[%c0_6, %c0_7, %c0_8] : memref<1x64x192xbf16, #tpu.memory_space<vmem>>, vector<1x64x192xbf16>
    %8 = vector.shape_cast %7 : vector<1x64x192xbf16> to vector<64x192xbf16>
    %cst = arith.constant dense<0.000000e+00> : vector<112x192xf32>
    %9 = tpu.matmul %5, %8, %cst {dimension_numbers = #tpu.dot_dimension_numbers<[1], [0], [0], [1], [0, 0, 1, 1], [], []>} : vector<112x64xbf16>, vector<64x192xbf16>, vector<112x192xf32> -> vector<112x192xf32>
    %c0_9 = arith.constant 0 : index
    %c0_10 = arith.constant 0 : index
    %c0_11 = arith.constant 0 : index
    %10 = vector.load %arg7[%c0_9, %c0_10, %c0_11] : memref<1x1x192xf32, #tpu.memory_space<vmem>>, vector<1x1x192xf32>
    %11 = vector.shape_cast %10 : vector<1x1x192xf32> to vector<1x192xf32>
    %12 = vector.broadcast %11 : vector<1x192xf32> to vector<112x192xf32>
    %13 = arith.addf %9, %12 : vector<112x192xf32>
    %14 = vector.shape_cast %13 : vector<112x192xf32> to vector<2x56x192xf32>
    %cst_12 = arith.constant 0.000000e+00 : f32
    %15 = vector.broadcast %cst_12 : f32 to vector<112x64xf32>
    %16 = vector.extract_strided_slice %14 {offsets = [0, 0, 0], sizes = [2, 56, 16], strides = [1, 1, 1]} : vector<2x56x192xf32> to vector<2x56x16xf32>
    %17 = vector.extract_strided_slice %14 {offsets = [0, 0, 64], sizes = [2, 56, 16], strides = [1, 1, 1]} : vector<2x56x192xf32> to vector<2x56x16xf32>
    %18 = vector.extract_strided_slice %14 {offsets = [0, 0, 128], sizes = [2, 56, 16], strides = [1, 1, 1]} : vector<2x56x192xf32> to vector<2x56x16xf32>
    %19 = arith.truncf %16 : vector<2x56x16xf32> to vector<2x56x16xbf16>
    %20 = arith.truncf %17 : vector<2x56x16xf32> to vector<2x56x16xbf16>
    "tpu.trace_start"() <{level = 10 : i32, message = "bqd,bkd->bqk"}> : () -> ()
    %cst_13 = arith.constant dense<0.000000e+00> : vector<2x56x56xf32>
    %21 = tpu.matmul %19, %20, %cst_13 {dimension_numbers = #tpu.dot_dimension_numbers<[2], [2], [1], [1], [0, 0, 0, 1, 1, 1], [0], [0]>} : vector<2x56x16xbf16>, vector<2x56x16xbf16>, vector<2x56x56xf32> -> vector<2x56x56xf32>
    "tpu.trace_stop"() : () -> ()
    %c0_14 = arith.constant 0 : index
    %c0_15 = arith.constant 0 : index
    %c0_16 = arith.constant 0 : index
    %22 = vector.load %arg4[%c0_14, %c0_15, %c0_16] : memref<4x56x56xf32, #tpu.memory_space<vmem>>, vector<1x56x56xf32>
    %23 = vector.shape_cast %22 : vector<1x56x56xf32> to vector<56x56xf32>
    %24 = vector.shape_cast %23 : vector<56x56xf32> to vector<1x56x56xf32>
    %25 = vector.broadcast %24 : vector<1x56x56xf32> to vector<2x56x56xf32>
    %26 = arith.addf %21, %25 : vector<2x56x56xf32>
    %27 = vector.broadcast %6 : vector<2x1x56xf32> to vector<2x56x56xf32>
    %28 = arith.addf %26, %27 : vector<2x56x56xf32>
    %cst_17 = arith.constant dense<0xFF800000> : vector<2x56xf32>
    %29 = vector.multi_reduction <maximumf>, %28, %cst_17 [2] : vector<2x56x56xf32> to vector<2x56xf32>
    %30 = vector.shape_cast %29 : vector<2x56xf32> to vector<2x56x1xf32>
    %31 = vector.broadcast %30 : vector<2x56x1xf32> to vector<2x56x56xf32>
    %32 = arith.subf %28, %31 : vector<2x56x56xf32>
    %33 = math.exp %32 : vector<2x56x56xf32>
    %cst_18 = arith.constant dense<0.000000e+00> : vector<2x56xf32>
    %34 = vector.multi_reduction <add>, %33, %cst_18 [2] : vector<2x56x56xf32> to vector<2x56xf32>
    %35 = vector.shape_cast %34 : vector<2x56xf32> to vector<2x56x1xf32>
    %36 = tpu.reciprocal %35 {approx = true} : vector<2x56x1xf32> -> vector<2x56x1xf32>
    %37 = vector.broadcast %36 : vector<2x56x1xf32> to vector<2x56x56xf32>
    %38 = arith.mulf %33, %37 : vector<2x56x56xf32>
    %39 = arith.truncf %38 : vector<2x56x56xf32> to vector<2x56x56xbf16>
    %40 = arith.truncf %18 : vector<2x56x16xf32> to vector<2x56x16xbf16>
    "tpu.trace_start"() <{level = 10 : i32, message = "bqk,bkd->bqd"}> : () -> ()
    %cst_19 = arith.constant dense<0.000000e+00> : vector<2x56x16xf32>
    %41 = tpu.matmul %39, %40, %cst_19 {dimension_numbers = #tpu.dot_dimension_numbers<[2], [1], [1], [2], [0, 0, 0, 1, 1, 2], [0], [0]>} : vector<2x56x56xbf16>, vector<2x56x16xbf16>, vector<2x56x16xf32> -> vector<2x56x16xf32>
    "tpu.trace_stop"() : () -> ()
    %42 = vector.shape_cast %41 : vector<2x56x16xf32> to vector<112x16xf32>
    %43 = arith.truncf %42 : vector<112x16xf32> to vector<112x16xbf16>
    %c0_20 = arith.constant 0 : index
    %c0_21 = arith.constant 0 : index
    %c0_22 = arith.constant 0 : index
    %c0_23 = arith.constant 0 : index
    %44 = vector.load %arg8[%c0_20, %c0_21, %c0_22, %c0_23] : memref<1x4x16x64xbf16, #tpu.memory_space<vmem>>, vector<1x1x16x64xbf16>
    %45 = vector.shape_cast %44 : vector<1x1x16x64xbf16> to vector<16x64xbf16>
    %cst_24 = arith.constant dense<0.000000e+00> : vector<112x64xf32>
    %46 = tpu.matmul %43, %45, %cst_24 {dimension_numbers = #tpu.dot_dimension_numbers<[1], [0], [0], [1], [0, 0, 1, 1], [], []>} : vector<112x16xbf16>, vector<16x64xbf16>, vector<112x64xf32> -> vector<112x64xf32>
    %47 = arith.addf %15, %46 : vector<112x64xf32>
    %48 = vector.extract_strided_slice %14 {offsets = [0, 0, 16], sizes = [2, 56, 16], strides = [1, 1, 1]} : vector<2x56x192xf32> to vector<2x56x16xf32>
    %49 = vector.extract_strided_slice %14 {offsets = [0, 0, 80], sizes = [2, 56, 16], strides = [1, 1, 1]} : vector<2x56x192xf32> to vector<2x56x16xf32>
    %50 = vector.extract_strided_slice %14 {offsets = [0, 0, 144], sizes = [2, 56, 16], strides = [1, 1, 1]} : vector<2x56x192xf32> to vector<2x56x16xf32>
    %51 = arith.truncf %48 : vector<2x56x16xf32> to vector<2x56x16xbf16>
    %52 = arith.truncf %49 : vector<2x56x16xf32> to vector<2x56x16xbf16>
    "tpu.trace_start"() <{level = 10 : i32, message = "bqd,bkd->bqk"}> : () -> ()
    %cst_25 = arith.constant dense<0.000000e+00> : vector<2x56x56xf32>
    %53 = tpu.matmul %51, %52, %cst_25 {dimension_numbers = #tpu.dot_dimension_numbers<[2], [2], [1], [1], [0, 0, 0, 1, 1, 1], [0], [0]>} : vector<2x56x16xbf16>, vector<2x56x16xbf16>, vector<2x56x56xf32> -> vector<2x56x56xf32>
    "tpu.trace_stop"() : () -> ()
    %c1 = arith.constant 1 : index
    %c0_26 = arith.constant 0 : index
    %c0_27 = arith.constant 0 : index
    %54 = vector.load %arg4[%c1, %c0_26, %c0_27] : memref<4x56x56xf32, #tpu.memory_space<vmem>>, vector<1x56x56xf32>
    %55 = vector.shape_cast %54 : vector<1x56x56xf32> to vector<56x56xf32>
    %56 = vector.shape_cast %55 : vector<56x56xf32> to vector<1x56x56xf32>
    %57 = vector.broadcast %56 : vector<1x56x56xf32> to vector<2x56x56xf32>
    %58 = arith.addf %53, %57 : vector<2x56x56xf32>
    %59 = vector.broadcast %6 : vector<2x1x56xf32> to vector<2x56x56xf32>
    %60 = arith.addf %58, %59 : vector<2x56x56xf32>
    %cst_28 = arith.constant dense<0xFF800000> : vector<2x56xf32>
    %61 = vector.multi_reduction <maximumf>, %60, %cst_28 [2] : vector<2x56x56xf32> to vector<2x56xf32>
    %62 = vector.shape_cast %61 : vector<2x56xf32> to vector<2x56x1xf32>
    %63 = vector.broadcast %62 : vector<2x56x1xf32> to vector<2x56x56xf32>
    %64 = arith.subf %60, %63 : vector<2x56x56xf32>
    %65 = math.exp %64 : vector<2x56x56xf32>
    %cst_29 = arith.constant dense<0.000000e+00> : vector<2x56xf32>
    %66 = vector.multi_reduction <add>, %65, %cst_29 [2] : vector<2x56x56xf32> to vector<2x56xf32>
    %67 = vector.shape_cast %66 : vector<2x56xf32> to vector<2x56x1xf32>
    %68 = tpu.reciprocal %67 {approx = true} : vector<2x56x1xf32> -> vector<2x56x1xf32>
    %69 = vector.broadcast %68 : vector<2x56x1xf32> to vector<2x56x56xf32>
    %70 = arith.mulf %65, %69 : vector<2x56x56xf32>
    %71 = arith.truncf %70 : vector<2x56x56xf32> to vector<2x56x56xbf16>
    %72 = arith.truncf %50 : vector<2x56x16xf32> to vector<2x56x16xbf16>
    "tpu.trace_start"() <{level = 10 : i32, message = "bqk,bkd->bqd"}> : () -> ()
    %cst_30 = arith.constant dense<0.000000e+00> : vector<2x56x16xf32>
    %73 = tpu.matmul %71, %72, %cst_30 {dimension_numbers = #tpu.dot_dimension_numbers<[2], [1], [1], [2], [0, 0, 0, 1, 1, 2], [0], [0]>} : vector<2x56x56xbf16>, vector<2x56x16xbf16>, vector<2x56x16xf32> -> vector<2x56x16xf32>
    "tpu.trace_stop"() : () -> ()
    %74 = vector.shape_cast %73 : vector<2x56x16xf32> to vector<112x16xf32>
    %75 = arith.truncf %74 : vector<112x16xf32> to vector<112x16xbf16>
    %c0_31 = arith.constant 0 : index
    %c1_32 = arith.constant 1 : index
    %c0_33 = arith.constant 0 : index
    %c0_34 = arith.constant 0 : index
    %76 = vector.load %arg8[%c0_31, %c1_32, %c0_33, %c0_34] : memref<1x4x16x64xbf16, #tpu.memory_space<vmem>>, vector<1x1x16x64xbf16>
    %77 = vector.shape_cast %76 : vector<1x1x16x64xbf16> to vector<16x64xbf16>
    %cst_35 = arith.constant dense<0.000000e+00> : vector<112x64xf32>
    %78 = tpu.matmul %75, %77, %cst_35 {dimension_numbers = #tpu.dot_dimension_numbers<[1], [0], [0], [1], [0, 0, 1, 1], [], []>} : vector<112x16xbf16>, vector<16x64xbf16>, vector<112x64xf32> -> vector<112x64xf32>
    %79 = arith.addf %47, %78 : vector<112x64xf32>
    %80 = vector.extract_strided_slice %14 {offsets = [0, 0, 32], sizes = [2, 56, 16], strides = [1, 1, 1]} : vector<2x56x192xf32> to vector<2x56x16xf32>
    %81 = vector.extract_strided_slice %14 {offsets = [0, 0, 96], sizes = [2, 56, 16], strides = [1, 1, 1]} : vector<2x56x192xf32> to vector<2x56x16xf32>
    %82 = vector.extract_strided_slice %14 {offsets = [0, 0, 160], sizes = [2, 56, 16], strides = [1, 1, 1]} : vector<2x56x192xf32> to vector<2x56x16xf32>
    %83 = arith.truncf %80 : vector<2x56x16xf32> to vector<2x56x16xbf16>
    %84 = arith.truncf %81 : vector<2x56x16xf32> to vector<2x56x16xbf16>
    "tpu.trace_start"() <{level = 10 : i32, message = "bqd,bkd->bqk"}> : () -> ()
    %cst_36 = arith.constant dense<0.000000e+00> : vector<2x56x56xf32>
    %85 = tpu.matmul %83, %84, %cst_36 {dimension_numbers = #tpu.dot_dimension_numbers<[2], [2], [1], [1], [0, 0, 0, 1, 1, 1], [0], [0]>} : vector<2x56x16xbf16>, vector<2x56x16xbf16>, vector<2x56x56xf32> -> vector<2x56x56xf32>
    "tpu.trace_stop"() : () -> ()
    %c2 = arith.constant 2 : index
    %c0_37 = arith.constant 0 : index
    %c0_38 = arith.constant 0 : index
    %86 = vector.load %arg4[%c2, %c0_37, %c0_38] : memref<4x56x56xf32, #tpu.memory_space<vmem>>, vector<1x56x56xf32>
    %87 = vector.shape_cast %86 : vector<1x56x56xf32> to vector<56x56xf32>
    %88 = vector.shape_cast %87 : vector<56x56xf32> to vector<1x56x56xf32>
    %89 = vector.broadcast %88 : vector<1x56x56xf32> to vector<2x56x56xf32>
    %90 = arith.addf %85, %89 : vector<2x56x56xf32>
    %91 = vector.broadcast %6 : vector<2x1x56xf32> to vector<2x56x56xf32>
    %92 = arith.addf %90, %91 : vector<2x56x56xf32>
    %cst_39 = arith.constant dense<0xFF800000> : vector<2x56xf32>
    %93 = vector.multi_reduction <maximumf>, %92, %cst_39 [2] : vector<2x56x56xf32> to vector<2x56xf32>
    %94 = vector.shape_cast %93 : vector<2x56xf32> to vector<2x56x1xf32>
    %95 = vector.broadcast %94 : vector<2x56x1xf32> to vector<2x56x56xf32>
    %96 = arith.subf %92, %95 : vector<2x56x56xf32>
    %97 = math.exp %96 : vector<2x56x56xf32>
    %cst_40 = arith.constant dense<0.000000e+00> : vector<2x56xf32>
    %98 = vector.multi_reduction <add>, %97, %cst_40 [2] : vector<2x56x56xf32> to vector<2x56xf32>
    %99 = vector.shape_cast %98 : vector<2x56xf32> to vector<2x56x1xf32>
    %100 = tpu.reciprocal %99 {approx = true} : vector<2x56x1xf32> -> vector<2x56x1xf32>
    %101 = vector.broadcast %100 : vector<2x56x1xf32> to vector<2x56x56xf32>
    %102 = arith.mulf %97, %101 : vector<2x56x56xf32>
    %103 = arith.truncf %102 : vector<2x56x56xf32> to vector<2x56x56xbf16>
    %104 = arith.truncf %82 : vector<2x56x16xf32> to vector<2x56x16xbf16>
    "tpu.trace_start"() <{level = 10 : i32, message = "bqk,bkd->bqd"}> : () -> ()
    %cst_41 = arith.constant dense<0.000000e+00> : vector<2x56x16xf32>
    %105 = tpu.matmul %103, %104, %cst_41 {dimension_numbers = #tpu.dot_dimension_numbers<[2], [1], [1], [2], [0, 0, 0, 1, 1, 2], [0], [0]>} : vector<2x56x56xbf16>, vector<2x56x16xbf16>, vector<2x56x16xf32> -> vector<2x56x16xf32>
    "tpu.trace_stop"() : () -> ()
    %106 = vector.shape_cast %105 : vector<2x56x16xf32> to vector<112x16xf32>
    %107 = arith.truncf %106 : vector<112x16xf32> to vector<112x16xbf16>
    %c0_42 = arith.constant 0 : index
    %c2_43 = arith.constant 2 : index
    %c0_44 = arith.constant 0 : index
    %c0_45 = arith.constant 0 : index
    %108 = vector.load %arg8[%c0_42, %c2_43, %c0_44, %c0_45] : memref<1x4x16x64xbf16, #tpu.memory_space<vmem>>, vector<1x1x16x64xbf16>
    %109 = vector.shape_cast %108 : vector<1x1x16x64xbf16> to vector<16x64xbf16>
    %cst_46 = arith.constant dense<0.000000e+00> : vector<112x64xf32>
    %110 = tpu.matmul %107, %109, %cst_46 {dimension_numbers = #tpu.dot_dimension_numbers<[1], [0], [0], [1], [0, 0, 1, 1], [], []>} : vector<112x16xbf16>, vector<16x64xbf16>, vector<112x64xf32> -> vector<112x64xf32>
    %111 = arith.addf %79, %110 : vector<112x64xf32>
    %112 = vector.extract_strided_slice %14 {offsets = [0, 0, 48], sizes = [2, 56, 16], strides = [1, 1, 1]} : vector<2x56x192xf32> to vector<2x56x16xf32>
    %113 = vector.extract_strided_slice %14 {offsets = [0, 0, 112], sizes = [2, 56, 16], strides = [1, 1, 1]} : vector<2x56x192xf32> to vector<2x56x16xf32>
    %114 = vector.extract_strided_slice %14 {offsets = [0, 0, 176], sizes = [2, 56, 16], strides = [1, 1, 1]} : vector<2x56x192xf32> to vector<2x56x16xf32>
    %115 = arith.truncf %112 : vector<2x56x16xf32> to vector<2x56x16xbf16>
    %116 = arith.truncf %113 : vector<2x56x16xf32> to vector<2x56x16xbf16>
    "tpu.trace_start"() <{level = 10 : i32, message = "bqd,bkd->bqk"}> : () -> ()
    %cst_47 = arith.constant dense<0.000000e+00> : vector<2x56x56xf32>
    %117 = tpu.matmul %115, %116, %cst_47 {dimension_numbers = #tpu.dot_dimension_numbers<[2], [2], [1], [1], [0, 0, 0, 1, 1, 1], [0], [0]>} : vector<2x56x16xbf16>, vector<2x56x16xbf16>, vector<2x56x56xf32> -> vector<2x56x56xf32>
    "tpu.trace_stop"() : () -> ()
    %c3 = arith.constant 3 : index
    %c0_48 = arith.constant 0 : index
    %c0_49 = arith.constant 0 : index
    %118 = vector.load %arg4[%c3, %c0_48, %c0_49] : memref<4x56x56xf32, #tpu.memory_space<vmem>>, vector<1x56x56xf32>
    %119 = vector.shape_cast %118 : vector<1x56x56xf32> to vector<56x56xf32>
    %120 = vector.shape_cast %119 : vector<56x56xf32> to vector<1x56x56xf32>
    %121 = vector.broadcast %120 : vector<1x56x56xf32> to vector<2x56x56xf32>
    %122 = arith.addf %117, %121 : vector<2x56x56xf32>
    %123 = vector.broadcast %6 : vector<2x1x56xf32> to vector<2x56x56xf32>
    %124 = arith.addf %122, %123 : vector<2x56x56xf32>
    %cst_50 = arith.constant dense<0xFF800000> : vector<2x56xf32>
    %125 = vector.multi_reduction <maximumf>, %124, %cst_50 [2] : vector<2x56x56xf32> to vector<2x56xf32>
    %126 = vector.shape_cast %125 : vector<2x56xf32> to vector<2x56x1xf32>
    %127 = vector.broadcast %126 : vector<2x56x1xf32> to vector<2x56x56xf32>
    %128 = arith.subf %124, %127 : vector<2x56x56xf32>
    %129 = math.exp %128 : vector<2x56x56xf32>
    %cst_51 = arith.constant dense<0.000000e+00> : vector<2x56xf32>
    %130 = vector.multi_reduction <add>, %129, %cst_51 [2] : vector<2x56x56xf32> to vector<2x56xf32>
    %131 = vector.shape_cast %130 : vector<2x56xf32> to vector<2x56x1xf32>
    %132 = tpu.reciprocal %131 {approx = true} : vector<2x56x1xf32> -> vector<2x56x1xf32>
    %133 = vector.broadcast %132 : vector<2x56x1xf32> to vector<2x56x56xf32>
    %134 = arith.mulf %129, %133 : vector<2x56x56xf32>
    %135 = arith.truncf %134 : vector<2x56x56xf32> to vector<2x56x56xbf16>
    %136 = arith.truncf %114 : vector<2x56x16xf32> to vector<2x56x16xbf16>
    "tpu.trace_start"() <{level = 10 : i32, message = "bqk,bkd->bqd"}> : () -> ()
    %cst_52 = arith.constant dense<0.000000e+00> : vector<2x56x16xf32>
    %137 = tpu.matmul %135, %136, %cst_52 {dimension_numbers = #tpu.dot_dimension_numbers<[2], [1], [1], [2], [0, 0, 0, 1, 1, 2], [0], [0]>} : vector<2x56x56xbf16>, vector<2x56x16xbf16>, vector<2x56x16xf32> -> vector<2x56x16xf32>
    "tpu.trace_stop"() : () -> ()
    %138 = vector.shape_cast %137 : vector<2x56x16xf32> to vector<112x16xf32>
    %139 = arith.truncf %138 : vector<112x16xf32> to vector<112x16xbf16>
    %c0_53 = arith.constant 0 : index
    %c3_54 = arith.constant 3 : index
    %c0_55 = arith.constant 0 : index
    %c0_56 = arith.constant 0 : index
    %140 = vector.load %arg8[%c0_53, %c3_54, %c0_55, %c0_56] : memref<1x4x16x64xbf16, #tpu.memory_space<vmem>>, vector<1x1x16x64xbf16>
    %141 = vector.shape_cast %140 : vector<1x1x16x64xbf16> to vector<16x64xbf16>
    %cst_57 = arith.constant dense<0.000000e+00> : vector<112x64xf32>
    %142 = tpu.matmul %139, %141, %cst_57 {dimension_numbers = #tpu.dot_dimension_numbers<[1], [0], [0], [1], [0, 0, 1, 1], [], []>} : vector<112x16xbf16>, vector<16x64xbf16>, vector<112x64xf32> -> vector<112x64xf32>
    %143 = arith.addf %111, %142 : vector<112x64xf32>
    %c0_58 = arith.constant 0 : index
    %c0_59 = arith.constant 0 : index
    %c0_60 = arith.constant 0 : index
    %144 = vector.load %arg9[%c0_58, %c0_59, %c0_60] : memref<1x1x64xf32, #tpu.memory_space<vmem>>, vector<1x1x64xf32>
    %145 = vector.shape_cast %144 : vector<1x1x64xf32> to vector<1x64xf32>
    %146 = vector.broadcast %145 : vector<1x64xf32> to vector<112x64xf32>
    %147 = arith.addf %143, %146 : vector<112x64xf32>
    %148 = arith.addf %4, %147 : vector<112x64xf32>
    %cst_61 = arith.constant dense<0.000000e+00> : vector<112xf32>
    %149 = vector.multi_reduction <add>, %148, %cst_61 [1] : vector<112x64xf32> to vector<112xf32>
    %150 = vector.shape_cast %149 : vector<112xf32> to vector<112x1xf32>
    %cst_62 = arith.constant 1.562500e-02 : f32
    %151 = vector.broadcast %cst_62 : f32 to vector<112x1xf32>
    %152 = arith.mulf %150, %151 : vector<112x1xf32>
    %153 = arith.mulf %148, %148 : vector<112x64xf32>
    %cst_63 = arith.constant dense<0.000000e+00> : vector<112xf32>
    %154 = vector.multi_reduction <add>, %153, %cst_63 [1] : vector<112x64xf32> to vector<112xf32>
    %155 = vector.shape_cast %154 : vector<112xf32> to vector<112x1xf32>
    %cst_64 = arith.constant 1.562500e-02 : f32
    %156 = vector.broadcast %cst_64 : f32 to vector<112x1xf32>
    %157 = arith.mulf %155, %156 : vector<112x1xf32>
    %158 = arith.mulf %152, %152 : vector<112x1xf32>
    %159 = arith.subf %157, %158 : vector<112x1xf32>
    %cst_65 = arith.constant 0.000000e+00 : f32
    %160 = vector.broadcast %cst_65 : f32 to vector<112x1xf32>
    %161 = arith.maximumf %159, %160 : vector<112x1xf32>
    %162 = vector.broadcast %152 : vector<112x1xf32> to vector<112x64xf32>
    %163 = arith.subf %148, %162 : vector<112x64xf32>
    %cst_66 = arith.constant 9.99999974E-6 : f32
    %164 = vector.broadcast %cst_66 : f32 to vector<112x1xf32>
    %165 = arith.addf %161, %164 : vector<112x1xf32>
    %166 = math.rsqrt %165 : vector<112x1xf32>
    %167 = vector.broadcast %166 : vector<112x1xf32> to vector<112x64xf32>
    %168 = arith.mulf %163, %167 : vector<112x64xf32>
    %c0_67 = arith.constant 0 : index
    %c0_68 = arith.constant 0 : index
    %c0_69 = arith.constant 0 : index
    %169 = vector.load %arg10[%c0_67, %c0_68, %c0_69] : memref<1x1x64xf32, #tpu.memory_space<vmem>>, vector<1x1x64xf32>
    %170 = vector.shape_cast %169 : vector<1x1x64xf32> to vector<1x64xf32>
    %171 = vector.broadcast %170 : vector<1x64xf32> to vector<112x64xf32>
    %172 = arith.mulf %168, %171 : vector<112x64xf32>
    %c0_70 = arith.constant 0 : index
    %c0_71 = arith.constant 0 : index
    %c0_72 = arith.constant 0 : index
    %173 = vector.load %arg11[%c0_70, %c0_71, %c0_72] : memref<1x1x64xf32, #tpu.memory_space<vmem>>, vector<1x1x64xf32>
    %174 = vector.shape_cast %173 : vector<1x1x64xf32> to vector<1x64xf32>
    %175 = vector.broadcast %174 : vector<1x64xf32> to vector<112x64xf32>
    %176 = arith.addf %172, %175 : vector<112x64xf32>
    %c0_73 = arith.constant 0 : index
    %c0_74 = arith.constant 0 : index
    %c0_75 = arith.constant 0 : index
    %177 = vector.load %arg12[%c0_73, %c0_74, %c0_75] : memref<1x64x192xbf16, #tpu.memory_space<vmem>>, vector<1x64x192xbf16>
    %178 = vector.shape_cast %177 : vector<1x64x192xbf16> to vector<64x192xbf16>
    %cst_76 = arith.constant dense<0.000000e+00> : vector<112x192xf32>
    %179 = tpu.matmul %5, %178, %cst_76 {dimension_numbers = #tpu.dot_dimension_numbers<[1], [0], [0], [1], [0, 0, 1, 1], [], []>} : vector<112x64xbf16>, vector<64x192xbf16>, vector<112x192xf32> -> vector<112x192xf32>
    %c0_77 = arith.constant 0 : index
    %c0_78 = arith.constant 0 : index
    %c0_79 = arith.constant 0 : index
    %180 = vector.load %arg13[%c0_77, %c0_78, %c0_79] : memref<1x1x192xf32, #tpu.memory_space<vmem>>, vector<1x1x192xf32>
    %181 = vector.shape_cast %180 : vector<1x1x192xf32> to vector<1x192xf32>
    %182 = vector.broadcast %181 : vector<1x192xf32> to vector<112x192xf32>
    %183 = arith.addf %179, %182 : vector<112x192xf32>
    %184 = vector.shape_cast %183 : vector<112x192xf32> to vector<2x56x192xf32>
    %cst_80 = arith.constant 0.000000e+00 : f32
    %185 = vector.broadcast %cst_80 : f32 to vector<112x64xf32>
    %186 = vector.extract_strided_slice %184 {offsets = [0, 0, 0], sizes = [2, 56, 16], strides = [1, 1, 1]} : vector<2x56x192xf32> to vector<2x56x16xf32>
    %187 = vector.extract_strided_slice %184 {offsets = [0, 0, 64], sizes = [2, 56, 16], strides = [1, 1, 1]} : vector<2x56x192xf32> to vector<2x56x16xf32>
    %188 = vector.extract_strided_slice %184 {offsets = [0, 0, 128], sizes = [2, 56, 16], strides = [1, 1, 1]} : vector<2x56x192xf32> to vector<2x56x16xf32>
    %189 = arith.truncf %186 : vector<2x56x16xf32> to vector<2x56x16xbf16>
    %190 = arith.truncf %187 : vector<2x56x16xf32> to vector<2x56x16xbf16>
    "tpu.trace_start"() <{level = 10 : i32, message = "bqd,bkd->bqk"}> : () -> ()
    %cst_81 = arith.constant dense<0.000000e+00> : vector<2x56x56xf32>
    %191 = tpu.matmul %189, %190, %cst_81 {dimension_numbers = #tpu.dot_dimension_numbers<[2], [2], [1], [1], [0, 0, 0, 1, 1, 1], [0], [0]>} : vector<2x56x16xbf16>, vector<2x56x16xbf16>, vector<2x56x56xf32> -> vector<2x56x56xf32>
    "tpu.trace_stop"() : () -> ()
    %c0_82 = arith.constant 0 : index
    %c0_83 = arith.constant 0 : index
    %c0_84 = arith.constant 0 : index
    %192 = vector.load %arg5[%c0_82, %c0_83, %c0_84] : memref<4x56x56xf32, #tpu.memory_space<vmem>>, vector<1x56x56xf32>
    %193 = vector.shape_cast %192 : vector<1x56x56xf32> to vector<56x56xf32>
    %194 = vector.shape_cast %193 : vector<56x56xf32> to vector<1x56x56xf32>
    %195 = vector.broadcast %194 : vector<1x56x56xf32> to vector<2x56x56xf32>
    %196 = arith.addf %191, %195 : vector<2x56x56xf32>
    %197 = vector.broadcast %6 : vector<2x1x56xf32> to vector<2x56x56xf32>
    %198 = arith.addf %196, %197 : vector<2x56x56xf32>
    %cst_85 = arith.constant dense<0xFF800000> : vector<2x56xf32>
    %199 = vector.multi_reduction <maximumf>, %198, %cst_85 [2] : vector<2x56x56xf32> to vector<2x56xf32>
    %200 = vector.shape_cast %199 : vector<2x56xf32> to vector<2x56x1xf32>
    %201 = vector.broadcast %200 : vector<2x56x1xf32> to vector<2x56x56xf32>
    %202 = arith.subf %198, %201 : vector<2x56x56xf32>
    %203 = math.exp %202 : vector<2x56x56xf32>
    %cst_86 = arith.constant dense<0.000000e+00> : vector<2x56xf32>
    %204 = vector.multi_reduction <add>, %203, %cst_86 [2] : vector<2x56x56xf32> to vector<2x56xf32>
    %205 = vector.shape_cast %204 : vector<2x56xf32> to vector<2x56x1xf32>
    %206 = tpu.reciprocal %205 {approx = true} : vector<2x56x1xf32> -> vector<2x56x1xf32>
    %207 = vector.broadcast %206 : vector<2x56x1xf32> to vector<2x56x56xf32>
    %208 = arith.mulf %203, %207 : vector<2x56x56xf32>
    %209 = arith.truncf %208 : vector<2x56x56xf32> to vector<2x56x56xbf16>
    %210 = arith.truncf %188 : vector<2x56x16xf32> to vector<2x56x16xbf16>
    "tpu.trace_start"() <{level = 10 : i32, message = "bqk,bkd->bqd"}> : () -> ()
    %cst_87 = arith.constant dense<0.000000e+00> : vector<2x56x16xf32>
    %211 = tpu.matmul %209, %210, %cst_87 {dimension_numbers = #tpu.dot_dimension_numbers<[2], [1], [1], [2], [0, 0, 0, 1, 1, 2], [0], [0]>} : vector<2x56x56xbf16>, vector<2x56x16xbf16>, vector<2x56x16xf32> -> vector<2x56x16xf32>
    "tpu.trace_stop"() : () -> ()
    %212 = vector.shape_cast %211 : vector<2x56x16xf32> to vector<112x16xf32>
    %213 = arith.truncf %212 : vector<112x16xf32> to vector<112x16xbf16>
    %c0_88 = arith.constant 0 : index
    %c0_89 = arith.constant 0 : index
    %c0_90 = arith.constant 0 : index
    %c0_91 = arith.constant 0 : index
    %214 = vector.load %arg14[%c0_88, %c0_89, %c0_90, %c0_91] : memref<1x4x16x64xbf16, #tpu.memory_space<vmem>>, vector<1x1x16x64xbf16>
    %215 = vector.shape_cast %214 : vector<1x1x16x64xbf16> to vector<16x64xbf16>
    %cst_92 = arith.constant dense<0.000000e+00> : vector<112x64xf32>
    %216 = tpu.matmul %213, %215, %cst_92 {dimension_numbers = #tpu.dot_dimension_numbers<[1], [0], [0], [1], [0, 0, 1, 1], [], []>} : vector<112x16xbf16>, vector<16x64xbf16>, vector<112x64xf32> -> vector<112x64xf32>
    %217 = arith.addf %185, %216 : vector<112x64xf32>
    %218 = vector.extract_strided_slice %184 {offsets = [0, 0, 16], sizes = [2, 56, 16], strides = [1, 1, 1]} : vector<2x56x192xf32> to vector<2x56x16xf32>
    %219 = vector.extract_strided_slice %184 {offsets = [0, 0, 80], sizes = [2, 56, 16], strides = [1, 1, 1]} : vector<2x56x192xf32> to vector<2x56x16xf32>
    %220 = vector.extract_strided_slice %184 {offsets = [0, 0, 144], sizes = [2, 56, 16], strides = [1, 1, 1]} : vector<2x56x192xf32> to vector<2x56x16xf32>
    %221 = arith.truncf %218 : vector<2x56x16xf32> to vector<2x56x16xbf16>
    %222 = arith.truncf %219 : vector<2x56x16xf32> to vector<2x56x16xbf16>
    "tpu.trace_start"() <{level = 10 : i32, message = "bqd,bkd->bqk"}> : () -> ()
    %cst_93 = arith.constant dense<0.000000e+00> : vector<2x56x56xf32>
    %223 = tpu.matmul %221, %222, %cst_93 {dimension_numbers = #tpu.dot_dimension_numbers<[2], [2], [1], [1], [0, 0, 0, 1, 1, 1], [0], [0]>} : vector<2x56x16xbf16>, vector<2x56x16xbf16>, vector<2x56x56xf32> -> vector<2x56x56xf32>
    "tpu.trace_stop"() : () -> ()
    %c1_94 = arith.constant 1 : index
    %c0_95 = arith.constant 0 : index
    %c0_96 = arith.constant 0 : index
    %224 = vector.load %arg5[%c1_94, %c0_95, %c0_96] : memref<4x56x56xf32, #tpu.memory_space<vmem>>, vector<1x56x56xf32>
    %225 = vector.shape_cast %224 : vector<1x56x56xf32> to vector<56x56xf32>
    %226 = vector.shape_cast %225 : vector<56x56xf32> to vector<1x56x56xf32>
    %227 = vector.broadcast %226 : vector<1x56x56xf32> to vector<2x56x56xf32>
    %228 = arith.addf %223, %227 : vector<2x56x56xf32>
    %229 = vector.broadcast %6 : vector<2x1x56xf32> to vector<2x56x56xf32>
    %230 = arith.addf %228, %229 : vector<2x56x56xf32>
    %cst_97 = arith.constant dense<0xFF800000> : vector<2x56xf32>
    %231 = vector.multi_reduction <maximumf>, %230, %cst_97 [2] : vector<2x56x56xf32> to vector<2x56xf32>
    %232 = vector.shape_cast %231 : vector<2x56xf32> to vector<2x56x1xf32>
    %233 = vector.broadcast %232 : vector<2x56x1xf32> to vector<2x56x56xf32>
    %234 = arith.subf %230, %233 : vector<2x56x56xf32>
    %235 = math.exp %234 : vector<2x56x56xf32>
    %cst_98 = arith.constant dense<0.000000e+00> : vector<2x56xf32>
    %236 = vector.multi_reduction <add>, %235, %cst_98 [2] : vector<2x56x56xf32> to vector<2x56xf32>
    %237 = vector.shape_cast %236 : vector<2x56xf32> to vector<2x56x1xf32>
    %238 = tpu.reciprocal %237 {approx = true} : vector<2x56x1xf32> -> vector<2x56x1xf32>
    %239 = vector.broadcast %238 : vector<2x56x1xf32> to vector<2x56x56xf32>
    %240 = arith.mulf %235, %239 : vector<2x56x56xf32>
    %241 = arith.truncf %240 : vector<2x56x56xf32> to vector<2x56x56xbf16>
    %242 = arith.truncf %220 : vector<2x56x16xf32> to vector<2x56x16xbf16>
    "tpu.trace_start"() <{level = 10 : i32, message = "bqk,bkd->bqd"}> : () -> ()
    %cst_99 = arith.constant dense<0.000000e+00> : vector<2x56x16xf32>
    %243 = tpu.matmul %241, %242, %cst_99 {dimension_numbers = #tpu.dot_dimension_numbers<[2], [1], [1], [2], [0, 0, 0, 1, 1, 2], [0], [0]>} : vector<2x56x56xbf16>, vector<2x56x16xbf16>, vector<2x56x16xf32> -> vector<2x56x16xf32>
    "tpu.trace_stop"() : () -> ()
    %244 = vector.shape_cast %243 : vector<2x56x16xf32> to vector<112x16xf32>
    %245 = arith.truncf %244 : vector<112x16xf32> to vector<112x16xbf16>
    %c0_100 = arith.constant 0 : index
    %c1_101 = arith.constant 1 : index
    %c0_102 = arith.constant 0 : index
    %c0_103 = arith.constant 0 : index
    %246 = vector.load %arg14[%c0_100, %c1_101, %c0_102, %c0_103] : memref<1x4x16x64xbf16, #tpu.memory_space<vmem>>, vector<1x1x16x64xbf16>
    %247 = vector.shape_cast %246 : vector<1x1x16x64xbf16> to vector<16x64xbf16>
    %cst_104 = arith.constant dense<0.000000e+00> : vector<112x64xf32>
    %248 = tpu.matmul %245, %247, %cst_104 {dimension_numbers = #tpu.dot_dimension_numbers<[1], [0], [0], [1], [0, 0, 1, 1], [], []>} : vector<112x16xbf16>, vector<16x64xbf16>, vector<112x64xf32> -> vector<112x64xf32>
    %249 = arith.addf %217, %248 : vector<112x64xf32>
    %250 = vector.extract_strided_slice %184 {offsets = [0, 0, 32], sizes = [2, 56, 16], strides = [1, 1, 1]} : vector<2x56x192xf32> to vector<2x56x16xf32>
    %251 = vector.extract_strided_slice %184 {offsets = [0, 0, 96], sizes = [2, 56, 16], strides = [1, 1, 1]} : vector<2x56x192xf32> to vector<2x56x16xf32>
    %252 = vector.extract_strided_slice %184 {offsets = [0, 0, 160], sizes = [2, 56, 16], strides = [1, 1, 1]} : vector<2x56x192xf32> to vector<2x56x16xf32>
    %253 = arith.truncf %250 : vector<2x56x16xf32> to vector<2x56x16xbf16>
    %254 = arith.truncf %251 : vector<2x56x16xf32> to vector<2x56x16xbf16>
    "tpu.trace_start"() <{level = 10 : i32, message = "bqd,bkd->bqk"}> : () -> ()
    %cst_105 = arith.constant dense<0.000000e+00> : vector<2x56x56xf32>
    %255 = tpu.matmul %253, %254, %cst_105 {dimension_numbers = #tpu.dot_dimension_numbers<[2], [2], [1], [1], [0, 0, 0, 1, 1, 1], [0], [0]>} : vector<2x56x16xbf16>, vector<2x56x16xbf16>, vector<2x56x56xf32> -> vector<2x56x56xf32>
    "tpu.trace_stop"() : () -> ()
    %c2_106 = arith.constant 2 : index
    %c0_107 = arith.constant 0 : index
    %c0_108 = arith.constant 0 : index
    %256 = vector.load %arg5[%c2_106, %c0_107, %c0_108] : memref<4x56x56xf32, #tpu.memory_space<vmem>>, vector<1x56x56xf32>
    %257 = vector.shape_cast %256 : vector<1x56x56xf32> to vector<56x56xf32>
    %258 = vector.shape_cast %257 : vector<56x56xf32> to vector<1x56x56xf32>
    %259 = vector.broadcast %258 : vector<1x56x56xf32> to vector<2x56x56xf32>
    %260 = arith.addf %255, %259 : vector<2x56x56xf32>
    %261 = vector.broadcast %6 : vector<2x1x56xf32> to vector<2x56x56xf32>
    %262 = arith.addf %260, %261 : vector<2x56x56xf32>
    %cst_109 = arith.constant dense<0xFF800000> : vector<2x56xf32>
    %263 = vector.multi_reduction <maximumf>, %262, %cst_109 [2] : vector<2x56x56xf32> to vector<2x56xf32>
    %264 = vector.shape_cast %263 : vector<2x56xf32> to vector<2x56x1xf32>
    %265 = vector.broadcast %264 : vector<2x56x1xf32> to vector<2x56x56xf32>
    %266 = arith.subf %262, %265 : vector<2x56x56xf32>
    %267 = math.exp %266 : vector<2x56x56xf32>
    %cst_110 = arith.constant dense<0.000000e+00> : vector<2x56xf32>
    %268 = vector.multi_reduction <add>, %267, %cst_110 [2] : vector<2x56x56xf32> to vector<2x56xf32>
    %269 = vector.shape_cast %268 : vector<2x56xf32> to vector<2x56x1xf32>
    %270 = tpu.reciprocal %269 {approx = true} : vector<2x56x1xf32> -> vector<2x56x1xf32>
    %271 = vector.broadcast %270 : vector<2x56x1xf32> to vector<2x56x56xf32>
    %272 = arith.mulf %267, %271 : vector<2x56x56xf32>
    %273 = arith.truncf %272 : vector<2x56x56xf32> to vector<2x56x56xbf16>
    %274 = arith.truncf %252 : vector<2x56x16xf32> to vector<2x56x16xbf16>
    "tpu.trace_start"() <{level = 10 : i32, message = "bqk,bkd->bqd"}> : () -> ()
    %cst_111 = arith.constant dense<0.000000e+00> : vector<2x56x16xf32>
    %275 = tpu.matmul %273, %274, %cst_111 {dimension_numbers = #tpu.dot_dimension_numbers<[2], [1], [1], [2], [0, 0, 0, 1, 1, 2], [0], [0]>} : vector<2x56x56xbf16>, vector<2x56x16xbf16>, vector<2x56x16xf32> -> vector<2x56x16xf32>
    "tpu.trace_stop"() : () -> ()
    %276 = vector.shape_cast %275 : vector<2x56x16xf32> to vector<112x16xf32>
    %277 = arith.truncf %276 : vector<112x16xf32> to vector<112x16xbf16>
    %c0_112 = arith.constant 0 : index
    %c2_113 = arith.constant 2 : index
    %c0_114 = arith.constant 0 : index
    %c0_115 = arith.constant 0 : index
    %278 = vector.load %arg14[%c0_112, %c2_113, %c0_114, %c0_115] : memref<1x4x16x64xbf16, #tpu.memory_space<vmem>>, vector<1x1x16x64xbf16>
    %279 = vector.shape_cast %278 : vector<1x1x16x64xbf16> to vector<16x64xbf16>
    %cst_116 = arith.constant dense<0.000000e+00> : vector<112x64xf32>
    %280 = tpu.matmul %277, %279, %cst_116 {dimension_numbers = #tpu.dot_dimension_numbers<[1], [0], [0], [1], [0, 0, 1, 1], [], []>} : vector<112x16xbf16>, vector<16x64xbf16>, vector<112x64xf32> -> vector<112x64xf32>
    %281 = arith.addf %249, %280 : vector<112x64xf32>
    %282 = vector.extract_strided_slice %184 {offsets = [0, 0, 48], sizes = [2, 56, 16], strides = [1, 1, 1]} : vector<2x56x192xf32> to vector<2x56x16xf32>
    %283 = vector.extract_strided_slice %184 {offsets = [0, 0, 112], sizes = [2, 56, 16], strides = [1, 1, 1]} : vector<2x56x192xf32> to vector<2x56x16xf32>
    %284 = vector.extract_strided_slice %184 {offsets = [0, 0, 176], sizes = [2, 56, 16], strides = [1, 1, 1]} : vector<2x56x192xf32> to vector<2x56x16xf32>
    %285 = arith.truncf %282 : vector<2x56x16xf32> to vector<2x56x16xbf16>
    %286 = arith.truncf %283 : vector<2x56x16xf32> to vector<2x56x16xbf16>
    "tpu.trace_start"() <{level = 10 : i32, message = "bqd,bkd->bqk"}> : () -> ()
    %cst_117 = arith.constant dense<0.000000e+00> : vector<2x56x56xf32>
    %287 = tpu.matmul %285, %286, %cst_117 {dimension_numbers = #tpu.dot_dimension_numbers<[2], [2], [1], [1], [0, 0, 0, 1, 1, 1], [0], [0]>} : vector<2x56x16xbf16>, vector<2x56x16xbf16>, vector<2x56x56xf32> -> vector<2x56x56xf32>
    "tpu.trace_stop"() : () -> ()
    %c3_118 = arith.constant 3 : index
    %c0_119 = arith.constant 0 : index
    %c0_120 = arith.constant 0 : index
    %288 = vector.load %arg5[%c3_118, %c0_119, %c0_120] : memref<4x56x56xf32, #tpu.memory_space<vmem>>, vector<1x56x56xf32>
    %289 = vector.shape_cast %288 : vector<1x56x56xf32> to vector<56x56xf32>
    %290 = vector.shape_cast %289 : vector<56x56xf32> to vector<1x56x56xf32>
    %291 = vector.broadcast %290 : vector<1x56x56xf32> to vector<2x56x56xf32>
    %292 = arith.addf %287, %291 : vector<2x56x56xf32>
    %293 = vector.broadcast %6 : vector<2x1x56xf32> to vector<2x56x56xf32>
    %294 = arith.addf %292, %293 : vector<2x56x56xf32>
    %cst_121 = arith.constant dense<0xFF800000> : vector<2x56xf32>
    %295 = vector.multi_reduction <maximumf>, %294, %cst_121 [2] : vector<2x56x56xf32> to vector<2x56xf32>
    %296 = vector.shape_cast %295 : vector<2x56xf32> to vector<2x56x1xf32>
    %297 = vector.broadcast %296 : vector<2x56x1xf32> to vector<2x56x56xf32>
    %298 = arith.subf %294, %297 : vector<2x56x56xf32>
    %299 = math.exp %298 : vector<2x56x56xf32>
    %cst_122 = arith.constant dense<0.000000e+00> : vector<2x56xf32>
    %300 = vector.multi_reduction <add>, %299, %cst_122 [2] : vector<2x56x56xf32> to vector<2x56xf32>
    %301 = vector.shape_cast %300 : vector<2x56xf32> to vector<2x56x1xf32>
    %302 = tpu.reciprocal %301 {approx = true} : vector<2x56x1xf32> -> vector<2x56x1xf32>
    %303 = vector.broadcast %302 : vector<2x56x1xf32> to vector<2x56x56xf32>
    %304 = arith.mulf %299, %303 : vector<2x56x56xf32>
    %305 = arith.truncf %304 : vector<2x56x56xf32> to vector<2x56x56xbf16>
    %306 = arith.truncf %284 : vector<2x56x16xf32> to vector<2x56x16xbf16>
    "tpu.trace_start"() <{level = 10 : i32, message = "bqk,bkd->bqd"}> : () -> ()
    %cst_123 = arith.constant dense<0.000000e+00> : vector<2x56x16xf32>
    %307 = tpu.matmul %305, %306, %cst_123 {dimension_numbers = #tpu.dot_dimension_numbers<[2], [1], [1], [2], [0, 0, 0, 1, 1, 2], [0], [0]>} : vector<2x56x56xbf16>, vector<2x56x16xbf16>, vector<2x56x16xf32> -> vector<2x56x16xf32>
    "tpu.trace_stop"() : () -> ()
    %308 = vector.shape_cast %307 : vector<2x56x16xf32> to vector<112x16xf32>
    %309 = arith.truncf %308 : vector<112x16xf32> to vector<112x16xbf16>
    %c0_124 = arith.constant 0 : index
    %c3_125 = arith.constant 3 : index
    %c0_126 = arith.constant 0 : index
    %c0_127 = arith.constant 0 : index
    %310 = vector.load %arg14[%c0_124, %c3_125, %c0_126, %c0_127] : memref<1x4x16x64xbf16, #tpu.memory_space<vmem>>, vector<1x1x16x64xbf16>
    %311 = vector.shape_cast %310 : vector<1x1x16x64xbf16> to vector<16x64xbf16>
    %cst_128 = arith.constant dense<0.000000e+00> : vector<112x64xf32>
    %312 = tpu.matmul %309, %311, %cst_128 {dimension_numbers = #tpu.dot_dimension_numbers<[1], [0], [0], [1], [0, 0, 1, 1], [], []>} : vector<112x16xbf16>, vector<16x64xbf16>, vector<112x64xf32> -> vector<112x64xf32>
    %313 = arith.addf %281, %312 : vector<112x64xf32>
    %c0_129 = arith.constant 0 : index
    %c0_130 = arith.constant 0 : index
    %c0_131 = arith.constant 0 : index
    %314 = vector.load %arg15[%c0_129, %c0_130, %c0_131] : memref<1x1x64xf32, #tpu.memory_space<vmem>>, vector<1x1x64xf32>
    %315 = vector.shape_cast %314 : vector<1x1x64xf32> to vector<1x64xf32>
    %316 = vector.broadcast %315 : vector<1x64xf32> to vector<112x64xf32>
    %317 = arith.addf %313, %316 : vector<112x64xf32>
    %318 = arith.addf %4, %317 : vector<112x64xf32>
    %cst_132 = arith.constant dense<0.000000e+00> : vector<112xf32>
    %319 = vector.multi_reduction <add>, %318, %cst_132 [1] : vector<112x64xf32> to vector<112xf32>
    %320 = vector.shape_cast %319 : vector<112xf32> to vector<112x1xf32>
    %cst_133 = arith.constant 1.562500e-02 : f32
    %321 = vector.broadcast %cst_133 : f32 to vector<112x1xf32>
    %322 = arith.mulf %320, %321 : vector<112x1xf32>
    %323 = arith.mulf %318, %318 : vector<112x64xf32>
    %cst_134 = arith.constant dense<0.000000e+00> : vector<112xf32>
    %324 = vector.multi_reduction <add>, %323, %cst_134 [1] : vector<112x64xf32> to vector<112xf32>
    %325 = vector.shape_cast %324 : vector<112xf32> to vector<112x1xf32>
    %cst_135 = arith.constant 1.562500e-02 : f32
    %326 = vector.broadcast %cst_135 : f32 to vector<112x1xf32>
    %327 = arith.mulf %325, %326 : vector<112x1xf32>
    %328 = arith.mulf %322, %322 : vector<112x1xf32>
    %329 = arith.subf %327, %328 : vector<112x1xf32>
    %cst_136 = arith.constant 0.000000e+00 : f32
    %330 = vector.broadcast %cst_136 : f32 to vector<112x1xf32>
    %331 = arith.maximumf %329, %330 : vector<112x1xf32>
    %332 = vector.broadcast %322 : vector<112x1xf32> to vector<112x64xf32>
    %333 = arith.subf %318, %332 : vector<112x64xf32>
    %cst_137 = arith.constant 9.99999974E-6 : f32
    %334 = vector.broadcast %cst_137 : f32 to vector<112x1xf32>
    %335 = arith.addf %331, %334 : vector<112x1xf32>
    %336 = math.rsqrt %335 : vector<112x1xf32>
    %337 = vector.broadcast %336 : vector<112x1xf32> to vector<112x64xf32>
    %338 = arith.mulf %333, %337 : vector<112x64xf32>
    %c0_138 = arith.constant 0 : index
    %c0_139 = arith.constant 0 : index
    %c0_140 = arith.constant 0 : index
    %339 = vector.load %arg16[%c0_138, %c0_139, %c0_140] : memref<1x1x64xf32, #tpu.memory_space<vmem>>, vector<1x1x64xf32>
    %340 = vector.shape_cast %339 : vector<1x1x64xf32> to vector<1x64xf32>
    %341 = vector.broadcast %340 : vector<1x64xf32> to vector<112x64xf32>
    %342 = arith.mulf %338, %341 : vector<112x64xf32>
    %c0_141 = arith.constant 0 : index
    %c0_142 = arith.constant 0 : index
    %c0_143 = arith.constant 0 : index
    %343 = vector.load %arg17[%c0_141, %c0_142, %c0_143] : memref<1x1x64xf32, #tpu.memory_space<vmem>>, vector<1x1x64xf32>
    %344 = vector.shape_cast %343 : vector<1x1x64xf32> to vector<1x64xf32>
    %345 = vector.broadcast %344 : vector<1x64xf32> to vector<112x64xf32>
    %346 = arith.addf %342, %345 : vector<112x64xf32>
    %347 = arith.addf %176, %346 : vector<112x64xf32>
    %cst_144 = arith.constant 5.000000e-01 : f32
    %348 = vector.broadcast %cst_144 : f32 to vector<112x64xf32>
    %349 = arith.mulf %348, %347 : vector<112x64xf32>
    %350 = arith.addf %4, %349 : vector<112x64xf32>
    %cst_145 = arith.constant dense<0.000000e+00> : vector<112xf32>
    %351 = vector.multi_reduction <add>, %350, %cst_145 [1] : vector<112x64xf32> to vector<112xf32>
    %352 = vector.shape_cast %351 : vector<112xf32> to vector<112x1xf32>
    %cst_146 = arith.constant 1.562500e-02 : f32
    %353 = vector.broadcast %cst_146 : f32 to vector<112x1xf32>
    %354 = arith.mulf %352, %353 : vector<112x1xf32>
    %355 = arith.mulf %350, %350 : vector<112x64xf32>
    %cst_147 = arith.constant dense<0.000000e+00> : vector<112xf32>
    %356 = vector.multi_reduction <add>, %355, %cst_147 [1] : vector<112x64xf32> to vector<112xf32>
    %357 = vector.shape_cast %356 : vector<112xf32> to vector<112x1xf32>
    %cst_148 = arith.constant 1.562500e-02 : f32
    %358 = vector.broadcast %cst_148 : f32 to vector<112x1xf32>
    %359 = arith.mulf %357, %358 : vector<112x1xf32>
    %360 = arith.mulf %354, %354 : vector<112x1xf32>
    %361 = arith.subf %359, %360 : vector<112x1xf32>
    %cst_149 = arith.constant 0.000000e+00 : f32
    %362 = vector.broadcast %cst_149 : f32 to vector<112x1xf32>
    %363 = arith.maximumf %361, %362 : vector<112x1xf32>
    %364 = vector.broadcast %354 : vector<112x1xf32> to vector<112x64xf32>
    %365 = arith.subf %350, %364 : vector<112x64xf32>
    %cst_150 = arith.constant 9.99999974E-6 : f32
    %366 = vector.broadcast %cst_150 : f32 to vector<112x1xf32>
    %367 = arith.addf %363, %366 : vector<112x1xf32>
    %368 = math.rsqrt %367 : vector<112x1xf32>
    %369 = vector.broadcast %368 : vector<112x1xf32> to vector<112x64xf32>
    %370 = arith.mulf %365, %369 : vector<112x64xf32>
    %c0_151 = arith.constant 0 : index
    %c0_152 = arith.constant 0 : index
    %c0_153 = arith.constant 0 : index
    %371 = vector.load %arg18[%c0_151, %c0_152, %c0_153] : memref<1x1x64xf32, #tpu.memory_space<vmem>>, vector<1x1x64xf32>
    %372 = vector.shape_cast %371 : vector<1x1x64xf32> to vector<1x64xf32>
    %373 = vector.broadcast %372 : vector<1x64xf32> to vector<112x64xf32>
    %374 = arith.mulf %370, %373 : vector<112x64xf32>
    %c0_154 = arith.constant 0 : index
    %c0_155 = arith.constant 0 : index
    %c0_156 = arith.constant 0 : index
    %375 = vector.load %arg19[%c0_154, %c0_155, %c0_156] : memref<1x1x64xf32, #tpu.memory_space<vmem>>, vector<1x1x64xf32>
    %376 = vector.shape_cast %375 : vector<1x1x64xf32> to vector<1x64xf32>
    %377 = vector.broadcast %376 : vector<1x64xf32> to vector<112x64xf32>
    %378 = arith.addf %374, %377 : vector<112x64xf32>
    %379 = arith.truncf %378 : vector<112x64xf32> to vector<112x64xbf16>
    %c0_157 = arith.constant 0 : index
    %c0_158 = arith.constant 0 : index
    %c0_159 = arith.constant 0 : index
    %380 = vector.load %arg20[%c0_157, %c0_158, %c0_159] : memref<1x64x128xbf16, #tpu.memory_space<vmem>>, vector<1x64x128xbf16>
    %381 = vector.shape_cast %380 : vector<1x64x128xbf16> to vector<64x128xbf16>
    %cst_160 = arith.constant dense<0.000000e+00> : vector<112x128xf32>
    %382 = tpu.matmul %379, %381, %cst_160 {dimension_numbers = #tpu.dot_dimension_numbers<[1], [0], [0], [1], [0, 0, 1, 1], [], []>} : vector<112x64xbf16>, vector<64x128xbf16>, vector<112x128xf32> -> vector<112x128xf32>
    %c0_161 = arith.constant 0 : index
    %c0_162 = arith.constant 0 : index
    %c0_163 = arith.constant 0 : index
    %383 = vector.load %arg21[%c0_161, %c0_162, %c0_163] : memref<1x1x128xf32, #tpu.memory_space<vmem>>, vector<1x1x128xf32>
    %384 = vector.shape_cast %383 : vector<1x1x128xf32> to vector<1x128xf32>
    %385 = vector.broadcast %384 : vector<1x128xf32> to vector<112x128xf32>
    %386 = arith.addf %382, %385 : vector<112x128xf32>
    %cst_164 = arith.constant 0.000000e+00 : f32
    %387 = vector.broadcast %cst_164 : f32 to vector<112x128xf32>
    %388 = arith.maximumf %386, %387 : vector<112x128xf32>
    %389 = arith.truncf %388 : vector<112x128xf32> to vector<112x128xbf16>
    %c0_165 = arith.constant 0 : index
    %c0_166 = arith.constant 0 : index
    %c0_167 = arith.constant 0 : index
    %390 = vector.load %arg22[%c0_165, %c0_166, %c0_167] : memref<1x128x64xbf16, #tpu.memory_space<vmem>>, vector<1x128x64xbf16>
    %391 = vector.shape_cast %390 : vector<1x128x64xbf16> to vector<128x64xbf16>
    %cst_168 = arith.constant dense<0.000000e+00> : vector<112x64xf32>
    %392 = tpu.matmul %389, %391, %cst_168 {dimension_numbers = #tpu.dot_dimension_numbers<[1], [0], [0], [1], [0, 0, 1, 1], [], []>} : vector<112x128xbf16>, vector<128x64xbf16>, vector<112x64xf32> -> vector<112x64xf32>
    %c0_169 = arith.constant 0 : index
    %c0_170 = arith.constant 0 : index
    %c0_171 = arith.constant 0 : index
    %393 = vector.load %arg23[%c0_169, %c0_170, %c0_171] : memref<1x1x64xf32, #tpu.memory_space<vmem>>, vector<1x1x64xf32>
    %394 = vector.shape_cast %393 : vector<1x1x64xf32> to vector<1x64xf32>
    %395 = vector.broadcast %394 : vector<1x64xf32> to vector<112x64xf32>
    %396 = arith.addf %392, %395 : vector<112x64xf32>
    %397 = arith.addf %378, %396 : vector<112x64xf32>
    %cst_172 = arith.constant dense<0.000000e+00> : vector<112xf32>
    %398 = vector.multi_reduction <add>, %397, %cst_172 [1] : vector<112x64xf32> to vector<112xf32>
    %399 = vector.shape_cast %398 : vector<112xf32> to vector<112x1xf32>
    %cst_173 = arith.constant 1.562500e-02 : f32
    %400 = vector.broadcast %cst_173 : f32 to vector<112x1xf32>
    %401 = arith.mulf %399, %400 : vector<112x1xf32>
    %402 = arith.mulf %397, %397 : vector<112x64xf32>
    %cst_174 = arith.constant dense<0.000000e+00> : vector<112xf32>
    %403 = vector.multi_reduction <add>, %402, %cst_174 [1] : vector<112x64xf32> to vector<112xf32>
    %404 = vector.shape_cast %403 : vector<112xf32> to vector<112x1xf32>
    %cst_175 = arith.constant 1.562500e-02 : f32
    %405 = vector.broadcast %cst_175 : f32 to vector<112x1xf32>
    %406 = arith.mulf %404, %405 : vector<112x1xf32>
    %407 = arith.mulf %401, %401 : vector<112x1xf32>
    %408 = arith.subf %406, %407 : vector<112x1xf32>
    %cst_176 = arith.constant 0.000000e+00 : f32
    %409 = vector.broadcast %cst_176 : f32 to vector<112x1xf32>
    %410 = arith.maximumf %408, %409 : vector<112x1xf32>
    %411 = vector.broadcast %401 : vector<112x1xf32> to vector<112x64xf32>
    %412 = arith.subf %397, %411 : vector<112x64xf32>
    %cst_177 = arith.constant 9.99999974E-6 : f32
    %413 = vector.broadcast %cst_177 : f32 to vector<112x1xf32>
    %414 = arith.addf %410, %413 : vector<112x1xf32>
    %415 = math.rsqrt %414 : vector<112x1xf32>
    %416 = vector.broadcast %415 : vector<112x1xf32> to vector<112x64xf32>
    %417 = arith.mulf %412, %416 : vector<112x64xf32>
    %c0_178 = arith.constant 0 : index
    %c0_179 = arith.constant 0 : index
    %c0_180 = arith.constant 0 : index
    %418 = vector.load %arg24[%c0_178, %c0_179, %c0_180] : memref<1x1x64xf32, #tpu.memory_space<vmem>>, vector<1x1x64xf32>
    %419 = vector.shape_cast %418 : vector<1x1x64xf32> to vector<1x64xf32>
    %420 = vector.broadcast %419 : vector<1x64xf32> to vector<112x64xf32>
    %421 = arith.mulf %417, %420 : vector<112x64xf32>
    %c0_181 = arith.constant 0 : index
    %c0_182 = arith.constant 0 : index
    %c0_183 = arith.constant 0 : index
    %422 = vector.load %arg25[%c0_181, %c0_182, %c0_183] : memref<1x1x64xf32, #tpu.memory_space<vmem>>, vector<1x1x64xf32>
    %423 = vector.shape_cast %422 : vector<1x1x64xf32> to vector<1x64xf32>
    %424 = vector.broadcast %423 : vector<1x64xf32> to vector<112x64xf32>
    %425 = arith.addf %421, %424 : vector<112x64xf32>
    %426 = vector.shape_cast %425 : vector<112x64xf32> to vector<2x56x64xf32>
    %c0_184 = arith.constant 0 : index
    %c0_185 = arith.constant 0 : index
    %c0_186 = arith.constant 0 : index
    %427 = vector.load %arg26[%c0_184, %c0_185, %c0_186] : memref<2x56x64xf32, #tpu.memory_space<vmem>>, vector<2x56x64xf32>
    tpu.vector_store %arg26[%c0_184, %c0_185, %c0_186], %426 {strides = array<i32>} : memref<2x56x64xf32, #tpu.memory_space<vmem>>, vector<2x56x64xf32>,
    return
  }
  func.func @transform_0(%arg0: i32, %arg1: i32) -> (i32, i32, i32) {
    %c0_i32 = arith.constant 0 : i32
    %c0_i32_0 = arith.constant 0 : i32
    %c0_i32_1 = arith.constant 0 : i32
    return %arg0, %c0_i32, %c0_i32_0 : i32, i32, i32
  }
  func.func @transform_1(%arg0: i32, %arg1: i32) -> (i32, i32, i32) {
    %c0_i32 = arith.constant 0 : i32
    %c0_i32_0 = arith.constant 0 : i32
    %c0_i32_1 = arith.constant 0 : i32
    return %arg0, %c0_i32, %c0_i32_0 : i32, i32, i32
  }
  func.func @transform_2(%arg0: i32, %arg1: i32) -> (i32, i32, i32) {
    %c0_i32 = arith.constant 0 : i32
    %c0_i32_0 = arith.constant 0 : i32
    %c0_i32_1 = arith.constant 0 : i32
    %c0_i32_2 = arith.constant 0 : i32
    return %c0_i32, %c0_i32_0, %c0_i32_1 : i32, i32, i32
  }
  func.func @transform_3(%arg0: i32, %arg1: i32) -> (i32, i32, i32) {
    %c0_i32 = arith.constant 0 : i32
    %c0_i32_0 = arith.constant 0 : i32
    %c0_i32_1 = arith.constant 0 : i32
    %c0_i32_2 = arith.constant 0 : i32
    return %c0_i32, %c0_i32_0, %c0_i32_1 : i32, i32, i32
  }
  func.func @transform_4(%arg0: i32, %arg1: i32) -> (i32, i32, i32) {
    %c0_i32 = arith.constant 0 : i32
    %c0_i32_0 = arith.constant 0 : i32
    %c0_i32_1 = arith.constant 0 : i32
    return %arg1, %c0_i32, %c0_i32_0 : i32, i32, i32
  }
  func.func @transform_5(%arg0: i32, %arg1: i32) -> (i32, i32, i32) {
    %c0_i32 = arith.constant 0 : i32
    %c0_i32_0 = arith.constant 0 : i32
    %c0_i32_1 = arith.constant 0 : i32
    return %arg1, %c0_i32, %c0_i32_0 : i32, i32, i32
  }
  func.func @transform_6(%arg0: i32, %arg1: i32) -> (i32, i32, i32, i32) {
    %c0_i32 = arith.constant 0 : i32
    %c0_i32_0 = arith.constant 0 : i32
    %c0_i32_1 = arith.constant 0 : i32
    %c0_i32_2 = arith.constant 0 : i32
    return %arg1, %c0_i32, %c0_i32_0, %c0_i32_1 : i32, i32, i32, i32
  }
  func.func @transform_7(%arg0: i32, %arg1: i32) -> (i32, i32, i32) {
    %c0_i32 = arith.constant 0 : i32
    %c0_i32_0 = arith.constant 0 : i32
    %c0_i32_1 = arith.constant 0 : i32
    return %arg1, %c0_i32, %c0_i32_0 : i32, i32, i32
  }
  func.func @transform_8(%arg0: i32, %arg1: i32) -> (i32, i32, i32) {
    %c0_i32 = arith.constant 0 : i32
    %c0_i32_0 = arith.constant 0 : i32
    %c0_i32_1 = arith.constant 0 : i32
    return %arg1, %c0_i32, %c0_i32_0 : i32, i32, i32
  }
  func.func @transform_9(%arg0: i32, %arg1: i32) -> (i32, i32, i32) {
    %c0_i32 = arith.constant 0 : i32
    %c0_i32_0 = arith.constant 0 : i32
    %c0_i32_1 = arith.constant 0 : i32
    return %arg1, %c0_i32, %c0_i32_0 : i32, i32, i32
  }
  func.func @transform_10(%arg0: i32, %arg1: i32) -> (i32, i32, i32) {
    %c0_i32 = arith.constant 0 : i32
    %c0_i32_0 = arith.constant 0 : i32
    %c0_i32_1 = arith.constant 0 : i32
    return %arg1, %c0_i32, %c0_i32_0 : i32, i32, i32
  }
  func.func @transform_11(%arg0: i32, %arg1: i32) -> (i32, i32, i32) {
    %c0_i32 = arith.constant 0 : i32
    %c0_i32_0 = arith.constant 0 : i32
    %c0_i32_1 = arith.constant 0 : i32
    return %arg1, %c0_i32, %c0_i32_0 : i32, i32, i32
  }
  func.func @transform_12(%arg0: i32, %arg1: i32) -> (i32, i32, i32, i32) {
    %c0_i32 = arith.constant 0 : i32
    %c0_i32_0 = arith.constant 0 : i32
    %c0_i32_1 = arith.constant 0 : i32
    %c0_i32_2 = arith.constant 0 : i32
    return %arg1, %c0_i32, %c0_i32_0, %c0_i32_1 : i32, i32, i32, i32
  }
  func.func @transform_13(%arg0: i32, %arg1: i32) -> (i32, i32, i32) {
    %c0_i32 = arith.constant 0 : i32
    %c0_i32_0 = arith.constant 0 : i32
    %c0_i32_1 = arith.constant 0 : i32
    return %arg1, %c0_i32, %c0_i32_0 : i32, i32, i32
  }
  func.func @transform_14(%arg0: i32, %arg1: i32) -> (i32, i32, i32) {
    %c0_i32 = arith.constant 0 : i32
    %c0_i32_0 = arith.constant 0 : i32
    %c0_i32_1 = arith.constant 0 : i32
    return %arg1, %c0_i32, %c0_i32_0 : i32, i32, i32
  }
  func.func @transform_15(%arg0: i32, %arg1: i32) -> (i32, i32, i32) {
    %c0_i32 = arith.constant 0 : i32
    %c0_i32_0 = arith.constant 0 : i32
    %c0_i32_1 = arith.constant 0 : i32
    return %arg1, %c0_i32, %c0_i32_0 : i32, i32, i32
  }
  func.func @transform_16(%arg0: i32, %arg1: i32) -> (i32, i32, i32) {
    %c0_i32 = arith.constant 0 : i32
    %c0_i32_0 = arith.constant 0 : i32
    %c0_i32_1 = arith.constant 0 : i32
    return %arg1, %c0_i32, %c0_i32_0 : i32, i32, i32
  }
  func.func @transform_17(%arg0: i32, %arg1: i32) -> (i32, i32, i32) {
    %c0_i32 = arith.constant 0 : i32
    %c0_i32_0 = arith.constant 0 : i32
    %c0_i32_1 = arith.constant 0 : i32
    return %arg1, %c0_i32, %c0_i32_0 : i32, i32, i32
  }
  func.func @transform_18(%arg0: i32, %arg1: i32) -> (i32, i32, i32) {
    %c0_i32 = arith.constant 0 : i32
    %c0_i32_0 = arith.constant 0 : i32
    %c0_i32_1 = arith.constant 0 : i32
    return %arg1, %c0_i32, %c0_i32_0 : i32, i32, i32
  }
  func.func @transform_19(%arg0: i32, %arg1: i32) -> (i32, i32, i32) {
    %c0_i32 = arith.constant 0 : i32
    %c0_i32_0 = arith.constant 0 : i32
    %c0_i32_1 = arith.constant 0 : i32
    return %arg1, %c0_i32, %c0_i32_0 : i32, i32, i32
  }
  func.func @transform_20(%arg0: i32, %arg1: i32) -> (i32, i32, i32) {
    %c0_i32 = arith.constant 0 : i32
    %c0_i32_0 = arith.constant 0 : i32
    %c0_i32_1 = arith.constant 0 : i32
    return %arg1, %c0_i32, %c0_i32_0 : i32, i32, i32
  }
  func.func @transform_21(%arg0: i32, %arg1: i32) -> (i32, i32, i32) {
    %c0_i32 = arith.constant 0 : i32
    %c0_i32_0 = arith.constant 0 : i32
    %c0_i32_1 = arith.constant 0 : i32
    return %arg1, %c0_i32, %c0_i32_0 : i32, i32, i32
  }
  func.func @transform_22(%arg0: i32, %arg1: i32) -> (i32, i32, i32) {
    %c0_i32 = arith.constant 0 : i32
    %c0_i32_0 = arith.constant 0 : i32
    %c0_i32_1 = arith.constant 0 : i32
    return %arg1, %c0_i32, %c0_i32_0 : i32, i32, i32
  }
  func.func @transform_23(%arg0: i32, %arg1: i32) -> (i32, i32, i32) {
    %c0_i32 = arith.constant 0 : i32
    %c0_i32_0 = arith.constant 0 : i32
    %c0_i32_1 = arith.constant 0 : i32
    return %arg1, %c0_i32, %c0_i32_0 : i32, i32, i32
  }
  func.func @transform_24(%arg0: i32, %arg1: i32) -> (i32, i32, i32) {
    %c0_i32 = arith.constant 0 : i32
    %c0_i32_0 = arith.constant 0 : i32
    %c0_i32_1 = arith.constant 0 : i32
    return %arg0, %c0_i32, %c0_i32_0 : i32, i32, i32
  }
}

</mosaic_0001>

<bundles_post_ra>
// kernel: multi_level_encoder_forward.2
= control target key start
LH: loop header
LB: loop body
LE: loop exit
PB: predicated region body
PF: predicated region fallthrough
CT: control target
= control target key end

     0   :  { %v1969_v3 = vmov 0.0   ;;  %vm260_vm0 = vcmask 785408   ;;  %vm1971_vm1 = vmmov 0   ;;  %vm1122_vm2 = vcmask 261120   ;;  %s3101_s0 = inlined_call_operand.vmem [shape: f32[96,2401], index: 0, kind: input, shape index: {}]   ;;  %s3102_s1 = inlined_call_operand.vmem [shape: f32[4,96], index: 1, kind: input, shape index: {}]   ;;  %s3103_s2 = inlined_call_operand.vmem [shape: f32[4,1], index: 2, kind: input, shape index: {}]   ;;  %s3104_s3 = inlined_call_operand.vmem [shape: f32[32,2401], index: 3, kind: input, shape index: {}]   ;;  %s3105_s4 = inlined_call_operand.vmem [shape: f32[4,32], index: 4, kind: input, shape index: {}]   ;;  %s3106_s5 = inlined_call_operand.vmem [shape: f32[4,1], index: 5, kind: input, shape index: {}]   ;;  %s3107_s6 = inlined_call_operand.vmem [shape: f32[4,2401], index: 6, kind: output, shape index: {0}]   ;;  %s3108_s7 = inlined_call_operand.vmem [shape: f32[4,2401], index: 7, kind: output, shape index: {1}]  }
   0x1   :  { %v236_v0 = vld [vmem:[%s3101_s0 + $0x690] sm:$0xff]  ;;  %v238_v1 = vld [vmem:[%s3101_s0 + $0x6a0] sm:$0xff]  ;;  %v235_v2 = vld [vmem:[%s3101_s0 + $0x688] sm:$0xff]  ;;  %328 = vmatprep.mubr.f32.mxu0 %v1969_v3  ;;  %399 = vmatprep.mubr.f32.mxu1 %v1969_v3  ;;  %vm1037_vm3 = vcmask 789504  }
   0x2   :  { %272 = vmatprep.subr.mxu0 %v236_v0  ;;  %343 = vmatprep.subr.mxu1 %v238_v1  ;;  %v237_v4 = vld [vmem:[%s3101_s0 + $0x698] sm:$0xff]  ;;  %v219_v6 = vld [vmem:[%s3101_s0 + $0x608] sm:$0xff]  ;;  %v216_v7 = vld [vmem:[%s3101_s0 + $0x5f0] sm:$0xff] }
   0x3   :  { %v217_v5 = vld [vmem:[%s3101_s0 + $0x5f8] sm:$0xff]  ;;  %273 = vmatpush1.msra.mxu0 %v235_v2  ;;  %344 = vmatpush1.msra.mxu1 %v237_v4  ;;  %v218_v8 = vld [vmem:[%s3101_s0 + $0x600] sm:$0xff]  ;;  %v200_v10 = vld [vmem:[%s3101_s0 + $0x570] sm:$0xff] }
   0x4   :  { %v198_v9 = vld [vmem:[%s3101_s0 + $0x560] sm:$0xff]  ;;  %274 = vmatprep.subr.mxu0 %v217_v5  ;;  %345 = vmatprep.subr.mxu1 %v219_v6  ;;  %v197_v11 = vld [vmem:[%s3101_s0 + $0x558] sm:$0xff]  ;;  %v199_v12 = vld [vmem:[%s3101_s0 + $0x568] sm:$0xff] }
   0x5   :  { %275 = vmatpush1.msra.mxu0 %v216_v7  ;;  %346 = vmatpush1.msra.mxu1 %v218_v8  ;;  %v179_v13 = vld [vmem:[%s3101_s0 + $0x4c8] sm:$0xff]  ;;  %v181_v14 = vld [vmem:[%s3101_s0 + $0x4d8] sm:$0xff]  ;;  %v178_v15 = vld [vmem:[%s3101_s0 + $0x4c0] sm:$0xff] }
   0x6   :  { %276 = vmatprep.subr.mxu0 %v198_v9  ;;  %347 = vmatprep.subr.mxu1 %v200_v10  ;;  %v180_v16 = vld [vmem:[%s3101_s0 + $0x4d0] sm:$0xff]  ;;  %v162_v18 = vld [vmem:[%s3101_s0 + $0x440] sm:$0xff]  ;;  %v159_v19 = vld [vmem:[%s3101_s0 + $0x428] sm:$0xff] }
   0x7   :  { %277 = vmatpush1.msra.mxu0 %v197_v11  ;;  %348 = vmatpush1.msra.mxu1 %v199_v12  ;;  %v160_v17 = vld [vmem:[%s3101_s0 + $0x430] sm:$0xff]  ;;  %v161_v20 = vld [vmem:[%s3101_s0 + $0x438] sm:$0xff]  ;;  %v143_v22 = vld [vmem:[%s3101_s0 + $0x3a8] sm:$0xff] }
   0x8   :  { %278 = vmatprep.subr.mxu0 %v179_v13  ;;  %349 = vmatprep.subr.mxu1 %v181_v14  ;;  %v141_v21 = vld [vmem:[%s3101_s0 + $0x398] sm:$0xff]  ;;  %v140_v23 = vld [vmem:[%s3101_s0 + $0x390] sm:$0xff]  ;;  %v142_v24 = vld [vmem:[%s3101_s0 + $0x3a0] sm:$0xff] }
   0x9   :  { %279 = vmatpush1.msra.mxu0 %v178_v15  ;;  %350 = vmatpush1.msra.mxu1 %v180_v16  ;;  %v122_v25 = vld [vmem:[%s3101_s0 + $0x300] sm:$0xff]  ;;  %v124_v26 = vld [vmem:[%s3101_s0 + $0x310] sm:$0xff]  ;;  %v121_v27 = vld [vmem:[%s3101_s0 + $0x2f8] sm:$0xff] }
   0xa   :  { %280 = vmatprep.subr.mxu0 %v160_v17  ;;  %351 = vmatprep.subr.mxu1 %v162_v18  ;;  %v123_v28 = vld [vmem:[%s3101_s0 + $0x308] sm:$0xff]  ;;  %v105_v30 = vld [vmem:[%s3101_s0 + $0x278] sm:$0xff]  ;;  %v102_v31 = vld [vmem:[%s3101_s0 + $0x260] sm:$0xff] }
   0xb   :  { %281 = vmatpush1.msra.mxu0 %v159_v19  ;;  %352 = vmatpush1.msra.mxu1 %v161_v20  ;;  %v103_v29 = vld [vmem:[%s3101_s0 + $0x268] sm:$0xff]  ;;  %v104_v32 = vld [vmem:[%s3101_s0 + $0x270] sm:$0xff]  ;;  %v86_v34 = vld [vmem:[%s3101_s0 + $0x1e0] sm:$0xff] }
   0xc   :  { %282 = vmatprep.subr.mxu0 %v141_v21  ;;  %353 = vmatprep.subr.mxu1 %v143_v22  ;;  %v84_v33 = vld [vmem:[%s3101_s0 + $0x1d0] sm:$0xff]  ;;  %v83_v35 = vld [vmem:[%s3101_s0 + $0x1c8] sm:$0xff]  ;;  %v85_v36 = vld [vmem:[%s3101_s0 + $0x1d8] sm:$0xff] }
   0xd   :  { %283 = vmatpush1.msra.mxu0 %v140_v23  ;;  %354 = vmatpush1.msra.mxu1 %v142_v24  ;;  %v65_v37 = vld [vmem:[%s3101_s0 + $0x138] sm:$0xff]  ;;  %v67_v38 = vld [vmem:[%s3101_s0 + $0x148] sm:$0xff]  ;;  %v64_v39 = vld [vmem:[%s3101_s0 + $0x130] sm:$0xff] }
   0xe   :  { %284 = vmatprep.subr.mxu0 %v122_v25  ;;  %355 = vmatprep.subr.mxu1 %v124_v26  ;;  %v66_v40 = vld [vmem:[%s3101_s0 + $0x140] sm:$0xff]  ;;  %v48_v42 = vld [vmem:[%s3101_s0 + $0xb0] sm:$0xff]  ;;  %v45_v43 = vld [vmem:[%s3101_s0 + $0x98] sm:$0xff] }
   0xf   :  { %285 = vmatpush1.msra.mxu0 %v121_v27  ;;  %356 = vmatpush1.msra.mxu1 %v123_v28  ;;  %v46_v41 = vld [vmem:[%s3101_s0 + $0xa0] sm:$0xff]  ;;  %v47_v44 = vld [vmem:[%s3101_s0 + $0xa8] sm:$0xff]  ;;  %v29_v46 = vld [vmem:[%s3101_s0 + $0x18] sm:$0xff] }
  0x10   :  { %286 = vmatprep.subr.mxu0 %v103_v29  ;;  %357 = vmatprep.subr.mxu1 %v105_v30  ;;  %v27_v45 = vld [vmem:[%s3101_s0 + $0x8] sm:$0xff]  ;;  %v26_v47 = vld [vmem:[%s3101_s0] sm:$0xff]  ;;  %v28_v48 = vld [vmem:[%s3101_s0 + $0x10] sm:$0xff] }
  0x11   :  { %287 = vmatpush1.msra.mxu0 %v102_v31  ;;  %358 = vmatpush1.msra.mxu1 %v104_v32  ;;  %v2161_v49 = vld [vmem:[%s3102_s1] sm:$0xf]  ;;  %v240_v50 = vld [vmem:[%s3101_s0 + $0x6b0] sm:$0xff]  ;;  %v239_v52 = vld [vmem:[%s3101_s0 + $0x6a8] sm:$0xff] }
  0x12   :  { %288 = vmatprep.subr.mxu0 %v84_v33  ;;  %359 = vmatprep.subr.mxu1 %v86_v34  ;;  %v242_v51 = vld [vmem:[%s3101_s0 + $0x6c0] sm:$0xff]  ;;  %v241_v53 = vld [vmem:[%s3101_s0 + $0x6b8] sm:$0xff]  ;;  %v223_v55 = vld [vmem:[%s3101_s0 + $0x628] sm:$0xff] }
  0x13   :  { %289 = vmatpush1.msra.mxu0 %v83_v35  ;;  %360 = vmatpush1.msra.mxu1 %v85_v36  ;;  %v221_v54 = vld [vmem:[%s3101_s0 + $0x618] sm:$0xff]  ;;  %v220_v56 = vld [vmem:[%s3101_s0 + $0x610] sm:$0xff]  ;;  %v222_v57 = vld [vmem:[%s3101_s0 + $0x620] sm:$0xff] }
  0x14   :  { %290 = vmatprep.subr.mxu0 %v65_v37  ;;  %361 = vmatprep.subr.mxu1 %v67_v38  ;;  %v202_v58 = vld [vmem:[%s3101_s0 + $0x580] sm:$0xff]  ;;  %v204_v59 = vld [vmem:[%s3101_s0 + $0x590] sm:$0xff]  ;;  %v201_v60 = vld [vmem:[%s3101_s0 + $0x578] sm:$0xff] }
  0x15   :  { %291 = vmatpush1.msra.mxu0 %v64_v39  ;;  %362 = vmatpush1.msra.mxu1 %v66_v40  ;;  %v203_v61 = vld [vmem:[%s3101_s0 + $0x588] sm:$0xff]  ;;  %v185_v63 = vld [vmem:[%s3101_s0 + $0x4f8] sm:$0xff]  ;;  %v182_v0 = vld [vmem:[%s3101_s0 + $0x4e0] sm:$0xff] }
  0x16   :  { %292 = vmatprep.subr.mxu0 %v46_v41  ;;  %363 = vmatprep.subr.mxu1 %v48_v42  ;;  %v183_v62 = vld [vmem:[%s3101_s0 + $0x4e8] sm:$0xff]  ;;  %v184_v1 = vld [vmem:[%s3101_s0 + $0x4f0] sm:$0xff]  ;;  %v166_v4 = vld [vmem:[%s3101_s0 + $0x460] sm:$0xff] }
  0x17   :  { %293 = vmatpush1.msra.mxu0 %v45_v43  ;;  %364 = vmatpush1.msra.mxu1 %v47_v44  ;;  %v164_v2 = vld [vmem:[%s3101_s0 + $0x450] sm:$0xff]  ;;  %v163_v5 = vld [vmem:[%s3101_s0 + $0x448] sm:$0xff]  ;;  %v165_v6 = vld [vmem:[%s3101_s0 + $0x458] sm:$0xff] }
  0x18   :  { %294 = vmatprep.subr.mxu0 %v27_v45  ;;  %365 = vmatprep.subr.mxu1 %v29_v46  ;;  %v145_v7 = vld [vmem:[%s3101_s0 + $0x3b8] sm:$0xff]  ;;  %v147_v8 = vld [vmem:[%s3101_s0 + $0x3c8] sm:$0xff]  ;;  %v144_v9 = vld [vmem:[%s3101_s0 + $0x3b0] sm:$0xff] }
  0x19   :  { %295 = vmatpush1.msra.mxu0 %v26_v47  ;;  %366 = vmatpush1.msra.mxu1 %v28_v48  ;;  %v146_v10 = vld [vmem:[%s3101_s0 + $0x3c0] sm:$0xff]  ;;  %v128_v12 = vld [vmem:[%s3101_s0 + $0x330] sm:$0xff]  ;;  %v125_v13 = vld [vmem:[%s3101_s0 + $0x318] sm:$0xff] }
  0x1a   :  { %1889 = vmatmul.mubr.msk.f32.vlgmr.msra.gmra.mxu0 %vm260_vm0, %v2161_v49  ;;  %414 = vmatprep.subr.mxu0 %v240_v50  ;;  %v126_v11 = vld [vmem:[%s3101_s0 + $0x320] sm:$0xff]  ;;  %v127_v14 = vld [vmem:[%s3101_s0 + $0x328] sm:$0xff]  ;;  %v109_v16 = vld [vmem:[%s3101_s0 + $0x298] sm:$0xff] }
  0x1b   :  { %485 = vmatprep.subr.mxu1 %v242_v51  ;;  %1890 = vmatmul.mubr.msk.f32.vlgmr.msra.gmra.mxu1 %vm260_vm0, %v2161_v49  ;;  %v107_v15 = vld [vmem:[%s3101_s0 + $0x288] sm:$0xff]  ;;  %v106_v17 = vld [vmem:[%s3101_s0 + $0x280] sm:$0xff]  ;;  %v108_v18 = vld [vmem:[%s3101_s0 + $0x290] sm:$0xff] }
  0x1c   :  { %415 = vmatpush1.msra.mxu0 %v239_v52  ;;  %486 = vmatpush1.msra.mxu1 %v241_v53  ;;  %v88_v19 = vld [vmem:[%s3101_s0 + $0x1f0] sm:$0xff]  ;;  %v90_v20 = vld [vmem:[%s3101_s0 + $0x200] sm:$0xff]  ;;  %v87_v21 = vld [vmem:[%s3101_s0 + $0x1e8] sm:$0xff] }
  0x1d   :  { %416 = vmatprep.subr.mxu0 %v221_v54  ;;  %487 = vmatprep.subr.mxu1 %v223_v55  ;;  %v89_v22 = vld [vmem:[%s3101_s0 + $0x1f8] sm:$0xff]  ;;  %v71_v24 = vld [vmem:[%s3101_s0 + $0x168] sm:$0xff]  ;;  %v68_v25 = vld [vmem:[%s3101_s0 + $0x150] sm:$0xff] }
  0x1e   :  { %417 = vmatpush1.msra.mxu0 %v220_v56  ;;  %488 = vmatpush1.msra.mxu1 %v222_v57  ;;  %v69_v23 = vld [vmem:[%s3101_s0 + $0x158] sm:$0xff]  ;;  %v70_v26 = vld [vmem:[%s3101_s0 + $0x160] sm:$0xff]  ;;  %v52_v28 = vld [vmem:[%s3101_s0 + $0xd0] sm:$0xff] }
  0x1f   :  { %418 = vmatprep.subr.mxu0 %v202_v58  ;;  %489 = vmatprep.subr.mxu1 %v204_v59  ;;  %v50_v27 = vld [vmem:[%s3101_s0 + $0xc0] sm:$0xff]  ;;  %v49_v29 = vld [vmem:[%s3101_s0 + $0xb8] sm:$0xff]  ;;  %v51_v30 = vld [vmem:[%s3101_s0 + $0xc8] sm:$0xff] }
  0x20   :  { %419 = vmatpush1.msra.mxu0 %v201_v60  ;;  %490 = vmatpush1.msra.mxu1 %v203_v61  ;;  %v31_v31 = vld [vmem:[%s3101_s0 + $0x28] sm:$0xff]  ;;  %v33_v32 = vld [vmem:[%s3101_s0 + $0x38] sm:$0xff]  ;;  %v30_v33 = vld [vmem:[%s3101_s0 + $0x20] sm:$0xff] }
  0x21   :  { %420 = vmatprep.subr.mxu0 %v183_v62  ;;  %491 = vmatprep.subr.mxu1 %v185_v63  ;;  %v32_v34 = vld [vmem:[%s3101_s0 + $0x30] sm:$0xff]  ;;  %v246_v36 = vld [vmem:[%s3101_s0 + $0x6e0] sm:$0xff]  ;;  %v243_v37 = vld [vmem:[%s3101_s0 + $0x6c8] sm:$0xff] }
  0x22   :  { %421 = vmatpush1.msra.mxu0 %v182_v0  ;;  %492 = vmatpush1.msra.mxu1 %v184_v1  ;;  %v244_v35 = vld [vmem:[%s3101_s0 + $0x6d0] sm:$0xff]  ;;  %v245_v38 = vld [vmem:[%s3101_s0 + $0x6d8] sm:$0xff]  ;;  %v227_v40 = vld [vmem:[%s3101_s0 + $0x648] sm:$0xff] }
  0x23   :  { %422 = vmatprep.subr.mxu0 %v164_v2  ;;  %493 = vmatprep.subr.mxu1 %v166_v4  ;;  %v225_v39 = vld [vmem:[%s3101_s0 + $0x638] sm:$0xff]  ;;  %v224_v41 = vld [vmem:[%s3101_s0 + $0x630] sm:$0xff]  ;;  %v226_v42 = vld [vmem:[%s3101_s0 + $0x640] sm:$0xff] }
  0x24   :  { %423 = vmatpush1.msra.mxu0 %v163_v5  ;;  %494 = vmatpush1.msra.mxu1 %v165_v6  ;;  %v206_v43 = vld [vmem:[%s3101_s0 + $0x5a0] sm:$0xff]  ;;  %v208_v44 = vld [vmem:[%s3101_s0 + $0x5b0] sm:$0xff]  ;;  %v205_v45 = vld [vmem:[%s3101_s0 + $0x598] sm:$0xff] }
  0x25   :  { %424 = vmatprep.subr.mxu0 %v145_v7  ;;  %495 = vmatprep.subr.mxu1 %v147_v8  ;;  %v207_v46 = vld [vmem:[%s3101_s0 + $0x5a8] sm:$0xff]  ;;  %v189_v48 = vld [vmem:[%s3101_s0 + $0x518] sm:$0xff]  ;;  %v186_v50 = vld [vmem:[%s3101_s0 + $0x500] sm:$0xff] }
  0x26   :  { %425 = vmatpush1.msra.mxu0 %v144_v9  ;;  %496 = vmatpush1.msra.mxu1 %v146_v10  ;;  %v187_v47 = vld [vmem:[%s3101_s0 + $0x508] sm:$0xff]  ;;  %v188_v51 = vld [vmem:[%s3101_s0 + $0x510] sm:$0xff]  ;;  %v170_v53 = vld [vmem:[%s3101_s0 + $0x480] sm:$0xff] }
  0x27   :  { %426 = vmatprep.subr.mxu0 %v126_v11  ;;  %497 = vmatprep.subr.mxu1 %v128_v12  ;;  %v168_v52 = vld [vmem:[%s3101_s0 + $0x470] sm:$0xff]  ;;  %v167_v54 = vld [vmem:[%s3101_s0 + $0x468] sm:$0xff]  ;;  %v169_v55 = vld [vmem:[%s3101_s0 + $0x478] sm:$0xff] }
  0x28   :  { %427 = vmatpush1.msra.mxu0 %v125_v13  ;;  %498 = vmatpush1.msra.mxu1 %v127_v14  ;;  %v149_v56 = vld [vmem:[%s3101_s0 + $0x3d8] sm:$0xff]  ;;  %v151_v57 = vld [vmem:[%s3101_s0 + $0x3e8] sm:$0xff]  ;;  %v148_v58 = vld [vmem:[%s3101_s0 + $0x3d0] sm:$0xff] }
  0x29   :  { %428 = vmatprep.subr.mxu0 %v107_v15  ;;  %499 = vmatprep.subr.mxu1 %v109_v16  ;;  %v150_v59 = vld [vmem:[%s3101_s0 + $0x3e0] sm:$0xff]  ;;  %v132_v61 = vld [vmem:[%s3101_s0 + $0x350] sm:$0xff]  ;;  %v129_v62 = vld [vmem:[%s3101_s0 + $0x338] sm:$0xff] }
  0x2a   :  { %429 = vmatpush1.msra.mxu0 %v106_v17  ;;  %500 = vmatpush1.msra.mxu1 %v108_v18  ;;  %v130_v60 = vld [vmem:[%s3101_s0 + $0x340] sm:$0xff]  ;;  %v131_v63 = vld [vmem:[%s3101_s0 + $0x348] sm:$0xff]  ;;  %v113_v1 = vld [vmem:[%s3101_s0 + $0x2b8] sm:$0xff] }
  0x2b   :  { %430 = vmatprep.subr.mxu0 %v88_v19  ;;  %501 = vmatprep.subr.mxu1 %v90_v20  ;;  %v111_v0 = vld [vmem:[%s3101_s0 + $0x2a8] sm:$0xff]  ;;  %v110_v2 = vld [vmem:[%s3101_s0 + $0x2a0] sm:$0xff]  ;;  %v112_v4 = vld [vmem:[%s3101_s0 + $0x2b0] sm:$0xff] }
  0x2c   :  { %431 = vmatpush1.msra.mxu0 %v87_v21  ;;  %502 = vmatpush1.msra.mxu1 %v89_v22  ;;  %v92_v5 = vld [vmem:[%s3101_s0 + $0x210] sm:$0xff]  ;;  %v94_v6 = vld [vmem:[%s3101_s0 + $0x220] sm:$0xff]  ;;  %v91_v7 = vld [vmem:[%s3101_s0 + $0x208] sm:$0xff] }
  0x2d   :  { %432 = vmatprep.subr.mxu0 %v69_v23  ;;  %503 = vmatprep.subr.mxu1 %v71_v24  ;;  %v93_v8 = vld [vmem:[%s3101_s0 + $0x218] sm:$0xff]  ;;  %v75_v10 = vld [vmem:[%s3101_s0 + $0x188] sm:$0xff]  ;;  %v72_v11 = vld [vmem:[%s3101_s0 + $0x170] sm:$0xff] }
  0x2e   :  { %433 = vmatpush1.msra.mxu0 %v68_v25  ;;  %504 = vmatpush1.msra.mxu1 %v70_v26  ;;  %v73_v9 = vld [vmem:[%s3101_s0 + $0x178] sm:$0xff]  ;;  %v74_v12 = vld [vmem:[%s3101_s0 + $0x180] sm:$0xff]  ;;  %v56_v14 = vld [vmem:[%s3101_s0 + $0xf0] sm:$0xff] }
  0x2f   :  { %434 = vmatprep.subr.mxu0 %v50_v27  ;;  %505 = vmatprep.subr.mxu1 %v52_v28  ;;  %v54_v13 = vld [vmem:[%s3101_s0 + $0xe0] sm:$0xff]  ;;  %v53_v15 = vld [vmem:[%s3101_s0 + $0xd8] sm:$0xff]  ;;  %v55_v16 = vld [vmem:[%s3101_s0 + $0xe8] sm:$0xff] }
  0x30   :  { %435 = vmatpush1.msra.mxu0 %v49_v29  ;;  %506 = vmatpush1.msra.mxu1 %v51_v30  ;;  %v35_v17 = vld [vmem:[%s3101_s0 + $0x48] sm:$0xff]  ;;  %v37_v18 = vld [vmem:[%s3101_s0 + $0x58] sm:$0xff]  ;;  %v34_v19 = vld [vmem:[%s3101_s0 + $0x40] sm:$0xff] }
  0x31   :  { %436 = vmatprep.subr.mxu0 %v31_v31  ;;  %507 = vmatprep.subr.mxu1 %v33_v32  ;;  %v36_v20 = vld [vmem:[%s3101_s0 + $0x50] sm:$0xff]  ;;  %v250_v22 = vld [vmem:[%s3101_s0 + $0x700] sm:$0xff]  ;;  %v247_v23 = vld [vmem:[%s3101_s0 + $0x6e8] sm:$0xff] }
  0x32   :  { %437 = vmatpush1.msra.mxu0 %v30_v33  ;;  %470 = vmatprep.mubr.f32.mxu0 %v1969_v3  ;;  %v248_v21 = vld [vmem:[%s3101_s0 + $0x6f0] sm:$0xff]  ;;  %v249_v24 = vld [vmem:[%s3101_s0 + $0x6f8] sm:$0xff]  ;;  %v231_v26 = vld [vmem:[%s3101_s0 + $0x668] sm:$0xff] }
  0x33   :  { %508 = vmatpush1.msra.mxu1 %v32_v34  ;;  %1891 = vmatmul.mubr.msk.f32.vlgmr.msra.gmra.mxu0 %vm260_vm0, %v2161_v49  ;;  %v229_v25 = vld [vmem:[%s3101_s0 + $0x658] sm:$0xff]  ;;  %v228_v27 = vld [vmem:[%s3101_s0 + $0x650] sm:$0xff]  ;;  %v230_v28 = vld [vmem:[%s3101_s0 + $0x660] sm:$0xff] }
  0x34   :  { %541 = vmatprep.mubr.f32.mxu1 %v1969_v3  ;;  %556 = vmatprep.subr.mxu0 %v244_v35  ;;  %v210_v29 = vld [vmem:[%s3101_s0 + $0x5c0] sm:$0xff]  ;;  %v212_v30 = vld [vmem:[%s3101_s0 + $0x5d0] sm:$0xff]  ;;  %v209_v31 = vld [vmem:[%s3101_s0 + $0x5b8] sm:$0xff] }
  0x35   :  { %627 = vmatprep.subr.mxu1 %v246_v36  ;;  %1892 = vmatmul.mubr.msk.f32.vlgmr.msra.gmra.mxu1 %vm260_vm0, %v2161_v49  ;;  %v211_v32 = vld [vmem:[%s3101_s0 + $0x5c8] sm:$0xff]  ;;  %v193_v34 = vld [vmem:[%s3101_s0 + $0x538] sm:$0xff]  ;;  %v190_v35 = vld [vmem:[%s3101_s0 + $0x520] sm:$0xff] }
  0x36   :  { %557 = vmatpush1.msra.mxu0 %v243_v37  ;;  %628 = vmatpush1.msra.mxu1 %v245_v38  ;;  %v191_v33 = vld [vmem:[%s3101_s0 + $0x528] sm:$0xff]  ;;  %v192_v36 = vld [vmem:[%s3101_s0 + $0x530] sm:$0xff]  ;;  %v174_v38 = vld [vmem:[%s3101_s0 + $0x4a0] sm:$0xff] }
  0x37   :  { %558 = vmatprep.subr.mxu0 %v225_v39  ;;  %629 = vmatprep.subr.mxu1 %v227_v40  ;;  %v172_v37 = vld [vmem:[%s3101_s0 + $0x490] sm:$0xff]  ;;  %v171_v39 = vld [vmem:[%s3101_s0 + $0x488] sm:$0xff]  ;;  %v173_v40 = vld [vmem:[%s3101_s0 + $0x498] sm:$0xff] }
  0x38   :  { %559 = vmatpush1.msra.mxu0 %v224_v41  ;;  %630 = vmatpush1.msra.mxu1 %v226_v42  ;;  %v153_v41 = vld [vmem:[%s3101_s0 + $0x3f8] sm:$0xff]  ;;  %v155_v42 = vld [vmem:[%s3101_s0 + $0x408] sm:$0xff] }
  0x39   :  { %560 = vmatprep.subr.mxu0 %v206_v43  ;;  %631 = vmatprep.subr.mxu1 %v208_v44  ;;  %v152_v43 = vld [vmem:[%s3101_s0 + $0x3f0] sm:$0xff]  ;;  %v154_v44 = vld [vmem:[%s3101_s0 + $0x400] sm:$0xff] }
  0x3a   :  { %561 = vmatpush1.msra.mxu0 %v205_v45  ;;  %632 = vmatpush1.msra.mxu1 %v207_v46  ;;  %v134_v45 = vld [vmem:[%s3101_s0 + $0x360] sm:$0xff]  ;;  %v136_v46 = vld [vmem:[%s3101_s0 + $0x370] sm:$0xff] }
  0x3b   :  { %562 = vmatprep.subr.mxu0 %v187_v47  ;;  %633 = vmatprep.subr.mxu1 %v189_v48  ;;  %v133_v47 = vld [vmem:[%s3101_s0 + $0x358] sm:$0xff]  ;;  %v135_v48 = vld [vmem:[%s3101_s0 + $0x368] sm:$0xff] }
  0x3c   :  { %563 = vmatpush1.msra.mxu0 %v186_v50  ;;  %634 = vmatpush1.msra.mxu1 %v188_v51  ;;  %v115_v50 = vld [vmem:[%s3101_s0 + $0x2c8] sm:$0xff]  ;;  %v117_v51 = vld [vmem:[%s3101_s0 + $0x2d8] sm:$0xff] }
  0x3d   :  { %564 = vmatprep.subr.mxu0 %v168_v52  ;;  %635 = vmatprep.subr.mxu1 %v170_v53  ;;  %v114_v52 = vld [vmem:[%s3101_s0 + $0x2c0] sm:$0xff]  ;;  %v116_v53 = vld [vmem:[%s3101_s0 + $0x2d0] sm:$0xff] }
  0x3e   :  { %565 = vmatpush1.msra.mxu0 %v167_v54  ;;  %636 = vmatpush1.msra.mxu1 %v169_v55  ;;  %v96_v54 = vld [vmem:[%s3101_s0 + $0x230] sm:$0xff]  ;;  %v98_v55 = vld [vmem:[%s3101_s0 + $0x240] sm:$0xff] }
  0x3f   :  { %566 = vmatprep.subr.mxu0 %v149_v56  ;;  %637 = vmatprep.subr.mxu1 %v151_v57  ;;  %v95_v56 = vld [vmem:[%s3101_s0 + $0x228] sm:$0xff]  ;;  %v97_v57 = vld [vmem:[%s3101_s0 + $0x238] sm:$0xff] }
  0x40   :  { %567 = vmatpush1.msra.mxu0 %v148_v58  ;;  %638 = vmatpush1.msra.mxu1 %v150_v59  ;;  %v77_v58 = vld [vmem:[%s3101_s0 + $0x198] sm:$0xff]  ;;  %v79_v59 = vld [vmem:[%s3101_s0 + $0x1a8] sm:$0xff] }
  0x41   :  { %568 = vmatprep.subr.mxu0 %v130_v60  ;;  %639 = vmatprep.subr.mxu1 %v132_v61  ;;  %v76_v60 = vld [vmem:[%s3101_s0 + $0x190] sm:$0xff]  ;;  %v78_v61 = vld [vmem:[%s3101_s0 + $0x1a0] sm:$0xff] }
  0x42   :  { %569 = vmatpush1.msra.mxu0 %v129_v62  ;;  %640 = vmatpush1.msra.mxu1 %v131_v63  ;;  %v58_v62 = vld [vmem:[%s3101_s0 + $0x100] sm:$0xff]  ;;  %v60_v63 = vld [vmem:[%s3101_s0 + $0x110] sm:$0xff] }
  0x43   :  { %570 = vmatprep.subr.mxu0 %v111_v0  ;;  %641 = vmatprep.subr.mxu1 %v113_v1  ;;  %v57_v0 = vld [vmem:[%s3101_s0 + $0xf8] sm:$0xff]  ;;  %v59_v1 = vld [vmem:[%s3101_s0 + $0x108] sm:$0xff] }
  0x44   :  { %571 = vmatpush1.msra.mxu0 %v110_v2  ;;  %642 = vmatpush1.msra.mxu1 %v112_v4  ;;  %v254_v2 = vld [vmem:[%s3103_s2] sm:$0xf]  ;;  %v39_v4 = vld [vmem:[%s3101_s0 + $0x68] sm:$0xff] }
  0x45   :  { %572 = vmatprep.subr.mxu0 %v92_v5  ;;  %643 = vmatprep.subr.mxu1 %v94_v6  ;;  %v41_v5 = vld [vmem:[%s3101_s0 + $0x78] sm:$0xff]  ;;  %v1970_v6 = vmov 0  }
  0x46   :  { %573 = vmatpush1.msra.mxu0 %v91_v7  ;;  %644 = vmatpush1.msra.mxu1 %v93_v8  ;;  %v38_v7 = vld [vmem:[%s3101_s0 + $0x60] sm:$0xff]  ;;  %v40_v8 = vld [vmem:[%s3101_s0 + $0x70] sm:$0xff] }
  0x47   :  { %574 = vmatprep.subr.mxu0 %v73_v9  ;;  %645 = vmatprep.subr.mxu1 %v75_v10  ;;  %v252_v9 = vld [vmem:[%s3101_s0 + $0x710] sm:$0xff]  ;;  %v251_v10 = vld [vmem:[%s3101_s0 + $0x708] sm:$0xff] }
  0x48   :  { %575 = vmatpush1.msra.mxu0 %v72_v11  ;;  %646 = vmatpush1.msra.mxu1 %v74_v12  ;;  %v253_v11 = vld [vmem:[%s3101_s0 + $0x718] sm:$0xff] }
  0x49   :  { %576 = vmatprep.subr.mxu0 %v54_v13  ;;  %647 = vmatprep.subr.mxu1 %v56_v14  ;;  %v233_v12 = vld [vmem:[%s3101_s0 + $0x678] sm:$0xff]  ;;  %v232_v13 = vld [vmem:[%s3101_s0 + $0x670] sm:$0xff]  ;;  %v234_v14 = vld [vmem:[%s3101_s0 + $0x680] sm:$0xff] }
  0x4a   :  { %577 = vmatpush1.msra.mxu0 %v53_v15  ;;  %648 = vmatpush1.msra.mxu1 %v55_v16  ;;  %v214_v15 = vld [vmem:[%s3101_s0 + $0x5e0] sm:$0xff]  ;;  %v213_v16 = vld [vmem:[%s3101_s0 + $0x5d8] sm:$0xff] }
  0x4b   :  { %578 = vmatprep.subr.mxu0 %v35_v17  ;;  %649 = vmatprep.subr.mxu1 %v37_v18  ;;  %v215_v17 = vld [vmem:[%s3101_s0 + $0x5e8] sm:$0xff] }
  0x4c   :  { %579 = vmatpush1.msra.mxu0 %v34_v19  ;;  %612 = vmatprep.mubr.f32.mxu0 %v1969_v3  ;;  %v195_v18 = vld [vmem:[%s3101_s0 + $0x548] sm:$0xff]  ;;  %v194_v19 = vld [vmem:[%s3101_s0 + $0x540] sm:$0xff] }
  0x4d   :  { %650 = vmatpush1.msra.mxu1 %v36_v20  ;;  %1893 = vmatmul.mubr.msk.f32.vlgmr.msra.gmra.mxu0 %vm260_vm0, %v2161_v49  ;;  %v196_v20 = vld [vmem:[%s3101_s0 + $0x550] sm:$0xff] }
  0x4e   :  { %683 = vmatprep.mubr.f32.mxu1 %v1969_v3  ;;  %698 = vmatprep.subr.mxu0 %v248_v21  ;;  %v176_v21 = vld [vmem:[%s3101_s0 + $0x4b0] sm:$0xff] }
  0x4f   :  { %769 = vmatprep.subr.mxu1 %v250_v22  ;;  %1894 = vmatmul.mubr.msk.f32.vlgmr.msra.gmra.mxu1 %vm260_vm0, %v2161_v49  ;;  %v175_v22 = vld [vmem:[%s3101_s0 + $0x4a8] sm:$0xff] }
  0x50   :  { %699 = vmatpush1.msra.mxu0 %v247_v23  ;;  %770 = vmatpush1.msra.mxu1 %v249_v24  ;;  %v177_v23 = vld [vmem:[%s3101_s0 + $0x4b8] sm:$0xff] }
  0x51   :  { %700 = vmatprep.subr.mxu0 %v229_v25  ;;  %771 = vmatprep.subr.mxu1 %v231_v26  ;;  %v157_v24 = vld [vmem:[%s3101_s0 + $0x418] sm:$0xff]  ;;  %v156_v25 = vld [vmem:[%s3101_s0 + $0x410] sm:$0xff]  ;;  %v158_v26 = vld [vmem:[%s3101_s0 + $0x420] sm:$0xff] }
  0x52   :  { %701 = vmatpush1.msra.mxu0 %v228_v27  ;;  %772 = vmatpush1.msra.mxu1 %v230_v28  ;;  %v138_v27 = vld [vmem:[%s3101_s0 + $0x380] sm:$0xff]  ;;  %v137_v28 = vld [vmem:[%s3101_s0 + $0x378] sm:$0xff] }
  0x53   :  { %702 = vmatprep.subr.mxu0 %v210_v29  ;;  %773 = vmatprep.subr.mxu1 %v212_v30  ;;  %v139_v29 = vld [vmem:[%s3101_s0 + $0x388] sm:$0xff] }
  0x54   :  { %703 = vmatpush1.msra.mxu0 %v209_v31  ;;  %774 = vmatpush1.msra.mxu1 %v211_v32  ;;  %v119_v30 = vld [vmem:[%s3101_s0 + $0x2e8] sm:$0xff]  ;;  %v118_v31 = vld [vmem:[%s3101_s0 + $0x2e0] sm:$0xff]  ;;  %v120_v32 = vld [vmem:[%s3101_s0 + $0x2f0] sm:$0xff] }
  0x55   :  { %704 = vmatprep.subr.mxu0 %v191_v33  ;;  %775 = vmatprep.subr.mxu1 %v193_v34  ;;  %v100_v33 = vld [vmem:[%s3101_s0 + $0x250] sm:$0xff]  ;;  %v99_v34 = vld [vmem:[%s3101_s0 + $0x248] sm:$0xff] }
  0x56   :  { %705 = vmatpush1.msra.mxu0 %v190_v35  ;;  %776 = vmatpush1.msra.mxu1 %v192_v36  ;;  %v101_v35 = vld [vmem:[%s3101_s0 + $0x258] sm:$0xff] }
  0x57   :  { %706 = vmatprep.subr.mxu0 %v172_v37  ;;  %777 = vmatprep.subr.mxu1 %v174_v38  ;;  %v81_v36 = vld [vmem:[%s3101_s0 + $0x1b8] sm:$0xff]  ;;  %v80_v37 = vld [vmem:[%s3101_s0 + $0x1b0] sm:$0xff]  ;;  %v82_v38 = vld [vmem:[%s3101_s0 + $0x1c0] sm:$0xff] }
  0x58   :  { %707 = vmatpush1.msra.mxu0 %v171_v39  ;;  %778 = vmatpush1.msra.mxu1 %v173_v40  ;;  %v62_v39 = vld [vmem:[%s3101_s0 + $0x120] sm:$0xff]  ;;  %v61_v40 = vld [vmem:[%s3101_s0 + $0x118] sm:$0xff] }
  0x59   :  { %708 = vmatprep.subr.mxu0 %v153_v41  ;;  %779 = vmatprep.subr.mxu1 %v155_v42  ;;  %v63_v41 = vld [vmem:[%s3101_s0 + $0x128] sm:$0xff] }
  0x5a   :  { %709 = vmatpush1.msra.mxu0 %v152_v43  ;;  %780 = vmatpush1.msra.mxu1 %v154_v44  ;;  %v43_v42 = vld [vmem:[%s3101_s0 + $0x88] sm:$0xff]  ;;  %v42_v43 = vld [vmem:[%s3101_s0 + $0x80] sm:$0xff]  ;;  %v44_v44 = vld [vmem:[%s3101_s0 + $0x90] sm:$0xff] }
  0x5b   :  { %710 = vmatprep.subr.mxu0 %v134_v45  ;;  %781 = vmatprep.subr.mxu1 %v136_v46  ;;  %v1098_v45 = vld [vmem:[%s3104_s3 + $0x1d0] sm:$0xff]  ;;  %v1100_v46 = vld [vmem:[%s3104_s3 + $0x1e0] sm:$0xff] }
  0x5c   :  { %711 = vmatpush1.msra.mxu0 %v133_v47  ;;  %782 = vmatpush1.msra.mxu1 %v135_v48  ;;  %v1097_v47 = vld [vmem:[%s3104_s3 + $0x1c8] sm:$0xff]  ;;  %v1099_v48 = vld [vmem:[%s3104_s3 + $0x1d8] sm:$0xff] }
  0x5d   :  { %712 = vmatprep.subr.mxu0 %v115_v50  ;;  %783 = vmatprep.subr.mxu1 %v117_v51  ;;  %v1079_v50 = vld [vmem:[%s3104_s3 + $0x138] sm:$0xff]  ;;  %v1081_v51 = vld [vmem:[%s3104_s3 + $0x148] sm:$0xff] }
  0x5e   :  { %713 = vmatpush1.msra.mxu0 %v114_v52  ;;  %784 = vmatpush1.msra.mxu1 %v116_v53  ;;  %v1078_v52 = vld [vmem:[%s3104_s3 + $0x130] sm:$0xff]  ;;  %v1080_v53 = vld [vmem:[%s3104_s3 + $0x140] sm:$0xff] }
  0x5f   :  { %714 = vmatprep.subr.mxu0 %v96_v54  ;;  %785 = vmatprep.subr.mxu1 %v98_v55  ;;  %v1060_v54 = vld [vmem:[%s3104_s3 + $0xa0] sm:$0xff]  ;;  %v1062_v55 = vld [vmem:[%s3104_s3 + $0xb0] sm:$0xff] }
  0x60   :  { %715 = vmatpush1.msra.mxu0 %v95_v56  ;;  %786 = vmatpush1.msra.mxu1 %v97_v57  ;;  %v1061_v56 = vld [vmem:[%s3104_s3 + $0xa8] sm:$0xff] }
  0x61   :  { %716 = vmatprep.subr.mxu0 %v77_v58  ;;  %787 = vmatprep.subr.mxu1 %v79_v59  ;;  %v1041_v57 = vld [vmem:[%s3104_s3 + $0x8] sm:$0xff]  ;;  %v1043_v58 = vld [vmem:[%s3104_s3 + $0x18] sm:$0xff]  ;;  %v1040_v59 = vld [vmem:[%s3104_s3] sm:$0xff] }
  0x62   :  { %717 = vmatpush1.msra.mxu0 %v76_v60  ;;  %788 = vmatpush1.msra.mxu1 %v78_v61  ;;  %v1042_v60 = vld [vmem:[%s3104_s3 + $0x10] sm:$0xff]  ;;  %v2798_v61 = vld [vmem:[%s3105_s4] sm:$0xf] }
  0x63   :  { %718 = vmatprep.subr.mxu0 %v58_v62  ;;  %789 = vmatprep.subr.mxu1 %v60_v63  ;;  %v1102_v62 = vld [vmem:[%s3104_s3 + $0x1f0] sm:$0xff]  ;;  %v1104_v63 = vld [vmem:[%s3104_s3 + $0x200] sm:$0xff] }
  0x64   :  { %1968 = vset.pattern.permute.xlu0 %v1970_v6  ;;  %719 = vmatpush1.msra.mxu0 %v57_v0  ;;  %v1101_v0 = vld [vmem:[%s3104_s3 + $0x1e8] sm:$0xff]  ;;  %v1084_v6 = vld [vmem:[%s3104_s3 + $0x160] sm:$0xff] }
  0x65   :  { %790 = vmatpush1.msra.mxu1 %v59_v1  ;;  %257 = vperm.xlu0 %1968, %v254_v2   ;;  %v1103_v1 = vld [vmem:[%s3104_s3 + $0x1f8] sm:$0xff] }
  0x66   :  { %720 = vmatprep.subr.mxu0 %v39_v4  ;;  %791 = vmatprep.subr.mxu1 %v41_v5  ;;  %v1083_v2 = vld [vmem:[%s3104_s3 + $0x158] sm:$0xff]  ;;  %v1085_v4 = vld [vmem:[%s3104_s3 + $0x168] sm:$0xff]  ;;  %v1082_v5 = vld [vmem:[%s3104_s3 + $0x150] sm:$0xff] }
  0x67   :  { %721 = vmatpush1.msra.mxu0 %v38_v7  ;;  %754 = vmatprep.mubr.f32.mxu0 %v1969_v3  ;;  %v1064_v7 = vld [vmem:[%s3104_s3 + $0xc0] sm:$0xff] }
  0x68   :  { %792 = vmatpush1.msra.mxu1 %v40_v8  ;;  %1895 = vmatmul.mubr.msk.f32.vlgmr.msra.gmra.mxu0 %vm260_vm0, %v2161_v49  ;;  %v1066_v8 = vld [vmem:[%s3104_s3 + $0xd0] sm:$0xff] }
  0x69   :  { %825 = vmatprep.mubr.f32.mxu1 %v1969_v3  ;;  %840 = vmatprep.subr.mxu0 %v252_v9  ;;  %v1063_v9 = vld [vmem:[%s3104_s3 + $0xb8] sm:$0xff] }
  0x6a   :  { %1927 = vmatprep.subr.mxu1 %v1969_v3  ;;  %1896 = vmatmul.mubr.msk.f32.vlgmr.msra.gmra.mxu1 %vm260_vm0, %v2161_v49 }
  0x6b   :  { %841 = vmatpush1.msra.mxu0 %v251_v10  ;;  %1928 = vmatpush3.msra.mxu1 %v253_v11  ;;  %v1065_v10 = vld [vmem:[%s3104_s3 + $0xc8] sm:$0xff] }
  0x6c   :  { %842 = vmatprep.subr.mxu0 %v233_v12  ;;  %1929 = vmatprep.subr.mxu1 %v1969_v3  ;;  %v1045_v11 = vld [vmem:[%s3104_s3 + $0x28] sm:$0xff]  ;;  %v1047_v12 = vld [vmem:[%s3104_s3 + $0x38] sm:$0xff] }
  0x6d   :  { %843 = vmatpush1.msra.mxu0 %v232_v13  ;;  %1930 = vmatpush3.msra.mxu1 %v234_v14  ;;  %v1044_v13 = vld [vmem:[%s3104_s3 + $0x20] sm:$0xff]  ;;  %v1046_v14 = vld [vmem:[%s3104_s3 + $0x30] sm:$0xff] }
  0x6e   :  { %844 = vmatprep.subr.mxu0 %v214_v15  ;;  %1931 = vmatprep.subr.mxu1 %v1969_v3  ;;  %v1106_v15 = vld [vmem:[%s3104_s3 + $0x210] sm:$0xff] }
  0x6f   :  { %845 = vmatpush1.msra.mxu0 %v213_v16  ;;  %1932 = vmatpush3.msra.mxu1 %v215_v17  ;;  %v1108_v16 = vld [vmem:[%s3104_s3 + $0x220] sm:$0xff]  ;;  %v1105_v17 = vld [vmem:[%s3104_s3 + $0x208] sm:$0xff] }
  0x70   :  { %846 = vmatprep.subr.mxu0 %v195_v18  ;;  %1933 = vmatprep.subr.mxu1 %v1969_v3  ;;  %v1107_v18 = vld [vmem:[%s3104_s3 + $0x218] sm:$0xff] }
  0x71   :  { %847 = vmatpush1.msra.mxu0 %v194_v19  ;;  %1934 = vmatpush3.msra.mxu1 %v196_v20  ;;  %v1087_v19 = vld [vmem:[%s3104_s3 + $0x178] sm:$0xff]  ;;  %v1089_v20 = vld [vmem:[%s3104_s3 + $0x188] sm:$0xff] }
  0x72   :  { %848 = vmatprep.subr.mxu0 %v176_v21  ;;  %1935 = vmatprep.subr.mxu1 %v1969_v3  ;;  %v1086_v21 = vld [vmem:[%s3104_s3 + $0x170] sm:$0xff] }
  0x73   :  { %849 = vmatpush1.msra.mxu0 %v175_v22  ;;  %1936 = vmatpush3.msra.mxu1 %v177_v23  ;;  %v1088_v22 = vld [vmem:[%s3104_s3 + $0x180] sm:$0xff] }
  0x74   :  { %850 = vmatprep.subr.mxu0 %v157_v24  ;;  %1937 = vmatprep.subr.mxu1 %v1969_v3  ;;  %v1068_v23 = vld [vmem:[%s3104_s3 + $0xe0] sm:$0xff]  ;;  %v1070_v24 = vld [vmem:[%s3104_s3 + $0xf0] sm:$0xff] }
  0x75   :  { %851 = vmatpush1.msra.mxu0 %v156_v25  ;;  %1938 = vmatpush3.msra.mxu1 %v158_v26  ;;  %v1067_v25 = vld [vmem:[%s3104_s3 + $0xd8] sm:$0xff]  ;;  %v1069_v26 = vld [vmem:[%s3104_s3 + $0xe8] sm:$0xff] }
  0x76   :  { %852 = vmatprep.subr.mxu0 %v138_v27  ;;  %1939 = vmatprep.subr.mxu1 %v1969_v3  ;;  %v1049_v27 = vld [vmem:[%s3104_s3 + $0x48] sm:$0xff] }
  0x77   :  { %853 = vmatpush1.msra.mxu0 %v137_v28  ;;  %1940 = vmatpush3.msra.mxu1 %v139_v29  ;;  %v1051_v28 = vld [vmem:[%s3104_s3 + $0x58] sm:$0xff]  ;;  %v1048_v29 = vld [vmem:[%s3104_s3 + $0x40] sm:$0xff] }
  0x78   :  { %854 = vmatprep.subr.mxu0 %v119_v30  ;;  %1941 = vmatprep.subr.mxu1 %v1969_v3  ;;  %v1050_v30 = vld [vmem:[%s3104_s3 + $0x50] sm:$0xff] }
  0x79   :  { %855 = vmatpush1.msra.mxu0 %v118_v31  ;;  %1942 = vmatpush3.msra.mxu1 %v120_v32  ;;  %v1110_v31 = vld [vmem:[%s3104_s3 + $0x230] sm:$0xff]  ;;  %v1112_v32 = vld [vmem:[%s3104_s3 + $0x240] sm:$0xff] }
  0x7a   :  { %856 = vmatprep.subr.mxu0 %v100_v33  ;;  %1943 = vmatprep.subr.mxu1 %v1969_v3  ;;  %v1109_v33 = vld [vmem:[%s3104_s3 + $0x228] sm:$0xff] }
  0x7b   :  { %857 = vmatpush1.msra.mxu0 %v99_v34  ;;  %1944 = vmatpush3.msra.mxu1 %v101_v35  ;;  %v1111_v34 = vld [vmem:[%s3104_s3 + $0x238] sm:$0xff] }
  0x7c   :  { %858 = vmatprep.subr.mxu0 %v81_v36  ;;  %1945 = vmatprep.subr.mxu1 %v1969_v3  ;;  %v1091_v35 = vld [vmem:[%s3104_s3 + $0x198] sm:$0xff]  ;;  %v1093_v36 = vld [vmem:[%s3104_s3 + $0x1a8] sm:$0xff] }
  0x7d   :  { %859 = vmatpush1.msra.mxu0 %v80_v37  ;;  %1946 = vmatpush3.msra.mxu1 %v82_v38  ;;  %v1090_v37 = vld [vmem:[%s3104_s3 + $0x190] sm:$0xff]  ;;  %v1092_v38 = vld [vmem:[%s3104_s3 + $0x1a0] sm:$0xff] }
  0x7e   :  { %860 = vmatprep.subr.mxu0 %v62_v39  ;;  %1947 = vmatprep.subr.mxu1 %v1969_v3  ;;  %v1072_v39 = vld [vmem:[%s3104_s3 + $0x100] sm:$0xff] }
  0x7f   :  { %861 = vmatpush1.msra.mxu0 %v61_v40  ;;  %1948 = vmatpush3.msra.mxu1 %v63_v41  ;;  %v1074_v40 = vld [vmem:[%s3104_s3 + $0x110] sm:$0xff]  ;;  %v1071_v41 = vld [vmem:[%s3104_s3 + $0xf8] sm:$0xff] }
  0x80   :  { %862 = vmatprep.subr.mxu0 %v43_v42  ;;  %1949 = vmatprep.subr.mxu1 %v1969_v3  ;;  %v1073_v42 = vld [vmem:[%s3104_s3 + $0x108] sm:$0xff] }
  0x81   :  { %863 = vmatpush1.msra.mxu0 %v42_v43  ;;  %896 = vmatprep.mubr.f32.mxu0 %v1969_v3  ;;  %v1053_v43 = vld [vmem:[%s3104_s3 + $0x68] sm:$0xff] }
  0x82   :  { %1950 = vmatpush3.msra.mxu1 %v44_v44  ;;  %1897 = vmatmul.mubr.msk.f32.vlgmr.msra.gmra.mxu0 %vm260_vm0, %v2161_v49  ;;  %v1055_v44 = vld [vmem:[%s3104_s3 + $0x78] sm:$0xff] }
  0x83   :  { %1951 = vmatprep.mubr.msk.f32.mxu1 %vm1971_vm1, %v1969_v3  ;;  %1150 = vmatprep.subr.mxu0 %v1098_v45  ;;  %v1052_v45 = vld [vmem:[%s3104_s3 + $0x60] sm:$0xff] }
  0x84   :  { %1221 = vmatprep.subr.mxu1 %v1100_v46  ;;  %1952 = vmatmul.mubr.msk.f32.vlgmr.msra.gmra.mxu1 %vm260_vm0, %v2161_v49  ;;  %v1059_v49 = vld [vmem:[%s3104_s3 + $0x98] sm:$0xff]  ;;  %v1054_v46 = vld [vmem:[%s3104_s3 + $0x70] sm:$0xff] }
  0x85   :  { %1151 = vmatpush1.msra.mxu0 %v1097_v47  ;;  %1222 = vmatpush1.msra.mxu1 %v1099_v48  ;;  %v1114_v47 = vld [vmem:[%s3104_s3 + $0x250] sm:$0xff]  ;;  %v1113_v48 = vld [vmem:[%s3104_s3 + $0x248] sm:$0xff] }
  0x86   :  { %1152 = vmatprep.subr.mxu0 %v1079_v50  ;;  %1223 = vmatprep.subr.mxu1 %v1081_v51  ;;  %v1115_v50 = vld [vmem:[%s3104_s3 + $0x258] sm:$0xff] }
  0x87   :  { %1153 = vmatpush1.msra.mxu0 %v1078_v52  ;;  %1224 = vmatpush1.msra.mxu1 %v1080_v53  ;;  %v1095_v51 = vld [vmem:[%s3104_s3 + $0x1b8] sm:$0xff]  ;;  %v1094_v52 = vld [vmem:[%s3104_s3 + $0x1b0] sm:$0xff]  ;;  %v1096_v53 = vld [vmem:[%s3104_s3 + $0x1c0] sm:$0xff] }
  0x88   :  { %1154 = vmatprep.subr.mxu0 %v1060_v54  ;;  %1225 = vmatprep.subr.mxu1 %v1062_v55  ;;  %v1076_v54 = vld [vmem:[%s3104_s3 + $0x120] sm:$0xff]  ;;  %v1075_v55 = vld [vmem:[%s3104_s3 + $0x118] sm:$0xff] }
  0x89   :  { %1155 = vmatpush1.msra.mxu0 %v1059_v49  ;;  %1226 = vmatpush1.msra.mxu1 %v1061_v56  ;;  %v1077_v49 = vld [vmem:[%s3104_s3 + $0x128] sm:$0xff] }
  0x8a   :  { %1156 = vmatprep.subr.mxu0 %v1041_v57  ;;  %1227 = vmatprep.subr.mxu1 %v1043_v58  ;;  %v1057_v56 = vld [vmem:[%s3104_s3 + $0x88] sm:$0xff]  ;;  %v1056_v57 = vld [vmem:[%s3104_s3 + $0x80] sm:$0xff]  ;;  %v1058_v58 = vld [vmem:[%s3104_s3 + $0x90] sm:$0xff] }
  0x8b   :  { %1157 = vmatpush1.msra.mxu0 %v1040_v59  ;;  %1190 = vmatprep.mubr.f32.mxu0 %v1969_v3  ;;  %v1116_v59 = vld [vmem:[%s3106_s5] sm:$0xf] }
  0x8c   :  { %1228 = vmatpush1.msra.mxu1 %v1042_v60  ;;  %1899 = vmatmul.mubr.msk.f32.vlgmr.msra.gmra.mxu0 %vm1122_vm2, %v2798_v61 }
  0x8d   :  { %1261 = vmatprep.mubr.f32.mxu1 %v1969_v3  ;;  %1292 = vmatprep.subr.mxu0 %v1102_v62 }
  0x8e   :  { %1363 = vmatprep.subr.mxu1 %v1104_v63  ;;  %1900 = vmatmul.mubr.msk.f32.vlgmr.msra.gmra.mxu1 %vm1122_vm2, %v2798_v61 }
  0x8f   :  { %1293 = vmatpush1.msra.mxu0 %v1101_v0  ;;  %1364 = vmatpush1.msra.mxu1 %v1103_v1 }
  0x90   :  { %1294 = vmatprep.subr.mxu0 %v1083_v2  ;;  %1365 = vmatprep.subr.mxu1 %v1085_v4 }
  0x91   :  { %1295 = vmatpush1.msra.mxu0 %v1082_v5  ;;  %1366 = vmatpush1.msra.mxu1 %v1084_v6 }
  0x92   :  { %1296 = vmatprep.subr.mxu0 %v1064_v7  ;;  %1367 = vmatprep.subr.mxu1 %v1066_v8 }
  0x93   :  { %1297 = vmatpush1.msra.mxu0 %v1063_v9  ;;  %1368 = vmatpush1.msra.mxu1 %v1065_v10 }
  0x94   :  { %1298 = vmatprep.subr.mxu0 %v1045_v11  ;;  %1369 = vmatprep.subr.mxu1 %v1047_v12 }
  0x95   :  { %1299 = vmatpush1.msra.mxu0 %v1044_v13  ;;  %1332 = vmatprep.mubr.f32.mxu0 %v1969_v3 }
  0x96   :  { %1370 = vmatpush1.msra.mxu1 %v1046_v14  ;;  %1901 = vmatmul.mubr.msk.f32.vlgmr.msra.gmra.mxu0 %vm1122_vm2, %v2798_v61 }
  0x97   :  { %1403 = vmatprep.mubr.f32.mxu1 %v1969_v3  ;;  %1434 = vmatprep.subr.mxu0 %v1106_v15 }
  0x98   :  { %1505 = vmatprep.subr.mxu1 %v1108_v16  ;;  %1902 = vmatmul.mubr.msk.f32.vlgmr.msra.gmra.mxu1 %vm1122_vm2, %v2798_v61 }
  0x99   :  { %1435 = vmatpush1.msra.mxu0 %v1105_v17  ;;  %1506 = vmatpush1.msra.mxu1 %v1107_v18 }
  0x9a   :  { %1436 = vmatprep.subr.mxu0 %v1087_v19  ;;  %1507 = vmatprep.subr.mxu1 %v1089_v20 }
  0x9b   :  { %1437 = vmatpush1.msra.mxu0 %v1086_v21  ;;  %1508 = vmatpush1.msra.mxu1 %v1088_v22 }
  0x9c   :  { %1438 = vmatprep.subr.mxu0 %v1068_v23  ;;  %1509 = vmatprep.subr.mxu1 %v1070_v24 }
  0x9d   :  { %1439 = vmatpush1.msra.mxu0 %v1067_v25  ;;  %1510 = vmatpush1.msra.mxu1 %v1069_v26 }
  0x9e   :  { %1440 = vmatprep.subr.mxu0 %v1049_v27  ;;  %1511 = vmatprep.subr.mxu1 %v1051_v28 }
  0x9f   :  { %1441 = vmatpush1.msra.mxu0 %v1048_v29  ;;  %1474 = vmatprep.mubr.f32.mxu0 %v1969_v3 }
  0xa0   :  { %1512 = vmatpush1.msra.mxu1 %v1050_v30  ;;  %1903 = vmatmul.mubr.msk.f32.vlgmr.msra.gmra.mxu0 %vm1122_vm2, %v2798_v61 }
  0xa1   :  { %1545 = vmatprep.mubr.f32.mxu1 %v1969_v3  ;;  %1576 = vmatprep.subr.mxu0 %v1110_v31 }
  0xa2   :  { %1647 = vmatprep.subr.mxu1 %v1112_v32  ;;  %1904 = vmatmul.mubr.msk.f32.vlgmr.msra.gmra.mxu1 %vm1122_vm2, %v2798_v61 }
  0xa3   :  { %1577 = vmatpush1.msra.mxu0 %v1109_v33  ;;  %1648 = vmatpush1.msra.mxu1 %v1111_v34 }
  0xa4   :  { %1578 = vmatprep.subr.mxu0 %v1091_v35  ;;  %1649 = vmatprep.subr.mxu1 %v1093_v36 }
  0xa5   :  { %1579 = vmatpush1.msra.mxu0 %v1090_v37  ;;  %1650 = vmatpush1.msra.mxu1 %v1092_v38 }
  0xa6   :  { %1580 = vmatprep.subr.mxu0 %v1072_v39  ;;  %1651 = vmatprep.subr.mxu1 %v1074_v40 }
  0xa7   :  { %1581 = vmatpush1.msra.mxu0 %v1071_v41  ;;  %1652 = vmatpush1.msra.mxu1 %v1073_v42 }
  0xa8   :  { %1582 = vmatprep.subr.mxu0 %v1053_v43  ;;  %1653 = vmatprep.subr.mxu1 %v1055_v44 }
  0xa9   :  { %1583 = vmatpush1.msra.mxu0 %v1052_v45  ;;  %1616 = vmatprep.mubr.f32.mxu0 %v1969_v3 }
  0xaa   :  { %1654 = vmatpush1.msra.mxu1 %v1054_v46  ;;  %1905 = vmatmul.mubr.msk.f32.vlgmr.msra.gmra.mxu0 %vm1122_vm2, %v2798_v61 }
  0xab   :  { %1687 = vmatprep.mubr.f32.mxu1 %v1969_v3  ;;  %1718 = vmatprep.subr.mxu0 %v1114_v47 }
  0xac   :  { %1954 = vmatprep.subr.mxu1 %v1969_v3  ;;  %1906 = vmatmul.mubr.msk.f32.vlgmr.msra.gmra.mxu1 %vm1122_vm2, %v2798_v61 }
  0xad   :  { %1719 = vmatpush1.msra.mxu0 %v1113_v48  ;;  %1955 = vmatpush3.msra.mxu1 %v1115_v50 }
  0xae   :  { %1720 = vmatprep.subr.mxu0 %v1095_v51  ;;  %1956 = vmatprep.subr.mxu1 %v1969_v3 }
  0xaf   :  { %1721 = vmatpush1.msra.mxu0 %v1094_v52  ;;  %1957 = vmatpush3.msra.mxu1 %v1096_v53 }
  0xb0   :  { %1722 = vmatprep.subr.mxu0 %v1076_v54  ;;  %1958 = vmatprep.subr.mxu1 %v1969_v3 }
  0xb1   :  { %1723 = vmatpush1.msra.mxu0 %v1075_v55  ;;  %1959 = vmatpush3.msra.mxu1 %v1077_v49 }
  0xb2   :  { %1724 = vmatprep.subr.mxu0 %v1057_v56  ;;  %1960 = vmatprep.subr.mxu1 %v1969_v3 }
  0xb3   :  { %1725 = vmatpush1.msra.mxu0 %v1056_v57  ;;  %1758 = vmatprep.mubr.f32.mxu0 %v1969_v3 }
  0xb4   :  { %1961 = vmatpush3.msra.mxu1 %v1058_v58  ;;  %1962 = vmatprep.mubr.msk.f32.mxu1 %vm1971_vm1, %v1969_v3 }
  0xb5   :  { %1907 = vmatmul.mubr.msk.f32.vlgmr.msra.gmra.mxu0 %vm1122_vm2, %v2798_v61  ;;  %1963 = vmatmul.mubr.msk.f32.vlgmr.msra.gmra.mxu1 %vm1122_vm2, %v2798_v61 }
  0xb6   :  { %1119 = vperm.xlu0 %1968, %v1116_v59  }
  0xda   :  { %v330_v60 = vpop.f32.mrf.mxu0 }
  0xdb   :  { %v401_v62 = vpop.f32.mrf.mxu1 }
  0xdc   :  { %v332_v63 = vpop.f32.mrf.mxu0 }
  0xdd   :  { %v403_v0 = vpop.f32.mrf.mxu1 }
  0xe0   :  { %v3018_v1 = vpop.permute.xlu0 %257 }
  0xe1   :  { %v331_v2 = vadd.f32 %v330_v60, %v3018_v1  ;;  %v333_v4 = vadd.f32 %v332_v63, %v3018_v1  ;;  %v402_v5 = vadd.f32 %v401_v62, %v3018_v1  ;;  %v404_v3 = vadd.f32 %v403_v0, %v3018_v1 }
  0xe3   :  { %v973_v6 = vmax.f32 %v331_v2, 0.0  ;;  %v974_v7 = vmax.f32 %v333_v4, 0.0  ;;  %v975_v8 = vmax.f32 %v402_v5, 0.0  ;;  %v976_v9 = vmax.f32 %v404_v3, 0.0 }
  0xe5   :  { %v1010_v61 = vcombine.low %v973_v6, %v974_v7  ;;  %v1011_v10 = vcombine.low %v975_v8, %v976_v9 }
  0xe7   :  { %1028 = vst [vmem:[%s3107_s6] sm:$0xff] %v1010_v61  ;;  %1029 = vst [vmem:[%s3107_s6 + $0x8] sm:$0xff] %v1011_v10 }
  0xf3   :  { %v472_v11 = vpop.f32.mrf.mxu0 }
  0xf4   :  { %v473_v12 = vadd.f32 %v472_v11, %v3018_v1 }
  0xf5   :  { %v474_v13 = vpop.f32.mrf.mxu0  ;;  %v543_v14 = vpop.f32.mrf.mxu1 }
  0xf6   :  { %v977_v15 = vmax.f32 %v473_v12, 0.0  ;;  %v475_v16 = vadd.f32 %v474_v13, %v3018_v1  ;;  %v544_v17 = vadd.f32 %v543_v14, %v3018_v1 }
  0xf7   :  { %v545_v18 = vpop.f32.mrf.mxu1 }
  0xf8   :  { %v978_v19 = vmax.f32 %v475_v16, 0.0  ;;  %v979_v20 = vmax.f32 %v544_v17, 0.0  ;;  %v546_v21 = vadd.f32 %v545_v18, %v3018_v1 }
  0xfa   :  { %v1012_v22 = vcombine.low %v977_v15, %v978_v19  ;;  %v980_v23 = vmax.f32 %v546_v21, 0.0 }
  0xfc   :  { %1030 = vst [vmem:[%s3107_s6 + $0x10] sm:$0xff] %v1012_v22  ;;  %v1013_v24 = vcombine.low %v979_v20, %v980_v23 }
  0xfe   :  { %1031 = vst [vmem:[%s3107_s6 + $0x18] sm:$0xff] %v1013_v24 }
 0x10d   :  { %v614_v25 = vpop.f32.mrf.mxu0 }
 0x10e   :  { %v615_v26 = vadd.f32 %v614_v25, %v3018_v1 }
 0x10f   :  { %v616_v27 = vpop.f32.mrf.mxu0  ;;  %v685_v28 = vpop.f32.mrf.mxu1 }
 0x110   :  { %v981_v29 = vmax.f32 %v615_v26, 0.0  ;;  %v617_v30 = vadd.f32 %v616_v27, %v3018_v1  ;;  %v686_v31 = vadd.f32 %v685_v28, %v3018_v1 }
 0x111   :  { %v687_v32 = vpop.f32.mrf.mxu1 }
 0x112   :  { %v982_v33 = vmax.f32 %v617_v30, 0.0  ;;  %v983_v34 = vmax.f32 %v686_v31, 0.0  ;;  %v688_v35 = vadd.f32 %v687_v32, %v3018_v1 }
 0x114   :  { %v1014_v36 = vcombine.low %v981_v29, %v982_v33  ;;  %v984_v37 = vmax.f32 %v688_v35, 0.0 }
 0x116   :  { %1032 = vst [vmem:[%s3107_s6 + $0x20] sm:$0xff] %v1014_v36  ;;  %v1015_v38 = vcombine.low %v983_v34, %v984_v37 }
 0x118   :  { %1033 = vst [vmem:[%s3107_s6 + $0x28] sm:$0xff] %v1015_v38 }
 0x128   :  { %v756_v39 = vpop.f32.mrf.mxu0 }
 0x129   :  { %v757_v40 = vadd.f32 %v756_v39, %v3018_v1 }
 0x12a   :  { %v758_v41 = vpop.f32.mrf.mxu0  ;;  %v827_v42 = vpop.f32.mrf.mxu1 }
 0x12b   :  { %v985_v43 = vmax.f32 %v757_v40, 0.0  ;;  %v759_v44 = vadd.f32 %v758_v41, %v3018_v1  ;;  %v828_v45 = vadd.f32 %v827_v42, %v3018_v1 }
 0x12c   :  { %v829_v46 = vpop.f32.mrf.mxu1 }
 0x12d   :  { %v986_v47 = vmax.f32 %v759_v44, 0.0  ;;  %v987_v48 = vmax.f32 %v828_v45, 0.0  ;;  %v830_v50 = vadd.f32 %v829_v46, %v3018_v1 }
 0x12f   :  { %v1016_v51 = vcombine.low %v985_v43, %v986_v47  ;;  %v988_v52 = vmax.f32 %v830_v50, 0.0 }
 0x131   :  { %1034 = vst [vmem:[%s3107_s6 + $0x30] sm:$0xff] %v1016_v51  ;;  %v1017_v53 = vcombine.low %v987_v48, %v988_v52  ;;  %v1120_v2 = vpop.permute.xlu0 %1119 }
 0x133   :  { %1035 = vst [vmem:[%s3107_s6 + $0x38] sm:$0xff] %v1017_v53 }
 0x142   :  { %v898_v54 = vpop.f32.mrf.mxu0 }
 0x143   :  { %v899_v55 = vadd.f32 %v898_v54, %v3018_v1 }
 0x144   :  { %v900_v49 = vpop.f32.mrf.mxu0  ;;  %v969_v56 = vpop.f32.mrf.mxu1 }
 0x145   :  { %v989_v57 = vmax.f32 %v899_v55, 0.0  ;;  %v901_v58 = vadd.f32 %v900_v49, %v3018_v1  ;;  %v970_v59 = vadd.f32 %v969_v56, %v3018_v1 }
 0x146   :  { %v1953_v60 = vpop.f32.mrf.mxu1 }
 0x147   :  { %v990_v62 = vmax.f32 %v901_v58, 0.0  ;;  %v991_v63 = vmax.f32 %v970_v59, 0.0 }
 0x149   :  { %v1018_v0 = vcombine.low %v989_v57, %v990_v62  ;;  %1038 = vst.msk [vmem:[%s3107_s6 + $0x48] sm:$0xf] %vm1037_vm3, %v991_v63 }
 0x14b   :  { %1036 = vst [vmem:[%s3107_s6 + $0x40] sm:$0xff] %v1018_v0 }
 0x14c   :  { %v1192_v4 = vpop.f32.mrf.mxu0 }
 0x14d   :  { %v1193_v5 = vadd.f32 %v1192_v4, %v1120_v2 }
 0x14e   :  { %v1194_v3 = vpop.f32.mrf.mxu0  ;;  %v1263_v6 = vpop.f32.mrf.mxu1 }
 0x14f   :  { %v1195_v1 = vadd.f32 %v1194_v3, %v1120_v2  ;;  %v1264_v7 = vadd.f32 %v1263_v6, %v1120_v2 }
 0x150   :  { %v1265_v8 = vpop.f32.mrf.mxu1 }
 0x151   :  { %v1853_v9 = vcombine.low %v1193_v5, %v1195_v1  ;;  %v1266_v61 = vadd.f32 %v1265_v8, %v1120_v2 }
 0x153   :  { %1871 = vst [vmem:[%s3108_s7] sm:$0xff] %v1853_v9  ;;  %v1854_v10 = vcombine.low %v1264_v7, %v1266_v61 }
 0x155   :  { %1872 = vst [vmem:[%s3108_s7 + $0x8] sm:$0xff] %v1854_v10 }
 0x156   :  { %v1334_v11 = vpop.f32.mrf.mxu0 }
 0x157   :  { %v1335_v12 = vadd.f32 %v1334_v11, %v1120_v2 }
 0x158   :  { %v1336_v13 = vpop.f32.mrf.mxu0  ;;  %v1405_v14 = vpop.f32.mrf.mxu1 }
 0x159   :  { %v1337_v15 = vadd.f32 %v1336_v13, %v1120_v2  ;;  %v1406_v16 = vadd.f32 %v1405_v14, %v1120_v2 }
 0x15a   :  { %v1407_v17 = vpop.f32.mrf.mxu1 }
 0x15b   :  { %v1855_v18 = vcombine.low %v1335_v12, %v1337_v15  ;;  %v1408_v19 = vadd.f32 %v1407_v17, %v1120_v2 }
 0x15d   :  { %1873 = vst [vmem:[%s3108_s7 + $0x10] sm:$0xff] %v1855_v18  ;;  %v1856_v20 = vcombine.low %v1406_v16, %v1408_v19 }
 0x15f   :  { %1874 = vst [vmem:[%s3108_s7 + $0x18] sm:$0xff] %v1856_v20 }
 0x160   :  { %v1476_v21 = vpop.f32.mrf.mxu0 }
 0x161   :  { %v1477_v22 = vadd.f32 %v1476_v21, %v1120_v2 }
 0x162   :  { %v1478_v23 = vpop.f32.mrf.mxu0  ;;  %v1547_v24 = vpop.f32.mrf.mxu1 }
 0x163   :  { %v1479_v25 = vadd.f32 %v1478_v23, %v1120_v2  ;;  %v1548_v26 = vadd.f32 %v1547_v24, %v1120_v2 }
 0x164   :  { %v1549_v27 = vpop.f32.mrf.mxu1 }
 0x165   :  { %v1857_v28 = vcombine.low %v1477_v22, %v1479_v25  ;;  %v1550_v29 = vadd.f32 %v1549_v27, %v1120_v2 }
 0x167   :  { %1875 = vst [vmem:[%s3108_s7 + $0x20] sm:$0xff] %v1857_v28  ;;  %v1858_v30 = vcombine.low %v1548_v26, %v1550_v29 }
 0x169   :  { %1876 = vst [vmem:[%s3108_s7 + $0x28] sm:$0xff] %v1858_v30 }
 0x16a   :  { %v1618_v31 = vpop.f32.mrf.mxu0 }
 0x16b   :  { %v1619_v32 = vadd.f32 %v1618_v31, %v1120_v2 }
 0x16c   :  { %v1620_v33 = vpop.f32.mrf.mxu0  ;;  %v1689_v34 = vpop.f32.mrf.mxu1 }
 0x16d   :  { %v1621_v35 = vadd.f32 %v1620_v33, %v1120_v2  ;;  %v1690_v36 = vadd.f32 %v1689_v34, %v1120_v2 }
 0x16e   :  { %v1691_v37 = vpop.f32.mrf.mxu1 }
 0x16f   :  { %v1859_v38 = vcombine.low %v1619_v32, %v1621_v35  ;;  %v1692_v39 = vadd.f32 %v1691_v37, %v1120_v2 }
 0x171   :  { %1877 = vst [vmem:[%s3108_s7 + $0x30] sm:$0xff] %v1859_v38  ;;  %v1860_v40 = vcombine.low %v1690_v36, %v1692_v39 }
 0x173   :  { %1878 = vst [vmem:[%s3108_s7 + $0x38] sm:$0xff] %v1860_v40 }
 0x175   :  { %v1760_v41 = vpop.f32.mrf.mxu0  ;;  %v1831_v42 = vpop.f32.mrf.mxu1 }
 0x176   :  { %v1832_v43 = vadd.f32 %v1831_v42, %v1120_v2  ;;  %v1761_v46 = vadd.f32 %v1760_v41, %v1120_v2 }
 0x177   :  { %v1762_v44 = vpop.f32.mrf.mxu0  ;;  %v1964_v45 = vpop.f32.mrf.mxu1 }
 0x178   :  { %1880 = vst.msk [vmem:[%s3108_s7 + $0x48] sm:$0xf] %vm1037_vm3, %v1832_v43  ;;  %v1763_v47 = vadd.f32 %v1762_v44, %v1120_v2 }
 0x17a   :  { %v1861_v48 = vcombine.low %v1761_v46, %v1763_v47 }
 0x17c   :  { %1879 = vst [vmem:[%s3108_s7 + $0x40] sm:$0xff] %v1861_v48 }

// kernel: multi_level_encoder_forward.3
= control target key start
LH: loop header
LB: loop body
LE: loop exit
PB: predicated region body
PF: predicated region fallthrough
CT: control target
= control target key end

     0   :  { %s11442_s26 = smov 0   ;;  %s11444_s27 = smov 0   ;;  %s15951_s0 = inlined_call_operand.vmem [shape: f32[4,56,64], index: 0, kind: input, shape index: {}]   ;;  %s15952_s1 = inlined_call_operand.vmem [shape: f32[4,1,56], index: 1, kind: input, shape index: {}]   ;;  %s15953_s2 = inlined_call_operand.vmem [shape: f32[4,56,56], index: 2, kind: input, shape index: {}]   ;;  %s15954_s3 = inlined_call_operand.vmem [shape: f32[4,56,56], index: 3, kind: input, shape index: {}]   ;;  %s15955_s4 = inlined_call_operand.vmem [shape: bf16[2,64,192], index: 4, kind: input, shape index: {}]   ;;  %s15956_s5 = inlined_call_operand.vmem [shape: f32[2,1,192], index: 5, kind: input, shape index: {}]   ;;  %s15957_s6 = inlined_call_operand.vmem [shape: bf16[2,4,16,64], index: 6, kind: input, shape index: {}]   ;;  %s15958_s7 = inlined_call_operand.vmem [shape: f32[2,1,64], index: 7, kind: input, shape index: {}]   ;;  %s15959_s8 = inlined_call_operand.vmem [shape: f32[2,1,64], index: 8, kind: input, shape index: {}]   ;;  %s15960_s9 = inlined_call_operand.vmem [shape: f32[2,1,64], index: 9, kind: input, shape index: {}]   ;;  %s15961_s10 = inlined_call_operand.vmem [shape: bf16[2,64,192], index: 10, kind: input, shape index: {}]   ;;  %s15962_s11 = inlined_call_operand.vmem [shape: f32[2,1,192], index: 11, kind: input, shape index: {}]   ;;  %s15963_s12 = inlined_call_operand.vmem [shape: bf16[2,4,16,64], index: 12, kind: input, shape index: {}]   ;;  %s15964_s13 = inlined_call_operand.vmem [shape: f32[2,1,64], index: 13, kind: input, shape index: {}]   ;;  %s15965_s14 = inlined_call_operand.vmem [shape: f32[2,1,64], index: 14, kind: input, shape index: {}]   ;;  %s15966_s15 = inlined_call_operand.vmem [shape: f32[2,1,64], index: 15, kind: input, shape index: {}]   ;;  %s15967_s16 = inlined_call_operand.vmem [shape: f32[2,1,64], index: 16, kind: input, shape index: {}]   ;;  %s15968_s17 = inlined_call_operand.vmem [shape: f32[2,1,64], index: 17, kind: input, shape index: {}]   ;;  %s15969_s18 = inlined_call_operand.vmem [shape: bf16[2,64,128], index: 18, kind: input, shape index: {}]   ;;  %s15970_s19 = inlined_call_operand.vmem [shape: f32[2,1,128], index: 19, kind: input, shape index: {}]   ;;  %s15971_s20 = inlined_call_operand.vmem [shape: bf16[2,128,64], index: 20, kind: input, shape index: {}]   ;;  %s15972_s21 = inlined_call_operand.vmem [shape: f32[2,1,64], index: 21, kind: input, shape index: {}]   ;;  %s15973_s22 = inlined_call_operand.vmem [shape: f32[2,1,64], index: 22, kind: input, shape index: {}]   ;;  %s15974_s23 = inlined_call_operand.vmem [shape: f32[2,1,64], index: 23, kind: input, shape index: {}]   ;;  %s15975_s24 = inlined_call_operand.vmem [shape: f32[4,56,64], index: 24, kind: output, shape index: {}]  }
   0x1   :  { %16009 = sst [smem:[#allocation47_spill]] %s15951_s0  ;;  %s11446_s28 = smov 0  }
   0x2   :  { %16010 = sst [smem:[#allocation48_spill]] %s15952_s1 }
   0x3   :  { %16011 = sst [smem:[#allocation49_spill]] %s15953_s2 }
   0x4   :  { %16012 = sst [smem:[#allocation50_spill]] %s15954_s3 }
   0x5   :  { %16013 = sst [smem:[#allocation51_spill]] %s15955_s4 }
   0x6   :  { %16014 = sst [smem:[#allocation52_spill]] %s15956_s5  ;;  %s11440_s5 = smov 0  }
   0x7   :  { %16015 = sst [smem:[#allocation53_spill]] %s15957_s6  ;;  %s11448_s6 = smov 0  }
   0x8   :  { %16016 = sst [smem:[#allocation54_spill]] %s15958_s7 }
   0x9   :  { %16017 = sst [smem:[#allocation55_spill]] %s15959_s8 }
   0xa   :  { %16018 = sst [smem:[#allocation56_spill]] %s15961_s10 }
   0xb   :  { %16019 = sst [smem:[#allocation57_spill]] %s15962_s11 }
   0xc   :  { %16020 = sst [smem:[#allocation58_spill]] %s15963_s12 }
   0xd   :  { %16021 = sst [smem:[#allocation59_spill]] %s15965_s14 }
   0xe   :  { %16022 = sst [smem:[#allocation60_spill]] %s15967_s16 }
   0xf   :  { %16023 = sst [smem:[#allocation61_spill]] %s15968_s17 }
  0x10   :  { %16024 = sst [smem:[#allocation62_spill]] %s15969_s18 }
  0x11   :  { %16025 = sst [smem:[#allocation63_spill]] %s15970_s19 }
  0x12   :  { %16026 = sst [smem:[#allocation64_spill]] %s15971_s20 }
  0x13   :  { %16027 = sst [smem:[#allocation65_spill]] %s15972_s21 }
  0x14   :  { %16028 = sst [smem:[#allocation66_spill]] %s15973_s22 }
  0x15   :  { %16029 = sst [smem:[#allocation67_spill]] %s15974_s23 }
  0x16   :  { %16030 = sst [smem:[#allocation68_spill]] %s15975_s24 }
  0x17 LB: > { %16031 = sst [smem:[#allocation2_spill]] %s11287_s5  ;;  %s43_s2 = sadd.s32 1, %s11295_s27  ;;  %s11303_s6 = sphi %s11448_s6, %s34_s6   ;;  %s11299_s28 = sphi %s11446_s28, %s16230_s28   ;;  %s11295_s27 = sphi %s11444_s27, %s16229_s27   ;;  %s11291_s26 = sphi %s11442_s26, %s16228_s26   ;;  %s11287_s5 = sphi %s11440_s5, %s16227_s5  }
  0x18   : > { %16032 = sst [smem:[#allocation3_spill]] %s11295_s27  ;;  %s46_s29 = sadd.s32 1, %s11299_s28 }
  0x19   : > { %16033 = sst [smem:[#allocation4_spill]] %s11299_s28  ;;  %p44_p0 = scmp.ge.s32.totalorder %s43_s2, 2 }
  0x1a   : > { %16034 = sst [smem:[#allocation5_spill]] %s11303_s6  ;;  %p8971_p1 = scmp.ge.s32.totalorder %s11303_s6, 1 }
  0x1b   : > { %p860_p2 = scmp.lt.s32.totalorder %s11303_s6, 5  ;;  %s16232_s2 = smov (%p44_p0, %s43_s2), 0 }
  0x1c   : > { %16035 = sst [smem:[#allocation6_spill]] %s16232_s2  ;;  %s16234_s29 = smov (!%p44_p0, %s46_s29), %s11299_s28 }
  0x1d   : > { %p861_p3 = pnand %p8971_p1, %p860_p2  ;;  %p48_p4 = scmp.ge.s32.totalorder %s16234_s29, 2 }
  0x1f   : > { %s16236_s29 = smov (%p48_p4, %s16234_s29), 0  ;;  %864 = sbr.rel (%p861_p3) target bundleno = 7374 (0x1cce), region = 116 }
  0x20   : > { %16036 = sst [smem:[#allocation7_spill]] %s16236_s29 }
  0x24   : > { %s8972_s0 = sshll.u32 %s11291_s26, 1  ;;  %p1018_p5 = scmp.lt.s32.totalorder %s11287_s5, 1 }
  0x25   : > { %p1007_p6 = scmp.lt.s32.totalorder %s8972_s0, 3  ;;  %s16037_s1 = sld [smem:[#allocation48_spill]] }
  0x26   : > { %s11474_s7 = scalar_select %p1018_p5, %s11287_s5, 1 }
  0x27   : > { %s16238_s0 = smov (!%p1007_p6, %s8972_s0), 3  ;;  %s16039_s28 = sld [smem:[#allocation51_spill]] }
  0x28   : > { %s9303_s30 = sshll.u32 %s11474_s7, 6  ;;  %s8977_s3 = sshll.u32 %s11474_s7, 1 }
  0x29   : > { %s10575_s25 = smul.u32 56, %s16238_s0  ;;  %s16041_s24 = sld [smem:[#allocation52_spill]] }
  0x2a   : > { %s16043_s20 = sld [smem:[#allocation47_spill]]  ;;  %s9304_s8 = sshll.u32 %s11474_s7, 5 }
  0x2b   : > { %s11481_s26 = scalar_lea.vmem %s16037_s1, %s16238_s0  ;;  %s16045_s1 = sld [smem:[#allocation53_spill]] }
  0x2c   : > { %16038 = sst [smem:[#allocation8_spill]] %s11481_s26 }
  0x2d   : > { %s11486_s27 = scalar_lea.vmem %s16039_s28, %s9303_s30  ;;  %s16048_s10 = sld [smem:[#allocation56_spill]] }
  0x2e   : > { %16040 = sst [smem:[#allocation9_spill]] %s11486_s27 }
  0x2f   : > { %s11491_s23 = scalar_lea.vmem %s16041_s24, %s8977_s3  ;;  %s16049_s11 = sld [smem:[#allocation57_spill]] }
  0x30   : > { %16042 = sst [smem:[#allocation10_spill]] %s11491_s23  ;;  %s11496_s19 = scalar_lea.vmem %s16043_s20, %s10575_s25 }
  0x31   : > { %16044 = sst [smem:[#allocation11_spill]] %s11496_s19  ;;  %s11502_s2 = scalar_lea.vmem %s16045_s1, %s9304_s8 }
  0x32   : > { %s16050_s12 = sld [smem:[#allocation58_spill]] }
  0x33   : > { %s11519_s0 = scalar_lea.vmem %s16048_s10, %s9303_s30  ;;  %s16054_s23 = sld [smem:[#allocation62_spill]] }
  0x34   : > { %s16056_s20 = sld [smem:[#allocation63_spill]] }
  0x35   : > { %s11524_s28 = scalar_lea.vmem %s16049_s11, %s8977_s3  ;;  %s16057_s19 = sld [smem:[#allocation64_spill]] }
  0x36   : > { %s16058_s1 = sld [smem:[#allocation65_spill]] }
  0x37   : > { %s16059_s29 = sld [smem:[#allocation66_spill]] }
  0x38   : > { %s11529_s24 = scalar_lea.vmem %s16050_s12, %s9304_s8  ;;  %s16061_s27 = sld [smem:[#allocation68_spill]] }
  0x39   : > { %s11554_s6 = scalar_lea.vmem %s16054_s23, %s9304_s8  ;;  %s16060_s8 = sld [smem:[#allocation67_spill]] }
  0x3a   : > { %16055 = sst [smem:[#allocation12_spill]] %s11554_s6  ;;  %s1077_s18 = scalar_lea.vmem %s16056_s20, %s11474_s7 }
  0x3b   : > { %s11563_s5 = scalar_lea.vmem %s16057_s19, %s9303_s30  ;;  %s16062_s14 = sld [smem:[#allocation2_spill]] }
  0x3c   : > { %s1085_s16 = scalar_lea.vmem %s16058_s1, %s11474_s7 }
  0x3d   : > { %s1088_s17 = scalar_lea.vmem %s16059_s29, %s11474_s7 }
  0x3e   : > { %s11580_s20 = scalar_lea.vmem %s16061_s27, %s10575_s25 }
  0x3f   : > { %s1091_s23 = scalar_lea.vmem %s16060_s8, %s11474_s7 }
  0x41   : > { %p8991_p7 = scmp.ne.s32.totalorder %s16062_s14, 0 }
  0x42   : > { %s16063_s30 = sld [smem:[#allocation11_spill]] (!%p8991_p7) }
  0x43   : > { %1103 = sbr.rel (%p8991_p7) target bundleno = 80 (0x50), region = 120 }
  0x48   : > { %v1104_v0 = vld [vmem:[%s16063_s30] sm:$0xff]  ;;  %vm1118_vm0 = vcmask 523264   ;;  %v1105_v1 = vld [vmem:[%s16063_s30 + $0x8] sm:$0xff]  ;;  %v1106_v2 = vld [vmem:[%s16063_s30 + $0x10] sm:$0xff] }
  0x49   : > { %1119 = vst.msk [vmem:[%s11580_s20] sm:$0xff] %vm1118_vm0, %v1104_v0  ;;  %1120 = vst.msk [vmem:[%s11580_s20 + $0x8] sm:$0xff] %vm1118_vm0, %v1105_v1  ;;  %v1107_v3 = vld [vmem:[%s16063_s30 + $0x18] sm:$0xff]  ;;  %v1108_v4 = vld [vmem:[%s16063_s30 + $0x20] sm:$0xff] }
  0x4a   : > { %1121 = vst.msk [vmem:[%s11580_s20 + $0x10] sm:$0xff] %vm1118_vm0, %v1106_v2  ;;  %v1109_v5 = vld [vmem:[%s16063_s30 + $0x28] sm:$0xff]  ;;  %1122 = vst.msk [vmem:[%s11580_s20 + $0x18] sm:$0xff] %vm1118_vm0, %v1107_v3  ;;  %v1110_v6 = vld [vmem:[%s16063_s30 + $0x30] sm:$0xff] }
  0x4b   : > { %1123 = vst.msk [vmem:[%s11580_s20 + $0x20] sm:$0xff] %vm1118_vm0, %v1108_v4  ;;  %1124 = vst.msk [vmem:[%s11580_s20 + $0x28] sm:$0xff] %vm1118_vm0, %v1109_v5  ;;  %v1111_v7 = vld [vmem:[%s16063_s30 + $0x38] sm:$0xff]  ;;  %v1112_v8 = vld [vmem:[%s16063_s30 + $0x40] sm:$0xff] }
  0x4c   : > { %1125 = vst.msk [vmem:[%s11580_s20 + $0x30] sm:$0xff] %vm1118_vm0, %v1110_v6  ;;  %1126 = vst.msk [vmem:[%s11580_s20 + $0x38] sm:$0xff] %vm1118_vm0, %v1111_v7  ;;  %v1113_v9 = vld [vmem:[%s16063_s30 + $0x48] sm:$0xff]  ;;  %v1114_v10 = vld [vmem:[%s16063_s30 + $0x50] sm:$0xff] }
  0x4d   : > { %1127 = vst.msk [vmem:[%s11580_s20 + $0x40] sm:$0xff] %vm1118_vm0, %v1112_v8  ;;  %v1115_v11 = vld [vmem:[%s16063_s30 + $0x58] sm:$0xff]  ;;  %1128 = vst.msk [vmem:[%s11580_s20 + $0x48] sm:$0xff] %vm1118_vm0, %v1113_v9  ;;  %v1116_v12 = vld [vmem:[%s16063_s30 + $0x60] sm:$0xff] }
  0x4e   : > { %1129 = vst.msk [vmem:[%s11580_s20 + $0x50] sm:$0xff] %vm1118_vm0, %v1114_v10  ;;  %1130 = vst.msk [vmem:[%s11580_s20 + $0x58] sm:$0xff] %vm1118_vm0, %v1115_v11  ;;  %v1117_v13 = vld [vmem:[%s16063_s30 + $0x68] sm:$0xff] }
  0x4f   : > { %1131 = vst.msk [vmem:[%s11580_s20 + $0x60] sm:$0xff] %vm1118_vm0, %v1116_v12  ;;  %1132 = vst.msk [vmem:[%s11580_s20 + $0x68] sm:$0xff] %vm1118_vm0, %v1117_v13 }
  0x50 PF: > { %s16064_s25 = sld [smem:[#allocation9_spill]]  ;;  %v15988_v16 = vmov 0   ;;  %v1133_v23 = vld [vmem:[%s11580_s20] sm:$0xff]  ;;  %v1134_v24 = vld [vmem:[%s11580_s20 + $0x8] sm:$0xff]  ;;  %vm1216_vm1 = vcmask 523264   ;;  %v1166_v44 = vlaneseq  ;;  %vm1766_vm2 = vcmask 1043456   ;;  %s16197_s4 = scalar_lea.vmem %s15960_s9, %s11474_s7 }
  0x51   : > { %1270 = vmatprep.mubr.bf16.mxu0 %v15988_v16  ;;  %1300 = vmatprep.mubr.bf16.mxu1 %v15988_v16  ;;  %v11639_v27 = vpack.c.bf16 %v1134_v24, %v1133_v23  ;;  %v1135_v29 = vld [vmem:[%s11580_s20 + $0x10] sm:$0xff]  ;;  %v1136_v30 = vld [vmem:[%s11580_s20 + $0x18] sm:$0xff]  ;;  %s16069_s1 = sld [smem:[#allocation10_spill]]  ;;  %s11306_s29 = smov 64   ;;  %vm1368_vm3 = vcmask 130048   ;;  %vm1583_vm4 = vcmask 457728  }
  0x52   : > { %v11653_v33 = vpack.c.bf16 %v1136_v30, %v1135_v29  ;;  %v1137_v35 = vld [vmem:[%s11580_s20 + $0x20] sm:$0xff]  ;;  %v1138_v36 = vld [vmem:[%s11580_s20 + $0x28] sm:$0xff]  ;;  %v11682_v45 = vshrl.u32 %v1166_v44, 7  ;;  %s11307_s6 = smov 48   ;;  %s11308_s21 = smov 112   ;;  %vm11312_vm5 = vmmov 0  }
  0x53   : > { %v1139_v25 = vld [vmem:[%s11580_s20 + $0x30] sm:$0xff]  ;;  %v1140_v26 = vld [vmem:[%s11580_s20 + $0x38] sm:$0xff]  ;;  %16065 = vst [vmem:[#allocation13_spill] sm:$0xff] %v11639_v27  ;;  %v11667_v39 = vpack.c.bf16 %v1138_v36, %v1137_v35  ;;  %s16077_s19 = sld [smem:[#allocation8_spill]]  ;;  %s11310_s12 = smov 32  }
  0x54   : > { %v11641_v28 = vpack.c.bf16 %v1140_v26, %v1139_v25  ;;  %v1141_v31 = vld [vmem:[%s11580_s20 + $0x40] sm:$0xff]  ;;  %v1142_v32 = vld [vmem:[%s11580_s20 + $0x48] sm:$0xff]  ;;  %16067 = vst [vmem:[#allocation15_spill] sm:$0xff] %v11653_v33  ;;  %16073 = vst [vmem:[#allocation20_spill] sm:$0xff] %v11682_v45  ;;  %v15986_v46 = vsub.s32 0, %v11682_v45  ;;  %v15987_v48 = vsub.s32 1, %v11682_v45  ;;  %s16199_s11 = scalar_lea.vmem %s15964_s13, %s11474_s7 }
  0x55   : > { %v11655_v34 = vpack.c.bf16 %v1142_v32, %v1141_v31  ;;  %v1143_v37 = vld [vmem:[%s11580_s20 + $0x50] sm:$0xff]  ;;  %v1144_v38 = vld [vmem:[%s11580_s20 + $0x58] sm:$0xff]  ;;  %16070 = vst [vmem:[#allocation17_spill] sm:$0xff] %v11667_v39  ;;  %s16078_s10 = sld [smem:[#allocation49_spill]]  ;;  %s11311_s8 = smov 96  }
  0x56   : > { %v10626_v14 = vld [vmem:[%s16064_s25 + $0x34] ss:$8 sps:$4 sm:$0xff]   ;;  %v10628_v15 = vld [vmem:[%s16064_s25 + $0x30] ss:$8 sps:$4 sm:$0xff]   ;;  %v10629_v17 = vld [vmem:[%s16064_s25 + $0x24] ss:$8 sps:$4 sm:$0xff]   ;;  %v11669_v40 = vpack.c.bf16 %v1144_v38, %v1143_v37 }
  0x57   : > { %1246 = vmatprep.subr.bf16.mxu0 %v10626_v14  ;;  %10487 = vmatprep.subr.bf16.mxu1 %v10626_v14  ;;  %v10631_v18 = vld [vmem:[%s16064_s25 + $0x20] ss:$8 sps:$4 sm:$0xff]   ;;  %v10632_v19 = vld [vmem:[%s16064_s25 + $0x14] ss:$8 sps:$4 sm:$0xff]   ;;  %v10634_v20 = vld [vmem:[%s16064_s25 + $0x10] ss:$8 sps:$4 sm:$0xff]  }
  0x58   : > { %1247 = vmatpush1.bf16.msra.mxu0 %v10628_v15  ;;  %10491 = vmatpush1.bf16.msra.mxu1 %v10628_v15  ;;  %v10635_v21 = vld [vmem:[%s16064_s25 + $0x4] ss:$8 sps:$4 sm:$0xff]   ;;  %v10637_v22 = vld [vmem:[%s16064_s25] ss:$8 sps:$4 sm:$0xff]   ;;  %16066 = vst [vmem:[#allocation14_spill] sm:$0xff] %v11641_v28  ;;  %16068 = vst [vmem:[#allocation16_spill] sm:$0xff] %v11655_v34 }
  0x59   : > { %1248 = vmatprep.subr.bf16.mxu0 %v10629_v17  ;;  %10488 = vmatprep.subr.bf16.mxu1 %v10629_v17  ;;  %16071 = vst [vmem:[#allocation18_spill] sm:$0xff] %v11669_v40  ;;  %v1145_v41 = vld [vmem:[%s11580_s20 + $0x60] sm:$0xff]  ;;  %v1146_v42 = vld [vmem:[%s11580_s20 + $0x68] sm:$0xff]  ;;  %s11313_s25 = smov 16   ;;  %s16150_s30 = sld [smem:[#allocation54_spill]] }
  0x5a   : > { %v11678_v43 = vpack.c.bf16 %v1146_v42, %v1145_v41  ;;  %v1164_v47 = vld [vmem:[%s16069_s1] sm:$0x3]  ;;  %s11314_s1 = smov 80  }
  0x5b   : > { %v11689_v49 = vrot.slane %v1164_v47, %v15986_v46  ;;  %v11694_v53 = vrot.slane %v1164_v47, %v15987_v48 }
  0x5c   : > { %1249 = vmatpush1.bf16.msra.mxu0 %v10631_v18  ;;  %10492 = vmatpush1.bf16.msra.mxu1 %v10631_v18  ;;  %16072 = vst [vmem:[#allocation19_spill] sm:$0xff] %v11678_v43 }
  0x5d   : > { %1250 = vmatprep.subr.bf16.mxu0 %v10632_v19  ;;  %10489 = vmatprep.subr.bf16.mxu1 %v10632_v19 }
  0x60   : > { %1251 = vmatpush1.bf16.msra.mxu0 %v10634_v20  ;;  %10493 = vmatpush1.bf16.msra.mxu1 %v10634_v20 }
  0x61   : > { %1252 = vmatprep.subr.bf16.mxu0 %v10635_v21  ;;  %10490 = vmatprep.subr.bf16.mxu1 %v10635_v21 }
  0x64   : > { %1253 = vmatpush1.bf16.msra.mxu0 %v10637_v22  ;;  %10494 = vmatpush1.bf16.msra.mxu1 %v10637_v22 }
  0x67   : > { %9000 = vmatmul.mubr.msk.bf16.vlgmr.msra.gmra.mxu0 %vm1216_vm1, %v11639_v27  ;;  %9003 = vmatmul.mubr.msk.bf16.vlgmr.msra.gmra.mxu1 %vm1216_vm1, %v11641_v28 }
  0x68   : > { %1280 = vmatprep.mubr.bf16.mxu0 %v15988_v16  ;;  %1310 = vmatprep.mubr.bf16.mxu1 %v15988_v16 }
  0x6f   : > { %9001 = vmatmul.mubr.msk.bf16.gmra.mxu0 %vm1216_vm1, %v11653_v33  ;;  %9004 = vmatmul.mubr.msk.bf16.gmra.mxu1 %vm1216_vm1, %v11655_v34 }
  0x70   : > { %1290 = vmatprep.mubr.bf16.mxu0 %v15988_v16  ;;  %1320 = vmatprep.mubr.bf16.mxu1 %v15988_v16 }
  0x77   : > { %9002 = vmatmul.mubr.msk.bf16.gmra.mxu0 %vm1216_vm1, %v11667_v39  ;;  %9005 = vmatmul.mubr.msk.bf16.gmra.mxu1 %vm1216_vm1, %v11669_v40 }
  0x78   : > { %1330 = vmatprep.mubr.bf16.mxu1 %v15988_v16 }
  0x7f   : > { %9006 = vmatmul.mubr.msk.bf16.gmra.mxu1 %vm1216_vm1, %v11678_v43 }
 0x127   : > { %v1272_v50 = vpop.f32.mrf.mxu0  ;;  %v1302_v51 = vpop.f32.mrf.mxu1 }
 0x128   : > { %v1303_v52 = vadd.f32 %v1302_v51, %v11689_v49  ;;  %v1273_v60 = vadd.f32 %v1272_v50, %v11689_v49 }
 0x129   : > { %v11696_v54 = vpop.f32.mrf.mxu0  ;;  %v1304_v55 = vpop.f32.mrf.mxu1 }
 0x12a   : > { %v11698_v56 = vpack.c.bf16 %v1303_v52, %v1303_v52  ;;  %v1305_v57 = vadd.f32 %v1304_v55, %v11694_v53 }
 0x12b   : > { %v1276_v58 = vpop.f32.mrf.mxu0  ;;  %v1306_v59 = vpop.f32.mrf.mxu1 }
 0x12c   : > { %v11702_v61 = vpack.c.bf16 %v1305_v57, %v1305_v57  ;;  %v1277_v62 = vadd.f32 %v1276_v58, %v11689_v49  ;;  %1366 = vrot.lane.b32.xlu0 %v11698_v56, %s11306_s29 }
 0x12d   : > { %v1278_v63 = vpop.f32.mrf.mxu0  ;;  %v1308_v0 = vpop.f32.mrf.mxu1 }
 0x12e   : > { %16074 = vst [vmem:[#allocation21_spill] sm:$0xff] %v11702_v61  ;;  %v11707_v1 = vpack.c.bf16 %v1277_v62, %v1273_v60  ;;  %10503 = vmatprep.subr.msk.bf16.mxu0 %vm1766_vm2, %v11702_v61  ;;  %v1768_v2 = vsel %vm1766_vm2, %v11702_v61, 0  ;;  %v1309_v5 = vadd.f32 %v1308_v0, %v11694_v53  ;;  %v1279_v55 = vadd.f32 %v1278_v63, %v11694_v53 }
 0x12f   : > { %v1282_v3 = vpop.f32.mrf.mxu0  ;;  %v1312_v4 = vpop.f32.mrf.mxu1  ;;  %9688 = vmatpush3.bf16.msra.mxu0 %v1768_v2  ;;  %v1307_v62 = vadd.f32 %v1306_v59, %v11689_v49 }
 0x130   : > { %9663 = vmatprep.mubr.msk.bf16.mxu1 %vm1368_vm3, %v11707_v1  ;;  %v1283_v11 = vadd.f32 %v1282_v3, %v11689_v49  ;;  %v1313_v0 = vadd.f32 %v1312_v4, %v11689_v49  ;;  %v1275_v3 = vadd.f32 %v11696_v54, %v11694_v53 }
 0x131   : > { %v1284_v6 = vpop.f32.mrf.mxu0  ;;  %v1314_v7 = vpop.f32.mrf.mxu1 }
 0x132   : > { %v1315_v8 = vadd.f32 %v1314_v7, %v11694_v53  ;;  %v1285_v44 = vadd.f32 %v1284_v6, %v11694_v53  ;;  %v11764_v6 = vpack.c.bf16 %v1279_v55, %v1275_v3 }
 0x133   : > { %v1286_v9 = vpop.f32.mrf.mxu0  ;;  %v1316_v10 = vpop.f32.mrf.mxu1 }
 0x134   : > { %v11718_v12 = vpack.c.bf16 %v1315_v8, %v1309_v5  ;;  %v1287_v13 = vadd.f32 %v1286_v9, %v11689_v49  ;;  %16076 = vst [vmem:[#allocation23_spill] sm:$0xff] %v11764_v6  ;;  %v1317_v59 = vadd.f32 %v1316_v10, %v11689_v49  ;;  %v11770_v8 = vpack.c.bf16 %v1313_v0, %v1307_v62  ;;  %v1352_v62 = vld [vmem:[%s16078_s10 + $0x18] sm:$0xff] }
 0x135   : > { %v1288_v14 = vpop.f32.mrf.mxu0  ;;  %v1318_v15 = vpop.f32.mrf.mxu1 }
 0x136   : > { %v11721_v17 = vpack.c.bf16 %v1287_v13, %v1283_v11  ;;  %v1319_v20 = vadd.f32 %v1318_v15, %v11694_v53  ;;  %v1289_v31 = vadd.f32 %v1288_v14, %v11694_v53 }
 0x137   : > { %v1292_v18 = vpop.f32.mrf.mxu0  ;;  %v1322_v19 = vpop.f32.mrf.mxu1 }
 0x138   : > { %1362 = vrot.lane.b32.xlu1 %v11721_v17, %s11306_s29  ;;  %v1293_v26 = vadd.f32 %v1292_v18, %v11689_v49  ;;  %v11747_v57 = vpack.c.bf16 %v1289_v31, %v1285_v44  ;;  %v1323_v4 = vadd.f32 %v1322_v19, %v11689_v49  ;;  %v1351_v44 = vld [vmem:[%s16078_s10 + $0x10] sm:$0xff] }
 0x139   : > { %v1294_v21 = vpop.f32.mrf.mxu0  ;;  %v1324_v22 = vpop.f32.mrf.mxu1 }
 0x13a   : > { %v1325_v23 = vadd.f32 %v1324_v22, %v11694_v53  ;;  %v1295_v36 = vadd.f32 %v1294_v21, %v11694_v53  ;;  %16075 = vst [vmem:[#allocation22_spill] sm:$0xff] %v11747_v57  ;;  %v11778_v54 = vpack.c.bf16 %v1323_v4, %v1317_v59 }
 0x13b   : > { %v1296_v24 = vpop.f32.mrf.mxu0  ;;  %v1326_v25 = vpop.f32.mrf.mxu1 }
 0x13c   : > { %v11728_v29 = vpack.c.bf16 %v1325_v23, %v1319_v20  ;;  %v1297_v30 = vadd.f32 %v1296_v24, %v11689_v49  ;;  %1360 = vrot.lane.b32.xlu1 %v11707_v1, %s11306_s29  ;;  %v1327_v38 = vadd.f32 %v1326_v25, %v11689_v49 }
 0x13d   : > { %v1298_v32 = vpop.f32.mrf.mxu0  ;;  %v1328_v35 = vpop.f32.mrf.mxu1 }
 0x13e   : > { %v11735_v37 = vpack.c.bf16 %v1297_v30, %v1293_v26  ;;  %v1299_v41 = vadd.f32 %v1298_v32, %v11694_v53  ;;  %v1329_v50 = vadd.f32 %v1328_v35, %v11694_v53 }
 0x13f   : > { %v1332_v42 = vpop.f32.mrf.mxu1 }
 0x140   : > { %v11740_v47 = vpack.c.bf16 %v1299_v41, %v1295_v36  ;;  %v1333_v51 = vadd.f32 %v1332_v42, %v11689_v49  ;;  %1364 = vrot.lane.b32.xlu0 %v11735_v37, %s11306_s29 }
 0x141   : > { %v1334_v52 = vpop.f32.mrf.mxu1 }
 0x142   : > { %v11749_v58 = vpack.c.bf16 %v1333_v51, %v1327_v38  ;;  %v1335_v60 = vadd.f32 %v1334_v52, %v11694_v53  ;;  %9689 = vmatprep.subr.bf16.mxu0 %v11740_v47  ;;  %v1349_v51 = vld [vmem:[%s16078_s10] sm:$0xff] }
 0x143   : > { %v1336_v2 = vpop.f32.mrf.mxu1  ;;  %9690 = vmatpush3.bf16.msra.mxu0 %v11740_v47  ;;  %v11859_v52 = vld [vmem:[%s16077_s19] ss:$0 sm:$0xff] }
 0x144   : > { %v11758_v5 = vpack.c.bf16 %v1335_v60, %v1329_v50  ;;  %v1337_v63 = vadd.f32 %v1336_v2, %v11689_v49  ;;  %9691 = vmatprep.subr.bf16.mxu0 %v11747_v57  ;;  %1465 = vrot.lane.b32.xlu1 %v11749_v58, %s11306_s29 }
 0x145   : > { %v1338_v26 = vpop.f32.mrf.mxu1 }
 0x146   : > { %v11768_v7 = vpack.c.bf16 %v1337_v63, %v1337_v63  ;;  %v1339_v31 = vadd.f32 %v1338_v26, %v11694_v53  ;;  %v1350_v63 = vld [vmem:[%s16078_s10 + $0x8] sm:$0xff] }
 0x147   : > { %9692 = vmatpush3.bf16.msra.mxu0 %v11747_v57 }
 0x148   : > { %1467 = vrot.lane.b32.xlu0 %v11768_v7, %s11306_s29  ;;  %9693 = vmatprep.subr.bf16.mxu0 %v11764_v6  ;;  %v11823_v32 = vpack.c.bf16 %v1339_v31, %v1339_v31 }
 0x149   : > { %1461 = vrot.lane.b32.xlu1 %v11770_v8, %s11306_s29 }
 0x14a   : > { %v1847_v38 = vsel %vm1766_vm2, %v11823_v32, 0 }
 0x14b   : > { %9694 = vmatpush3.bf16.msra.mxu0 %v11764_v6 }
 0x14c   : > { %1463 = vrot.lane.b32.xlu0 %v11778_v54, %s11306_s29 }
 0x14d   : > { %1942 = vrot.lane.b32.xlu1 %v11735_v37, %s11307_s6 }
 0x150   : > { %1944 = vrot.lane.b32.xlu0 %v11698_v56, %s11307_s6 }
 0x151   : > { %1940 = vrot.lane.b32.xlu1 %v11721_v17, %s11307_s6 }
 0x154   : > { %1938 = vrot.lane.b32.xlu0 %v11707_v1, %s11307_s6 }
 0x155   : > { %1930 = vrot.lane.b32.xlu1 %v11707_v1, %s11308_s21 }
 0x159   : > { %2048 = vrot.lane.b32.xlu1 %v11768_v7, %s11307_s6 }
 0x19e   : > { %v1367_v49 = vpop.permute.xlu0 %1366 }
 0x19f   : > { %10495 = vmatprep.subr.msk.bf16.mxu1 %vm1368_vm3, %v1367_v49  ;;  %v1391_v9 = vsel %vm1368_vm3, %v1367_v49, 0 }
 0x1a0   : > { %9656 = vmatpush3.bf16.xpose.msra.mxu1 %v1391_v9 }
 0x1aa   : > { %v1363_v13 = vpop.permute.xlu1 %1362 }
 0x1ab   : > { %v1385_v15 = vsel %vm1368_vm3, %v1363_v13, 0 }
 0x1ae   : > { %v1361_v18 = vpop.permute.xlu1 %1360 }
 0x1af   : > { %v1382_v21 = vsel %vm1368_vm3, %v1361_v18, 0 }
 0x1b2   : > { %v1365_v10 = vpop.permute.xlu0 %1364 }
 0x1b3   : > { %10496 = vmatprep.subr.msk.bf16.mxu1 %vm1368_vm3, %v1365_v10  ;;  %v1388_v11 = vsel %vm1368_vm3, %v1365_v10, 0  ;;  %v1355_v10 = vld [vmem:[%s16078_s10 + $0x30] sm:$0xff] }
 0x1b4   : > { %9658 = vmatpush3.bf16.xpose.msra.mxu1 %v1388_v11 }
 0x1b5   : > { %10497 = vmatprep.subr.msk.bf16.mxu1 %vm1368_vm3, %v1363_v13 }
 0x1b6   : > { %v1466_v23 = vpop.permute.xlu1 %1465 }
 0x1b7   : > { %v1488_v24 = vsel %vm1368_vm3, %v1466_v23, 0 }
 0x1ba   : > { %v1468_v14 = vpop.permute.xlu0 %1467 }
 0x1bb   : > { %v1491_v22 = vsel %vm1368_vm3, %v1468_v14, 0  ;;  %v1462_v30 = vpop.permute.xlu1 %1461 }
 0x1bc   : > { %9660 = vmatpush3.bf16.xpose.msra.mxu1 %v1385_v15  ;;  %v1482_v35 = vsel %vm1368_vm3, %v1462_v30, 0 }
 0x1bd   : > { %10498 = vmatprep.subr.msk.bf16.mxu1 %vm1368_vm3, %v1361_v18 }
 0x1be   : > { %v1464_v19 = vpop.permute.xlu0 %1463 }
 0x1bf   : > { %v1485_v25 = vsel %vm1368_vm3, %v1464_v19, 0  ;;  %v11828_v36 = vpop.permute.xlu1 %1942 }
 0x1c2   : > { %v11802_v20 = vpop.permute.xlu0 %1944 }
 0x1c3   : > { %10505 = vmatprep.subr.msk.bf16.mxu0 %vm1368_vm3, %v11802_v20  ;;  %v11834_v41 = vpop.permute.xlu1 %1940 }
 0x1c4   : > { %9662 = vmatpush3.bf16.xpose.msra.mxu1 %v1382_v21 }
 0x1c5   : > { %10499 = vmatprep.subr.msk.bf16.mxu1 %vm1368_vm3, %v1468_v14  ;;  %v1353_v14 = vld [vmem:[%s16078_s10 + $0x20] sm:$0xff] }
 0x1c7   : > { %v11841_v53 = vpop.permute.xlu1 %1930 }
 0x1cb   : > { %9664 = vmatmul.mubr.msk.bf16.vlgmr.msra.gmra.mxu1 %vm1368_vm3, %v11721_v17  ;;  %v11847_v42 = vpop.permute.xlu1 %2048 }
 0x1cc   : > { %9667 = vmatprep.mubr.msk.bf16.mxu1 %vm1368_vm3, %v11735_v37  ;;  %9672 = vmatpush3.bf16.xpose.msra.mxu1 %v1491_v22 }
 0x1cd   : > { %10500 = vmatprep.subr.msk.bf16.mxu1 %vm1368_vm3, %v1466_v23 }
 0x1d3   : > { %9668 = vmatmul.mubr.msk.bf16.gmra.mxu1 %vm1368_vm3, %v11698_v56 }
 0x1d4   : > { %9674 = vmatpush3.bf16.xpose.msra.mxu1 %v1488_v24  ;;  %9679 = vmatprep.mubr.msk.bf16.mxu1 %vm1368_vm3, %v11770_v8 }
 0x1d5   : > { %10501 = vmatprep.subr.msk.bf16.mxu1 %vm1368_vm3, %v1464_v19 }
 0x1dc   : > { %9676 = vmatpush3.bf16.xpose.msra.mxu1 %v1485_v25 }
 0x1dd   : > { %10502 = vmatprep.subr.msk.bf16.mxu1 %vm1368_vm3, %v1462_v30  ;;  %v1354_v30 = vld [vmem:[%s16078_s10 + $0x28] sm:$0xff] }
 0x1e4   : > { %9678 = vmatpush3.bf16.xpose.msra.mxu1 %v1482_v35 }
 0x1e5   : > { %10504 = vmatprep.subr.msk.bf16.mxu1 %vm1766_vm2, %v11823_v32 }
 0x1eb   : > { %9680 = vmatmul.mubr.msk.bf16.vlgmr.msra.gmra.mxu1 %vm1368_vm3, %v11778_v54 }
 0x1ec   : > { %9683 = vmatprep.mubr.msk.bf16.mxu1 %vm1368_vm3, %v11749_v58  ;;  %9704 = vmatpush3.bf16.msra.mxu1 %v1847_v38 }
 0x1ed   : > { %9705 = vmatprep.subr.bf16.mxu1 %v11758_v5 }
 0x1f0   : > { %9706 = vmatpush3.bf16.msra.mxu1 %v11758_v5 }
 0x1f1   : > { %9707 = vmatprep.subr.bf16.mxu1 %v11728_v29 }
 0x1f3   : > { %9684 = vmatmul.mubr.msk.bf16.gmra.mxu1 %vm1368_vm3, %v11768_v7 }
 0x1f4   : > { %9708 = vmatpush3.bf16.msra.mxu1 %v11728_v29 }
 0x1f5   : > { %9709 = vmatprep.subr.bf16.mxu1 %v11718_v12 }
 0x1f8   : > { %9710 = vmatpush3.bf16.msra.mxu1 %v11718_v12 }
 0x1f9   : > { %10509 = vmatprep.subr.msk.bf16.mxu1 %vm1368_vm3, %v11847_v42 }
 0x28b   : > { %v9665_v50 = vpop.f32.mrf.mxu1 }
 0x28c   : > { %v1436_v55 = vadd.f32 %v9665_v50, %v1351_v44 }
 0x28d   : > { %v1427_v60 = vpop.f32.mrf.mxu1 }
 0x28e   : > { %v1428_v0 = vadd.f32 %v1427_v60, %v1349_v51  ;;  %v11865_v2 = vadd.f32 %v11859_v52, %v1436_v55 }
 0x28f   : > { %v9666_v3 = vpop.f32.mrf.mxu1 }
 0x290   : > { %v1439_v59 = vadd.f32 %v9666_v3, %v1352_v62  ;;  %v1590_v4 = vsel %vm1583_vm4, %v11865_v2, -inf  ;;  %v11873_v49 = vadd.f32 %v11859_v52, %v1428_v0 }
 0x291   : > { %1591 = vmax.xlane.f32.xlu0 %v1590_v4  ;;  %v1430_v9 = vpop.f32.mrf.mxu1  ;;  %v11912_v4 = vld [vmem:[%s16077_s19 + $0x1] ss:$0 sm:$0xff] }
 0x292   : > { %v1431_v11 = vadd.f32 %v1430_v9, %v1350_v63  ;;  %v1584_v18 = vsel %vm1583_vm4, %v11873_v49, -inf  ;;  %v11887_v21 = vadd.f32 %v11859_v52, %v1439_v59 }
 0x293   : > { %v9669_v13 = vpop.f32.mrf.mxu1 }
 0x294   : > { %v1452_v15 = vadd.f32 %v9669_v13, %v1355_v10  ;;  %v11884_v19 = vadd.f32 %v11859_v52, %v1431_v11  ;;  %v1593_v31 = vsel %vm1583_vm4, %v11887_v21, -inf }
 0x295   : > { %v1443_v22 = vpop.f32.mrf.mxu1  ;;  %1585 = vmax.xlane.f32.xlu0 %v1584_v18 }
 0x296   : > { %v1444_v23 = vadd.f32 %v1443_v22, %v1353_v14  ;;  %v1587_v24 = vsel %vm1583_vm4, %v11884_v19, -inf  ;;  %v11892_v25 = vadd.f32 %v11859_v52, %v1452_v15 }
 0x297   : > { %v9670_v26 = vpop.f32.mrf.mxu1  ;;  %1588 = vmax.xlane.f32.xlu1 %v1587_v24 }
 0x298   : > { %v1602_v50 = vsel %vm1583_vm4, %v11892_v25, -inf  ;;  %v11902_v55 = vadd.f32 %v11859_v52, %v1444_v23 }
 0x299   : > { %v1446_v35 = vpop.f32.mrf.mxu1  ;;  %1594 = vmax.xlane.f32.xlu0 %v1593_v31 }
 0x29a   : > { %v1447_v38 = vadd.f32 %v1446_v35, %v1354_v30  ;;  %v1596_v0 = vsel %vm1583_vm4, %v11902_v55, -inf }
 0x29b   : > { %1603 = vmax.xlane.f32.xlu1 %v1602_v50 }
 0x29c   : > { %v11905_v60 = vadd.f32 %v11859_v52, %v1447_v38 }
 0x29e   : > { %v1599_v3 = vsel %vm1583_vm4, %v11905_v60, -inf }
 0x29f   : > { %1597 = vmax.xlane.f32.xlu1 %v1596_v0  ;;  %1600 = vmax.xlane.f32.xlu0 %v1599_v3 }
 0x2ab   : > { %v9681_v59 = vpop.f32.mrf.mxu1 }
 0x2ac   : > { %v1536_v9 = vadd.f32 %v9681_v59, %v1351_v44 }
 0x2ad   : > { %v1527_v11 = vpop.f32.mrf.mxu1 }
 0x2ae   : > { %v1528_v13 = vadd.f32 %v1527_v11, %v1349_v51  ;;  %v11915_v15 = vadd.f32 %v11912_v4, %v1536_v9 }
 0x2af   : > { %v9682_v18 = vpop.f32.mrf.mxu1 }
 0x2b0   : > { %v1539_v22 = vadd.f32 %v9682_v18, %v1352_v62  ;;  %v1611_v23 = vsel %vm1583_vm4, %v11915_v15, -inf  ;;  %v11920_v24 = vadd.f32 %v11912_v4, %v1528_v13 }
 0x2b1   : > { %v1530_v26 = vpop.f32.mrf.mxu1  ;;  %1612 = vmax.xlane.f32.xlu0 %v1611_v23 }
 0x2b2   : > { %v1531_v31 = vadd.f32 %v1530_v26, %v1350_v63  ;;  %v11923_v35 = vadd.f32 %v11912_v4, %v1539_v22  ;;  %v1605_v62 = vsel %vm1583_vm4, %v11920_v24, -inf  ;;  %v11953_v26 = vpop.permute.xlu0 %1938 }
 0x2b3   : > { %v9685_v44 = vpop.f32.mrf.mxu1 }
 0x2b4   : > { %v1552_v38 = vadd.f32 %v9685_v44, %v1355_v10  ;;  %v1614_v51 = vsel %vm1583_vm4, %v11923_v35, -inf  ;;  %v11930_v50 = vadd.f32 %v11912_v4, %v1531_v31 }
 0x2b5   : > { %v1543_v0 = vpop.f32.mrf.mxu1  ;;  %1615 = vmax.xlane.f32.xlu1 %v1614_v51  ;;  %1606 = vmax.xlane.f32.xlu0 %v1605_v62 }
 0x2b6   : > { %v1544_v3 = vadd.f32 %v1543_v0, %v1353_v14  ;;  %v11933_v63 = vadd.f32 %v11912_v4, %v1552_v38  ;;  %v1608_v10 = vsel %vm1583_vm4, %v11930_v50, -inf }
 0x2b7   : > { %v9686_v59 = vpop.f32.mrf.mxu1 }
 0x2b8   : > { %v1623_v9 = vsel %vm1583_vm4, %v11933_v63, -inf  ;;  %v11940_v11 = vadd.f32 %v11912_v4, %v1544_v3 }
 0x2b9   : > { %v1546_v13 = vpop.f32.mrf.mxu1  ;;  %1609 = vmax.xlane.f32.xlu1 %v1608_v10  ;;  %1624 = vmax.xlane.f32.xlu0 %v1623_v9 }
 0x2ba   : > { %v1547_v18 = vadd.f32 %v1546_v13, %v1354_v30  ;;  %v1617_v14 = vsel %vm1583_vm4, %v11940_v11, -inf }
 0x2bc   : > { %v11945_v22 = vadd.f32 %v11912_v4, %v1547_v18 }
 0x2bd   : > { %1618 = vmax.xlane.f32.xlu0 %v1617_v14 }
 0x2be   : > { %v1620_v23 = vsel %vm1583_vm4, %v11945_v22, -inf }
 0x2bf   : > { %1621 = vmax.xlane.f32.xlu1 %v1620_v23 }
 0x2d0   : > { %2046 = vrot.lane.b32.xlu1 %v11749_v58, %s11307_s6 }
 0x2d3   : > { %1932 = vrot.lane.b32.xlu0 %v11721_v17, %s11308_s21 }
 0x31a   : > { %v1592_v30 = vpop.xlane.xlu0 %1591 }
 0x31b   : > { %v1628_v31 = vsub.f32 %v11865_v2, %v1592_v30 }
 0x31d   : > { %v1644_v44 = vmul.f32 1.442695, %v1628_v31 }
 0x31e   : > { %v1586_v38 = vpop.xlane.xlu0 %1585 }
 0x31f   : > { %10670 = vpow2.f32 %v1644_v44  ;;  %v1626_v51 = vsub.f32 %v11873_v49, %v1586_v38 }
 0x320   : > { %v1589_v62 = vpop.xlane.xlu1 %1588 }
 0x321   : > { %v1640_v0 = vmul.f32 1.442695, %v1626_v51  ;;  %v1627_v3 = vsub.f32 %v11884_v19, %v1589_v62 }
 0x322   : > { %v1595_v59 = vpop.xlane.xlu0 %1594 }
 0x323   : > { %10672 = vpow2.f32 %v1640_v0  ;;  %v1629_v10 = vsub.f32 %v11887_v21, %v1595_v59  ;;  %v1642_v9 = vmul.f32 1.442695, %v1627_v3 }
 0x324   : > { %v1604_v13 = vpop.xlane.xlu1 %1603 }
 0x325   : > { %v1646_v18 = vmul.f32 1.442695, %v1629_v10  ;;  %v1632_v14 = vsub.f32 %v11892_v25, %v1604_v13 }
 0x327   : > { %10674 = vpow2.f32 %v1646_v18  ;;  %v1652_v2 = vmul.f32 1.442695, %v1632_v14 }
 0x328   : > { %10676 = vpow2.f32 %v1642_v9  ;;  %v1598_v23 = vpop.xlane.xlu1 %1597  ;;  %v1601_v30 = vpop.xlane.xlu0 %1600 }
 0x329   : > { %10678 = vpow2.f32 %v1652_v2  ;;  %v1630_v49 = vsub.f32 %v11902_v55, %v1598_v23  ;;  %v1631_v31 = vsub.f32 %v11905_v60, %v1601_v30 }
 0x32b   : > { %v1648_v19 = vmul.f32 1.442695, %v1630_v49  ;;  %v1650_v44 = vmul.f32 1.442695, %v1631_v31 }
 0x32c   : > { %v11962_v38 = vpop.eup %10670 }
 0x32d   : > { %10680 = vpow2.f32 %v1648_v19  ;;  %v1674_v21 = vsel %vm1583_vm4, %v11962_v38, 0.0 }
 0x32e   : > { %10682 = vpow2.f32 %v1650_v44  ;;  %1675 = vadd.xlane.f32.xlu1 %v1674_v21 }
 0x330   : > { %v11966_v25 = vpop.eup %10672 }
 0x331   : > { %v1668_v51 = vsel %vm1583_vm4, %v11966_v25, 0.0 }
 0x332   : > { %1669 = vadd.xlane.f32.xlu1 %v1668_v51 }
 0x334   : > { %v11970_v62 = vpop.eup %10674 }
 0x335   : > { %v11972_v55 = vpop.eup %10676  ;;  %v1677_v60 = vsel %vm1583_vm4, %v11970_v62, 0.0 }
 0x336   : > { %v11976_v0 = vpop.eup %10678  ;;  %1678 = vadd.xlane.f32.xlu0 %v1677_v60  ;;  %v1671_v59 = vsel %vm1583_vm4, %v11972_v55, 0.0 }
 0x337   : > { %v1686_v3 = vsel %vm1583_vm4, %v11976_v0, 0.0 }
 0x338   : > { %1687 = vadd.xlane.f32.xlu1 %v1686_v3 }
 0x33a   : > { %v11982_v10 = vpop.eup %10680  ;;  %1672 = vadd.xlane.f32.xlu0 %v1671_v59  ;;  %v1613_v9 = vpop.xlane.xlu0 %1612 }
 0x33b   : > { %v11984_v13 = vpop.eup %10682  ;;  %v1635_v18 = vsub.f32 %v11915_v15, %v1613_v9  ;;  %v1680_v14 = vsel %vm1583_vm4, %v11982_v10, 0.0 }
 0x33c   : > { %1681 = vadd.xlane.f32.xlu1 %v1680_v14  ;;  %v1683_v23 = vsel %vm1583_vm4, %v11984_v13, 0.0 }
 0x33d   : > { %v1658_v2 = vmul.f32 1.442695, %v1635_v18 }
 0x33e   : > { %v1616_v30 = vpop.xlane.xlu1 %1615  ;;  %1684 = vadd.xlane.f32.xlu0 %v1683_v23  ;;  %v1607_v49 = vpop.xlane.xlu0 %1606 }
 0x33f   : > { %10684 = vpow2.f32 %v1658_v2  ;;  %v1636_v31 = vsub.f32 %v11923_v35, %v1616_v30  ;;  %v1633_v19 = vsub.f32 %v11920_v24, %v1607_v49 }
 0x341   : > { %v1660_v44 = vmul.f32 1.442695, %v1636_v31  ;;  %v1654_v21 = vmul.f32 1.442695, %v1633_v19 }
 0x342   : > { %v1610_v51 = vpop.xlane.xlu1 %1609  ;;  %v1625_v2 = vpop.xlane.xlu0 %1624 }
 0x343   : > { %10686 = vpow2.f32 %v1660_v44  ;;  %v1634_v15 = vsub.f32 %v11930_v50, %v1610_v51  ;;  %v1639_v23 = vsub.f32 %v11933_v63, %v1625_v2 }
 0x344   : > { %10688 = vpow2.f32 %v1654_v21 }
 0x345   : > { %v1656_v60 = vmul.f32 1.442695, %v1634_v15  ;;  %v1666_v19 = vmul.f32 1.442695, %v1639_v23 }
 0x346   : > { %v1619_v49 = vpop.xlane.xlu0 %1618 }
 0x347   : > { %10690 = vpow2.f32 %v1656_v60  ;;  %v1637_v44 = vsub.f32 %v11940_v11, %v1619_v49 }
 0x348   : > { %v1622_v30 = vpop.xlane.xlu1 %1621  ;;  %10692 = vpow2.f32 %v1666_v19 }
 0x349   : > { %v1638_v31 = vsub.f32 %v11945_v22, %v1622_v30  ;;  %v1662_v51 = vmul.f32 1.442695, %v1637_v44 }
 0x34b   : > { %v1664_v21 = vmul.f32 1.442695, %v1638_v31 }
 0x34c   : > { %v11994_v3 = vpop.eup %10684 }
 0x34d   : > { %v1695_v59 = vsel %vm1583_vm4, %v11994_v3, 0.0  ;;  %10694 = vpow2.f32 %v1664_v21 }
 0x34e   : > { %1696 = vadd.xlane.f32.xlu0 %v1695_v59  ;;  %10696 = vpow2.f32 %v1662_v51 }
 0x350   : > { %v11998_v9 = vpop.eup %10686 }
 0x351   : > { %v12000_v35 = vpop.eup %10688  ;;  %v1698_v24 = vsel %vm1583_vm4, %v11998_v9, 0.0 }
 0x352   : > { %1699 = vadd.xlane.f32.xlu1 %v1698_v24  ;;  %v1689_v50 = vsel %vm1583_vm4, %v12000_v35, 0.0  ;;  %v12043_v24 = vpop.permute.xlu1 %2046 }
 0x353   : > { %1690 = vadd.xlane.f32.xlu0 %v1689_v50 }
 0x354   : > { %v12006_v18 = vpop.eup %10690 }
 0x355   : > { %v1692_v14 = vsel %vm1583_vm4, %v12006_v18, 0.0  ;;  %v12017_v15 = vpop.eup %10692 }
 0x356   : > { %1693 = vadd.xlane.f32.xlu1 %v1692_v14  ;;  %v1707_v59 = vsel %vm1583_vm4, %v12017_v15, 0.0  ;;  %v12045_v14 = vpop.permute.xlu0 %1932 }
 0x35a   : > { %v12019_v60 = vpop.eup %10694 }
 0x35b   : > { %v12023_v63 = vpop.eup %10696  ;;  %v1704_v22 = vsel %vm1583_vm4, %v12019_v60, 0.0 }
 0x35c   : > { %v1701_v11 = vsel %vm1583_vm4, %v12023_v63, 0.0 }
 0x367   : > { %1934 = vrot.lane.b32.xlu1 %v11735_v37, %s11308_s21 }
 0x369   : > { %2044 = vrot.lane.b32.xlu0 %v11778_v54, %s11307_s6 }
 0x388   : > { %1708 = vadd.xlane.f32.xlu0 %v1707_v59 }
 0x38b   : > { %1705 = vadd.xlane.f32.xlu1 %v1704_v22 }
 0x38c   : > { %1702 = vadd.xlane.f32.xlu0 %v1701_v11 }
 0x39c   : > { %2042 = vrot.lane.b32.xlu1 %v11770_v8, %s11307_s6 }
 0x3a0   : > { %2036 = vrot.lane.b32.xlu1 %v11778_v54, %s11308_s21 }
 0x3a2   : > { %1936 = vrot.lane.b32.xlu0 %v11698_v56, %s11308_s21 }
 0x3a4   : > { %2040 = vrot.lane.b32.xlu1 %v11768_v7, %s11308_s21 }
 0x3a6   : > { %2034 = vrot.lane.b32.xlu0 %v11770_v8, %s11308_s21 }
 0x3a8   : > { %2324 = vrot.lane.b32.xlu1 %v11702_v61, %s11308_s21 }
 0x3aa   : > { %2038 = vrot.lane.b32.xlu0 %v11749_v58, %s11308_s21 }
 0x3b7   : > { %v1676_v50 = vpop.xlane.xlu1 %1675 }
 0x3bb   : > { %v1670_v2 = vpop.xlane.xlu1 %1669 }
 0x3bf   : > { %v1679_v23 = vpop.xlane.xlu0 %1678 }
 0x3c0   : > { %10698 = vrcp.f32 %v1679_v23 }
 0x3c1   : > { %v1688_v30 = vpop.xlane.xlu1 %1687  ;;  %10700 = vrcp.f32 %v1670_v2 }
 0x3c2   : > { %10702 = vrcp.f32 %v1676_v50 }
 0x3c3   : > { %v1673_v49 = vpop.xlane.xlu0 %1672 }
 0x3c4   : > { %10704 = vrcp.f32 %v1673_v49 }
 0x3c5   : > { %v1682_v31 = vpop.xlane.xlu1 %1681 }
 0x3c6   : > { %10706 = vrcp.f32 %v1682_v31 }
 0x3c7   : > { %v1685_v19 = vpop.xlane.xlu0 %1684 }
 0x3c8   : > { %10708 = vrcp.f32 %v1685_v19 }
 0x3c9   : > { %10710 = vrcp.f32 %v1688_v30 }
 0x3cd   : > { %v10699_v44 = vpop.eup %10698 }
 0x3ce   : > { %v10701_v21 = vpop.eup %10700  ;;  %v1727_v22 = vmul.f32 %v10699_v44, %v11970_v62 }
 0x3cf   : > { %v10703_v51 = vpop.eup %10702  ;;  %v1724_v11 = vmul.f32 %v10701_v21, %v11966_v25  ;;  %v1968_v25 = vsel %vm1368_vm3, %v11802_v20, 0  ;;  %v1965_v20 = vsel %vm1368_vm3, %v11828_v36, 0 }
 0x3d0   : > { %v1726_v50 = vmul.f32 %v10703_v51, %v11962_v38 }
 0x3d1   : > { %v10705_v59 = vpop.eup %10704 }
 0x3d2   : > { %v1725_v23 = vmul.f32 %v10705_v59, %v11972_v55  ;;  %v1739_v48 = vpack.c.bf16 %v1727_v22, %v1726_v50 }
 0x3d3   : > { %v10707_v46 = vpop.eup %10706 }
 0x3d4   : > { %v1738_v2 = vpack.c.bf16 %v1725_v23, %v1724_v11  ;;  %v1728_v30 = vmul.f32 %v10707_v46, %v11982_v10  ;;  %v1959_v23 = vsel %vm1368_vm3, %v11953_v26, 0 }
 0x3d5   : > { %v10709_v49 = vpop.eup %10708 }
 0x3d6   : > { %v10711_v31 = vpop.eup %10710  ;;  %9695 = vmatprep.mubr.msk.bf16.mxu0 %vm1583_vm4, %v1738_v2  ;;  %v1729_v19 = vmul.f32 %v10709_v49, %v11984_v13  ;;  %v2072_v2 = vsel %vm1368_vm3, %v11847_v42, 0 }
 0x3d7   : > { %9696 = vmatmul.mubr.msk.bf16.vlgmr.msra.gmra.mxu0 %vm1583_vm4, %v1739_v48  ;;  %v1697_v62 = vpop.xlane.xlu0 %1696  ;;  %v1730_v38 = vmul.f32 %v10711_v31, %v11976_v0  ;;  %v1962_v0 = vsel %vm1368_vm3, %v11834_v41, 0 }
 0x3d8   : > { %9720 = vmatpush3.bf16.xpose.msra.mxu0 %v1968_v25  ;;  %v1740_v55 = vpack.c.bf16 %v1729_v19, %v1728_v30 }
 0x3d9   : > { %10506 = vmatprep.subr.msk.bf16.mxu0 %vm1368_vm3, %v11828_v36  ;;  %v1741_v46 = vpack.c.bf16 %v1730_v38, %v1730_v38 }
 0x3da   : > { %9699 = vmatprep.mubr.msk.bf16.mxu0 %vm1583_vm4, %v1740_v55 }
 0x3db   : > { %v1700_v44 = vpop.xlane.xlu1 %1699 }
 0x3dc   : > { %v1691_v21 = vpop.xlane.xlu0 %1690  ;;  %10712 = vrcp.f32 %v1700_v44 }
 0x3dd   : > { %10714 = vrcp.f32 %v1691_v21 }
 0x3de   : > { %10716 = vrcp.f32 %v1697_v62 }
 0x3df   : > { %v1694_v48 = vpop.xlane.xlu1 %1693  ;;  %9700 = vmatmul.mubr.msk.bf16.gmra.mxu0 %vm1583_vm4, %v1741_v46 }
 0x3e0   : > { %10718 = vrcp.f32 %v1694_v48  ;;  %9722 = vmatpush3.bf16.xpose.msra.mxu0 %v1965_v20  ;;  %9727 = vmatprep.mubr.msk.bf16.mxu0 %vm1368_vm3, %v11841_v53 }
 0x3e1   : > { %10507 = vmatprep.subr.msk.bf16.mxu0 %vm1368_vm3, %v11834_v41 }
 0x3e8   : > { %9724 = vmatpush3.bf16.xpose.msra.mxu0 %v1962_v0 }
 0x3e9   : > { %10508 = vmatprep.subr.msk.bf16.mxu0 %vm1368_vm3, %v11953_v26  ;;  %v10713_v10 = vpop.eup %10712  ;;  %v2069_v26 = vsel %vm1368_vm3, %v12043_v24, 0 }
 0x3ea   : > { %v10715_v13 = vpop.eup %10714  ;;  %v1734_v36 = vmul.f32 %v10713_v10, %v11998_v9  ;;  %v1935_v9 = vpop.permute.xlu1 %1934 }
 0x3eb   : > { %v10717_v51 = vpop.eup %10716  ;;  %v1731_v22 = vmul.f32 %v10715_v13, %v12000_v35 }
 0x3ec   : > { %v1733_v11 = vmul.f32 %v10717_v51, %v11994_v3  ;;  %v2045_v3 = vpop.permute.xlu0 %2044 }
 0x3ed   : > { %v10719_v59 = vpop.eup %10718  ;;  %v2066_v35 = vsel %vm1368_vm3, %v2045_v3, 0 }
 0x3ee   : > { %v1732_v53 = vmul.f32 %v10719_v59, %v12006_v18  ;;  %v1743_v50 = vpack.c.bf16 %v1734_v36, %v1733_v11 }
 0x3f0   : > { %9726 = vmatpush3.bf16.xpose.msra.mxu0 %v1959_v23  ;;  %v1742_v41 = vpack.c.bf16 %v1732_v53, %v1731_v22 }
 0x3f2   : > { %9711 = vmatprep.mubr.msk.bf16.mxu1 %vm1583_vm4, %v1742_v41 }
 0x3f3   : > { %9712 = vmatmul.mubr.msk.bf16.vlgmr.msra.gmra.mxu1 %vm1583_vm4, %v1743_v50  ;;  %v9027_v50 = vld [vmem:[%s16078_s10 + $0x48] sm:$0xff] }
 0x3f4   : > { %9736 = vmatpush3.bf16.xpose.msra.mxu1 %v2072_v2 }
 0x3f5   : > { %10510 = vmatprep.subr.msk.bf16.mxu1 %vm1368_vm3, %v12043_v24 }
 0x3f7   : > { %9728 = vmatmul.mubr.msk.bf16.vlgmr.msra.gmra.mxu0 %vm1368_vm3, %v12045_v14 }
 0x3f8   : > { %9731 = vmatprep.mubr.msk.bf16.mxu0 %vm1368_vm3, %v1935_v9 }
 0x3fc   : > { %9738 = vmatpush3.bf16.xpose.msra.mxu1 %v2069_v26  ;;  %v9025_v26 = vld [vmem:[%s16078_s10 + $0x38] sm:$0xff] }
 0x3fd   : > { %10511 = vmatprep.subr.msk.bf16.mxu1 %vm1368_vm3, %v2045_v3 }
 0x404   : > { %9740 = vmatpush3.bf16.xpose.msra.mxu1 %v2066_v35 }
 0x411   : > { %v1709_v42 = vpop.xlane.xlu0 %1708 }
 0x412   : > { %10720 = vrcp.f32 %v1709_v42  ;;  %v9028_v42 = vld [vmem:[%s16078_s10 + $0x50] sm:$0xff] }
 0x414   : > { %v1706_v18 = vpop.xlane.xlu1 %1705 }
 0x415   : > { %10722 = vrcp.f32 %v1706_v18  ;;  %v1703_v49 = vpop.xlane.xlu0 %1702 }
 0x416   : > { %10724 = vrcp.f32 %v1703_v49 }
 0x418   : > { %v2043_v31 = vpop.permute.xlu1 %2042 }
 0x419   : > { %v1937_v14 = vpop.permute.xlu0 %1936  ;;  %10512 = vmatprep.subr.msk.bf16.mxu1 %vm1368_vm3, %v2043_v31  ;;  %v2063_v30 = vsel %vm1368_vm3, %v2043_v31, 0 }
 0x41a   : > { %9732 = vmatmul.mubr.msk.bf16.gmra.mxu0 %vm1368_vm3, %v1937_v14  ;;  %9742 = vmatpush3.bf16.xpose.msra.mxu1 %v2063_v30  ;;  %v9026_v14 = vld [vmem:[%s16078_s10 + $0x40] sm:$0xff] }
 0x41c   : > { %v2037_v24 = vpop.permute.xlu1 %2036 }
 0x41d   : > { %v2035_v10 = vpop.permute.xlu0 %2034 }
 0x41f   : > { %v10721_v19 = vpop.eup %10720 }
 0x420   : > { %v2041_v25 = vpop.permute.xlu1 %2040  ;;  %v1737_v44 = vmul.f32 %v10721_v19, %v12017_v15 }
 0x422   : > { %v10723_v62 = vpop.eup %10722  ;;  %v1745_v0 = vpack.c.bf16 %v1737_v44, %v1737_v44 }
 0x423   : > { %v10725_v55 = vpop.eup %10724  ;;  %v1736_v38 = vmul.f32 %v10723_v62, %v12019_v60  ;;  %v2039_v60 = vpop.permute.xlu0 %2038 }
 0x424   : > { %v2325_v21 = vpop.permute.xlu1 %2324  ;;  %v1735_v46 = vmul.f32 %v10725_v55, %v12023_v63 }
 0x425   : > { %10513 = vmatprep.subr.msk.bf16.mxu0 %vm1766_vm2, %v2325_v21  ;;  %v2342_v48 = vsel %vm1766_vm2, %v2325_v21, 0 }
 0x426   : > { %9752 = vmatpush3.bf16.msra.mxu0 %v2342_v48  ;;  %v1744_v20 = vpack.c.bf16 %v1736_v38, %v1735_v46  ;;  %v9031_v48 = vld [vmem:[%s16078_s10 + $0x68] sm:$0xff] }
 0x428   : > { %9715 = vmatprep.mubr.msk.bf16.mxu1 %vm1583_vm4, %v1744_v20 }
 0x429   : > { %9716 = vmatmul.mubr.msk.bf16.gmra.mxu1 %vm1583_vm4, %v1745_v0  ;;  %v9029_v0 = vld [vmem:[%s16078_s10 + $0x58] sm:$0xff] }
 0x42a   : > { %9743 = vmatprep.mubr.msk.bf16.mxu1 %vm1368_vm3, %v2035_v10 }
 0x431   : > { %9744 = vmatmul.mubr.msk.bf16.vlgmr.msra.gmra.mxu1 %vm1368_vm3, %v2037_v24 }
 0x432   : > { %9747 = vmatprep.mubr.msk.bf16.mxu1 %vm1368_vm3, %v2039_v60 }
 0x439   : > { %9748 = vmatmul.mubr.msk.bf16.gmra.mxu1 %vm1368_vm3, %v2041_v25 }
 0x497   : > { %v12105_v15 = vpop.f32.mrf.mxu0 }
 0x499   : > { %v12107_v63 = vpop.f32.mrf.mxu0 }
 0x49b   : > { %v12109_v13 = vpop.f32.mrf.mxu0 }
 0x49d   : > { %v12113_v59 = vpop.f32.mrf.mxu0 }
 0x49f   : > { %v12115_v36 = vpop.f32.mrf.mxu0 }
 0x4a1   : > { %v12117_v22 = vpop.f32.mrf.mxu0 }
 0x4a3   : > { %v9702_v53 = vpop.f32.mrf.mxu0 }
 0x4a5   : > { %v12121_v23 = vpop.f32.mrf.mxu0 }
 0x4b3   : > { %v12119_v11 = vpop.f32.mrf.mxu1 }
 0x4b5   : > { %v12123_v41 = vpop.f32.mrf.mxu1 }
 0x4b7   : > { %v9729_v9 = vpop.f32.mrf.mxu0 }
 0x4b8   : > { %v2013_v3 = vadd.f32 %v9729_v9, %v9027_v50 }
 0x4b9   : > { %v2004_v35 = vpop.f32.mrf.mxu0 }
 0x4ba   : > { %v2005_v18 = vadd.f32 %v9025_v26, %v2004_v35  ;;  %v12137_v49 = vadd.f32 %v11859_v52, %v2013_v3  ;;  %v9030_v35 = vld [vmem:[%s16078_s10 + $0x60] sm:$0xff] }
 0x4bb   : > { %v9730_v31 = vpop.f32.mrf.mxu0 }
 0x4bc   : > { %v2016_v30 = vadd.f32 %v9730_v31, %v9028_v42  ;;  %v2158_v24 = vsel %vm1583_vm4, %v12137_v49, -inf  ;;  %v12145_v19 = vadd.f32 %v11859_v52, %v2005_v18 }
 0x4bd   : > { %2159 = vmax.xlane.f32.xlu0 %v2158_v24  ;;  %v2007_v25 = vpop.f32.mrf.mxu0 }
 0x4be   : > { %v2008_v62 = vadd.f32 %v9026_v14, %v2007_v25  ;;  %v2152_v55 = vsel %vm1583_vm4, %v12145_v19, -inf  ;;  %v12153_v44 = vadd.f32 %v11859_v52, %v2016_v30  ;;  %v12176_v25 = vpop.f32.mrf.mxu1 }
 0x4c0   : > { %v12150_v38 = vadd.f32 %v11859_v52, %v2008_v62  ;;  %v2161_v46 = vsel %vm1583_vm4, %v12153_v44, -inf }
 0x4c1   : > { %2153 = vmax.xlane.f32.xlu0 %v2152_v55 }
 0x4c2   : > { %v2155_v21 = vsel %vm1583_vm4, %v12150_v38, -inf }
 0x4c3   : > { %2156 = vmax.xlane.f32.xlu1 %v2155_v21 }
 0x4c5   : > { %2162 = vmax.xlane.f32.xlu0 %v2161_v46  ;;  %v12185_v46 = vpop.f32.mrf.mxu1 }
 0x4da   : > { %v9733_v20 = vpop.f32.mrf.mxu0 }
 0x4db   : > { %v2029_v10 = vadd.f32 %v9733_v20, %v9031_v48 }
 0x4dc   : > { %v2020_v60 = vpop.f32.mrf.mxu0 }
 0x4dd   : > { %v2021_v53 = vadd.f32 %v9029_v0, %v2020_v60  ;;  %v12166_v9 = vadd.f32 %v11859_v52, %v2029_v10 }
 0x4de   : > { %v9734_v3 = vpop.f32.mrf.mxu0 }
 0x4df   : > { %v2170_v18 = vsel %vm1583_vm4, %v12166_v9, -inf  ;;  %v12174_v31 = vadd.f32 %v11859_v52, %v2021_v53 }
 0x4e0   : > { %2171 = vmax.xlane.f32.xlu1 %v2170_v18  ;;  %v2023_v30 = vpop.f32.mrf.mxu0 }
 0x4e1   : > { %v2024_v24 = vadd.f32 %v9030_v35, %v2023_v30  ;;  %v2164_v62 = vsel %vm1583_vm4, %v12174_v31, -inf }
 0x4e3   : > { %v12181_v55 = vadd.f32 %v11859_v52, %v2024_v24 }
 0x4e4   : > { %2165 = vmax.xlane.f32.xlu1 %v2164_v62 }
 0x4e5   : > { %v2167_v21 = vsel %vm1583_vm4, %v12181_v55, -inf }
 0x4e6   : > { %2168 = vmax.xlane.f32.xlu0 %v2167_v21 }
 0x4e9   : > { %v12187_v20 = vpop.f32.mrf.mxu1 }
 0x4eb   : > { %v12189_v10 = vpop.f32.mrf.mxu1 }
 0x4ed   : > { %v9718_v53 = vpop.f32.mrf.mxu1 }
 0x4ef   : > { %v12193_v3 = vpop.f32.mrf.mxu1 }
 0x4f1   : > { %v9745_v18 = vpop.f32.mrf.mxu1 }
 0x4f2   : > { %v2117_v51 = vadd.f32 %v9745_v18, %v9027_v50 }
 0x4f3   : > { %v2108_v52 = vpop.f32.mrf.mxu1 }
 0x4f4   : > { %v2109_v43 = vadd.f32 %v9025_v26, %v2108_v52  ;;  %v12203_v40 = vadd.f32 %v11912_v4, %v2117_v51 }
 0x4f5   : > { %2320 = vrot.lane.b32.xlu1 %v11747_v57, %s11308_s21  ;;  %v9746_v30 = vpop.f32.mrf.mxu1 }
 0x4f6   : > { %v2120_v2 = vadd.f32 %v9746_v30, %v9028_v42  ;;  %v2179_v50 = vsel %vm1583_vm4, %v12203_v40, -inf }
 0x4f7   : > { %v2111_v24 = vpop.f32.mrf.mxu1 }
 0x4f8   : > { %v2112_v45 = vadd.f32 %v9026_v14, %v2111_v24  ;;  %v12200_v53 = vadd.f32 %v11912_v4, %v2120_v2  ;;  %v12213_v2 = vadd.f32 %v11912_v4, %v2109_v43 }
 0x4f9   : > { %v9749_v62 = vpop.f32.mrf.mxu1 }
 0x4fa   : > { %v2182_v28 = vsel %vm1583_vm4, %v12200_v53, -inf  ;;  %v12208_v39 = vadd.f32 %v11912_v4, %v2112_v45  ;;  %v2173_v45 = vsel %vm1583_vm4, %v12213_v2, -inf }
 0x4fb   : > { %v2124_v21 = vpop.f32.mrf.mxu1 }
 0x4fc   : > { %2322 = vrot.lane.b32.xlu0 %v11740_v47, %s11308_s21  ;;  %v2176_v51 = vsel %vm1583_vm4, %v12208_v39, -inf  ;;  %v2125_v42 = vadd.f32 %v9029_v0, %v2124_v21 }
 0x4fd   : > { %v9750_v16 = vpop.f32.mrf.mxu1 }
 0x4fe   : > { %v2133_v16 = vadd.f32 %v9749_v62, %v9031_v48  ;;  %v12230_v48 = vadd.f32 %v11912_v4, %v2125_v42 }
 0x4ff   : > { %v2127_v60 = vpop.f32.mrf.mxu1 }
 0x500   : > { %v2128_v34 = vadd.f32 %v9030_v35, %v2127_v60 }
 0x502   : > { %v12218_v26 = vadd.f32 %v11912_v4, %v2128_v34  ;;  %v2185_v34 = vsel %vm1583_vm4, %v12230_v48, -inf }
 0x504   : > { %v2188_v43 = vsel %vm1583_vm4, %v12218_v26, -inf }
 0x519   : > { %2183 = vmax.xlane.f32.xlu1 %v2182_v28  ;;  %v12223_v28 = vadd.f32 %v11912_v4, %v2133_v16 }
 0x51b   : > { %2180 = vmax.xlane.f32.xlu0 %v2179_v50  ;;  %v2191_v14 = vsel %vm1583_vm4, %v12223_v28, -inf }
 0x51d   : > { %2177 = vmax.xlane.f32.xlu1 %v2176_v51 }
 0x51f   : > { %2174 = vmax.xlane.f32.xlu0 %v2173_v45 }
 0x521   : > { %2189 = vmax.xlane.f32.xlu1 %v2188_v43 }
 0x523   : > { %2192 = vmax.xlane.f32.xlu0 %v2191_v14 }
 0x527   : > { %2186 = vmax.xlane.f32.xlu0 %v2185_v34 }
 0x532   : > { %2318 = vrot.lane.b32.xlu1 %v11764_v6, %s11308_s21 }
 0x546   : > { %v2160_v0 = vpop.xlane.xlu0 %2159 }
 0x547   : > { %v2196_v35 = vsub.f32 %v12137_v49, %v2160_v0 }
 0x549   : > { %v2212_v60 = vmul.f32 1.442695, %v2196_v35 }
 0x54a   : > { %v2154_v18 = vpop.xlane.xlu0 %2153 }
 0x54b   : > { %10726 = vpow2.f32 %v2212_v60  ;;  %v2194_v52 = vsub.f32 %v12145_v19, %v2154_v18 }
 0x54c   : > { %v2157_v30 = vpop.xlane.xlu1 %2156 }
 0x54d   : > { %v2208_v24 = vmul.f32 1.442695, %v2194_v52  ;;  %v2195_v4 = vsub.f32 %v12150_v38, %v2157_v30 }
 0x54e   : > { %v2163_v62 = vpop.xlane.xlu0 %2162 }
 0x54f   : > { %10728 = vpow2.f32 %v2208_v24  ;;  %v2197_v21 = vsub.f32 %v12153_v44, %v2163_v62  ;;  %v2210_v16 = vmul.f32 1.442695, %v2195_v4 }
 0x551   : > { %v2214_v50 = vmul.f32 1.442695, %v2197_v21 }
 0x553   : > { %10730 = vpow2.f32 %v2214_v50 }
 0x554   : > { %10732 = vpow2.f32 %v2210_v16 }
 0x558   : > { %v12240_v51 = vpop.eup %10726 }
 0x559   : > { %v2242_v49 = vsel %vm1583_vm4, %v12240_v51, 0.0 }
 0x55a   : > { %2243 = vadd.xlane.f32.xlu1 %v2242_v49 }
 0x55c   : > { %v12244_v42 = vpop.eup %10728 }
 0x55d   : > { %v2236_v19 = vsel %vm1583_vm4, %v12244_v42, 0.0 }
 0x55e   : > { %2237 = vadd.xlane.f32.xlu1 %v2236_v19 }
 0x560   : > { %v12248_v38 = vpop.eup %10730 }
 0x561   : > { %v2245_v44 = vsel %vm1583_vm4, %v12248_v38, 0.0  ;;  %v12252_v45 = vpop.eup %10732 }
 0x562   : > { %2246 = vadd.xlane.f32.xlu0 %v2245_v44  ;;  %v2239_v43 = vsel %vm1583_vm4, %v12252_v45, 0.0 }
 0x566   : > { %2240 = vadd.xlane.f32.xlu0 %v2239_v43 }
 0x569   : > { %v2172_v14 = vpop.xlane.xlu1 %2171 }
 0x56a   : > { %v2200_v18 = vsub.f32 %v12166_v9, %v2172_v14 }
 0x56c   : > { %v2220_v52 = vmul.f32 1.442695, %v2200_v18 }
 0x56d   : > { %v2166_v34 = vpop.xlane.xlu1 %2165 }
 0x56e   : > { %v2198_v30 = vsub.f32 %v12174_v31, %v2166_v34  ;;  %10734 = vpow2.f32 %v2220_v52 }
 0x56f   : > { %v2169_v0 = vpop.xlane.xlu0 %2168 }
 0x570   : > { %v2216_v24 = vmul.f32 1.442695, %v2198_v30  ;;  %v2199_v4 = vsub.f32 %v12181_v55, %v2169_v0 }
 0x571   : > { %v2321_v60 = vpop.permute.xlu1 %2320 }
 0x572   : > { %10736 = vpow2.f32 %v2216_v24  ;;  %v2218_v62 = vmul.f32 1.442695, %v2199_v4 }
 0x573   : > { %v2323_v35 = vpop.permute.xlu0 %2322 }
 0x574   : > { %9753 = vmatprep.subr.bf16.mxu0 %v2323_v35  ;;  %10738 = vpow2.f32 %v2218_v62 }
 0x575   : > { %9754 = vmatpush3.bf16.msra.mxu0 %v2323_v35 }
 0x576   : > { %9755 = vmatprep.subr.bf16.mxu0 %v2321_v60 }
 0x579   : > { %9756 = vmatpush3.bf16.msra.mxu0 %v2321_v60 }
 0x57b   : > { %v12261_v21 = vpop.eup %10734 }
 0x57c   : > { %2418 = vrot.lane.b32.xlu0 %v11823_v32, %s11308_s21  ;;  %v2254_v16 = vsel %vm1583_vm4, %v12261_v21, 0.0 }
 0x57f   : > { %v12265_v50 = vpop.eup %10736 }
 0x580   : > { %v2248_v9 = vsel %vm1583_vm4, %v12265_v50, 0.0 }
 0x581   : > { %v12269_v49 = vpop.eup %10738 }
 0x582   : > { %v2251_v55 = vsel %vm1583_vm4, %v12269_v49, 0.0 }
 0x59b   : > { %2255 = vadd.xlane.f32.xlu0 %v2254_v16 }
 0x59f   : > { %2249 = vadd.xlane.f32.xlu0 %v2248_v9 }
 0x5a2   : > { %v2184_v31 = vpop.xlane.xlu1 %2183 }
 0x5a3   : > { %2252 = vadd.xlane.f32.xlu0 %v2251_v55  ;;  %v2204_v14 = vsub.f32 %v12200_v53, %v2184_v31 }
 0x5a4   : > { %v2181_v19 = vpop.xlane.xlu0 %2180 }
 0x5a5   : > { %v2203_v44 = vsub.f32 %v12203_v40, %v2181_v19  ;;  %v2228_v30 = vmul.f32 1.442695, %v2204_v14 }
 0x5a6   : > { %v2178_v43 = vpop.xlane.xlu1 %2177 }
 0x5a7   : > { %v2226_v34 = vmul.f32 1.442695, %v2203_v44  ;;  %v2202_v0 = vsub.f32 %v12208_v39, %v2178_v43 }
 0x5a8   : > { %v2175_v35 = vpop.xlane.xlu0 %2174 }
 0x5a9   : > { %10740 = vpow2.f32 %v2226_v34  ;;  %v2224_v60 = vmul.f32 1.442695, %v2202_v0  ;;  %v2201_v18 = vsub.f32 %v12213_v2, %v2175_v35 }
 0x5aa   : > { %v2190_v52 = vpop.xlane.xlu1 %2189 }
 0x5ab   : > { %10742 = vpow2.f32 %v2224_v60  ;;  %v2222_v24 = vmul.f32 1.442695, %v2201_v18  ;;  %v2206_v9 = vsub.f32 %v12218_v26, %v2190_v52 }
 0x5ac   : > { %v2193_v4 = vpop.xlane.xlu0 %2192 }
 0x5ad   : > { %10744 = vpow2.f32 %v2222_v24  ;;  %v2207_v62 = vsub.f32 %v12223_v28, %v2193_v4  ;;  %v2232_v55 = vmul.f32 1.442695, %v2206_v9 }
 0x5ae   : > { %v2319_v40 = vpop.permute.xlu1 %2318  ;;  %10746 = vpow2.f32 %v2228_v30  ;;  %v15997_v30 = vmov 0.0  }
 0x5af   : > { %v2234_v16 = vmul.f32 1.442695, %v2207_v62  ;;  %9757 = vmatprep.subr.bf16.mxu0 %v2319_v40 }
 0x5b0   : > { %9758 = vmatpush3.bf16.msra.mxu0 %v2319_v40  ;;  %v2187_v53 = vpop.xlane.xlu0 %2186 }
 0x5b1   : > { %v2205_v39 = vsub.f32 %v12230_v48, %v2187_v53  ;;  %10748 = vpow2.f32 %v2234_v16  ;;  %9783 = vmatprep.subr.bf16.mxu0 %v15997_v30 }
 0x5b3   : > { %v2230_v2 = vmul.f32 1.442695, %v2205_v39 }
 0x5b5   : > { %10750 = vpow2.f32 %v2230_v2 }
 0x5b6   : > { %v12280_v31 = vpop.eup %10740  ;;  %10752 = vpow2.f32 %v2232_v55 }
 0x5b7   : > { %v2263_v19 = vsel %vm1583_vm4, %v12280_v31, 0.0 }
 0x5b8   : > { %v12284_v28 = vpop.eup %10742  ;;  %2264 = vadd.xlane.f32.xlu1 %v2263_v19 }
 0x5b9   : > { %v2260_v44 = vsel %vm1583_vm4, %v12284_v28, 0.0 }
 0x5ba   : > { %v12288_v43 = vpop.eup %10744  ;;  %2261 = vadd.xlane.f32.xlu0 %v2260_v44 }
 0x5bb   : > { %v2257_v26 = vsel %vm1583_vm4, %v12288_v43, 0.0  ;;  %v12292_v48 = vpop.eup %10746 }
 0x5bc   : > { %2258 = vadd.xlane.f32.xlu1 %v2257_v26  ;;  %v2266_v14 = vsel %vm1583_vm4, %v12292_v48, 0.0 }
 0x5be   : > { %v12296_v34 = vpop.eup %10748 }
 0x5bf   : > { %v2275_v0 = vsel %vm1583_vm4, %v12296_v34, 0.0 }
 0x5c0   : > { %2267 = vadd.xlane.f32.xlu1 %v2266_v14 }
 0x5c2   : > { %v12300_v35 = vpop.eup %10750 }
 0x5c3   : > { %v2269_v60 = vsel %vm1583_vm4, %v12300_v35, 0.0  ;;  %v12304_v18 = vpop.eup %10752 }
 0x5c4   : > { %2276 = vadd.xlane.f32.xlu1 %v2275_v0  ;;  %v2272_v52 = vsel %vm1583_vm4, %v12304_v18, 0.0 }
 0x5c8   : > { %2270 = vadd.xlane.f32.xlu1 %v2269_v60  ;;  %v10638_v60 = vld [vmem:[%s11502_s2 + $0x8] sm:$0xff]  }
 0x5cc   : > { %2273 = vadd.xlane.f32.xlu1 %v2272_v52 }
 0x5d0   : > { %2414 = vrot.lane.b32.xlu0 %v11728_v29, %s11308_s21 }
 0x5d4   : > { %2412 = vrot.lane.b32.xlu0 %v11718_v12, %s11308_s21 }
 0x5d8   : > { %2766 = vrot.lane.b32.xlu0 %v11698_v56, %s11310_s12 }
 0x5dc   : > { %2762 = vrot.lane.b32.xlu0 %v11721_v17, %s11310_s12 }
 0x5dd   : > { %2416 = vrot.lane.b32.xlu1 %v11758_v5, %s11308_s21 }
 0x5e0   : > { %2870 = vrot.lane.b32.xlu0 %v11768_v7, %s11310_s12 }
 0x5e1   : > { %2764 = vrot.lane.b32.xlu1 %v11735_v37, %s11310_s12 }
 0x5e3   : > { %v2244_v24 = vpop.xlane.xlu1 %2243 }
 0x5e4   : > { %2754 = vrot.lane.b32.xlu0 %v11721_v17, %s11311_s8 }
 0x5e5   : > { %2760 = vrot.lane.b32.xlu1 %v11707_v1, %s11310_s12 }
 0x5e7   : > { %v2238_v4 = vpop.xlane.xlu1 %2237 }
 0x5e8   : > { %2866 = vrot.lane.b32.xlu0 %v11778_v54, %s11310_s12 }
 0x5e9   : > { %2752 = vrot.lane.b32.xlu1 %v11707_v1, %s11311_s8 }
 0x5eb   : > { %v2247_v62 = vpop.xlane.xlu0 %2246 }
 0x5ec   : > { %2758 = vrot.lane.b32.xlu0 %v11698_v56, %s11311_s8  ;;  %10754 = vrcp.f32 %v2247_v62 }
 0x5ed   : > { %2868 = vrot.lane.b32.xlu1 %v11749_v58, %s11310_s12  ;;  %10756 = vrcp.f32 %v2238_v4 }
 0x5ee   : > { %10758 = vrcp.f32 %v2244_v24 }
 0x5ef   : > { %v2241_v40 = vpop.xlane.xlu0 %2240 }
 0x5f0   : > { %10760 = vrcp.f32 %v2241_v40  ;;  %2856 = vrot.lane.b32.xlu0 %v11770_v8, %s11311_s8 }
 0x5f1   : > { %2756 = vrot.lane.b32.xlu1 %v11735_v37, %s11311_s8 }
 0x5f3   : > { %v2419_v16 = vpop.permute.xlu0 %2418 }
 0x5f4   : > { %2860 = vrot.lane.b32.xlu0 %v11749_v58, %s11311_s8  ;;  %10514 = vmatprep.subr.msk.bf16.mxu1 %vm1766_vm2, %v2419_v16  ;;  %v2436_v53 = vsel %vm1766_vm2, %v2419_v16, 0 }
 0x5f5   : > { %2864 = vrot.lane.b32.xlu1 %v11770_v8, %s11310_s12  ;;  %9768 = vmatpush3.bf16.msra.mxu1 %v2436_v53 }
 0x5f9   : > { %2858 = vrot.lane.b32.xlu1 %v11778_v54, %s11311_s8  ;;  %v10755_v39 = vpop.eup %10754 }
 0x5fa   : > { %v10757_v9 = vpop.eup %10756  ;;  %v2295_v19 = vmul.f32 %v10755_v39, %v12248_v38 }
 0x5fb   : > { %v10759_v2 = vpop.eup %10758  ;;  %v2292_v44 = vmul.f32 %v10757_v9, %v12244_v42 }
 0x5fc   : > { %v2294_v14 = vmul.f32 %v10759_v2, %v12240_v51 }
 0x5fd   : > { %v10761_v55 = vpop.eup %10760  ;;  %2862 = vrot.lane.b32.xlu1 %v11768_v7, %s11311_s8 }
 0x5fe   : > { %v2293_v26 = vmul.f32 %v10761_v55, %v12252_v45  ;;  %v2307_v52 = vpack.c.bf16 %v2295_v19, %v2294_v14 }
 0x600   : > { %v2306_v0 = vpack.c.bf16 %v2293_v26, %v2292_v44 }
 0x602   : > { %9759 = vmatprep.mubr.msk.bf16.mxu0 %vm1583_vm4, %v2306_v0 }
 0x603   : > { %9760 = vmatmul.mubr.msk.bf16.vlgmr.msra.gmra.mxu0 %vm1583_vm4, %v2307_v52 }
 0x604   : > { %9784 = vmatpush3.bf16.msra.mxu0 %v10638_v60 }
 0x624   : > { %v2256_v24 = vpop.xlane.xlu0 %2255 }
 0x625   : > { %10762 = vrcp.f32 %v2256_v24 }
 0x628   : > { %v2250_v4 = vpop.xlane.xlu0 %2249 }
 0x629   : > { %10764 = vrcp.f32 %v2250_v4 }
 0x62c   : > { %v2253_v38 = vpop.xlane.xlu0 %2252 }
 0x62d   : > { %10766 = vrcp.f32 %v2253_v38 }
 0x632   : > { %v10763_v62 = vpop.eup %10762 }
 0x633   : > { %v2298_v45 = vmul.f32 %v10763_v62, %v12261_v21 }
 0x635   : > { %v2309_v39 = vpack.c.bf16 %v2298_v45, %v2298_v45 }
 0x636   : > { %v10765_v42 = vpop.eup %10764 }
 0x637   : > { %v2296_v51 = vmul.f32 %v10765_v42, %v12265_v50 }
 0x63a   : > { %v10767_v40 = vpop.eup %10766 }
 0x63b   : > { %v2297_v16 = vmul.f32 %v10767_v40, %v12269_v49 }
 0x63d   : > { %v2308_v53 = vpack.c.bf16 %v2297_v16, %v2296_v51  ;;  %v10639_v16 = vld [vmem:[%s11502_s2] sm:$0xff]  }
 0x63f   : > { %9763 = vmatprep.mubr.msk.bf16.mxu0 %vm1583_vm4, %v2308_v53 }
 0x640   : > { %9764 = vmatmul.mubr.msk.bf16.gmra.mxu0 %vm1583_vm4, %v2309_v39 }
 0x641   : > { %v2265_v9 = vpop.xlane.xlu1 %2264  ;;  %9785 = vmatprep.mubr.msk.bf16.mxu0 %vm11312_vm5, %v15997_v30 }
 0x643   : > { %v2262_v2 = vpop.xlane.xlu0 %2261 }
 0x644   : > { %10768 = vrcp.f32 %v2262_v2 }
 0x645   : > { %v2259_v55 = vpop.xlane.xlu1 %2258 }
 0x646   : > { %10770 = vrcp.f32 %v2259_v55 }
 0x647   : > { %v2415_v21 = vpop.permute.xlu0 %2414 }
 0x649   : > { %v2268_v19 = vpop.xlane.xlu1 %2267 }
 0x64a   : > { %10772 = vrcp.f32 %v2268_v19 }
 0x64b   : > { %v2413_v50 = vpop.permute.xlu0 %2412  ;;  %10774 = vrcp.f32 %v2265_v9 }
 0x64d   : > { %v2277_v44 = vpop.xlane.xlu1 %2276 }
 0x64f   : > { %v12363_v49 = vpop.permute.xlu0 %2766 }
 0x650   : > { %10515 = vmatprep.subr.msk.bf16.mxu0 %vm1368_vm3, %v12363_v49 }
 0x651   : > { %v10769_v26 = vpop.eup %10768  ;;  %v2271_v14 = vpop.xlane.xlu1 %2270 }
 0x652   : > { %10776 = vrcp.f32 %v2271_v14  ;;  %v2300_v52 = vmul.f32 %v10769_v26, %v12284_v28  ;;  %v16079_v14 = vpack.c.bf16 %v12109_v13, %v12105_v15 }
 0x653   : > { %v10771_v0 = vpop.eup %10770  ;;  %v12371_v45 = vpop.permute.xlu0 %2762 }
 0x654   : > { %v2299_v60 = vmul.f32 %v10771_v0, %v12288_v43 }
 0x655   : > { %v2274_v24 = vpop.xlane.xlu1 %2273 }
 0x656   : > { %10778 = vrcp.f32 %v2274_v24  ;;  %v2310_v4 = vpack.c.bf16 %v2300_v52, %v2299_v60  ;;  %v1915_v60 = vpack.c.bf16 %v12121_v23, %v12117_v22  ;;  %v16080_v52 = vpack.c.bf16 %v12123_v41, %v12115_v36 }
 0x657   : > { %10780 = vrcp.f32 %v2277_v44  ;;  %v10773_v62 = vpop.eup %10772  ;;  %v1917_v22 = vpack.c.bf16 %v12119_v11, %v12185_v46  ;;  %v16081_v23 = vpack.c.bf16 %v12189_v10, %v12176_v25  ;;  %v1919_v41 = vpack.c.bf16 %v12187_v20, %v12193_v3 }
 0x658   : > { %9775 = vmatprep.mubr.msk.bf16.mxu1 %vm1583_vm4, %v2310_v4  ;;  %v10775_v42 = vpop.eup %10774  ;;  %v2302_v40 = vmul.f32 %v10773_v62, %v12292_v48  ;;  %v2790_v20 = vsel %vm1368_vm3, %v12363_v49, 0  ;;  %v2784_v49 = vsel %vm1368_vm3, %v12371_v45, 0 }
 0x659   : > { %v2417_v38 = vpop.permute.xlu1 %2416  ;;  %v2301_v28 = vmul.f32 %v10775_v42, %v12280_v31 }
 0x65a   : > { %9769 = vmatprep.subr.bf16.mxu1 %v2417_v38 }
 0x65b   : > { %9770 = vmatpush3.bf16.msra.mxu1 %v2417_v38  ;;  %v2311_v53 = vpack.c.bf16 %v2302_v40, %v2301_v28 }
 0x65c   : > { %9771 = vmatprep.subr.bf16.mxu1 %v2415_v21 }
 0x65d   : > { %v12378_v55 = vpop.permute.xlu1 %2764 }
 0x65f   : > { %9772 = vmatpush3.bf16.msra.mxu1 %v2415_v21  ;;  %v10777_v43 = vpop.eup %10776  ;;  %v2871_v21 = vpop.permute.xlu0 %2870 }
 0x660   : > { %9773 = vmatprep.subr.bf16.mxu1 %v2413_v50  ;;  %v2303_v39 = vmul.f32 %v10777_v43, %v12300_v35  ;;  %v2894_v44 = vsel %vm1368_vm3, %v2871_v21, 0  ;;  %v2787_v43 = vsel %vm1368_vm3, %v12378_v55, 0 }
 0x661   : > { %v12384_v19 = vpop.permute.xlu1 %2760 }
 0x662   : > { %v2781_v28 = vsel %vm1368_vm3, %v12384_v19, 0 }
 0x663   : > { %v10779_v51 = vpop.eup %10778  ;;  %9774 = vmatpush3.bf16.msra.mxu1 %v2413_v50 }
 0x664   : > { %9813 = vmatprep.subr.bf16.mxu1 %v15997_v30  ;;  %v2304_v9 = vmul.f32 %v10779_v51, %v12304_v18  ;;  %v10781_v2 = vpop.eup %10780  ;;  %v1913_v18 = vpack.c.bf16 %v12113_v59, %v12107_v63 }
 0x665   : > { %v2305_v31 = vmul.f32 %v10781_v2, %v12296_v34  ;;  %v12389_v35 = vpop.permute.xlu1 %2752  ;;  %v12398_v34 = vpop.permute.xlu0 %2754 }
 0x666   : > { %9776 = vmatmul.mubr.msk.bf16.vlgmr.msra.gmra.mxu1 %vm1583_vm4, %v2311_v53  ;;  %v2312_v48 = vpack.c.bf16 %v2304_v9, %v2303_v39 }
 0x667   : > { %9814 = vmatpush3.bf16.msra.mxu1 %v10639_v16  ;;  %v2313_v50 = vpack.c.bf16 %v2305_v31, %v2305_v31 }
 0x668   : > { %9779 = vmatprep.mubr.msk.bf16.mxu1 %vm1583_vm4, %v2312_v48  ;;  %10519 = vmatprep.subr.msk.bf16.mxu1 %vm1368_vm3, %v2871_v21 }
 0x669   : > { %v2869_v26 = vpop.permute.xlu1 %2868  ;;  %v2867_v59 = vpop.permute.xlu0 %2866 }
 0x66a   : > { %v2891_v63 = vsel %vm1368_vm3, %v2869_v26, 0  ;;  %v2888_v15 = vsel %vm1368_vm3, %v2867_v59, 0 }
 0x66d   : > { %v12408_v0 = vpop.permute.xlu1 %2756  ;;  %v12435_v36 = vpop.permute.xlu0 %2758 }
 0x66e   : > { %9780 = vmatmul.mubr.msk.bf16.gmra.mxu1 %vm1583_vm4, %v2313_v50 }
 0x66f   : > { %9815 = vmatprep.mubr.msk.bf16.mxu1 %vm11312_vm5, %v15997_v30 }
 0x671   : > { %v2865_v13 = vpop.permute.xlu1 %2864  ;;  %v2857_v4 = vpop.permute.xlu0 %2856 }
 0x672   : > { %v2885_v24 = vsel %vm1368_vm3, %v2865_v13, 0 }
 0x675   : > { %v2859_v11 = vpop.permute.xlu1 %2858  ;;  %v2861_v46 = vpop.permute.xlu0 %2860 }
 0x676   : > { %9816 = vmatmul.mubr.msk.bf16.vlgmr.msra.gmra.mxu1 %vm1368_vm3, %v1913_v18 }
 0x677   : > { %9860 = vmatpush3.bf16.xpose.msra.mxu1 %v2894_v44  ;;  %9819 = vmatprep.mubr.msk.bf16.mxu1 %vm11312_vm5, %v15997_v30 }
 0x678   : > { %10520 = vmatprep.subr.msk.bf16.mxu1 %vm1368_vm3, %v2869_v26 }
 0x679   : > { %v2863_v25 = vpop.permute.xlu1 %2862 }
 0x67e   : > { %9820 = vmatmul.mubr.msk.bf16.gmra.mxu1 %vm1368_vm3, %v16079_v14 }
 0x67f   : > { %9862 = vmatpush3.bf16.xpose.msra.mxu1 %v2891_v63  ;;  %9823 = vmatprep.mubr.msk.bf16.mxu1 %vm11312_vm5, %v15997_v30 }
 0x680   : > { %10521 = vmatprep.subr.msk.bf16.mxu1 %vm1368_vm3, %v2867_v59 }
 0x686   : > { %9824 = vmatmul.mubr.msk.bf16.gmra.mxu1 %vm1368_vm3, %v1915_v60 }
 0x687   : > { %9864 = vmatpush3.bf16.xpose.msra.mxu1 %v2888_v15  ;;  %9827 = vmatprep.mubr.msk.bf16.mxu1 %vm11312_vm5, %v15997_v30 }
 0x688   : > { %10522 = vmatprep.subr.msk.bf16.mxu1 %vm1368_vm3, %v2865_v13 }
 0x68e   : > { %9828 = vmatmul.mubr.msk.bf16.gmra.mxu1 %vm1368_vm3, %v16080_v52 }
 0x68f   : > { %9866 = vmatpush3.bf16.xpose.msra.mxu1 %v2885_v24  ;;  %9831 = vmatprep.mubr.msk.bf16.mxu1 %vm11312_vm5, %v15997_v30 }
 0x696   : > { %9832 = vmatmul.mubr.msk.bf16.gmra.mxu1 %vm1368_vm3, %v1917_v22 }
 0x697   : > { %9835 = vmatprep.mubr.msk.bf16.mxu1 %vm11312_vm5, %v15997_v30 }
 0x69e   : > { %9836 = vmatmul.mubr.msk.bf16.gmra.mxu1 %vm1368_vm3, %v16081_v23 }
 0x69f   : > { %9839 = vmatprep.mubr.msk.bf16.mxu1 %vm11312_vm5, %v15997_v30 }
 0x6a6   : > { %9840 = vmatmul.mubr.msk.bf16.gmra.mxu1 %vm1368_vm3, %v1919_v41 }
 0x6a7   : > { %9867 = vmatprep.mubr.msk.bf16.mxu1 %vm1368_vm3, %v2857_v4 }
 0x6ae   : > { %9868 = vmatmul.mubr.msk.bf16.vlgmr.msra.gmra.mxu1 %vm1368_vm3, %v2859_v11 }
 0x6af   : > { %9871 = vmatprep.mubr.msk.bf16.mxu1 %vm1368_vm3, %v2861_v46 }
 0x6b6   : > { %9872 = vmatmul.mubr.msk.bf16.gmra.mxu1 %vm1368_vm3, %v2863_v25 }
 0x6c3   : > { %v9761_v10 = vpop.f32.mrf.mxu0 }
 0x6c5   : > { %v2378_v38 = vpop.f32.mrf.mxu0 }
 0x6c7   : > { %v9762_v62 = vpop.f32.mrf.mxu0 }
 0x6c8   : > { %v2503_v3 = vpack.c.bf16 %v9762_v62, %v9761_v10 }
 0x6c9   : > { %v2381_v42 = vpop.f32.mrf.mxu0 }
 0x6ca   : > { %v2502_v40 = vpack.c.bf16 %v2381_v42, %v2378_v38 }
 0x6cc   : > { %9786 = vmatmul.mubr.msk.bf16.vlgmr.msra.gmra.mxu0 %vm1368_vm3, %v2502_v40 }
 0x6cd   : > { %9844 = vmatpush3.bf16.xpose.msra.mxu0 %v2790_v20  ;;  %9789 = vmatprep.mubr.msk.bf16.mxu0 %vm11312_vm5, %v15997_v30 }
 0x6ce   : > { %10516 = vmatprep.subr.msk.bf16.mxu0 %vm1368_vm3, %v12378_v55 }
 0x6d4   : > { %9790 = vmatmul.mubr.msk.bf16.gmra.mxu0 %vm1368_vm3, %v2503_v3 }
 0x6d5   : > { %9846 = vmatpush3.bf16.xpose.msra.mxu0 %v2787_v43  ;;  %9793 = vmatprep.mubr.msk.bf16.mxu0 %vm11312_vm5, %v15997_v30 }
 0x6d6   : > { %10517 = vmatprep.subr.msk.bf16.mxu0 %vm1368_vm3, %v12371_v45 }
 0x6dd   : > { %9848 = vmatpush3.bf16.xpose.msra.mxu0 %v2784_v49 }
 0x6de   : > { %10518 = vmatprep.subr.msk.bf16.mxu0 %vm1368_vm3, %v12384_v19 }
 0x6e5   : > { %9850 = vmatpush3.bf16.xpose.msra.mxu0 %v2781_v28 }
 0x700   : > { %v9765_v51 = vpop.f32.mrf.mxu0 }
 0x702   : > { %v2394_v16 = vpop.f32.mrf.mxu0 }
 0x704   : > { %v9766_v53 = vpop.f32.mrf.mxu0 }
 0x706   : > { %v2397_v39 = vpop.f32.mrf.mxu0 }
 0x707   : > { %v2504_v9 = vpack.c.bf16 %v2397_v39, %v2394_v16  ;;  %v9067_v39 = vld [vmem:[%s16078_s10 + $0x78] sm:$0xff] }
 0x709   : > { %9794 = vmatmul.mubr.msk.bf16.gmra.mxu0 %vm1368_vm3, %v2504_v9 }
 0x70a   : > { %9797 = vmatprep.mubr.msk.bf16.mxu0 %vm11312_vm5, %v15997_v30 }
 0x726   : > { %v9777_v2 = vpop.f32.mrf.mxu1 }
 0x728   : > { %v2472_v45 = vpop.f32.mrf.mxu1 }
 0x729   : > { %v2505_v55 = vpack.c.bf16 %v2472_v45, %v9765_v51 }
 0x72a   : > { %v9778_v48 = vpop.f32.mrf.mxu1 }
 0x72b   : > { %9798 = vmatmul.mubr.msk.bf16.gmra.mxu0 %vm1368_vm3, %v2505_v55  ;;  %v12523_v55 = vld [vmem:[%s16077_s19 + $0x1] ss:$0 sm:$0xff] }
 0x72c   : > { %v2475_v21 = vpop.f32.mrf.mxu1  ;;  %9801 = vmatprep.mubr.msk.bf16.mxu0 %vm11312_vm5, %v15997_v30 }
 0x72d   : > { %v2506_v50 = vpack.c.bf16 %v9777_v2, %v2475_v21 }
 0x72e   : > { %v9781_v31 = vpop.f32.mrf.mxu1 }
 0x730   : > { %v2488_v19 = vpop.f32.mrf.mxu1 }
 0x731   : > { %v2507_v63 = vpack.c.bf16 %v2488_v19, %v9778_v48 }
 0x732   : > { %v9782_v18 = vpop.f32.mrf.mxu1 }
 0x733   : > { %9802 = vmatmul.mubr.msk.bf16.gmra.mxu0 %vm1368_vm3, %v2506_v50 }
 0x734   : > { %v2491_v44 = vpop.f32.mrf.mxu1  ;;  %9805 = vmatprep.mubr.msk.bf16.mxu0 %vm11312_vm5, %v15997_v30 }
 0x735   : > { %v2508_v52 = vpack.c.bf16 %v9781_v31, %v2491_v44 }
 0x736   : > { %v12473_v26 = vpop.f32.mrf.mxu1 }
 0x738   : > { %v9817_v14 = vpop.f32.mrf.mxu1 }
 0x73a   : > { %v12475_v59 = vpop.f32.mrf.mxu1 }
 0x73b   : > { %9806 = vmatmul.mubr.msk.bf16.gmra.mxu0 %vm1368_vm3, %v2507_v63 }
 0x73c   : > { %v9818_v60 = vpop.f32.mrf.mxu1  ;;  %9809 = vmatprep.mubr.msk.bf16.mxu0 %vm11312_vm5, %v15997_v30 }
 0x73e   : > { %v12480_v15 = vpop.f32.mrf.mxu1 }
 0x740   : > { %v9821_v13 = vpop.f32.mrf.mxu1 }
 0x742   : > { %v12482_v24 = vpop.f32.mrf.mxu1 }
 0x743   : > { %9810 = vmatmul.mubr.msk.bf16.gmra.mxu0 %vm1368_vm3, %v2508_v52 }
 0x744   : > { %v9822_v22 = vpop.f32.mrf.mxu1  ;;  %9851 = vmatprep.mubr.msk.bf16.mxu0 %vm1368_vm3, %v12389_v35 }
 0x746   : > { %v12487_v23 = vpop.f32.mrf.mxu1 }
 0x748   : > { %v9825_v41 = vpop.f32.mrf.mxu1 }
 0x74a   : > { %v12489_v4 = vpop.f32.mrf.mxu1 }
 0x74b   : > { %9852 = vmatmul.mubr.msk.bf16.vlgmr.msra.gmra.mxu0 %vm1368_vm3, %v12398_v34 }
 0x74c   : > { %v9826_v11 = vpop.f32.mrf.mxu1  ;;  %9855 = vmatprep.mubr.msk.bf16.mxu0 %vm1368_vm3, %v12408_v0 }
 0x74e   : > { %v12495_v46 = vpop.f32.mrf.mxu1 }
 0x750   : > { %v9829_v25 = vpop.f32.mrf.mxu1 }
 0x752   : > { %v12497_v10 = vpop.f32.mrf.mxu1 }
 0x753   : > { %9856 = vmatmul.mubr.msk.bf16.gmra.mxu0 %vm1368_vm3, %v12435_v36 }
 0x754   : > { %v9830_v35 = vpop.f32.mrf.mxu1 }
 0x756   : > { %v12501_v38 = vpop.f32.mrf.mxu1 }
 0x758   : > { %v9833_v62 = vpop.f32.mrf.mxu1 }
 0x75a   : > { %v12503_v42 = vpop.f32.mrf.mxu1 }
 0x75b   : > { %16082 = vst [vmem:[#allocation24_spill] sm:$0xff] %v12503_v42 }
 0x75c   : > { %v9834_v40 = vpop.f32.mrf.mxu1 }
 0x75e   : > { %v12505_v34 = vpop.f32.mrf.mxu1 }
 0x75f   : > { %16083 = vst [vmem:[#allocation25_spill] sm:$0xff] %v12505_v34 }
 0x760   : > { %v9837_v20 = vpop.f32.mrf.mxu1 }
 0x762   : > { %v12507_v0 = vpop.f32.mrf.mxu1 }
 0x763   : > { %16084 = vst [vmem:[#allocation26_spill] sm:$0xff] %v12507_v0 }
 0x764   : > { %v9838_v3 = vpop.f32.mrf.mxu1 }
 0x766   : > { %v12509_v43 = vpop.f32.mrf.mxu1 }
 0x767   : > { %16085 = vst [vmem:[#allocation27_spill] sm:$0xff] %v12509_v43 }
 0x768   : > { %v9841_v49 = vpop.f32.mrf.mxu1 }
 0x76a   : > { %v12511_v28 = vpop.f32.mrf.mxu1 }
 0x76b   : > { %16086 = vst [vmem:[#allocation28_spill] sm:$0xff] %v12511_v28 }
 0x76c   : > { %v9842_v36 = vpop.f32.mrf.mxu1 }
 0x76e   : > { %v12513_v51 = vpop.f32.mrf.mxu1 }
 0x770   : > { %v2930_v16 = vpop.f32.mrf.mxu1 }
 0x772   : > { %v12515_v53 = vpop.f32.mrf.mxu1 }
 0x774   : > { %v2933_v9 = vpop.f32.mrf.mxu1 }
 0x775   : > { %v2934_v2 = vadd.f32 %v9067_v39, %v2933_v9 }
 0x776   : > { %v12520_v45 = vpop.f32.mrf.mxu1 }
 0x777   : > { %v12526_v48 = vadd.f32 %v12523_v55, %v2934_v2 }
 0x778   : > { %v12528_v21 = vpop.f32.mrf.mxu1 }
 0x779   : > { %v2998_v31 = vsel %vm1583_vm4, %v12526_v48, -inf }
 0x77a   : > { %2999 = vmax.xlane.f32.xlu1 %v2998_v31  ;;  %v9874_v19 = vpop.f32.mrf.mxu1 }
 0x78c   : > { %v12532_v50 = vpop.f32.mrf.mxu0 }
 0x78e   : > { %v9787_v18 = vpop.f32.mrf.mxu0 }
 0x790   : > { %v12534_v44 = vpop.f32.mrf.mxu0 }
 0x792   : > { %v9788_v14 = vpop.f32.mrf.mxu0 }
 0x794   : > { %v12536_v63 = vpop.f32.mrf.mxu0 }
 0x796   : > { %v9791_v60 = vpop.f32.mrf.mxu0 }
 0x798   : > { %v12538_v13 = vpop.f32.mrf.mxu0 }
 0x79a   : > { %v9792_v52 = vpop.f32.mrf.mxu0 }
 0x7c9   : > { %v12540_v22 = vpop.f32.mrf.mxu0 }
 0x7cb   : > { %v9795_v41 = vpop.f32.mrf.mxu0 }
 0x7cd   : > { %v12542_v11 = vpop.f32.mrf.mxu0 }
 0x7cf   : > { %v9796_v25 = vpop.f32.mrf.mxu0 }
 0x7d0   : > { %v9068_v25 = vld [vmem:[%s16078_s10 + $0x80] sm:$0xff] }
 0x7eb   : > { %v12544_v35 = vpop.f32.mrf.mxu0 }
 0x7ed   : > { %v9799_v62 = vpop.f32.mrf.mxu0 }
 0x7ef   : > { %v12546_v40 = vpop.f32.mrf.mxu0 }
 0x7f1   : > { %v9800_v20 = vpop.f32.mrf.mxu0 }
 0x7f3   : > { %v12548_v3 = vpop.f32.mrf.mxu0 }
 0x7f5   : > { %v9803_v49 = vpop.f32.mrf.mxu0 }
 0x7f6   : > { %v9066_v49 = vld [vmem:[%s16078_s10 + $0x70] sm:$0xff] }
 0x7f7   : > { %v12550_v36 = vpop.f32.mrf.mxu0  ;;  %v2931_v43 = vadd.f32 %v9066_v49, %v2930_v16 }
 0x7f9   : > { %v9804_v9 = vpop.f32.mrf.mxu0 }
 0x7fb   : > { %v12552_v2 = vpop.f32.mrf.mxu0 }
 0x7fc   : > { %16087 = vst [vmem:[#allocation29_spill] sm:$0xff] %v12552_v2 }
 0x7fd   : > { %v9807_v31 = vpop.f32.mrf.mxu0 }
 0x7fe   : > { %v12567_v31 = vld [vmem:[%s16077_s19] ss:$0 sm:$0xff] }
 0x7ff   : > { %v12554_v19 = vpop.f32.mrf.mxu0 }
 0x800   : > { %16088 = vst [vmem:[#allocation30_spill] sm:$0xff] %v12554_v19 }
 0x801   : > { %v9808_v18 = vpop.f32.mrf.mxu0 }
 0x803   : > { %v12556_v14 = vpop.f32.mrf.mxu0 }
 0x804   : > { %16089 = vst [vmem:[#allocation31_spill] sm:$0xff] %v12556_v14 }
 0x805   : > { %v9811_v60 = vpop.f32.mrf.mxu0 }
 0x807   : > { %v12558_v52 = vpop.f32.mrf.mxu0 }
 0x808   : > { %16090 = vst [vmem:[#allocation32_spill] sm:$0xff] %v12558_v52 }
 0x809   : > { %v9812_v41 = vpop.f32.mrf.mxu0 }
 0x80a   : > { %v9069_v41 = vld [vmem:[%s16078_s10 + $0x88] sm:$0xff] }
 0x80b   : > { %v9853_v62 = vpop.f32.mrf.mxu0 }
 0x80c   : > { %v2835_v20 = vadd.f32 %v9853_v62, %v9068_v25 }
 0x80d   : > { %v2826_v9 = vpop.f32.mrf.mxu0 }
 0x80e   : > { %v12570_v18 = vadd.f32 %v12567_v31, %v2835_v20  ;;  %v2827_v60 = vadd.f32 %v9066_v49, %v2826_v9  ;;  %v9072_v20 = vld [vmem:[%s16078_s10 + $0xa0] sm:$0xff] }
 0x80f   : > { %v9854_v30 = vpop.f32.mrf.mxu0 }
 0x810   : > { %v12576_v33 = vadd.f32 %v12567_v31, %v2827_v60  ;;  %v2838_v62 = vadd.f32 %v9854_v30, %v9069_v41  ;;  %v2980_v27 = vsel %vm1583_vm4, %v12570_v18, -inf }
 0x811   : > { %2981 = vmax.xlane.f32.xlu0 %v2980_v27  ;;  %v2829_v28 = vpop.f32.mrf.mxu0  ;;  %v9070_v27 = vld [vmem:[%s16078_s10 + $0x90] sm:$0xff] }
 0x812   : > { %v2830_v52 = vadd.f32 %v9067_v39, %v2829_v28  ;;  %v12584_v14 = vadd.f32 %v12567_v31, %v2838_v62  ;;  %v2974_v60 = vsel %vm1583_vm4, %v12576_v33, -inf }
 0x813   : > { %v9857_v9 = vpop.f32.mrf.mxu0 }
 0x814   : > { %v2851_v0 = vadd.f32 %v9857_v9, %v9072_v20  ;;  %v12589_v30 = vadd.f32 %v12567_v31, %v2830_v52  ;;  %v12600_v9 = vadd.f32 %v12523_v55, %v2931_v43  ;;  %v2983_v52 = vsel %vm1583_vm4, %v12584_v14, -inf  ;;  %v2949_v43 = vpop.f32.mrf.mxu1 }
 0x815   : > { %2975 = vmax.xlane.f32.xlu0 %v2974_v60  ;;  %v2842_v28 = vpop.f32.mrf.mxu0  ;;  %v9071_v60 = vld [vmem:[%s16078_s10 + $0x98] sm:$0xff] }
 0x816   : > { %v12595_v16 = vadd.f32 %v12567_v31, %v2851_v0  ;;  %v2843_v39 = vadd.f32 %v9070_v27, %v2842_v28  ;;  %v2977_v49 = vsel %vm1583_vm4, %v12589_v30, -inf  ;;  %v2942_v0 = vadd.f32 %v12515_v53, %v9069_v41 }
 0x817   : > { %v9858_v62 = vpop.f32.mrf.mxu0  ;;  %2978 = vmax.xlane.f32.xlu1 %v2977_v49  ;;  %v2995_v2 = vsel %vm1583_vm4, %v12600_v9, -inf  ;;  %v2950_v41 = vadd.f32 %v9071_v60, %v2949_v43 }
 0x818   : > { %v12609_v28 = vadd.f32 %v12567_v31, %v2843_v39  ;;  %v2992_v49 = vsel %vm1583_vm4, %v12595_v16, -inf  ;;  %v2939_v62 = vadd.f32 %v12513_v51, %v9068_v25  ;;  %v12620_v53 = vadd.f32 %v12523_v55, %v2942_v0 }
 0x819   : > { %2984 = vmax.xlane.f32.xlu0 %v2983_v52  ;;  %v2845_v19 = vpop.f32.mrf.mxu0  ;;  %v2947_v52 = vadd.f32 %v9070_v27, %v12528_v21  ;;  %v2955_v25 = vadd.f32 %v12520_v45, %v9072_v20 }
 0x81a   : > { %v2846_v34 = vadd.f32 %v9071_v60, %v2845_v19  ;;  %v2986_v19 = vsel %vm1583_vm4, %v12609_v28, -inf  ;;  %v2969_v39 = vadd.f32 %v12523_v55, %v2939_v62 }
 0x81b   : > { %2993 = vmax.xlane.f32.xlu1 %v2992_v49  ;;  %v12635_v60 = vadd.f32 %v12523_v55, %v2947_v52  ;;  %v12641_v27 = vadd.f32 %v12523_v55, %v2955_v25 }
 0x81c   : > { %v12617_v42 = vadd.f32 %v12567_v31, %v2846_v34  ;;  %v3004_v34 = vsel %vm1583_vm4, %v12620_v53, -inf  ;;  %v3001_v0 = vsel %vm1583_vm4, %v2969_v39, -inf }
 0x81d   : > { %2996 = vmax.xlane.f32.xlu0 %v2995_v2  ;;  %v12631_v2 = vadd.f32 %v12523_v55, %v2950_v41  ;;  %v3007_v49 = vsel %vm1583_vm4, %v12635_v60, -inf  ;;  %v3013_v45 = vsel %vm1583_vm4, %v12641_v27, -inf  ;;  %v3000_v55 = vpop.xlane.xlu1 %2999 }
 0x81e   : > { %v2989_v51 = vsel %vm1583_vm4, %v12617_v42, -inf  ;;  %v3024_v20 = vsub.f32 %v12526_v48, %v3000_v55 }
 0x81f   : > { %2987 = vmax.xlane.f32.xlu1 %v2986_v19  ;;  %v3010_v21 = vsel %vm1583_vm4, %v12631_v2, -inf }
 0x820   : > { %v3046_v43 = vmul.f32 1.442695, %v3024_v20 }
 0x821   : > { %2990 = vmax.xlane.f32.xlu0 %v2989_v51 }
 0x822   : > { %10782 = vpow2.f32 %v3046_v43 }
 0x823   : > { %3005 = vmax.xlane.f32.xlu1 %v3004_v34 }
 0x825   : > { %3002 = vmax.xlane.f32.xlu0 %v3001_v0 }
 0x827   : > { %3011 = vmax.xlane.f32.xlu1 %v3010_v21 }
 0x829   : > { %3008 = vmax.xlane.f32.xlu0 %v3007_v49 }
 0x82d   : > { %3014 = vmax.xlane.f32.xlu0 %v3013_v45 }
 0x82f   : > { %v12656_v62 = vpop.eup %10782 }
 0x830   : > { %v3082_v41 = vsel %vm1583_vm4, %v12656_v62, 0.0 }
 0x838   : > { %3142 = vrot.lane.b32.xlu1 %v11702_v61, %s11311_s8 }
 0x83c   : > { %3138 = vrot.lane.b32.xlu1 %v11747_v57, %s11311_s8 }
 0x840   : > { %3136 = vrot.lane.b32.xlu1 %v11764_v6, %s11311_s8 }
 0x843   : > { %3140 = vrot.lane.b32.xlu0 %v11740_v47, %s11311_s8 }
 0x862   : > { %3083 = vadd.xlane.f32.xlu0 %v3082_v41 }
 0x89a   : > { %v2982_v19 = vpop.xlane.xlu0 %2981 }
 0x89e   : > { %v2976_v52 = vpop.xlane.xlu0 %2975 }
 0x8a0   : > { %v2979_v51 = vpop.xlane.xlu1 %2978 }
 0x8a1   : > { %v3017_v34 = vsub.f32 %v12589_v30, %v2979_v51 }
 0x8a2   : > { %v2985_v25 = vpop.xlane.xlu0 %2984 }
 0x8a3   : > { %v3019_v0 = vsub.f32 %v12584_v14, %v2985_v25  ;;  %v3032_v49 = vmul.f32 1.442695, %v3017_v34 }
 0x8a4   : > { %v2994_v21 = vpop.xlane.xlu1 %2993 }
 0x8a5   : > { %v3036_v45 = vmul.f32 1.442695, %v3019_v0  ;;  %v3022_v48 = vsub.f32 %v12595_v16, %v2994_v21  ;;  %v3018_v0 = vsub.f32 %v12570_v18, %v2982_v19 }
 0x8a6   : > { %v2997_v55 = vpop.xlane.xlu0 %2996 }
 0x8a7   : > { %10784 = vpow2.f32 %v3036_v45  ;;  %v3023_v20 = vsub.f32 %v12600_v9, %v2997_v55  ;;  %v3042_v41 = vmul.f32 1.442695, %v3022_v48 }
 0x8a8   : > { %v2988_v43 = vpop.xlane.xlu1 %2987  ;;  %10786 = vpow2.f32 %v3032_v49 }
 0x8a9   : > { %v3044_v6 = vmul.f32 1.442695, %v3023_v20  ;;  %v3020_v57 = vsub.f32 %v12609_v28, %v2988_v43 }
 0x8aa   : > { %v2991_v61 = vpop.xlane.xlu0 %2990 }
 0x8ab   : > { %10788 = vpow2.f32 %v3044_v6  ;;  %v3021_v30 = vsub.f32 %v12617_v42, %v2991_v61  ;;  %v3038_v51 = vmul.f32 1.442695, %v3020_v57  ;;  %v3034_v6 = vmul.f32 1.442695, %v3018_v0 }
 0x8ac   : > { %v3006_v14 = vpop.xlane.xlu1 %3005  ;;  %10790 = vpow2.f32 %v3042_v41  ;;  %v3016_v57 = vsub.f32 %v12576_v33, %v2976_v52 }
 0x8ad   : > { %v3026_v34 = vsub.f32 %v12620_v53, %v3006_v14  ;;  %v3040_v9 = vmul.f32 1.442695, %v3021_v30  ;;  %10792 = vpow2.f32 %v3038_v51 }
 0x8ae   : > { %v3003_v16 = vpop.xlane.xlu0 %3002  ;;  %v3030_v55 = vmul.f32 1.442695, %v3016_v57  ;;  %v16091_v57 = vmov 0.0  }
 0x8af   : > { %v3025_v25 = vsub.f32 %v2969_v39, %v3003_v16  ;;  %v3050_v49 = vmul.f32 1.442695, %v3026_v34 }
 0x8b0   : > { %v3012_v21 = vpop.xlane.xlu1 %3011 }
 0x8b1   : > { %v3048_v45 = vmul.f32 1.442695, %v3025_v25  ;;  %v3028_v14 = vsub.f32 %v12631_v2, %v3012_v21 }
 0x8b2   : > { %v3009_v48 = vpop.xlane.xlu0 %3008 }
 0x8b3   : > { %10794 = vpow2.f32 %v3048_v45  ;;  %v3027_v20 = vsub.f32 %v12635_v60, %v3009_v48  ;;  %v3054_v25 = vmul.f32 1.442695, %v3028_v14 }
 0x8b4   : > { %v12668_v28 = vpop.eup %10784  ;;  %10796 = vpow2.f32 %v3040_v9  ;;  %v3143_v61 = vpop.permute.xlu1 %3142 }
 0x8b5   : > { %10798 = vpow2.f32 %v3050_v49  ;;  %10523 = vmatprep.subr.msk.bf16.mxu0 %vm1766_vm2, %v3143_v61  ;;  %v3160_v42 = vsel %vm1766_vm2, %v3143_v61, 0  ;;  %v3067_v18 = vsel %vm1583_vm4, %v12668_v28, 0.0  ;;  %v12675_v53 = vpop.eup %10786  ;;  %v3052_v51 = vmul.f32 1.442695, %v3027_v20 }
 0x8b6   : > { %9876 = vmatpush3.bf16.msra.mxu0 %v3160_v42  ;;  %3068 = vadd.xlane.f32.xlu0 %v3067_v18  ;;  %v3015_v39 = vpop.xlane.xlu0 %3014  ;;  %10800 = vpow2.f32 %v3034_v6  ;;  %v3061_v33 = vsel %vm1583_vm4, %v12675_v53, 0.0 }
 0x8b7   : > { %10802 = vpow2.f32 %v3030_v55  ;;  %v3029_v2 = vsub.f32 %v12641_v27, %v3015_v39 }
 0x8b8   : > { %v12677_v19 = vpop.eup %10788  ;;  %v3139_v41 = vpop.permute.xlu1 %3138  ;;  %10804 = vpow2.f32 %v3052_v51 }
 0x8b9   : > { %v3079_v52 = vsel %vm1583_vm4, %v12677_v19, 0.0  ;;  %v12684_v43 = vpop.eup %10790  ;;  %10806 = vpow2.f32 %v3054_v25  ;;  %v3056_v6 = vmul.f32 1.442695, %v3029_v2 }
 0x8ba   : > { %3062 = vadd.xlane.f32.xlu0 %v3061_v33  ;;  %3080 = vadd.xlane.f32.xlu1 %v3079_v52  ;;  %v3141_v30 = vpop.permute.xlu0 %3140  ;;  %v3076_v60 = vsel %vm1583_vm4, %v12684_v43, 0.0  ;;  %v12689_v34 = vpop.eup %10792 }
 0x8bb   : > { %9877 = vmatprep.subr.bf16.mxu0 %v3141_v30  ;;  %v3070_v21 = vsel %vm1583_vm4, %v12689_v34, 0.0  ;;  %10808 = vpow2.f32 %v3056_v6 }
 0x8bc   : > { %9878 = vmatpush3.bf16.msra.mxu0 %v3141_v30  ;;  %v3137_v0 = vpop.permute.xlu1 %3136 }
 0x8bd   : > { %9879 = vmatprep.subr.bf16.mxu0 %v3139_v41 }
 0x8be   : > { %3077 = vadd.xlane.f32.xlu0 %v3076_v60 }
 0x8c0   : > { %v12691_v16 = vpop.eup %10794  ;;  %9880 = vmatpush3.bf16.msra.mxu0 %v3139_v41 }
 0x8c1   : > { %v12693_v9 = vpop.eup %10796  ;;  %9881 = vmatprep.subr.bf16.mxu0 %v3137_v0  ;;  %v3085_v49 = vsel %vm1583_vm4, %v12691_v16, 0.0 }
 0x8c2   : > { %v12700_v45 = vpop.eup %10798  ;;  %3071 = vadd.xlane.f32.xlu0 %v3070_v21  ;;  %3086 = vadd.xlane.f32.xlu1 %v3085_v49  ;;  %v3073_v61 = vsel %vm1583_vm4, %v12693_v9, 0.0 }
 0x8c3   : > { %v12702_v48 = vpop.eup %10800  ;;  %v3088_v27 = vsel %vm1583_vm4, %v12700_v45, 0.0 }
 0x8c4   : > { %9882 = vmatpush3.bf16.msra.mxu0 %v3137_v0  ;;  %v3064_v42 = vsel %vm1583_vm4, %v12702_v48, 0.0  ;;  %v12711_v18 = vpop.eup %10802 }
 0x8c5   : > { %9907 = vmatprep.subr.bf16.mxu0 %v16091_v57  ;;  %v3058_v39 = vsel %vm1583_vm4, %v12711_v18, 0.0  ;;  %v12715_v55 = vpop.eup %10804 }
 0x8c6   : > { %3074 = vadd.xlane.f32.xlu0 %v3073_v61  ;;  %3089 = vadd.xlane.f32.xlu1 %v3088_v27  ;;  %v3091_v20 = vsel %vm1583_vm4, %v12715_v55, 0.0  ;;  %v12719_v33 = vpop.eup %10806 }
 0x8c7   : > { %v3094_v52 = vsel %vm1583_vm4, %v12719_v33, 0.0 }
 0x8c8   : > { %v12723_v41 = vpop.eup %10808 }
 0x8c9   : > { %v3097_v30 = vsel %vm1583_vm4, %v12723_v41, 0.0 }
 0x8ca   : > { %3065 = vadd.xlane.f32.xlu1 %v3064_v42 }
 0x8ce   : > { %3059 = vadd.xlane.f32.xlu1 %v3058_v39 }
 0x8d2   : > { %3092 = vadd.xlane.f32.xlu1 %v3091_v20 }
 0x8d6   : > { %3095 = vadd.xlane.f32.xlu1 %v3094_v52 }
 0x8da   : > { %3098 = vadd.xlane.f32.xlu1 %v3097_v30 }
 0x8dc   : > { %3232 = vrot.lane.b32.xlu0 %v11823_v32, %s11311_s8 }
 0x8e0   : > { %3228 = vrot.lane.b32.xlu0 %v11728_v29, %s11311_s8 }
 0x8e4   : > { %3226 = vrot.lane.b32.xlu0 %v11718_v12, %s11311_s8 }
 0x8e8   : > { %3478 = vrot.lane.b32.xlu0 %v11698_v56, %s11313_s25 }
 0x8eb   : > { %3230 = vrot.lane.b32.xlu1 %v11758_v5, %s11311_s8 }
 0x8ec   : > { %3474 = vrot.lane.b32.xlu0 %v11721_v17, %s11313_s25 }
 0x8ef   : > { %3476 = vrot.lane.b32.xlu1 %v11735_v37, %s11313_s25 }
 0x8f0   : > { %3472 = vrot.lane.b32.xlu0 %v11707_v1, %s11313_s25 }
 0x8f3   : > { %3582 = vrot.lane.b32.xlu1 %v11768_v7, %s11313_s25 }
 0x8f4   : > { %3464 = vrot.lane.b32.xlu0 %v11707_v1, %s11314_s1  ;;  %v3084_v1 = vpop.xlane.xlu0 %3083 }
 0x8f5   : > { %10810 = vrcp.f32 %v3084_v1 }
 0x8f7   : > { %3580 = vrot.lane.b32.xlu1 %v11749_v58, %s11313_s25 }
 0x8f8   : > { %3578 = vrot.lane.b32.xlu0 %v11778_v54, %s11313_s25 }
 0x8fb   : > { %3466 = vrot.lane.b32.xlu1 %v11721_v17, %s11314_s1 }
 0x8fc   : > { %3470 = vrot.lane.b32.xlu0 %v11698_v56, %s11314_s1 }
 0x8ff   : > { %3468 = vrot.lane.b32.xlu1 %v11735_v37, %s11314_s1 }
 0x900   : > { %3568 = vrot.lane.b32.xlu0 %v11770_v8, %s11314_s1 }
 0x902   : > { %v10811_v25 = vpop.eup %10810 }
 0x903   : > { %3576 = vrot.lane.b32.xlu1 %v11770_v8, %s11313_s25 }
 0x904   : > { %3572 = vrot.lane.b32.xlu0 %v11749_v58, %s11314_s1 }
 0x907   : > { %3570 = vrot.lane.b32.xlu1 %v11778_v54, %s11314_s1  ;;  %v3122_v54 = vmul.f32 %v10811_v25, %v12656_v62 }
 0x90b   : > { %3574 = vrot.lane.b32.xlu1 %v11768_v7, %s11314_s1 }
 0x93f   : > { %v3069_v56 = vpop.xlane.xlu0 %3068 }
 0x943   : > { %v3081_v17 = vpop.xlane.xlu1 %3080  ;;  %v3063_v37 = vpop.xlane.xlu0 %3062 }
 0x944   : > { %10812 = vrcp.f32 %v3081_v17 }
 0x945   : > { %10814 = vrcp.f32 %v3069_v56 }
 0x946   : > { %10816 = vrcp.f32 %v3063_v37 }
 0x947   : > { %v3078_v14 = vpop.xlane.xlu0 %3077 }
 0x94b   : > { %v3087_v51 = vpop.xlane.xlu1 %3086  ;;  %v3072_v60 = vpop.xlane.xlu0 %3071 }
 0x94f   : > { %v3090_v8 = vpop.xlane.xlu1 %3089  ;;  %v3075_v0 = vpop.xlane.xlu0 %3074 }
 0x951   : > { %v10813_v2 = vpop.eup %10812 }
 0x952   : > { %v3121_v58 = vmul.f32 %v10813_v2, %v12677_v19  ;;  %v10815_v42 = vpop.eup %10814 }
 0x953   : > { %v3066_v21 = vpop.xlane.xlu1 %3065  ;;  %v3233_v7 = vpop.permute.xlu0 %3232  ;;  %v3117_v25 = vmul.f32 %v10815_v42, %v12668_v28 }
 0x954   : > { %10524 = vmatprep.subr.msk.bf16.mxu1 %vm1766_vm2, %v3233_v7  ;;  %v3250_v49 = vsel %vm1766_vm2, %v3233_v7, 0  ;;  %v3132_v6 = vpack.c.bf16 %v3122_v54, %v3121_v58  ;;  %10818 = vrcp.f32 %v3066_v21  ;;  %v10817_v39 = vpop.eup %10816  ;;  %v10640_v58 = vld [vmem:[%s11502_s2 + $0x10] sm:$0xff]  }
 0x955   : > { %9892 = vmatpush3.bf16.msra.mxu1 %v3250_v49  ;;  %10820 = vrcp.f32 %v3075_v0 }
 0x956   : > { %9899 = vmatprep.mubr.msk.bf16.mxu1 %vm1583_vm4, %v3132_v6  ;;  %10822 = vrcp.f32 %v3072_v60  ;;  %v3115_v60 = vmul.f32 %v10817_v39, %v12675_v53 }
 0x957   : > { %v3060_v61 = vpop.xlane.xlu1 %3059  ;;  %v3229_v62 = vpop.permute.xlu0 %3228 }
 0x958   : > { %10824 = vrcp.f32 %v3060_v61 }
 0x959   : > { %10826 = vrcp.f32 %v3078_v14 }
 0x95a   : > { %10828 = vrcp.f32 %v3090_v8 }
 0x95b   : > { %v3093_v19 = vpop.xlane.xlu1 %3092  ;;  %10830 = vrcp.f32 %v3087_v51  ;;  %v3227_v56 = vpop.permute.xlu0 %3226 }
 0x95f   : > { %v3096_v27 = vpop.xlane.xlu1 %3095  ;;  %v3479_v7 = vpop.permute.xlu0 %3478 }
 0x960   : > { %10832 = vrcp.f32 %v3096_v27 }
 0x961   : > { %10834 = vrcp.f32 %v3093_v19  ;;  %v10819_v20 = vpop.eup %10818 }
 0x962   : > { %v10821_v52 = vpop.eup %10820  ;;  %v3116_v37 = vmul.f32 %v10819_v20, %v12702_v48 }
 0x963   : > { %v3099_v30 = vpop.xlane.xlu1 %3098  ;;  %v10823_v1 = vpop.eup %10822  ;;  %v3119_v51 = vmul.f32 %v10821_v52, %v12693_v9 }
 0x964   : > { %10836 = vrcp.f32 %v3099_v30  ;;  %v3118_v2 = vmul.f32 %v10823_v1, %v12689_v34  ;;  %v3129_v54 = vpack.c.bf16 %v3117_v25, %v3116_v37  ;;  %v3475_v42 = vpop.permute.xlu0 %3474 }
 0x965   : > { %v10825_v17 = vpop.eup %10824 }
 0x966   : > { %v3114_v14 = vmul.f32 %v10825_v17, %v12711_v18  ;;  %v10827_v21 = vpop.eup %10826  ;;  %v3130_v48 = vpack.c.bf16 %v3119_v51, %v3118_v2 }
 0x967   : > { %v3231_v8 = vpop.permute.xlu1 %3230  ;;  %v10829_v18 = vpop.eup %10828  ;;  %v3120_v34 = vmul.f32 %v10827_v21, %v12684_v43 }
 0x968   : > { %9893 = vmatprep.subr.bf16.mxu1 %v3231_v8  ;;  %v3128_v0 = vpack.c.bf16 %v3115_v60, %v3114_v14  ;;  %v10831_v9 = vpop.eup %10830  ;;  %v3124_v6 = vmul.f32 %v10829_v18, %v12700_v45 }
 0x969   : > { %9894 = vmatpush3.bf16.msra.mxu1 %v3231_v8  ;;  %v3123_v27 = vmul.f32 %v10831_v9, %v12691_v16  ;;  %v3131_v39 = vpack.c.bf16 %v3120_v34, %v3120_v34  ;;  %v3473_v16 = vpop.permute.xlu0 %3472 }
 0x96a   : > { %9883 = vmatprep.mubr.msk.bf16.mxu0 %vm1583_vm4, %v3128_v0  ;;  %9895 = vmatprep.subr.bf16.mxu1 %v3229_v62  ;;  %v3493_v37 = vsel %vm1368_vm3, %v3473_v16, 0 }
 0x96b   : > { %v3477_v53 = vpop.permute.xlu1 %3476  ;;  %9884 = vmatmul.mubr.msk.bf16.vlgmr.msra.gmra.mxu0 %vm1583_vm4, %v3129_v54 }
 0x96c   : > { %9887 = vmatprep.mubr.msk.bf16.mxu0 %vm1583_vm4, %v3130_v48  ;;  %9908 = vmatpush3.bf16.msra.mxu0 %v10640_v58  ;;  %v3499_v1 = vsel %vm1368_vm3, %v3477_v53, 0 }
 0x96d   : > { %v10833_v28 = vpop.eup %10832  ;;  %9896 = vmatpush3.bf16.msra.mxu1 %v3229_v62  ;;  %v3133_v62 = vpack.c.bf16 %v3124_v6, %v3123_v27  ;;  %v3465_v30 = vpop.permute.xlu0 %3464 }
 0x96e   : > { %v10835_v49 = vpop.eup %10834  ;;  %9897 = vmatprep.subr.bf16.mxu1 %v3227_v56  ;;  %v3126_v19 = vmul.f32 %v10833_v28, %v12719_v33  ;;  %v3502_v33 = vsel %vm1368_vm3, %v3479_v7, 0 }
 0x96f   : > { %v3583_v61 = vpop.permute.xlu1 %3582  ;;  %v3125_v20 = vmul.f32 %v10835_v49, %v12715_v55 }
 0x970   : > { %10529 = vmatprep.subr.msk.bf16.mxu0 %vm1368_vm3, %v3583_v61 }
 0x971   : > { %9898 = vmatpush3.bf16.msra.mxu1 %v3227_v56  ;;  %v10837_v43 = vpop.eup %10836  ;;  %v3134_v45 = vpack.c.bf16 %v3126_v19, %v3125_v20  ;;  %v3496_v56 = vsel %vm1368_vm3, %v3475_v42, 0  ;;  %v3579_v60 = vpop.permute.xlu0 %3578 }
 0x972   : > { %10525 = vmatprep.subr.msk.bf16.mxu1 %vm1368_vm3, %v3479_v7  ;;  %v3127_v55 = vmul.f32 %v10837_v43, %v12723_v41  ;;  %v3606_v7 = vsel %vm1368_vm3, %v3583_v61, 0 }
 0x973   : > { %9888 = vmatmul.mubr.msk.bf16.gmra.mxu0 %vm1583_vm4, %v3131_v39  ;;  %v3581_v17 = vpop.permute.xlu1 %3580  ;;  %v3600_v39 = vsel %vm1368_vm3, %v3579_v60, 0 }
 0x974   : > { %9900 = vmatmul.mubr.msk.bf16.vlgmr.msra.gmra.mxu1 %vm1583_vm4, %v3133_v62  ;;  %9909 = vmatprep.mubr.msk.bf16.mxu0 %vm11312_vm5, %v16091_v57  ;;  %v3135_v52 = vpack.c.bf16 %v3127_v55, %v3127_v55  ;;  %v3603_v6 = vsel %vm1368_vm3, %v3581_v17, 0 }
 0x975   : > { %9903 = vmatprep.mubr.msk.bf16.mxu1 %vm1583_vm4, %v3134_v45  ;;  %9938 = vmatpush3.bf16.xpose.msra.mxu1 %v3502_v33  ;;  %v3471_v51 = vpop.permute.xlu0 %3470 }
 0x976   : > { %10526 = vmatprep.subr.msk.bf16.mxu1 %vm1368_vm3, %v3477_v53 }
 0x977   : > { %v3467_v41 = vpop.permute.xlu1 %3466 }
 0x97b   : > { %v3469_v14 = vpop.permute.xlu1 %3468 }
 0x97c   : > { %9904 = vmatmul.mubr.msk.bf16.gmra.mxu1 %vm1583_vm4, %v3135_v52  ;;  %v12838_v52 = vld [vmem:[%s16078_s10 + $0xa8] sm:$0xff] }
 0x97d   : > { %9940 = vmatpush3.bf16.xpose.msra.mxu1 %v3499_v1  ;;  %9945 = vmatprep.mubr.msk.bf16.mxu1 %vm1368_vm3, %v3465_v30 }
 0x97e   : > { %10527 = vmatprep.subr.msk.bf16.mxu1 %vm1368_vm3, %v3475_v42 }
 0x97f   : > { %v3577_v20 = vpop.permute.xlu1 %3576 }
 0x980   : > { %v3597_v43 = vsel %vm1368_vm3, %v3577_v20, 0 }
 0x985   : > { %9942 = vmatpush3.bf16.xpose.msra.mxu1 %v3496_v56  ;;  %v12846_v56 = vld [vmem:[%s16078_s10 + $0xc0] sm:$0xff] }
 0x986   : > { %10528 = vmatprep.subr.msk.bf16.mxu1 %vm1368_vm3, %v3473_v16  ;;  %v12832_v16 = vld [vmem:[%s16078_s10 + $0xb8] sm:$0xff] }
 0x98d   : > { %9944 = vmatpush3.bf16.xpose.msra.mxu1 %v3493_v37 }
 0x994   : > { %9946 = vmatmul.mubr.msk.bf16.vlgmr.msra.gmra.mxu1 %vm1368_vm3, %v3467_v41 }
 0x995   : > { %9949 = vmatprep.mubr.msk.bf16.mxu1 %vm1368_vm3, %v3469_v14  ;;  %v12853_v14 = vld [vmem:[%s16078_s10 + $0xb0] sm:$0xff] }
 0x99c   : > { %9950 = vmatmul.mubr.msk.bf16.gmra.mxu1 %vm1368_vm3, %v3471_v51 }
 0xa2b   : > { %v9885_v25 = vpop.f32.mrf.mxu0 }
 0xa2d   : > { %v3196_v8 = vpop.f32.mrf.mxu0 }
 0xa2f   : > { %v9886_v0 = vpop.f32.mrf.mxu0 }
 0xa30   : > { %v3317_v28 = vpack.c.bf16 %v9886_v0, %v9885_v25 }
 0xa31   : > { %v3199_v2 = vpop.f32.mrf.mxu0 }
 0xa32   : > { %v3316_v58 = vpack.c.bf16 %v3199_v2, %v3196_v8  ;;  %v12861_v2 = vld [vmem:[%s16078_s10 + $0xd8] sm:$0xff] }
 0xa33   : > { %v9889_v54 = vpop.f32.mrf.mxu0 }
 0xa34   : > { %v9901_v21 = vpop.f32.mrf.mxu1  ;;  %9910 = vmatmul.mubr.msk.bf16.vlgmr.msra.gmra.mxu0 %vm1368_vm3, %v3316_v58 }
 0xa35   : > { %9954 = vmatpush3.bf16.xpose.msra.mxu0 %v3606_v7  ;;  %v3212_v48 = vpop.f32.mrf.mxu0  ;;  %9913 = vmatprep.mubr.msk.bf16.mxu0 %vm11312_vm5, %v16091_v57 }
 0xa36   : > { %10530 = vmatprep.subr.msk.bf16.mxu0 %vm1368_vm3, %v3581_v17  ;;  %v3286_v18 = vpop.f32.mrf.mxu1 }
 0xa37   : > { %v9890_v53 = vpop.f32.mrf.mxu0  ;;  %v3319_v62 = vpack.c.bf16 %v3286_v18, %v9889_v54 }
 0xa38   : > { %v9902_v9 = vpop.f32.mrf.mxu1 }
 0xa39   : > { %v3215_v19 = vpop.f32.mrf.mxu0 }
 0xa3a   : > { %v3289_v34 = vpop.f32.mrf.mxu1  ;;  %v3318_v42 = vpack.c.bf16 %v3215_v19, %v3212_v48  ;;  %v12884_v19 = vld [vmem:[%s16078_s10 + $0xd0] sm:$0xff] }
 0xa3b   : > { %v3320_v45 = vpack.c.bf16 %v9901_v21, %v3289_v34  ;;  %v12868_v21 = vld [vmem:[%s16078_s10 + $0xc8] sm:$0xff] }
 0xa3c   : > { %v12812_v49 = vpop.f32.mrf.mxu1  ;;  %9914 = vmatmul.mubr.msk.bf16.gmra.mxu0 %vm1368_vm3, %v3317_v28 }
 0xa3d   : > { %9956 = vmatpush3.bf16.xpose.msra.mxu0 %v3603_v6  ;;  %9917 = vmatprep.mubr.msk.bf16.mxu0 %vm11312_vm5, %v16091_v57 }
 0xa3e   : > { %10531 = vmatprep.subr.msk.bf16.mxu0 %vm1368_vm3, %v3579_v60  ;;  %v3302_v61 = vpop.f32.mrf.mxu1 }
 0xa3f   : > { %v3321_v8 = vpack.c.bf16 %v3302_v61, %v9902_v9 }
 0xa40   : > { %v9906_v27 = vpop.f32.mrf.mxu1 }
 0xa42   : > { %v3305_v33 = vpop.f32.mrf.mxu1 }
 0xa44   : > { %9918 = vmatmul.mubr.msk.bf16.gmra.mxu0 %vm1368_vm3, %v3318_v42  ;;  %v3322_v42 = vpack.c.bf16 %v12812_v49, %v3305_v33 }
 0xa45   : > { %9958 = vmatpush3.bf16.xpose.msra.mxu0 %v3600_v39  ;;  %9921 = vmatprep.mubr.msk.bf16.mxu0 %vm11312_vm5, %v16091_v57 }
 0xa46   : > { %10532 = vmatprep.subr.msk.bf16.mxu0 %vm1368_vm3, %v3577_v20 }
 0xa4c   : > { %9922 = vmatmul.mubr.msk.bf16.gmra.mxu0 %vm1368_vm3, %v3319_v62 }
 0xa4d   : > { %9960 = vmatpush3.bf16.xpose.msra.mxu0 %v3597_v43  ;;  %9925 = vmatprep.mubr.msk.bf16.mxu0 %vm11312_vm5, %v16091_v57 }
 0xa4e   : > { %10001 = vmatprep.subr.bf16.mxu0 %v16091_v57 }
 0xa54   : > { %9926 = vmatmul.mubr.msk.bf16.gmra.mxu0 %vm1368_vm3, %v3320_v45  ;;  %v9947_v55 = vpop.f32.mrf.mxu1  ;;  %v3569_v45 = vpop.permute.xlu0 %3568 }
 0xa55   : > { %v3547_v30 = vadd.f32 %v9947_v55, %v12832_v16  ;;  %9929 = vmatprep.mubr.msk.bf16.mxu0 %vm11312_vm5, %v16091_v57 }
 0xa56   : > { %v3538_v1 = vpop.f32.mrf.mxu1 }
 0xa57   : > { %v3674_v17 = vadd.f32 %v12567_v31, %v3547_v30  ;;  %v3539_v37 = vadd.f32 %v12838_v52, %v3538_v1  ;;  %v3571_v30 = vpop.permute.xlu1 %3570 }
 0xa58   : > { %v9948_v41 = vpop.f32.mrf.mxu1  ;;  %v3573_v1 = vpop.permute.xlu0 %3572 }
 0xa59   : > { %v3672_v60 = vadd.f32 %v12567_v31, %v3539_v37  ;;  %v3550_v51 = vadd.f32 %v9948_v41, %v12846_v56  ;;  %v3692_v25 = vsel %vm1583_vm4, %v3674_v17, -inf }
 0xa5a   : > { %3693 = vmax.xlane.f32.xlu0 %v3692_v25  ;;  %v3541_v0 = vpop.f32.mrf.mxu1 }
 0xa5b   : > { %v3542_v58 = vadd.f32 %v12853_v14, %v3541_v0  ;;  %v3675_v7 = vadd.f32 %v12567_v31, %v3550_v51  ;;  %v3686_v18 = vsel %vm1583_vm4, %v3672_v60, -inf  ;;  %v3575_v37 = vpop.permute.xlu1 %3574 }
 0xa5c   : > { %9930 = vmatmul.mubr.msk.bf16.gmra.mxu0 %vm1368_vm3, %v3321_v8  ;;  %v9951_v54 = vpop.f32.mrf.mxu1 }
 0xa5d   : > { %v3563_v48 = vadd.f32 %v9951_v54, %v12861_v2  ;;  %v3673_v53 = vadd.f32 %v12567_v31, %v3542_v58  ;;  %9933 = vmatprep.mubr.msk.bf16.mxu0 %vm11312_vm5, %v16091_v57  ;;  %v3695_v27 = vsel %vm1583_vm4, %v3675_v7, -inf }
 0xa5e   : > { %3687 = vmax.xlane.f32.xlu0 %v3686_v18  ;;  %v3554_v9 = vpop.f32.mrf.mxu1 }
 0xa5f   : > { %v12877_v28 = vadd.f32 %v12567_v31, %v3563_v48  ;;  %v3555_v34 = vadd.f32 %v12868_v21, %v3554_v9  ;;  %v3689_v6 = vsel %vm1583_vm4, %v3673_v53, -inf }
 0xa60   : > { %3690 = vmax.xlane.f32.xlu1 %v3689_v6  ;;  %v9952_v61 = vpop.f32.mrf.mxu1 }
 0xa61   : > { %v3676_v20 = vadd.f32 %v12567_v31, %v3555_v34  ;;  %v3704_v43 = vsel %vm1583_vm4, %v12877_v28, -inf }
 0xa62   : > { %3696 = vmax.xlane.f32.xlu0 %v3695_v27  ;;  %v3557_v39 = vpop.f32.mrf.mxu1 }
 0xa63   : > { %v3558_v62 = vadd.f32 %v12884_v19, %v3557_v39  ;;  %v3698_v33 = vsel %vm1583_vm4, %v3676_v20, -inf }
 0xa64   : > { %9934 = vmatmul.mubr.msk.bf16.gmra.mxu0 %vm1368_vm3, %v3322_v42  ;;  %3705 = vmax.xlane.f32.xlu1 %v3704_v43  ;;  %v2693_v43 = vadd.f32 %v12475_v59, %v12534_v44 }
 0xa65   : > { %9961 = vmatprep.mubr.msk.bf16.mxu0 %vm1368_vm3, %v3569_v45  ;;  %v12895_v55 = vadd.f32 %v12567_v31, %v3558_v62 }
 0xa67   : > { %v3701_v49 = vsel %vm1583_vm4, %v12895_v55, -inf }
 0xa68   : > { %3702 = vmax.xlane.f32.xlu0 %v3701_v49  ;;  %3699 = vmax.xlane.f32.xlu1 %v3698_v33  ;;  %v2698_v33 = vadd.f32 %v12480_v15, %v12536_v63 }
 0xa6c   : > { %9962 = vmatmul.mubr.msk.bf16.vlgmr.msra.gmra.mxu0 %vm1368_vm3, %v3571_v30 }
 0xa6d   : > { %9965 = vmatprep.mubr.msk.bf16.mxu0 %vm1368_vm3, %v3573_v1 }
 0xa74   : > { %9966 = vmatmul.mubr.msk.bf16.gmra.mxu0 %vm1368_vm3, %v3575_v37 }
 0xa75   : > { %10003 = vmatprep.mubr.msk.bf16.mxu0 %vm11312_vm5, %v16091_v57 }
 0xae3   : > { %v3694_v31 = vpop.xlane.xlu0 %3693 }
 0xae4   : > { %v3730_v41 = vsub.f32 %v3674_v17, %v3694_v31  ;;  %v2690_v17 = vadd.f32 %v12473_v26, %v12532_v50 }
 0xae6   : > { %v3746_v51 = vmul.f32 1.442695, %v3730_v41  ;;  %v2701_v41 = vadd.f32 %v12482_v24, %v12538_v13  ;;  %v2709_v13 = vadd.f32 %v12489_v4, %v12542_v11  ;;  %v2722_v4 = vadd.f32 %v12501_v38, %v12548_v3  ;;  %v16096_v38 = vld [vmem:[#allocation26_spill] sm:$0xff] }
 0xae7   : > { %v3688_v25 = vpop.xlane.xlu0 %3687 }
 0xae8   : > { %10838 = vpow2.f32 %v3746_v51  ;;  %v3728_v8 = vsub.f32 %v3672_v60, %v3688_v25 }
 0xae9   : > { %v3691_v0 = vpop.xlane.xlu1 %3690 }
 0xaea   : > { %v3742_v58 = vmul.f32 1.442695, %v3728_v8  ;;  %v3729_v54 = vsub.f32 %v3673_v53, %v3691_v0  ;;  %v2706_v0 = vadd.f32 %v12487_v23, %v12540_v22 }
 0xaeb   : > { %v3697_v48 = vpop.xlane.xlu0 %3696 }
 0xaec   : > { %10840 = vpow2.f32 %v3742_v58  ;;  %v3731_v18 = vsub.f32 %v3675_v7, %v3697_v48  ;;  %v3744_v34 = vmul.f32 1.442695, %v3729_v54 }
 0xaed   : > { %v12905_v9 = vpop.xlane.xlu1 %3705 }
 0xaee   : > { %v3748_v6 = vmul.f32 1.442695, %v3731_v18 }
 0xaf0   : > { %10842 = vpow2.f32 %v3748_v6 }
 0xaf1   : > { %v3700_v61 = vpop.xlane.xlu1 %3699  ;;  %10844 = vpow2.f32 %v3744_v34 }
 0xaf2   : > { %v3732_v27 = vsub.f32 %v3676_v20, %v3700_v61  ;;  %v2714_v61 = vadd.f32 %v12495_v46, %v12544_v35  ;;  %v16092_v46 = vld [vmem:[#allocation24_spill] sm:$0xff] }
 0xaf3   : > { %v2725_v35 = vadd.f32 %v16092_v46, %v12550_v36  ;;  %v16098_v36 = vld [vmem:[#allocation27_spill] sm:$0xff] }
 0xaf4   : > { %v3750_v42 = vmul.f32 1.442695, %v3732_v27  ;;  %v3387_v39 = vpop.f32.mrf.mxu0 }
 0xaf5   : > { %v12909_v60 = vpop.eup %10838  ;;  %v12911_v62 = vadd.f32 %v3387_v39, %v2690_v17  ;;  %v2717_v17 = vadd.f32 %v12497_v10, %v12546_v40  ;;  %v16094_v10 = vld [vmem:[#allocation25_spill] sm:$0xff] }
 0xaf6   : > { %10846 = vpow2.f32 %v3750_v42  ;;  %v9911_v53 = vpop.f32.mrf.mxu0  ;;  %v3776_v7 = vsel %vm1583_vm4, %v12909_v60, 0.0 }
 0xaf7   : > { %3777 = vadd.xlane.f32.xlu1 %v3776_v7 }
 0xaf8   : > { %v3390_v45 = vpop.f32.mrf.mxu0 }
 0xaf9   : > { %v12917_v20 = vpop.eup %10840  ;;  %v12919_v49 = vadd.f32 %v3390_v45, %v2693_v43 }
 0xafa   : > { %v9912_v26 = vpop.f32.mrf.mxu0  ;;  %v3770_v50 = vsel %vm1583_vm4, %v12917_v20, 0.0 }
 0xafb   : > { %3771 = vadd.xlane.f32.xlu1 %v3770_v50 }
 0xafc   : > { %v3395_v30 = vpop.f32.mrf.mxu0 }
 0xafd   : > { %v12925_v1 = vpop.eup %10842  ;;  %v12927_v37 = vadd.f32 %v3395_v30, %v2698_v33  ;;  %v16093_v33 = vld [vmem:[#allocation29_spill] sm:$0xff] }
 0xafe   : > { %v9915_v59 = vpop.f32.mrf.mxu0  ;;  %v3779_v44 = vsel %vm1583_vm4, %v12925_v1, 0.0  ;;  %v12931_v31 = vpop.eup %10844  ;;  %v2730_v40 = vadd.f32 %v16094_v10, %v16093_v33 }
 0xaff   : > { %3780 = vadd.xlane.f32.xlu0 %v3779_v44  ;;  %v3773_v63 = vsel %vm1583_vm4, %v12931_v31, 0.0 }
 0xb00   : > { %v3398_v51 = vpop.f32.mrf.mxu0 }
 0xb01   : > { %v12935_v25 = vadd.f32 %v3398_v51, %v2701_v41  ;;  %v16095_v41 = vld [vmem:[#allocation30_spill] sm:$0xff] }
 0xb02   : > { %v9916_v15 = vpop.f32.mrf.mxu0  ;;  %v2733_v3 = vadd.f32 %v16096_v38, %v16095_v41 }
 0xb03   : > { %v12939_v8 = vpop.eup %10846  ;;  %3774 = vadd.xlane.f32.xlu0 %v3773_v63 }
 0xb04   : > { %v3403_v58 = vpop.f32.mrf.mxu0  ;;  %v3782_v54 = vsel %vm1583_vm4, %v12939_v8, 0.0 }
 0xb05   : > { %v12945_v48 = vadd.f32 %v3403_v58, %v2706_v0  ;;  %3783 = vadd.xlane.f32.xlu1 %v3782_v54  ;;  %v16097_v0 = vld [vmem:[#allocation31_spill] sm:$0xff] }
 0xb06   : > { %v9919_v24 = vpop.f32.mrf.mxu0  ;;  %v2738_v58 = vadd.f32 %v16098_v36, %v16097_v0 }
 0xb07   : > { %v3734_v24 = vsub.f32 %v12877_v28, %v12905_v9  ;;  %v12988_v9 = vld [vmem:[%s16077_s19 + $0x1] ss:$0 sm:$0xff] }
 0xb08   : > { %v3406_v18 = vpop.f32.mrf.mxu0 }
 0xb09   : > { %v12949_v34 = vadd.f32 %v3406_v18, %v2709_v13  ;;  %v3703_v18 = vpop.xlane.xlu0 %3702 }
 0xb0a   : > { %v9920_v6 = vpop.f32.mrf.mxu0 }
 0xb0c   : > { %v3411_v23 = vpop.f32.mrf.mxu0 }
 0xb0d   : > { %v12953_v22 = vadd.f32 %v3411_v23, %v2714_v61  ;;  %v16099_v61 = vld [vmem:[#allocation32_spill] sm:$0xff] }
 0xb0e   : > { %v9923_v27 = vpop.f32.mrf.mxu0  ;;  %v16100_v23 = vld [vmem:[#allocation28_spill] sm:$0xff] }
 0xb0f   : > { %v2741_v27 = vadd.f32 %v16100_v23, %v16099_v61 }
 0xb10   : > { %v3414_v42 = vpop.f32.mrf.mxu0 }
 0xb11   : > { %v12957_v39 = vadd.f32 %v3414_v42, %v2717_v17  ;;  %v3754_v42 = vmul.f32 1.442695, %v3734_v24 }
 0xb12   : > { %v9924_v53 = vpop.f32.mrf.mxu0 }
 0xb13   : > { %v3733_v53 = vsub.f32 %v12895_v55, %v3703_v18  ;;  %10848 = vpow2.f32 %v3754_v42  ;;  %v16102_v42 = vld [vmem:[#allocation22_spill] sm:$0xff] }
 0xb14   : > { %v3419_v11 = vpop.f32.mrf.mxu0 }
 0xb15   : > { %v12961_v7 = vadd.f32 %v3419_v11, %v2722_v4  ;;  %v3752_v46 = vmul.f32 1.442695, %v3733_v53  ;;  %v16103_v53 = vld [vmem:[#allocation23_spill] sm:$0xff] }
 0xb16   : > { %v9927_v43 = vpop.f32.mrf.mxu0 }
 0xb17   : > { %10850 = vpow2.f32 %v3752_v46 }
 0xb18   : > { %v3422_v45 = vpop.f32.mrf.mxu0 }
 0xb19   : > { %v12965_v26 = vadd.f32 %v3422_v45, %v2725_v35 }
 0xb1a   : > { %v9928_v50 = vpop.f32.mrf.mxu0 }
 0xb1c   : > { %v3427_v30 = vpop.f32.mrf.mxu0 }
 0xb1d   : > { %v12969_v59 = vadd.f32 %v3427_v30, %v2730_v40 }
 0xb1e   : > { %v9931_v44 = vpop.f32.mrf.mxu0 }
 0xb20   : > { %v3430_v51 = vpop.f32.mrf.mxu0 }
 0xb21   : > { %v12973_v15 = vadd.f32 %v3430_v51, %v2733_v3 }
 0xb22   : > { %v9932_v63 = vpop.f32.mrf.mxu0 }
 0xb24   : > { %v3435_v54 = vpop.f32.mrf.mxu0 }
 0xb25   : > { %v12979_v13 = vadd.f32 %v3435_v54, %v2738_v58  ;;  %v13009_v54 = vpop.eup %10848 }
 0xb26   : > { %v9935_v6 = vpop.f32.mrf.mxu0  ;;  %v13016_v23 = vpop.eup %10850 }
 0xb27   : > { %v3788_v6 = vsel %vm1583_vm4, %v13009_v54, 0.0 }
 0xb28   : > { %v3438_v17 = vpop.f32.mrf.mxu0 }
 0xb29   : > { %v12984_v4 = vadd.f32 %v3438_v17, %v2741_v27  ;;  %v3785_v17 = vsel %vm1583_vm4, %v13016_v23, 0.0 }
 0xb2a   : > { %v9936_v11 = vpop.f32.mrf.mxu0 }
 0xb2c   : > { %v9963_v43 = vpop.f32.mrf.mxu0 }
 0xb2d   : > { %v3651_v35 = vadd.f32 %v9963_v43, %v12832_v16 }
 0xb2e   : > { %v3642_v28 = vpop.f32.mrf.mxu0 }
 0xb2f   : > { %v3681_v45 = vadd.f32 %v12988_v9, %v3651_v35  ;;  %v3643_v50 = vadd.f32 %v12838_v52, %v3642_v28 }
 0xb30   : > { %v9964_v33 = vpop.f32.mrf.mxu0 }
 0xb31   : > { %v12993_v10 = vadd.f32 %v12988_v9, %v3643_v50  ;;  %v3654_v55 = vadd.f32 %v9964_v33, %v12846_v56  ;;  %v3713_v40 = vsel %vm1583_vm4, %v3681_v45, -inf }
 0xb32   : > { %v3645_v30 = vpop.f32.mrf.mxu0  ;;  %3714 = vmax.xlane.f32.xlu0 %v3713_v40 }
 0xb33   : > { %v3682_v16 = vadd.f32 %v12988_v9, %v3654_v55  ;;  %v3646_v44 = vadd.f32 %v12853_v14, %v3645_v30  ;;  %v3707_v3 = vsel %vm1583_vm4, %v12993_v10, -inf }
 0xb34   : > { %v9967_v41 = vpop.f32.mrf.mxu0 }
 0xb35   : > { %v3667_v38 = vadd.f32 %v9967_v41, %v12861_v2  ;;  %v3716_v52 = vsel %vm1583_vm4, %v3682_v16, -inf  ;;  %v3680_v51 = vadd.f32 %v12988_v9, %v3646_v44 }
 0xb36   : > { %v3658_v63 = vpop.f32.mrf.mxu0  ;;  %3717 = vmax.xlane.f32.xlu1 %v3716_v52  ;;  %3708 = vmax.xlane.f32.xlu0 %v3707_v3 }
 0xb37   : > { %v3685_v56 = vadd.f32 %v12988_v9, %v3667_v38  ;;  %v3659_v0 = vadd.f32 %v12868_v21, %v3658_v63  ;;  %v3710_v58 = vsel %vm1583_vm4, %v3680_v51, -inf }
 0xb38   : > { %v9968_v36 = vpop.f32.mrf.mxu0 }
 0xb39   : > { %v3683_v14 = vadd.f32 %v12988_v9, %v3659_v0  ;;  %v3725_v2 = vsel %vm1583_vm4, %v3685_v56, -inf }
 0xb3a   : > { %v3661_v24 = vpop.f32.mrf.mxu0  ;;  %3711 = vmax.xlane.f32.xlu1 %v3710_v58  ;;  %3726 = vmax.xlane.f32.xlu0 %v3725_v2 }
 0xb3b   : > { %v3662_v18 = vadd.f32 %v12884_v19, %v3661_v24  ;;  %v3719_v61 = vsel %vm1583_vm4, %v3683_v14, -inf  ;;  %v16101_v19 = vld [vmem:[#allocation21_spill] sm:$0xff] }
 0xb3d   : > { %v3684_v21 = vadd.f32 %v12988_v9, %v3662_v18 }
 0xb3e   : > { %3789 = vadd.xlane.f32.xlu1 %v3788_v6  ;;  %3720 = vmax.xlane.f32.xlu0 %v3719_v61 }
 0xb3f   : > { %v3722_v27 = vsel %vm1583_vm4, %v3684_v21, -inf }
 0xb42   : > { %3723 = vmax.xlane.f32.xlu1 %v3722_v27  ;;  %3786 = vadd.xlane.f32.xlu0 %v3785_v17 }
 0xb53   : > { %3852 = vrot.lane.b32.xlu1 %v11740_v47, %s11314_s1 }
 0xb57   : > { %3944 = vrot.lane.b32.xlu1 %v11823_v32, %s11314_s1 }
 0xb58   : > { %3854 = vrot.lane.b32.xlu0 %v16101_v19, %s11314_s1 }
 0xb5c   : > { %3850 = vrot.lane.b32.xlu0 %v16102_v42, %s11314_s1 }
 0xb60   : > { %3848 = vrot.lane.b32.xlu0 %v16103_v53, %s11314_s1 }
 0xb64   : > { %3942 = vrot.lane.b32.xlu0 %v11758_v5, %s11314_s1 }
 0xb80   : > { %v3778_v11 = vpop.xlane.xlu1 %3777 }
 0xb84   : > { %v3772_v43 = vpop.xlane.xlu1 %3771 }
 0xb85   : > { %10852 = vrcp.f32 %v3772_v43 }
 0xb88   : > { %v3781_v46 = vpop.xlane.xlu0 %3780 }
 0xb8c   : > { %v3775_v47 = vpop.xlane.xlu0 %3774 }
 0xb8d   : > { %10854 = vrcp.f32 %v3775_v47 }
 0xb8e   : > { %v3784_v55 = vpop.xlane.xlu1 %3783 }
 0xb92   : > { %v10853_v35 = vpop.eup %10852 }
 0xb93   : > { %v3826_v28 = vmul.f32 %v10853_v35, %v12917_v20 }
 0xb9a   : > { %v10855_v32 = vpop.eup %10854 }
 0xb9b   : > { %v3827_v50 = vmul.f32 %v10855_v32, %v12931_v31 }
 0xb9d   : > { %v3840_v33 = vpack.c.bf16 %v3827_v50, %v3826_v28 }
 0xb9f   : > { %9977 = vmatprep.mubr.msk.bf16.mxu1 %vm1583_vm4, %v3840_v33 }
 0xbbb   : > { %v3715_v40 = vpop.xlane.xlu0 %3714 }
 0xbbc   : > { %v3737_v30 = vsub.f32 %v3681_v45, %v3715_v40 }
 0xbbe   : > { %v3760_v44 = vmul.f32 1.442695, %v3737_v30 }
 0xbbf   : > { %v3718_v5 = vpop.xlane.xlu1 %3717  ;;  %v3709_v41 = vpop.xlane.xlu0 %3708 }
 0xbc0   : > { %10856 = vpow2.f32 %v3760_v44  ;;  %v3738_v38 = vsub.f32 %v3682_v16, %v3718_v5  ;;  %v3735_v52 = vsub.f32 %v12993_v10, %v3709_v41 }
 0xbc2   : > { %v3756_v3 = vmul.f32 1.442695, %v3735_v52  ;;  %v3762_v63 = vmul.f32 1.442695, %v3738_v38 }
 0xbc3   : > { %v3712_v0 = vpop.xlane.xlu1 %3711  ;;  %v3727_v36 = vpop.xlane.xlu0 %3726 }
 0xbc4   : > { %v3736_v20 = vsub.f32 %v3680_v51, %v3712_v0  ;;  %v3741_v58 = vsub.f32 %v3685_v56, %v3727_v36  ;;  %10858 = vpow2.f32 %v3756_v3 }
 0xbc5   : > { %10860 = vrcp.f32 %v3778_v11 }
 0xbc6   : > { %v3768_v31 = vmul.f32 1.442695, %v3741_v58  ;;  %10862 = vpow2.f32 %v3762_v63  ;;  %v3758_v2 = vmul.f32 1.442695, %v3736_v20 }
 0xbc7   : > { %v3790_v24 = vpop.xlane.xlu1 %3789  ;;  %v3721_v45 = vpop.xlane.xlu0 %3720  ;;  %10864 = vrcp.f32 %v3781_v46 }
 0xbc8   : > { %v3739_v18 = vsub.f32 %v3683_v14, %v3721_v45  ;;  %10866 = vpow2.f32 %v3768_v31  ;;  %v10653_v31 = vld [vmem:[%s11502_s2 + $0x18] sm:$0xff]   ;;  %s16211_s2 = sld [smem:[#allocation59_spill]] }
 0xbc9   : > { %10868 = vrcp.f32 %v3784_v55  ;;  %10002 = vmatpush3.bf16.msra.mxu0 %v10653_v31 }
 0xbca   : > { %v3764_v16 = vmul.f32 1.442695, %v3739_v18  ;;  %10870 = vpow2.f32 %v3758_v2 }
 0xbcb   : > { %v3724_v10 = vpop.xlane.xlu1 %3723  ;;  %v3787_v6 = vpop.xlane.xlu0 %3786 }
 0xbcc   : > { %10872 = vpow2.f32 %v3764_v16  ;;  %v3740_v61 = vsub.f32 %v3684_v21, %v3724_v10 }
 0xbcd   : > { %v13037_v27 = vpop.eup %10856  ;;  %10874 = vrcp.f32 %v3787_v6 }
 0xbce   : > { %v3766_v51 = vmul.f32 1.442695, %v3740_v61  ;;  %v3797_v56 = vsel %vm1583_vm4, %v13037_v27, 0.0 }
 0xbcf   : > { %3798 = vadd.xlane.f32.xlu1 %v3797_v56  ;;  %v3855_v17 = vpop.permute.xlu0 %3854  ;;  %v3853_v19 = vpop.permute.xlu1 %3852 }
 0xbd0   : > { %10876 = vpow2.f32 %v3766_v51  ;;  %10533 = vmatprep.subr.msk.bf16.mxu1 %vm1766_vm2, %v3855_v17  ;;  %v3872_v14 = vsel %vm1766_vm2, %v3855_v17, 0 }
 0xbd1   : > { %9970 = vmatpush3.bf16.msra.mxu1 %v3872_v14  ;;  %v13043_v42 = vpop.eup %10858  ;;  %10878 = vrcp.f32 %v3790_v24 }
 0xbd2   : > { %9971 = vmatprep.subr.bf16.mxu1 %v3853_v19  ;;  %v10861_v21 = vpop.eup %10860  ;;  %v3791_v53 = vsel %vm1583_vm4, %v13043_v42, 0.0 }
 0xbd3   : > { %v3851_v11 = vpop.permute.xlu0 %3850  ;;  %v13047_v43 = vpop.eup %10862  ;;  %3792 = vadd.xlane.f32.xlu1 %v3791_v53  ;;  %v3828_v38 = vmul.f32 %v10861_v21, %v12909_v60 }
 0xbd4   : > { %v10865_v46 = vpop.eup %10864  ;;  %v3800_v32 = vsel %vm1583_vm4, %v13047_v43, 0.0  ;;  %v3945_v3 = vpop.permute.xlu1 %3944 }
 0xbd5   : > { %9972 = vmatpush3.bf16.msra.mxu1 %v3853_v19  ;;  %v13049_v47 = vpop.eup %10866  ;;  %v3829_v30 = vmul.f32 %v10865_v46, %v12925_v1  ;;  %v3962_v60 = vsel %vm1766_vm2, %v3945_v3, 0 }
 0xbd6   : > { %9973 = vmatprep.subr.bf16.mxu1 %v3851_v11  ;;  %v10869_v35 = vpop.eup %10868  ;;  %v3809_v28 = vsel %vm1583_vm4, %v13049_v47, 0.0 }
 0xbd7   : > { %v13055_v50 = vpop.eup %10870  ;;  %3801 = vadd.xlane.f32.xlu1 %v3800_v32  ;;  %3810 = vadd.xlane.f32.xlu0 %v3809_v28  ;;  %v3849_v55 = vpop.permute.xlu0 %3848  ;;  %v3830_v63 = vmul.f32 %v10869_v35, %v12939_v8  ;;  %v3841_v0 = vpack.c.bf16 %v3829_v30, %v3828_v38  ;;  %v10641_v35 = vld [vmem:[%s11519_s0 + $0x30] ss:$8 sps:$4 sm:$0xff]   ;;  %v10652_v38 = vld [vmem:[%s11519_s0 + $0x4] ss:$8 sps:$4 sm:$0xff]  }
 0xbd8   : > { %v3794_v5 = vsel %vm1583_vm4, %v13055_v50, 0.0 }
 0xbd9   : > { %v13057_v33 = vpop.eup %10872  ;;  %9974 = vmatpush3.bf16.msra.mxu1 %v3851_v11 }
 0xbda   : > { %v10875_v40 = vpop.eup %10874  ;;  %9975 = vmatprep.subr.bf16.mxu1 %v3849_v55  ;;  %v3803_v44 = vsel %vm1583_vm4, %v13057_v33, 0.0 }
 0xbdb   : > { %v3831_v41 = vmul.f32 %v10875_v40, %v13016_v23  ;;  %3795 = vadd.xlane.f32.xlu1 %v3794_v5  ;;  %3804 = vadd.xlane.f32.xlu0 %v3803_v44  ;;  %v3943_v23 = vpop.permute.xlu0 %3942  ;;  %v10649_v44 = vld [vmem:[%s11519_s0 + $0x14] ss:$8 sps:$4 sm:$0xff]   ;;  %v10647_v5 = vld [vmem:[%s11519_s0 + $0x10] ss:$8 sps:$4 sm:$0xff]  }
 0xbdd   : > { %v13066_v52 = vpop.eup %10876  ;;  %9976 = vmatpush3.bf16.msra.mxu1 %v3849_v55  ;;  %v3842_v20 = vpack.c.bf16 %v3831_v41, %v3830_v63  ;;  %v10646_v55 = vld [vmem:[%s11519_s0 + $0x24] ss:$8 sps:$4 sm:$0xff]  }
 0xbde   : > { %10534 = vmatprep.subr.msk.bf16.mxu1 %vm1766_vm2, %v3945_v3  ;;  %v3806_v1 = vsel %vm1583_vm4, %v13066_v52, 0.0  ;;  %v10879_v36 = vpop.eup %10878  ;;  %v16105_v3 = vld [vmem:[#allocation13_spill] sm:$0xff] }
 0xbdf   : > { %3807 = vadd.xlane.f32.xlu1 %v3806_v1  ;;  %v3832_v8 = vmul.f32 %v10879_v36, %v13009_v54  ;;  %v16107_v63 = vld [vmem:[#allocation17_spill] sm:$0xff] }
 0xbe0   : > { %9978 = vmatmul.mubr.msk.bf16.vlgmr.msra.gmra.mxu1 %vm1583_vm4, %v3841_v0  ;;  %v16108_v0 = vld [vmem:[#allocation14_spill] sm:$0xff] }
 0xbe1   : > { %9981 = vmatprep.mubr.msk.bf16.mxu1 %vm1583_vm4, %v3842_v20  ;;  %9986 = vmatpush3.bf16.msra.mxu1 %v3962_v60  ;;  %v3843_v58 = vpack.c.bf16 %v3832_v8, %v3832_v8 }
 0xbe2   : > { %9987 = vmatprep.subr.bf16.mxu1 %v3943_v23 }
 0xbe5   : > { %9988 = vmatpush3.bf16.msra.mxu1 %v3943_v23 }
 0xbe8   : > { %9982 = vmatmul.mubr.msk.bf16.gmra.mxu1 %vm1583_vm4, %v3843_v58  ;;  %v16109_v58 = vld [vmem:[#allocation16_spill] sm:$0xff] }
 0xbf0   : > { %3938 = vrot.lane.b32.xlu1 %v11718_v12, %s11314_s1  ;;  %v10643_v12 = vld [vmem:[%s11519_s0 + $0x34] ss:$8 sps:$4 sm:$0xff]  }
 0xbf1   : > { %3940 = vrot.lane.b32.xlu0 %v11728_v29, %s11314_s1 }
 0xc58   : > { %v3799_v2 = vpop.xlane.xlu1 %3798 }
 0xc5c   : > { %v3793_v24 = vpop.xlane.xlu1 %3792 }
 0xc60   : > { %v3802_v45 = vpop.xlane.xlu1 %3801  ;;  %v3811_v18 = vpop.xlane.xlu0 %3810 }
 0xc61   : > { %10880 = vrcp.f32 %v3802_v45  ;;  %v16110_v45 = vld [vmem:[#allocation18_spill] sm:$0xff] }
 0xc62   : > { %10882 = vrcp.f32 %v3793_v24 }
 0xc63   : > { %10884 = vrcp.f32 %v3799_v2 }
 0xc64   : > { %v3796_v54 = vpop.xlane.xlu1 %3795  ;;  %v3805_v16 = vpop.xlane.xlu0 %3804 }
 0xc65   : > { %10886 = vrcp.f32 %v3796_v54 }
 0xc66   : > { %10888 = vrcp.f32 %v3805_v16  ;;  %v16111_v16 = vld [vmem:[#allocation19_spill] sm:$0xff] }
 0xc68   : > { %v3808_v10 = vpop.xlane.xlu1 %3807  ;;  %v3941_v6 = vpop.permute.xlu0 %3940 }
 0xc69   : > { %10890 = vrcp.f32 %v3808_v10  ;;  %9989 = vmatprep.subr.bf16.mxu1 %v3941_v6 }
 0xc6a   : > { %10892 = vrcp.f32 %v3811_v18  ;;  %9990 = vmatpush3.bf16.msra.mxu1 %v3941_v6 }
 0xc6c   : > { %v3939_v29 = vpop.permute.xlu1 %3938 }
 0xc6d   : > { %9991 = vmatprep.subr.bf16.mxu1 %v3939_v29 }
 0xc6e   : > { %9992 = vmatpush3.bf16.msra.mxu1 %v3939_v29  ;;  %v10881_v61 = vpop.eup %10880 }
 0xc6f   : > { %4537 = vmatprep.subr.bf16.mxu1 %v10643_v12  ;;  %v10883_v51 = vpop.eup %10882  ;;  %v3836_v14 = vmul.f32 %v10881_v61, %v13047_v43 }
 0xc70   : > { %v10885_v56 = vpop.eup %10884  ;;  %v3833_v19 = vmul.f32 %v10883_v51, %v13043_v42 }
 0xc71   : > { %v3835_v11 = vmul.f32 %v10885_v56, %v13037_v27 }
 0xc72   : > { %v10887_v17 = vpop.eup %10886 }
 0xc73   : > { %v3834_v21 = vmul.f32 %v10887_v17, %v13055_v50  ;;  %v10889_v53 = vpop.eup %10888  ;;  %v3845_v28 = vpack.c.bf16 %v3836_v14, %v3835_v11  ;;  %v10644_v50 = vld [vmem:[%s11519_s0 + $0x20] ss:$8 sps:$4 sm:$0xff]  }
 0xc74   : > { %v3837_v43 = vmul.f32 %v10889_v53, %v13057_v33  ;;  %v10650_v33 = vld [vmem:[%s11519_s0] ss:$8 sps:$4 sm:$0xff]   ;;  %v16112_v53 = vld [vmem:[#allocation20_spill] sm:$0xff]  ;;  %s16212_s0 = scalar_lea.vmem %s16211_s2, %s11474_s7 }
 0xc75   : > { %v3844_v46 = vpack.c.bf16 %v3834_v21, %v3833_v19  ;;  %v4477_v21 = vld [vmem:[%s11524_s28] sm:$0x3]  ;;  %v16113_v11 = vsub.s32 1, %v16112_v53  ;;  %s16124_s28 = sld [smem:[#allocation50_spill]] }
 0xc76   : > { %v10891_v32 = vpop.eup %10890 }
 0xc77   : > { %v10893_v40 = vpop.eup %10892  ;;  %9993 = vmatprep.mubr.msk.bf16.mxu1 %vm1583_vm4, %v3844_v46  ;;  %v3838_v42 = vmul.f32 %v10891_v32, %v13066_v52  ;;  %v16104_v52 = vmov 0   ;;  %v13140_v46 = vrot.slane %v4477_v21, %v16113_v11 }
 0xc78   : > { %9994 = vmatmul.mubr.msk.bf16.vlgmr.msra.gmra.mxu1 %vm1583_vm4, %v3845_v28  ;;  %v3839_v30 = vmul.f32 %v10893_v40, %v13049_v47  ;;  %v16106_v47 = vld [vmem:[#allocation15_spill] sm:$0xff] }
 0xc79   : > { %4538 = vmatpush1.bf16.msra.mxu1 %v10641_v35  ;;  %v3846_v27 = vpack.c.bf16 %v3838_v42, %v3837_v43  ;;  %v16114_v43 = vsub.s32 0, %v16112_v53 }
 0xc7a   : > { %4539 = vmatprep.subr.bf16.mxu1 %v10646_v55  ;;  %v3847_v41 = vpack.c.bf16 %v3839_v30, %v3839_v30 }
 0xc7b   : > { %9997 = vmatprep.mubr.msk.bf16.mxu1 %vm1583_vm4, %v3846_v27  ;;  %v13146_v42 = vrot.slane %v4477_v21, %v16114_v43 }
 0xc7d   : > { %4540 = vmatpush1.bf16.msra.mxu1 %v10644_v50 }
 0xc7e   : > { %4541 = vmatprep.subr.bf16.mxu1 %v10649_v44 }
 0xc80   : > { %9998 = vmatmul.mubr.msk.bf16.gmra.mxu1 %vm1583_vm4, %v3847_v41 }
 0xc81   : > { %4542 = vmatpush1.bf16.msra.mxu1 %v10647_v5  ;;  %4561 = vmatprep.mubr.bf16.mxu1 %v16104_v52 }
 0xc82   : > { %4543 = vmatprep.subr.bf16.mxu1 %v10652_v38 }
 0xc85   : > { %4544 = vmatpush1.bf16.msra.mxu1 %v10650_v33 }
 0xc88   : > { %9143 = vmatmul.mubr.msk.bf16.vlgmr.msra.gmra.mxu1 %vm1216_vm1, %v16105_v3 }
 0xc89   : > { %4571 = vmatprep.mubr.bf16.mxu1 %v16104_v52 }
 0xc90   : > { %9144 = vmatmul.mubr.msk.bf16.gmra.mxu1 %vm1216_vm1, %v16106_v47 }
 0xc91   : > { %4581 = vmatprep.mubr.bf16.mxu1 %v16104_v52 }
 0xc98   : > { %9145 = vmatmul.mubr.msk.bf16.gmra.mxu1 %vm1216_vm1, %v16107_v63 }
 0xc99   : > { %4591 = vmatprep.mubr.bf16.mxu1 %v16104_v52 }
 0xca0   : > { %v9979_v1 = vpop.f32.mrf.mxu1  ;;  %9146 = vmatmul.mubr.msk.bf16.gmra.mxu1 %vm1216_vm1, %v16108_v0 }
 0xca1   : > { %4601 = vmatprep.mubr.bf16.mxu1 %v16104_v52 }
 0xca2   : > { %v3908_v36 = vpop.f32.mrf.mxu1 }
 0xca4   : > { %v9980_v20 = vpop.f32.mrf.mxu1 }
 0xca5   : > { %v4029_v24 = vpack.c.bf16 %v9980_v20, %v9979_v1 }
 0xca6   : > { %v3911_v60 = vpop.f32.mrf.mxu1 }
 0xca7   : > { %v4028_v23 = vpack.c.bf16 %v3911_v60, %v3908_v36 }
 0xca8   : > { %v9983_v8 = vpop.f32.mrf.mxu1  ;;  %9147 = vmatmul.mubr.msk.bf16.gmra.mxu1 %vm1216_vm1, %v16109_v58 }
 0xca9   : > { %10004 = vmatmul.mubr.msk.bf16.vlgmr.msra.gmra.mxu0 %vm1368_vm3, %v4028_v23  ;;  %4611 = vmatprep.mubr.bf16.mxu1 %v16104_v52 }
 0xcaa   : > { %v3924_v31 = vpop.f32.mrf.mxu1  ;;  %10007 = vmatprep.mubr.msk.bf16.mxu0 %vm11312_vm5, %v16091_v57 }
 0xcac   : > { %v9984_v2 = vpop.f32.mrf.mxu1 }
 0xcae   : > { %v3927_v18 = vpop.f32.mrf.mxu1 }
 0xcaf   : > { %v4030_v54 = vpack.c.bf16 %v3927_v18, %v3924_v31 }
 0xcb0   : > { %9148 = vmatmul.mubr.msk.bf16.gmra.mxu1 %vm1216_vm1, %v16110_v45 }
 0xcb1   : > { %10008 = vmatmul.mubr.msk.bf16.gmra.mxu0 %vm1368_vm3, %v4029_v24  ;;  %4621 = vmatprep.mubr.bf16.mxu1 %v16104_v52 }
 0xcb2   : > { %10011 = vmatprep.mubr.msk.bf16.mxu0 %vm11312_vm5, %v16091_v57 }
 0xcb8   : > { %9149 = vmatmul.mubr.msk.bf16.gmra.mxu1 %vm1216_vm1, %v16111_v16 }
 0xcb9   : > { %10012 = vmatmul.mubr.msk.bf16.gmra.mxu0 %vm1368_vm3, %v4030_v54 }
 0xcba   : > { %10015 = vmatprep.mubr.msk.bf16.mxu0 %vm11312_vm5, %v16091_v57 }
 0xd38   : > { %v9995_v10 = vpop.f32.mrf.mxu1 }
 0xd3a   : > { %v3998_v6 = vpop.f32.mrf.mxu1 }
 0xd3b   : > { %v4031_v12 = vpack.c.bf16 %v3998_v6, %v9983_v8 }
 0xd3c   : > { %v9996_v29 = vpop.f32.mrf.mxu1 }
 0xd3d   : > { %10016 = vmatmul.mubr.msk.bf16.gmra.mxu0 %vm1368_vm3, %v4031_v12 }
 0xd3e   : > { %v4001_v61 = vpop.f32.mrf.mxu1  ;;  %10019 = vmatprep.mubr.msk.bf16.mxu0 %vm11312_vm5, %v16091_v57 }
 0xd3f   : > { %v4032_v17 = vpack.c.bf16 %v9995_v10, %v4001_v61 }
 0xd40   : > { %v9999_v51 = vpop.f32.mrf.mxu1 }
 0xd42   : > { %v4014_v56 = vpop.f32.mrf.mxu1 }
 0xd43   : > { %v4033_v28 = vpack.c.bf16 %v4014_v56, %v9996_v29 }
 0xd44   : > { %v10000_v14 = vpop.f32.mrf.mxu1 }
 0xd45   : > { %10020 = vmatmul.mubr.msk.bf16.gmra.mxu0 %vm1368_vm3, %v4032_v17 }
 0xd46   : > { %v4017_v19 = vpop.f32.mrf.mxu1  ;;  %10023 = vmatprep.mubr.msk.bf16.mxu0 %vm11312_vm5, %v16091_v57 }
 0xd47   : > { %v4034_v33 = vpack.c.bf16 %v9999_v51, %v4017_v19 }
 0xd48   : > { %v4563_v35 = vpop.f32.mrf.mxu1 }
 0xd49   : > { %v4564_v41 = vadd.f32 %v4563_v35, %v13146_v42 }
 0xd4a   : > { %v4565_v32 = vpop.f32.mrf.mxu1 }
 0xd4b   : > { %v4566_v55 = vadd.f32 %v4565_v32, %v13140_v46 }
 0xd4c   : > { %v4567_v40 = vpop.f32.mrf.mxu1 }
 0xd4d   : > { %10024 = vmatmul.mubr.msk.bf16.gmra.mxu0 %vm1368_vm3, %v4033_v28  ;;  %v4568_v30 = vadd.f32 %v4567_v40, %v13146_v42 }
 0xd4e   : > { %v4569_v27 = vpop.f32.mrf.mxu1  ;;  %10027 = vmatprep.mubr.msk.bf16.mxu0 %vm11312_vm5, %v16091_v57 }
 0xd4f   : > { %v4570_v50 = vadd.f32 %v4569_v27, %v13140_v46  ;;  %v13156_v3 = vpack.c.bf16 %v4568_v30, %v4564_v41 }
 0xd50   : > { %v4573_v44 = vpop.f32.mrf.mxu1 }
 0xd51   : > { %v13152_v5 = vpack.c.bf16 %v4570_v50, %v4566_v55  ;;  %v4574_v61 = vadd.f32 %v4573_v44, %v13146_v42 }
 0xd52   : > { %v4575_v38 = vpop.f32.mrf.mxu1 }
 0xd53   : > { %v4576_v52 = vadd.f32 %v4575_v38, %v13140_v46 }
 0xd54   : > { %v4577_v47 = vpop.f32.mrf.mxu1 }
 0xd55   : > { %10028 = vmatmul.mubr.msk.bf16.gmra.mxu0 %vm1368_vm3, %v4034_v33  ;;  %v4578_v10 = vadd.f32 %v4577_v47, %v13146_v42 }
 0xd56   : > { %v4579_v63 = vpop.f32.mrf.mxu1  ;;  %10039 = vmatprep.mubr.msk.bf16.mxu0 %vm1368_vm3, %v13156_v3 }
 0xd57   : > { %v4580_v1 = vadd.f32 %v4579_v63, %v13140_v46  ;;  %v13186_v56 = vpack.c.bf16 %v4578_v10, %v4574_v61 }
 0xd58   : > { %v4583_v0 = vpop.f32.mrf.mxu1 }
 0xd59   : > { %v13162_v36 = vpack.c.bf16 %v4580_v1, %v4576_v52  ;;  %v4584_v8 = vadd.f32 %v4583_v0, %v13146_v42 }
 0xd5a   : > { %v4585_v20 = vpop.f32.mrf.mxu1 }
 0xd5b   : > { %v4586_v60 = vadd.f32 %v4585_v20, %v13140_v46 }
 0xd5c   : > { %v4587_v23 = vpop.f32.mrf.mxu1 }
 0xd5d   : > { %v4588_v58 = vadd.f32 %v4587_v23, %v13146_v42 }
 0xd5e   : > { %v4589_v31 = vpop.f32.mrf.mxu1 }
 0xd5f   : > { %v13167_v2 = vpack.c.bf16 %v4588_v58, %v4584_v8  ;;  %v4590_v24 = vadd.f32 %v4589_v31, %v13140_v46 }
 0xd60   : > { %v4593_v45 = vpop.f32.mrf.mxu1 }
 0xd61   : > { %v13170_v18 = vpack.c.bf16 %v4590_v24, %v4586_v60  ;;  %v4594_v54 = vadd.f32 %v4593_v45, %v13146_v42  ;;  %4655 = vrot.lane.b32.xlu1 %v13167_v2, %s11306_s29 }
 0xd62   : > { %v4595_v16 = vpop.f32.mrf.mxu1 }
 0xd63   : > { %v13176_v6 = vpack.c.bf16 %v4594_v54, %v4594_v54  ;;  %v13179_v12 = vadd.f32 %v4595_v16, %v13140_v46 }
 0xd64   : > { %v4597_v29 = vpop.f32.mrf.mxu1 }
 0xd65   : > { %4657 = vrot.lane.b32.xlu0 %v13176_v6, %s11306_s29  ;;  %4651 = vrot.lane.b32.xlu1 %v13156_v3, %s11306_s29  ;;  %v4598_v19 = vadd.f32 %v4597_v29, %v13146_v42 }
 0xd66   : > { %v4599_v51 = vpop.f32.mrf.mxu1 }
 0xd67   : > { %v4600_v32 = vadd.f32 %v4599_v51, %v13140_v46 }
 0xd68   : > { %v4603_v17 = vpop.f32.mrf.mxu1 }
 0xd69   : > { %v4099_v14 = vpop.f32.mrf.mxu0  ;;  %v4604_v21 = vadd.f32 %v4603_v17, %v13146_v42  ;;  %4653 = vrot.lane.b32.xlu0 %v13186_v56, %s11306_s29 }
 0xd6a   : > { %v13191_v53 = vadd.f32 %v4099_v14, %v12911_v62  ;;  %v4605_v11 = vpop.f32.mrf.mxu1 }
 0xd6b   : > { %v10005_v35 = vpop.f32.mrf.mxu0  ;;  %v13196_v28 = vpack.c.bf16 %v4604_v21, %v4598_v19  ;;  %v4606_v55 = vadd.f32 %v4605_v11, %v13140_v46 }
 0xd6c   : > { %v4607_v40 = vpop.f32.mrf.mxu1 }
 0xd6d   : > { %v4102_v43 = vpop.f32.mrf.mxu0  ;;  %v13199_v27 = vpack.c.bf16 %v4606_v55, %v4600_v32  ;;  %10055 = vmatprep.mubr.msk.bf16.mxu1 %vm1368_vm3, %v13196_v28  ;;  %v4608_v11 = vadd.f32 %v4607_v40, %v13146_v42 }
 0xd6e   : > { %v13202_v50 = vadd.f32 %v4102_v43, %v12919_v49  ;;  %v4609_v62 = vpop.f32.mrf.mxu1 }
 0xd6f   : > { %v10006_v30 = vpop.f32.mrf.mxu0  ;;  %v4610_v47 = vadd.f32 %v4609_v62, %v13140_v46 }
 0xd70   : > { %v4613_v44 = vpop.f32.mrf.mxu1  ;;  %v13266_v30 = vpack.c.bf16 %v13179_v12, %v13179_v12 }
 0xd71   : > { %v4107_v41 = vpop.f32.mrf.mxu0  ;;  %v4614_v19 = vadd.f32 %v4613_v44, %v13146_v42 }
 0xd72   : > { %v13207_v38 = vadd.f32 %v4107_v41, %v12927_v37  ;;  %v4615_v33 = vpop.f32.mrf.mxu1  ;;  %v5044_v12 = vsel %vm1766_vm2, %v13266_v30, 0 }
 0xd73   : > { %v10009_v52 = vpop.f32.mrf.mxu0  ;;  %v4616_v63 = vadd.f32 %v4615_v33, %v13140_v46  ;;  %v13241_v35 = vpack.c.bf16 %v4614_v19, %v4608_v11 }
 0xd74   : > { %v4617_v1 = vpop.f32.mrf.mxu1 }
 0xd75   : > { %v4110_v0 = vpop.f32.mrf.mxu0  ;;  %v13211_v49 = vpack.c.bf16 %v4616_v63, %v4610_v47  ;;  %v4618_v37 = vadd.f32 %v4617_v1, %v13146_v42 }
 0xd76   : > { %v13214_v20 = vadd.f32 %v4110_v0, %v12935_v25  ;;  %v4619_v60 = vpop.f32.mrf.mxu1 }
 0xd77   : > { %v10010_v23 = vpop.f32.mrf.mxu0  ;;  %v4620_v16 = vadd.f32 %v4619_v60, %v13140_v46 }
 0xd78   : > { %v4623_v8 = vpop.f32.mrf.mxu1 }
 0xd79   : > { %v4115_v58 = vpop.f32.mrf.mxu0  ;;  %v4624_v31 = vadd.f32 %v4623_v8, %v13146_v42 }
 0xd7a   : > { %v13219_v24 = vadd.f32 %v4115_v58, %v12945_v48  ;;  %v4625_v45 = vpop.f32.mrf.mxu1 }
 0xd7b   : > { %v10013_v54 = vpop.f32.mrf.mxu0  ;;  %v13222_v10 = vpack.c.bf16 %v4624_v31, %v4618_v37  ;;  %v4626_v25 = vadd.f32 %v4625_v45, %v13140_v46 }
 0xd7c   : > { %16115 = vst [vmem:[#allocation24_spill] sm:$0xff] %v13219_v24  ;;  %v4627_v29 = vpop.f32.mrf.mxu1 }
 0xd7d   : > { %v4118_v61 = vpop.f32.mrf.mxu0  ;;  %v13225_v51 = vpack.c.bf16 %v4626_v25, %v4620_v16  ;;  %v4628_v17 = vadd.f32 %v4627_v29, %v13146_v42  ;;  %4755 = vrot.lane.b32.xlu1 %v13222_v10, %s11306_s29 }
 0xd7e   : > { %v13229_v14 = vadd.f32 %v4118_v61, %v12949_v34  ;;  %v4629_v37 = vpop.f32.mrf.mxu1 }
 0xd7f   : > { %v10014_v48 = vpop.f32.mrf.mxu0  ;;  %v13234_v21 = vpack.c.bf16 %v4628_v17, %v4628_v17  ;;  %v4630_v25 = vadd.f32 %v4629_v37, %v13140_v46 }
 0xd81   : > { %4757 = vrot.lane.b32.xlu0 %v13234_v21, %s11306_s29  ;;  %4751 = vrot.lane.b32.xlu1 %v13196_v28, %s11306_s29  ;;  %v13309_v48 = vpack.c.bf16 %v4630_v25, %v4630_v25 }
 0xd85   : > { %4753 = vrot.lane.b32.xlu0 %v13241_v35, %s11306_s29  ;;  %5218 = vrot.lane.b32.xlu1 %v13167_v2, %s11307_s6  ;;  %s16125_s29 = smov %s16124_s28 }
 0xd89   : > { %5220 = vrot.lane.b32.xlu0 %v13176_v6, %s11307_s6  ;;  %5216 = vrot.lane.b32.xlu1 %v13186_v56, %s11307_s6 }
 0xd8d   : > { %5214 = vrot.lane.b32.xlu0 %v13156_v3, %s11307_s6  ;;  %5206 = vrot.lane.b32.xlu1 %v13156_v3, %s11308_s21 }
 0xd91   : > { %5324 = vrot.lane.b32.xlu1 %v13234_v21, %s11307_s6 }
 0xdd3   : > { %v4656_v32 = vpop.permute.xlu1 %4655 }
 0xdd4   : > { %v4678_v55 = vsel %vm1368_vm3, %v4656_v32, 0 }
 0xdd7   : > { %v4658_v34 = vpop.permute.xlu0 %4657  ;;  %v4652_v62 = vpop.permute.xlu1 %4651 }
 0xdd8   : > { %10535 = vmatprep.subr.msk.bf16.mxu0 %vm1368_vm3, %v4658_v34  ;;  %v4681_v42 = vsel %vm1368_vm3, %v4658_v34, 0  ;;  %v4672_v44 = vsel %vm1368_vm3, %v4652_v62, 0 }
 0xdd9   : > { %10032 = vmatpush3.bf16.xpose.msra.mxu0 %v4681_v42 }
 0xdda   : > { %10536 = vmatprep.subr.msk.bf16.mxu0 %vm1368_vm3, %v4656_v32 }
 0xddb   : > { %v4654_v40 = vpop.permute.xlu0 %4653 }
 0xddc   : > { %v4675_v43 = vsel %vm1368_vm3, %v4654_v40, 0 }
 0xde1   : > { %10034 = vmatpush3.bf16.xpose.msra.mxu0 %v4678_v55  ;;  %v5123_v55 = vsel %vm1766_vm2, %v13309_v48, 0 }
 0xde2   : > { %10537 = vmatprep.subr.msk.bf16.mxu0 %vm1368_vm3, %v4654_v40 }
 0xde9   : > { %10036 = vmatpush3.bf16.xpose.msra.mxu0 %v4675_v43 }
 0xdea   : > { %10538 = vmatprep.subr.msk.bf16.mxu0 %vm1368_vm3, %v4652_v62 }
 0xdef   : > { %v4756_v52 = vpop.permute.xlu1 %4755 }
 0xdf0   : > { %v4778_v47 = vsel %vm1368_vm3, %v4756_v52, 0 }
 0xdf1   : > { %10038 = vmatpush3.bf16.xpose.msra.mxu0 %v4672_v44 }
 0xdf2   : > { %10543 = vmatprep.subr.msk.bf16.mxu0 %vm1766_vm2, %v13266_v30 }
 0xdf3   : > { %v4758_v41 = vpop.permute.xlu0 %4757 }
 0xdf4   : > { %10539 = vmatprep.subr.msk.bf16.mxu1 %vm1368_vm3, %v4758_v41  ;;  %v4781_v33 = vsel %vm1368_vm3, %v4758_v41, 0 }
 0xdf5   : > { %10048 = vmatpush3.bf16.xpose.msra.mxu1 %v4781_v33 }
 0xdf6   : > { %10540 = vmatprep.subr.msk.bf16.mxu1 %vm1368_vm3, %v4756_v52 }
 0xdf7   : > { %v4754_v63 = vpop.permute.xlu0 %4753 }
 0xdf8   : > { %10040 = vmatmul.mubr.msk.bf16.vlgmr.msra.gmra.mxu0 %vm1368_vm3, %v13186_v56  ;;  %v4775_v31 = vsel %vm1368_vm3, %v4754_v63, 0 }
 0xdf9   : > { %10043 = vmatprep.mubr.msk.bf16.mxu0 %vm1368_vm3, %v13167_v2  ;;  %10064 = vmatpush3.bf16.msra.mxu0 %v5044_v12  ;;  %v4640_v12 = vld [vmem:[%s16125_s29] sm:$0xff] }
 0xdfa   : > { %10065 = vmatprep.subr.bf16.mxu0 %v13170_v18 }
 0xdfb   : > { %v13296_v45 = vpop.permute.xlu0 %5220 }
 0xdfd   : > { %v4123_v1 = vpop.f32.mrf.mxu0  ;;  %10050 = vmatpush3.bf16.xpose.msra.mxu1 %v4778_v47  ;;  %10066 = vmatpush3.bf16.msra.mxu0 %v13170_v18 }
 0xdfe   : > { %v13284_v0 = vadd.f32 %v4123_v1, %v12953_v22  ;;  %10541 = vmatprep.subr.msk.bf16.mxu1 %vm1368_vm3, %v4754_v63  ;;  %10067 = vmatprep.subr.bf16.mxu0 %v13162_v36  ;;  %v4752_v22 = vpop.permute.xlu1 %4751  ;;  %v4643_v1 = vld [vmem:[%s16125_s29 + $0x18] sm:$0xff] }
 0xdff   : > { %v10017_v60 = vpop.f32.mrf.mxu0  ;;  %v4772_v19 = vsel %vm1368_vm3, %v4752_v22, 0 }
 0xe00   : > { %16116 = vst [vmem:[#allocation29_spill] sm:$0xff] %v13284_v0  ;;  %10044 = vmatmul.mubr.msk.bf16.gmra.mxu0 %vm1368_vm3, %v13176_v6  ;;  %v13360_v60 = vld [vmem:[%s16077_s19] ss:$0 sm:$0xff] }
 0xe01   : > { %v4126_v23 = vpop.f32.mrf.mxu0  ;;  %10068 = vmatpush3.bf16.msra.mxu0 %v13162_v36 }
 0xe02   : > { %v13292_v8 = vadd.f32 %v4126_v23, %v12957_v39  ;;  %10069 = vmatprep.subr.bf16.mxu0 %v13152_v5  ;;  %v13317_v34 = vpop.permute.xlu1 %5218 }
 0xe03   : > { %v10018_v58 = vpop.f32.mrf.mxu0 }
 0xe04   : > { %16117 = vst [vmem:[#allocation25_spill] sm:$0xff] %v13292_v8 }
 0xe05   : > { %v4131_v54 = vpop.f32.mrf.mxu0  ;;  %10052 = vmatpush3.bf16.xpose.msra.mxu1 %v4775_v31  ;;  %10070 = vmatpush3.bf16.msra.mxu0 %v13152_v5 }
 0xe06   : > { %v13300_v16 = vadd.f32 %v4131_v54, %v12961_v7  ;;  %10542 = vmatprep.subr.msk.bf16.mxu1 %vm1368_vm3, %v4752_v22  ;;  %10545 = vmatprep.subr.msk.bf16.mxu0 %vm1368_vm3, %v13296_v45  ;;  %v13326_v40 = vpop.permute.xlu1 %5216  ;;  %v4641_v22 = vld [vmem:[%s16125_s29 + $0x8] sm:$0xff] }
 0xe07   : > { %v10021_v39 = vpop.f32.mrf.mxu0 }
 0xe08   : > { %16118 = vst [vmem:[#allocation30_spill] sm:$0xff] %v13300_v16 }
 0xe09   : > { %v4134_v29 = vpop.f32.mrf.mxu0 }
 0xe0a   : > { %v13307_v61 = vadd.f32 %v4134_v29, %v12965_v26  ;;  %v13339_v41 = vpop.permute.xlu1 %5206  ;;  %v4646_v29 = vld [vmem:[%s16125_s29 + $0x30] sm:$0xff] }
 0xe0b   : > { %v10022_v17 = vpop.f32.mrf.mxu0 }
 0xe0c   : > { %16119 = vst [vmem:[#allocation26_spill] sm:$0xff] %v13307_v61 }
 0xe0d   : > { %v4139_v11 = vpop.f32.mrf.mxu0  ;;  %10054 = vmatpush3.bf16.xpose.msra.mxu1 %v4772_v19 }
 0xe0e   : > { %v13313_v7 = vadd.f32 %v4139_v11, %v12969_v59  ;;  %10544 = vmatprep.subr.msk.bf16.mxu1 %vm1766_vm2, %v13309_v48  ;;  %v4644_v11 = vld [vmem:[%s16125_s29 + $0x20] sm:$0xff] }
 0xe0f   : > { %v10025_v46 = vpop.f32.mrf.mxu0 }
 0xe10   : > { %16120 = vst [vmem:[#allocation31_spill] sm:$0xff] %v13313_v7 }
 0xe11   : > { %v4142_v42 = vpop.f32.mrf.mxu0 }
 0xe12   : > { %v13320_v26 = vadd.f32 %v4142_v42, %v12973_v15 }
 0xe13   : > { %v10026_v32 = vpop.f32.mrf.mxu0 }
 0xe14   : > { %16121 = vst [vmem:[#allocation27_spill] sm:$0xff] %v13320_v26  ;;  %10056 = vmatmul.mubr.msk.bf16.vlgmr.msra.gmra.mxu1 %vm1368_vm3, %v13241_v35 }
 0xe15   : > { %v4147_v59 = vpop.f32.mrf.mxu0  ;;  %10059 = vmatprep.mubr.msk.bf16.mxu1 %vm1368_vm3, %v13222_v10  ;;  %10080 = vmatpush3.bf16.msra.mxu1 %v5123_v55 }
 0xe16   : > { %v13331_v43 = vadd.f32 %v4147_v59, %v12979_v13  ;;  %10081 = vmatprep.subr.bf16.mxu1 %v13225_v51  ;;  %v13345_v13 = vpop.permute.xlu1 %5324 }
 0xe17   : > { %v10029_v15 = vpop.f32.mrf.mxu0 }
 0xe18   : > { %16122 = vst [vmem:[#allocation32_spill] sm:$0xff] %v13331_v43  ;;  %v13418_v43 = vld [vmem:[%s16077_s19 + $0x1] ss:$0 sm:$0xff] }
 0xe19   : > { %v4150_v62 = vpop.f32.mrf.mxu0  ;;  %10082 = vmatpush3.bf16.msra.mxu1 %v13225_v51 }
 0xe1a   : > { %v13336_v44 = vadd.f32 %v4150_v62, %v12984_v4  ;;  %10083 = vmatprep.subr.bf16.mxu1 %v13211_v49  ;;  %v4642_v4 = vld [vmem:[%s16124_s28 + $0x10] sm:$0xff] }
 0xe1b   : > { %v10030_v33 = vpop.f32.mrf.mxu0 }
 0xe1c   : > { %16123 = vst [vmem:[#allocation28_spill] sm:$0xff] %v13336_v44  ;;  %10060 = vmatmul.mubr.msk.bf16.gmra.mxu1 %vm1368_vm3, %v13234_v21 }
 0xe1d   : > { %10084 = vmatpush3.bf16.msra.mxu1 %v13211_v49 }
 0xe1e   : > { %10085 = vmatprep.subr.bf16.mxu1 %v13199_v27 }
 0xe21   : > { %10086 = vmatpush3.bf16.msra.mxu1 %v13199_v27 }
 0xe22   : > { %10549 = vmatprep.subr.msk.bf16.mxu1 %vm1368_vm3, %v13345_v13 }
 0xeb8   : > { %v10041_v52 = vpop.f32.mrf.mxu0 }
 0xeb9   : > { %v4726_v47 = vadd.f32 %v10041_v52, %v4642_v4 }
 0xeba   : > { %v4717_v63 = vpop.f32.mrf.mxu0 }
 0xebb   : > { %v13363_v23 = vadd.f32 %v13360_v60, %v4726_v47  ;;  %v4718_v58 = vadd.f32 %v4717_v63, %v4640_v12  ;;  %v4645_v47 = vld [vmem:[%s16125_s29 + $0x28] sm:$0xff] }
 0xebc   : > { %v10042_v37 = vpop.f32.mrf.mxu0 }
 0xebd   : > { %v13369_v31 = vadd.f32 %v13360_v60, %v4718_v58  ;;  %v4729_v54 = vadd.f32 %v10042_v37, %v4643_v1  ;;  %v4867_v39 = vsel %vm1583_vm4, %v13363_v23, -inf }
 0xebe   : > { %4868 = vmax.xlane.f32.xlu0 %v4867_v39  ;;  %v4720_v25 = vpop.f32.mrf.mxu0 }
 0xebf   : > { %v4721_v17 = vadd.f32 %v4720_v25, %v4641_v22  ;;  %v13380_v46 = vadd.f32 %v13360_v60, %v4729_v54  ;;  %v4861_v32 = vsel %vm1583_vm4, %v13369_v31, -inf }
 0xec0   : > { %v10045_v19 = vpop.f32.mrf.mxu0 }
 0xec1   : > { %v4742_v42 = vadd.f32 %v10045_v19, %v4646_v29  ;;  %v13385_v55 = vadd.f32 %v13360_v60, %v4721_v17  ;;  %v4870_v63 = vsel %vm1583_vm4, %v13380_v46, -inf }
 0xec2   : > { %v4733_v59 = vpop.f32.mrf.mxu0  ;;  %4862 = vmax.xlane.f32.xlu0 %v4861_v32 }
 0xec3   : > { %v13388_v15 = vadd.f32 %v13360_v60, %v4742_v42  ;;  %v4734_v62 = vadd.f32 %v4733_v59, %v4644_v11  ;;  %v4864_v33 = vsel %vm1583_vm4, %v13385_v55, -inf }
 0xec4   : > { %v10046_v52 = vpop.f32.mrf.mxu0  ;;  %4865 = vmax.xlane.f32.xlu1 %v4864_v33 }
 0xec5   : > { %v13398_v37 = vadd.f32 %v13360_v60, %v4734_v62  ;;  %v4879_v39 = vsel %vm1583_vm4, %v13388_v15, -inf }
 0xec6   : > { %v4736_v58 = vpop.f32.mrf.mxu0  ;;  %4871 = vmax.xlane.f32.xlu0 %v4870_v63 }
 0xec7   : > { %v4737_v54 = vadd.f32 %v4736_v58, %v4645_v47  ;;  %v4873_v17 = vsel %vm1583_vm4, %v13398_v37, -inf }
 0xec8   : > { %4880 = vmax.xlane.f32.xlu1 %v4879_v39 }
 0xec9   : > { %v13403_v25 = vadd.f32 %v13360_v60, %v4737_v54 }
 0xecb   : > { %v4876_v19 = vsel %vm1583_vm4, %v13403_v25, -inf }
 0xecc   : > { %4874 = vmax.xlane.f32.xlu1 %v4873_v17  ;;  %4877 = vmax.xlane.f32.xlu0 %v4876_v19 }
 0xed4   : > { %v10057_v42 = vpop.f32.mrf.mxu1 }
 0xed5   : > { %v4826_v32 = vadd.f32 %v10057_v42, %v4642_v4 }
 0xed6   : > { %v4817_v59 = vpop.f32.mrf.mxu1 }
 0xed7   : > { %v13410_v62 = vadd.f32 %v12988_v9, %v4826_v32  ;;  %v4818_v33 = vadd.f32 %v4817_v59, %v4640_v12 }
 0xed8   : > { %v10058_v52 = vpop.f32.mrf.mxu1 }
 0xed9   : > { %v13413_v63 = vadd.f32 %v12988_v9, %v4818_v33  ;;  %v4829_v58 = vadd.f32 %v10058_v52, %v4643_v1  ;;  %v4888_v54 = vsel %vm1583_vm4, %v13410_v62, -inf }
 0xeda   : > { %v4820_v39 = vpop.f32.mrf.mxu1  ;;  %4889 = vmax.xlane.f32.xlu0 %v4888_v54 }
 0xedb   : > { %v13421_v17 = vadd.f32 %v13418_v43, %v4829_v58  ;;  %v4821_v4 = vadd.f32 %v4820_v39, %v4641_v22  ;;  %v4882_v9 = vsel %vm1583_vm4, %v13413_v63, -inf }
 0xedc   : > { %v10061_v19 = vpop.f32.mrf.mxu1 }
 0xedd   : > { %v4842_v42 = vadd.f32 %v10061_v19, %v4646_v29  ;;  %v4891_v12 = vsel %vm1583_vm4, %v13421_v17, -inf  ;;  %v13428_v1 = vadd.f32 %v13418_v43, %v4821_v4 }
 0xede   : > { %v4833_v32 = vpop.f32.mrf.mxu1  ;;  %4892 = vmax.xlane.f32.xlu1 %v4891_v12  ;;  %4883 = vmax.xlane.f32.xlu0 %v4882_v9 }
 0xedf   : > { %v13431_v59 = vadd.f32 %v13418_v43, %v4842_v42  ;;  %v4834_v33 = vadd.f32 %v4833_v32, %v4644_v11  ;;  %v4885_v29 = vsel %vm1583_vm4, %v13428_v1, -inf  ;;  %v13451_v42 = vpop.permute.xlu0 %5214 }
 0xee0   : > { %v10062_v52 = vpop.f32.mrf.mxu1 }
 0xee1   : > { %v13434_v22 = vadd.f32 %v13418_v43, %v4834_v33  ;;  %v4900_v58 = vsel %vm1583_vm4, %v13431_v59, -inf }
 0xee2   : > { %v4836_v54 = vpop.f32.mrf.mxu1  ;;  %4886 = vmax.xlane.f32.xlu1 %v4885_v29  ;;  %4901 = vmax.xlane.f32.xlu0 %v4900_v58 }
 0xee3   : > { %v4837_v39 = vadd.f32 %v4836_v54, %v4645_v47  ;;  %v4894_v4 = vsel %vm1583_vm4, %v13434_v22, -inf }
 0xee5   : > { %v13443_v19 = vadd.f32 %v13418_v43, %v4837_v39 }
 0xee6   : > { %4895 = vmax.xlane.f32.xlu0 %v4894_v4 }
 0xee7   : > { %v4897_v11 = vsel %vm1583_vm4, %v13443_v19, -inf }
 0xee8   : > { %4898 = vmax.xlane.f32.xlu1 %v4897_v11 }
 0xef9   : > { %5322 = vrot.lane.b32.xlu1 %v13222_v10, %s11307_s6 }
 0xefc   : > { %5208 = vrot.lane.b32.xlu0 %v13186_v56, %s11308_s21 }
 0xf47   : > { %v4869_v47 = vpop.xlane.xlu0 %4868 }
 0xf48   : > { %v4905_v12 = vsub.f32 %v13363_v23, %v4869_v47 }
 0xf4a   : > { %v4921_v9 = vmul.f32 1.442695, %v4905_v12 }
 0xf4b   : > { %v4863_v32 = vpop.xlane.xlu0 %4862 }
 0xf4c   : > { %10894 = vpow2.f32 %v4921_v9  ;;  %v4903_v33 = vsub.f32 %v13369_v31, %v4863_v32 }
 0xf4d   : > { %v4866_v52 = vpop.xlane.xlu1 %4865 }
 0xf4e   : > { %v4917_v29 = vmul.f32 1.442695, %v4903_v33  ;;  %v4904_v58 = vsub.f32 %v13385_v55, %v4866_v52 }
 0xf4f   : > { %v4872_v54 = vpop.xlane.xlu0 %4871 }
 0xf50   : > { %10896 = vpow2.f32 %v4917_v29  ;;  %v4906_v39 = vsub.f32 %v13380_v46, %v4872_v54  ;;  %v4919_v4 = vmul.f32 1.442695, %v4904_v58 }
 0xf51   : > { %v4881_v11 = vpop.xlane.xlu1 %4880 }
 0xf52   : > { %v4923_v44 = vmul.f32 1.442695, %v4906_v39  ;;  %v4909_v7 = vsub.f32 %v13388_v15, %v4881_v11 }
 0xf54   : > { %10898 = vpow2.f32 %v4923_v44  ;;  %v4929_v23 = vmul.f32 1.442695, %v4909_v7 }
 0xf55   : > { %10900 = vpow2.f32 %v4919_v4  ;;  %v4875_v47 = vpop.xlane.xlu1 %4874  ;;  %v4878_v12 = vpop.xlane.xlu0 %4877 }
 0xf56   : > { %10902 = vpow2.f32 %v4929_v23  ;;  %v4907_v31 = vsub.f32 %v13398_v37, %v4875_v47  ;;  %v4908_v9 = vsub.f32 %v13403_v25, %v4878_v12 }
 0xf58   : > { %v4925_v55 = vmul.f32 1.442695, %v4907_v31  ;;  %v4927_v32 = vmul.f32 1.442695, %v4908_v9 }
 0xf59   : > { %v13460_v33 = vpop.eup %10894 }
 0xf5a   : > { %10904 = vpow2.f32 %v4925_v55  ;;  %v4951_v46 = vsel %vm1583_vm4, %v13460_v33, 0.0 }
 0xf5b   : > { %10906 = vpow2.f32 %v4927_v32  ;;  %4952 = vadd.xlane.f32.xlu1 %v4951_v46 }
 0xf5d   : > { %v13464_v44 = vpop.eup %10896 }
 0xf5e   : > { %v4945_v7 = vsel %vm1583_vm4, %v13464_v44, 0.0 }
 0xf5f   : > { %4946 = vadd.xlane.f32.xlu1 %v4945_v7 }
 0xf61   : > { %v13468_v15 = vpop.eup %10898 }
 0xf62   : > { %v13470_v37 = vpop.eup %10900  ;;  %v4954_v25 = vsel %vm1583_vm4, %v13468_v15, 0.0 }
 0xf63   : > { %v13474_v52 = vpop.eup %10902  ;;  %4955 = vadd.xlane.f32.xlu0 %v4954_v25  ;;  %v4890_v29 = vpop.xlane.xlu0 %4889  ;;  %v4948_v4 = vsel %vm1583_vm4, %v13470_v37, 0.0 }
 0xf64   : > { %v4912_v58 = vsub.f32 %v13410_v62, %v4890_v29  ;;  %v4963_v54 = vsel %vm1583_vm4, %v13474_v52, 0.0 }
 0xf65   : > { %4964 = vadd.xlane.f32.xlu1 %v4963_v54 }
 0xf66   : > { %v4935_v39 = vmul.f32 1.442695, %v4912_v58 }
 0xf67   : > { %v13481_v11 = vpop.eup %10904  ;;  %v4893_v23 = vpop.xlane.xlu1 %4892  ;;  %4949 = vadd.xlane.f32.xlu0 %v4948_v4 }
 0xf68   : > { %v4884_v47 = vpop.xlane.xlu0 %4883  ;;  %v13483_v12 = vpop.eup %10906  ;;  %10908 = vpow2.f32 %v4935_v39  ;;  %v4913_v31 = vsub.f32 %v13421_v17, %v4893_v23  ;;  %v4957_v9 = vsel %vm1583_vm4, %v13481_v11, 0.0 }
 0xf69   : > { %v4910_v62 = vsub.f32 %v13413_v63, %v4884_v47  ;;  %4958 = vadd.xlane.f32.xlu1 %v4957_v9  ;;  %v4960_v46 = vsel %vm1583_vm4, %v13483_v12, 0.0 }
 0xf6a   : > { %v4937_v55 = vmul.f32 1.442695, %v4913_v31 }
 0xf6b   : > { %v4931_v32 = vmul.f32 1.442695, %v4910_v62  ;;  %v4887_v7 = vpop.xlane.xlu1 %4886  ;;  %4961 = vadd.xlane.f32.xlu0 %v4960_v46 }
 0xf6c   : > { %10910 = vpow2.f32 %v4937_v55  ;;  %v4911_v25 = vsub.f32 %v13428_v1, %v4887_v7  ;;  %v4902_v47 = vpop.xlane.xlu0 %4901 }
 0xf6d   : > { %10912 = vpow2.f32 %v4931_v32  ;;  %v4916_v31 = vsub.f32 %v13431_v59, %v4902_v47 }
 0xf6e   : > { %v4933_v29 = vmul.f32 1.442695, %v4911_v25 }
 0xf6f   : > { %v4943_v32 = vmul.f32 1.442695, %v4916_v31 }
 0xf70   : > { %10914 = vpow2.f32 %v4933_v29  ;;  %v4896_v9 = vpop.xlane.xlu0 %4895 }
 0xf71   : > { %v4899_v62 = vpop.xlane.xlu1 %4898  ;;  %v4914_v46 = vsub.f32 %v13434_v22, %v4896_v9  ;;  %10916 = vpow2.f32 %v4943_v32 }
 0xf72   : > { %v4915_v55 = vsub.f32 %v13443_v19, %v4899_v62 }
 0xf73   : > { %v4939_v25 = vmul.f32 1.442695, %v4914_v46 }
 0xf74   : > { %v4941_v7 = vmul.f32 1.442695, %v4915_v55  ;;  %v13543_v47 = vpop.permute.xlu0 %5208 }
 0xf75   : > { %v13492_v17 = vpop.eup %10908 }
 0xf76   : > { %v4972_v63 = vsel %vm1583_vm4, %v13492_v17, 0.0  ;;  %10918 = vpow2.f32 %v4941_v7 }
 0xf77   : > { %4973 = vadd.xlane.f32.xlu0 %v4972_v63  ;;  %10920 = vpow2.f32 %v4939_v25 }
 0xf79   : > { %v13496_v58 = vpop.eup %10910 }
 0xf7a   : > { %v13498_v54 = vpop.eup %10912  ;;  %v4975_v39 = vsel %vm1583_vm4, %v13496_v58, 0.0 }
 0xf7b   : > { %4976 = vadd.xlane.f32.xlu1 %v4975_v39  ;;  %v4966_v1 = vsel %vm1583_vm4, %v13498_v54, 0.0 }
 0xf7c   : > { %4967 = vadd.xlane.f32.xlu0 %v4966_v1  ;;  %v13541_v1 = vpop.permute.xlu1 %5322 }
 0xf7d   : > { %v13504_v4 = vpop.eup %10914 }
 0xf7e   : > { %v4969_v23 = vsel %vm1583_vm4, %v13504_v4, 0.0  ;;  %v13515_v29 = vpop.eup %10916 }
 0xf7f   : > { %4970 = vadd.xlane.f32.xlu1 %v4969_v23  ;;  %v4984_v39 = vsel %vm1583_vm4, %v13515_v29, 0.0 }
 0xf83   : > { %v13517_v63 = vpop.eup %10918 }
 0xf84   : > { %v13521_v59 = vpop.eup %10920  ;;  %v4981_v19 = vsel %vm1583_vm4, %v13517_v63, 0.0 }
 0xf85   : > { %v4978_v22 = vsel %vm1583_vm4, %v13521_v59, 0.0 }
 0xf90   : > { %5210 = vrot.lane.b32.xlu1 %v13167_v2, %s11308_s21 }
 0xf92   : > { %5320 = vrot.lane.b32.xlu0 %v13241_v35, %s11307_s6 }
 0xfb1   : > { %4985 = vadd.xlane.f32.xlu0 %v4984_v39 }
 0xfb4   : > { %4982 = vadd.xlane.f32.xlu1 %v4981_v19 }
 0xfb5   : > { %4979 = vadd.xlane.f32.xlu0 %v4978_v22 }
 0xfc5   : > { %5318 = vrot.lane.b32.xlu1 %v13196_v28, %s11307_s6  ;;  %s16213_s6 = scalar_lea.vmem %s15966_s15, %s11474_s7 }
 0xfc9   : > { %5312 = vrot.lane.b32.xlu1 %v13241_v35, %s11308_s21 }
 0xfcb   : > { %5212 = vrot.lane.b32.xlu0 %v13176_v6, %s11308_s21 }
 0xfcd   : > { %5316 = vrot.lane.b32.xlu1 %v13234_v21, %s11308_s21 }
 0xfcf   : > { %5310 = vrot.lane.b32.xlu0 %v13196_v28, %s11308_s21 }
 0xfd1   : > { %5600 = vrot.lane.b32.xlu1 %v13266_v30, %s11308_s21 }
 0xfd3   : > { %5314 = vrot.lane.b32.xlu0 %v13222_v10, %s11308_s21 }
 0xfe4   : > { %v4953_v23 = vpop.xlane.xlu1 %4952 }
 0xfe8   : > { %v4947_v31 = vpop.xlane.xlu1 %4946 }
 0xfec   : > { %v4956_v62 = vpop.xlane.xlu0 %4955 }
 0xfed   : > { %10922 = vrcp.f32 %v4956_v62 }
 0xfee   : > { %v4965_v9 = vpop.xlane.xlu1 %4964  ;;  %10924 = vrcp.f32 %v4947_v31 }
 0xfef   : > { %10926 = vrcp.f32 %v4953_v23 }
 0xff0   : > { %v4950_v55 = vpop.xlane.xlu0 %4949 }
 0xff1   : > { %10928 = vrcp.f32 %v4950_v55 }
 0xff2   : > { %v4959_v32 = vpop.xlane.xlu1 %4958 }
 0xff3   : > { %10930 = vrcp.f32 %v4959_v32 }
 0xff4   : > { %v4962_v46 = vpop.xlane.xlu0 %4961 }
 0xff5   : > { %10932 = vrcp.f32 %v4962_v46 }
 0xff6   : > { %10934 = vrcp.f32 %v4965_v9 }
 0xffa   : > { %v10923_v7 = vpop.eup %10922 }
 0xffb   : > { %v10925_v25 = vpop.eup %10924  ;;  %v5004_v22 = vmul.f32 %v10923_v7, %v13468_v15 }
 0xffc   : > { %v10927_v39 = vpop.eup %10926  ;;  %v5001_v26 = vmul.f32 %v10925_v25, %v13464_v44  ;;  %v5244_v44 = vsel %vm1368_vm3, %v13296_v45, 0  ;;  %v5241_v45 = vsel %vm1368_vm3, %v13317_v34, 0 }
 0xffd   : > { %v5003_v23 = vmul.f32 %v10927_v39, %v13460_v33 }
 0xffe   : > { %v10929_v19 = vpop.eup %10928 }
 0xfff   : > { %v5002_v62 = vmul.f32 %v10929_v19, %v13470_v37  ;;  %v5016_v32 = vpack.c.bf16 %v5004_v22, %v5003_v23  ;;  %v5238_v37 = vsel %vm1368_vm3, %v13326_v40, 0 }
0x1000   : > { %v10931_v16 = vpop.eup %10930  ;;  %v4974_v31 = vpop.xlane.xlu0 %4973 }
0x1001   : > { %v5015_v55 = vpack.c.bf16 %v5002_v62, %v5001_v26  ;;  %v5005_v9 = vmul.f32 %v10931_v16, %v13481_v11 }
0x1002   : > { %v10933_v61 = vpop.eup %10932 }
0x1003   : > { %v10935_v0 = vpop.eup %10934  ;;  %10071 = vmatprep.mubr.msk.bf16.mxu0 %vm1583_vm4, %v5015_v55  ;;  %v5006_v46 = vmul.f32 %v10933_v61, %v13483_v12 }
0x1004   : > { %v4977_v8 = vpop.xlane.xlu1 %4976  ;;  %10072 = vmatmul.mubr.msk.bf16.vlgmr.msra.gmra.mxu0 %vm1583_vm4, %v5016_v32  ;;  %v5007_v26 = vmul.f32 %v10935_v0, %v13474_v52 }
0x1005   : > { %10096 = vmatpush3.bf16.xpose.msra.mxu0 %v5244_v44  ;;  %v4968_v15 = vpop.xlane.xlu0 %4967  ;;  %v5017_v33 = vpack.c.bf16 %v5006_v46, %v5005_v9  ;;  %10936 = vrcp.f32 %v4977_v8 }
0x1006   : > { %10546 = vmatprep.subr.msk.bf16.mxu0 %vm1368_vm3, %v13317_v34  ;;  %10938 = vrcp.f32 %v4968_v15  ;;  %v5018_v61 = vpack.c.bf16 %v5007_v26, %v5007_v26 }
0x1007   : > { %10075 = vmatprep.mubr.msk.bf16.mxu0 %vm1583_vm4, %v5017_v33  ;;  %10940 = vrcp.f32 %v4974_v31 }
0x1008   : > { %v4971_v16 = vpop.xlane.xlu1 %4970 }
0x1009   : > { %10942 = vrcp.f32 %v4971_v16 }
0x100c   : > { %10076 = vmatmul.mubr.msk.bf16.gmra.mxu0 %vm1583_vm4, %v5018_v61 }
0x100d   : > { %10098 = vmatpush3.bf16.xpose.msra.mxu0 %v5241_v45  ;;  %10103 = vmatprep.mubr.msk.bf16.mxu0 %vm1368_vm3, %v13339_v41 }
0x100e   : > { %10547 = vmatprep.subr.msk.bf16.mxu0 %vm1368_vm3, %v13326_v40  ;;  %v5235_v40 = vsel %vm1368_vm3, %v13451_v42, 0 }
0x1012   : > { %v10937_v0 = vpop.eup %10936 }
0x1013   : > { %v10939_v8 = vpop.eup %10938  ;;  %v5011_v12 = vmul.f32 %v10937_v0, %v13496_v58  ;;  %v5348_v58 = vsel %vm1368_vm3, %v13345_v13, 0 }
0x1014   : > { %v10941_v52 = vpop.eup %10940  ;;  %v5008_v34 = vmul.f32 %v10939_v8, %v13498_v54  ;;  %v5211_v54 = vpop.permute.xlu1 %5210 }
0x1015   : > { %10100 = vmatpush3.bf16.xpose.msra.mxu0 %v5238_v37  ;;  %v5010_v7 = vmul.f32 %v10941_v52, %v13492_v17  ;;  %v5345_v17 = vsel %vm1368_vm3, %v13541_v1, 0 }
0x1016   : > { %v10943_v11 = vpop.eup %10942  ;;  %10548 = vmatprep.subr.msk.bf16.mxu0 %vm1368_vm3, %v13451_v42 }
0x1017   : > { %v5009_v41 = vmul.f32 %v10943_v11, %v13504_v4  ;;  %v5020_v39 = vpack.c.bf16 %v5011_v12, %v5010_v7  ;;  %v5321_v4 = vpop.permute.xlu0 %5320 }
0x1018   : > { %v5342_v13 = vsel %vm1368_vm3, %v5321_v4, 0 }
0x1019   : > { %v5019_v25 = vpack.c.bf16 %v5009_v41, %v5008_v34 }
0x101b   : > { %10087 = vmatprep.mubr.msk.bf16.mxu1 %vm1583_vm4, %v5019_v25 }
0x101c   : > { %10088 = vmatmul.mubr.msk.bf16.vlgmr.msra.gmra.mxu1 %vm1583_vm4, %v5020_v39  ;;  %v9168_v39 = vld [vmem:[%s16125_s29 + $0x48] sm:$0xff] }
0x101d   : > { %10102 = vmatpush3.bf16.xpose.msra.mxu0 %v5235_v40  ;;  %10112 = vmatpush3.bf16.xpose.msra.mxu1 %v5348_v58  ;;  %v9166_v58 = vld [vmem:[%s16125_s29 + $0x38] sm:$0xff] }
0x101e   : > { %10550 = vmatprep.subr.msk.bf16.mxu1 %vm1368_vm3, %v13541_v1 }
0x1024   : > { %10104 = vmatmul.mubr.msk.bf16.vlgmr.msra.gmra.mxu0 %vm1368_vm3, %v13543_v47 }
0x1025   : > { %10107 = vmatprep.mubr.msk.bf16.mxu0 %vm1368_vm3, %v5211_v54  ;;  %10114 = vmatpush3.bf16.xpose.msra.mxu1 %v5345_v17 }
0x1026   : > { %10551 = vmatprep.subr.msk.bf16.mxu1 %vm1368_vm3, %v5321_v4  ;;  %v9169_v4 = vld [vmem:[%s16125_s29 + $0x50] sm:$0xff] }
0x102d   : > { %10116 = vmatpush3.bf16.xpose.msra.mxu1 %v5342_v13 }
0x103a   : > { %v4986_v42 = vpop.xlane.xlu0 %4985 }
0x103b   : > { %10944 = vrcp.f32 %v4986_v42 }
0x103d   : > { %v4983_v19 = vpop.xlane.xlu1 %4982 }
0x103e   : > { %10946 = vrcp.f32 %v4983_v19  ;;  %v4980_v22 = vpop.xlane.xlu0 %4979 }
0x103f   : > { %10948 = vrcp.f32 %v4980_v22  ;;  %v9167_v22 = vld [vmem:[%s16125_s29 + $0x40] sm:$0xff] }
0x1041   : > { %v5319_v62 = vpop.permute.xlu1 %5318 }
0x1042   : > { %v5213_v47 = vpop.permute.xlu0 %5212  ;;  %10552 = vmatprep.subr.msk.bf16.mxu1 %vm1368_vm3, %v5319_v62  ;;  %v5339_v1 = vsel %vm1368_vm3, %v5319_v62, 0 }
0x1043   : > { %10108 = vmatmul.mubr.msk.bf16.gmra.mxu0 %vm1368_vm3, %v5213_v47  ;;  %10118 = vmatpush3.bf16.xpose.msra.mxu1 %v5339_v1 }
0x1045   : > { %v5313_v23 = vpop.permute.xlu1 %5312 }
0x1046   : > { %v5311_v45 = vpop.permute.xlu0 %5310 }
0x1048   : > { %v10945_v31 = vpop.eup %10944 }
0x1049   : > { %v5317_v55 = vpop.permute.xlu1 %5316  ;;  %v5014_v44 = vmul.f32 %v10945_v31, %v13515_v29 }
0x104b   : > { %v10947_v32 = vpop.eup %10946  ;;  %v5022_v61 = vpack.c.bf16 %v5014_v44, %v5014_v44 }
0x104c   : > { %v10949_v9 = vpop.eup %10948  ;;  %v5013_v46 = vmul.f32 %v10947_v32, %v13517_v63  ;;  %v5315_v63 = vpop.permute.xlu0 %5314 }
0x104d   : > { %v5601_v15 = vpop.permute.xlu1 %5600  ;;  %v5012_v33 = vmul.f32 %v10949_v9, %v13521_v59 }
0x104e   : > { %10553 = vmatprep.subr.msk.bf16.mxu0 %vm1766_vm2, %v5601_v15  ;;  %v5618_v26 = vsel %vm1766_vm2, %v5601_v15, 0  ;;  %v9172_v15 = vld [vmem:[%s16125_s29 + $0x68] sm:$0xff] }
0x104f   : > { %10128 = vmatpush3.bf16.msra.mxu0 %v5618_v26  ;;  %v5021_v16 = vpack.c.bf16 %v5013_v46, %v5012_v33  ;;  %v9170_v26 = vld [vmem:[%s16125_s29 + $0x58] sm:$0xff] }
0x1051   : > { %10091 = vmatprep.mubr.msk.bf16.mxu1 %vm1583_vm4, %v5021_v16 }
0x1052   : > { %10092 = vmatmul.mubr.msk.bf16.gmra.mxu1 %vm1583_vm4, %v5022_v61 }
0x1053   : > { %10119 = vmatprep.mubr.msk.bf16.mxu1 %vm1368_vm3, %v5311_v45 }
0x105a   : > { %10120 = vmatmul.mubr.msk.bf16.vlgmr.msra.gmra.mxu1 %vm1368_vm3, %v5313_v23 }
0x105b   : > { %10123 = vmatprep.mubr.msk.bf16.mxu1 %vm1368_vm3, %v5315_v63 }
0x1062   : > { %10124 = vmatmul.mubr.msk.bf16.gmra.mxu1 %vm1368_vm3, %v5317_v55 }
0x10c4   : > { %v13603_v29 = vpop.f32.mrf.mxu0 }
0x10c6   : > { %v13605_v59 = vpop.f32.mrf.mxu0 }
0x10c8   : > { %v13607_v0 = vpop.f32.mrf.mxu0 }
0x10ca   : > { %v13611_v37 = vpop.f32.mrf.mxu0 }
0x10cc   : > { %v13613_v52 = vpop.f32.mrf.mxu0 }
0x10ce   : > { %v13615_v11 = vpop.f32.mrf.mxu0 }
0x10d0   : > { %v10078_v12 = vpop.f32.mrf.mxu0 }
0x10d2   : > { %v13623_v25 = vpop.f32.mrf.mxu0 }
0x10dc   : > { %v13617_v34 = vpop.f32.mrf.mxu1 }
0x10de   : > { %v13619_v41 = vpop.f32.mrf.mxu1 }
0x10e4   : > { %v10105_v40 = vpop.f32.mrf.mxu0 }
0x10e5   : > { %v5289_v54 = vadd.f32 %v10105_v40, %v9168_v39  ;;  %v9171_v40 = vld [vmem:[%s16125_s29 + $0x60] sm:$0xff] }
0x10e6   : > { %v5280_v17 = vpop.f32.mrf.mxu0 }
0x10e7   : > { %v13635_v13 = vadd.f32 %v13360_v60, %v5289_v54  ;;  %v5281_v42 = vadd.f32 %v9166_v58, %v5280_v17 }
0x10e8   : > { %v10106_v19 = vpop.f32.mrf.mxu0 }
0x10e9   : > { %v13641_v62 = vadd.f32 %v13360_v60, %v5281_v42  ;;  %v5292_v47 = vadd.f32 %v10106_v19, %v9169_v4  ;;  %v5434_v1 = vsel %vm1583_vm4, %v13635_v13, -inf }
0x10ea   : > { %5435 = vmax.xlane.f32.xlu0 %v5434_v1  ;;  %v5283_v23 = vpop.f32.mrf.mxu0 }
0x10eb   : > { %v5284_v31 = vadd.f32 %v9167_v22, %v5283_v23  ;;  %v13646_v55 = vadd.f32 %v13360_v60, %v5292_v47  ;;  %v5428_v32 = vsel %vm1583_vm4, %v13641_v62, -inf  ;;  %v13674_v47 = vpop.f32.mrf.mxu1 }
0x10ed   : > { %v13651_v9 = vadd.f32 %v13360_v60, %v5284_v31  ;;  %v5437_v44 = vsel %vm1583_vm4, %v13646_v55, -inf }
0x10ee   : > { %5429 = vmax.xlane.f32.xlu0 %v5428_v32  ;;  %v13683_v32 = vpop.f32.mrf.mxu1 }
0x10ef   : > { %v5431_v46 = vsel %vm1583_vm4, %v13651_v9, -inf }
0x10f0   : > { %5432 = vmax.xlane.f32.xlu1 %v5431_v46 }
0x10f2   : > { %5438 = vmax.xlane.f32.xlu0 %v5437_v44 }
0x1103   : > { %v10109_v33 = vpop.f32.mrf.mxu0 }
0x1104   : > { %v5305_v16 = vadd.f32 %v10109_v33, %v9172_v15 }
0x1105   : > { %v5296_v61 = vpop.f32.mrf.mxu0 }
0x1106   : > { %v13664_v45 = vadd.f32 %v13360_v60, %v5305_v16  ;;  %v5297_v63 = vadd.f32 %v9170_v26, %v5296_v61 }
0x1107   : > { %v10110_v12 = vpop.f32.mrf.mxu0 }
0x1108   : > { %v13670_v54 = vadd.f32 %v13360_v60, %v5297_v63  ;;  %v5446_v17 = vsel %vm1583_vm4, %v13664_v45, -inf }
0x1109   : > { %5447 = vmax.xlane.f32.xlu1 %v5446_v17  ;;  %v5299_v42 = vpop.f32.mrf.mxu0 }
0x110a   : > { %v5300_v19 = vadd.f32 %v9171_v40, %v5299_v42  ;;  %v5440_v1 = vsel %vm1583_vm4, %v13670_v54, -inf }
0x110c   : > { %v13679_v23 = vadd.f32 %v13360_v60, %v5300_v19 }
0x110d   : > { %5441 = vmax.xlane.f32.xlu1 %v5440_v1 }
0x110e   : > { %v5443_v31 = vsel %vm1583_vm4, %v13679_v23, -inf }
0x110f   : > { %5444 = vmax.xlane.f32.xlu0 %v5443_v31 }
0x1112   : > { %v13685_v46 = vpop.f32.mrf.mxu1 }
0x1114   : > { %v13687_v44 = vpop.f32.mrf.mxu1 }
0x1116   : > { %v10094_v16 = vpop.f32.mrf.mxu1 }
0x1118   : > { %v13691_v61 = vpop.f32.mrf.mxu1 }
0x111a   : > { %v10121_v63 = vpop.f32.mrf.mxu1 }
0x111b   : > { %v5393_v60 = vadd.f32 %v10121_v63, %v9168_v39 }
0x111c   : > { %v5384_v12 = vpop.f32.mrf.mxu1 }
0x111d   : > { %v13694_v17 = vadd.f32 %v13418_v43, %v5393_v60  ;;  %v5385_v42 = vadd.f32 %v9166_v58, %v5384_v12 }
0x111e   : > { %v10122_v19 = vpop.f32.mrf.mxu1 }
0x111f   : > { %v13697_v1 = vadd.f32 %v13418_v43, %v5385_v42  ;;  %v5396_v31 = vadd.f32 %v10122_v19, %v9169_v4  ;;  %v5455_v7 = vsel %vm1583_vm4, %v13694_v17, -inf }
0x1120   : > { %5456 = vmax.xlane.f32.xlu0 %v5455_v7  ;;  %v5387_v33 = vpop.f32.mrf.mxu1 }
0x1121   : > { %v13702_v16 = vadd.f32 %v13418_v43, %v5396_v31  ;;  %v5388_v8 = vadd.f32 %v9167_v22, %v5387_v33  ;;  %v5449_v4 = vsel %vm1583_vm4, %v13697_v1, -inf }
0x1122   : > { %v10125_v39 = vpop.f32.mrf.mxu1 }
0x1123   : > { %v13705_v63 = vadd.f32 %v13418_v43, %v5388_v8  ;;  %v5409_v60 = vadd.f32 %v10125_v39, %v9172_v15  ;;  %v5458_v58 = vsel %vm1583_vm4, %v13702_v16, -inf }
0x1124   : > { %5459 = vmax.xlane.f32.xlu1 %v5458_v58  ;;  %5450 = vmax.xlane.f32.xlu0 %v5449_v4  ;;  %v5400_v12 = vpop.f32.mrf.mxu1 }
0x1125   : > { %v13712_v7 = vadd.f32 %v13418_v43, %v5409_v60  ;;  %v5401_v42 = vadd.f32 %v9170_v26, %v5400_v12  ;;  %v5452_v8 = vsel %vm1583_vm4, %v13705_v63, -inf }
0x1126   : > { %v10126_v19 = vpop.f32.mrf.mxu1 }
0x1127   : > { %v13715_v22 = vadd.f32 %v13418_v43, %v5401_v42  ;;  %v5467_v15 = vsel %vm1583_vm4, %v13712_v7, -inf }
0x1128   : > { %5453 = vmax.xlane.f32.xlu1 %v5452_v8  ;;  %5468 = vmax.xlane.f32.xlu0 %v5467_v15  ;;  %v5403_v26 = vpop.f32.mrf.mxu1 }
0x1129   : > { %v5461_v33 = vsel %vm1583_vm4, %v13715_v22, -inf  ;;  %v5404_v31 = vadd.f32 %v9171_v40, %v5403_v26 }
0x112b   : > { %v13728_v39 = vadd.f32 %v13418_v43, %v5404_v31 }
0x112c   : > { %5462 = vmax.xlane.f32.xlu0 %v5461_v33 }
0x112d   : > { %v5464_v60 = vsel %vm1583_vm4, %v13728_v39, -inf }
0x1139   : > { %5596 = vrot.lane.b32.xlu1 %v13162_v36, %s11308_s21 }
0x1142   : > { %5598 = vrot.lane.b32.xlu0 %v13170_v18, %s11308_s21 }
0x115d   : > { %5465 = vmax.xlane.f32.xlu1 %v5464_v60 }
0x116e   : > { %5594 = vrot.lane.b32.xlu1 %v13152_v5, %s11308_s21 }
0x1173   : > { %v5436_v58 = vpop.xlane.xlu0 %5435 }
0x1174   : > { %v5472_v12 = vsub.f32 %v13635_v13, %v5436_v58 }
0x1176   : > { %v5488_v15 = vmul.f32 1.442695, %v5472_v12 }
0x1177   : > { %v5430_v4 = vpop.xlane.xlu0 %5429 }
0x1178   : > { %v5470_v43 = vsub.f32 %v13641_v62, %v5430_v4 }
0x1179   : > { %v5433_v42 = vpop.xlane.xlu1 %5432 }
0x117a   : > { %v5471_v19 = vsub.f32 %v13651_v9, %v5433_v42  ;;  %v5484_v31 = vmul.f32 1.442695, %v5470_v43 }
0x117b   : > { %v5439_v8 = vpop.xlane.xlu0 %5438 }
0x117c   : > { %v5473_v40 = vsub.f32 %v13646_v55, %v5439_v8  ;;  %v5486_v33 = vmul.f32 1.442695, %v5471_v19 }
0x117e   : > { %v5490_v26 = vmul.f32 1.442695, %v5473_v40 }
0x1180   : > { %10950 = vpow2.f32 %v5490_v26 }
0x1181   : > { %10952 = vpow2.f32 %v5488_v15 }
0x1182   : > { %10954 = vpow2.f32 %v5486_v33 }
0x1183   : > { %10956 = vpow2.f32 %v5484_v31 }
0x118d   : > { %v13738_v60 = vpop.eup %10950 }
0x118e   : > { %v13740_v24 = vpop.eup %10952  ;;  %v5521_v13 = vsel %vm1583_vm4, %v13738_v60, 0.0 }
0x118f   : > { %v13744_v9 = vpop.eup %10954  ;;  %5522 = vadd.xlane.f32.xlu0 %v5521_v13  ;;  %v5518_v62 = vsel %vm1583_vm4, %v13740_v24, 0.0 }
0x1190   : > { %v13748_v55 = vpop.eup %10956  ;;  %v5515_v4 = vsel %vm1583_vm4, %v13744_v9, 0.0 }
0x1191   : > { %v5512_v19 = vsel %vm1583_vm4, %v13748_v55, 0.0 }
0x1192   : > { %v5448_v58 = vpop.xlane.xlu1 %5447  ;;  %5519 = vadd.xlane.f32.xlu1 %v5518_v62 }
0x1193   : > { %v5476_v12 = vsub.f32 %v13664_v45, %v5448_v58  ;;  %5516 = vadd.xlane.f32.xlu0 %v5515_v4 }
0x1195   : > { %v5496_v42 = vmul.f32 1.442695, %v5476_v12 }
0x1196   : > { %v5442_v8 = vpop.xlane.xlu1 %5441  ;;  %5513 = vadd.xlane.f32.xlu1 %v5512_v19 }
0x1197   : > { %10958 = vpow2.f32 %v5496_v42  ;;  %v5474_v40 = vsub.f32 %v13670_v54, %v5442_v8 }
0x1198   : > { %v5445_v15 = vpop.xlane.xlu0 %5444 }
0x1199   : > { %v5492_v43 = vmul.f32 1.442695, %v5474_v40  ;;  %v5475_v33 = vsub.f32 %v13679_v23, %v5445_v15 }
0x119b   : > { %10960 = vpow2.f32 %v5492_v43  ;;  %v5494_v26 = vmul.f32 1.442695, %v5475_v33 }
0x119d   : > { %10962 = vpow2.f32 %v5494_v26 }
0x11a4   : > { %v13757_v31 = vpop.eup %10958 }
0x11a5   : > { %v5530_v45 = vsel %vm1583_vm4, %v13757_v31, 0.0 }
0x11a6   : > { %5531 = vadd.xlane.f32.xlu0 %v5530_v45 }
0x11a8   : > { %v13761_v13 = vpop.eup %10960 }
0x11a9   : > { %v5457_v62 = vpop.xlane.xlu0 %5456  ;;  %v5524_v58 = vsel %vm1583_vm4, %v13761_v13, 0.0 }
0x11aa   : > { %v13765_v54 = vpop.eup %10962  ;;  %v5479_v4 = vsub.f32 %v13694_v17, %v5457_v62  ;;  %5525 = vadd.xlane.f32.xlu0 %v5524_v58 }
0x11ab   : > { %v5527_v19 = vsel %vm1583_vm4, %v13765_v54, 0.0 }
0x11ac   : > { %v5502_v23 = vmul.f32 1.442695, %v5479_v4 }
0x11ad   : > { %v5460_v12 = vpop.xlane.xlu1 %5459  ;;  %v5451_v42 = vpop.xlane.xlu0 %5450 }
0x11ae   : > { %10964 = vpow2.f32 %v5502_v23  ;;  %v5480_v8 = vsub.f32 %v13702_v16, %v5460_v12  ;;  %v5477_v40 = vsub.f32 %v13697_v1, %v5451_v42  ;;  %5528 = vadd.xlane.f32.xlu0 %v5527_v19 }
0x11b0   : > { %v5498_v15 = vmul.f32 1.442695, %v5477_v40  ;;  %v5504_v43 = vmul.f32 1.442695, %v5480_v8 }
0x11b1   : > { %v5454_v33 = vpop.xlane.xlu1 %5453  ;;  %v5469_v26 = vpop.xlane.xlu0 %5468 }
0x11b2   : > { %v5478_v45 = vsub.f32 %v13705_v63, %v5454_v33  ;;  %v5483_v17 = vsub.f32 %v13712_v7, %v5469_v26  ;;  %10966 = vpow2.f32 %v5498_v15 }
0x11b3   : > { %10968 = vpow2.f32 %v5504_v43 }
0x11b4   : > { %v5500_v62 = vmul.f32 1.442695, %v5478_v45  ;;  %v5510_v58 = vmul.f32 1.442695, %v5483_v17 }
0x11b5   : > { %v5463_v4 = vpop.xlane.xlu0 %5462  ;;  %v5597_v42 = vpop.permute.xlu1 %5596 }
0x11b6   : > { %10970 = vpow2.f32 %v5500_v62  ;;  %v5481_v23 = vsub.f32 %v13715_v22, %v5463_v4 }
0x11b7   : > { %10972 = vpow2.f32 %v5510_v58 }
0x11b8   : > { %v5506_v16 = vmul.f32 1.442695, %v5481_v23 }
0x11b9   : > { %v5599_v1 = vpop.permute.xlu0 %5598 }
0x11ba   : > { %10129 = vmatprep.subr.bf16.mxu0 %v5599_v1  ;;  %10974 = vpow2.f32 %v5506_v16 }
0x11bb   : > { %v13775_v12 = vpop.eup %10964  ;;  %10130 = vmatpush3.bf16.msra.mxu0 %v5599_v1 }
0x11bc   : > { %10131 = vmatprep.subr.bf16.mxu0 %v5597_v42  ;;  %v5539_v63 = vsel %vm1583_vm4, %v13775_v12, 0.0 }
0x11bd   : > { %5540 = vadd.xlane.f32.xlu1 %v5539_v63 }
0x11bf   : > { %10132 = vmatpush3.bf16.msra.mxu0 %v5597_v42  ;;  %v13779_v7 = vpop.eup %10966 }
0x11c0   : > { %v5533_v22 = vsel %vm1583_vm4, %v13779_v7, 0.0  ;;  %v13783_v19 = vpop.eup %10968 }
0x11c1   : > { %5534 = vadd.xlane.f32.xlu1 %v5533_v22  ;;  %v5542_v43 = vsel %vm1583_vm4, %v13783_v19, 0.0 }
0x11c3   : > { %v13785_v8 = vpop.eup %10970 }
0x11c4   : > { %v5536_v40 = vsel %vm1583_vm4, %v13785_v8, 0.0  ;;  %v13789_v15 = vpop.eup %10972 }
0x11c5   : > { %5537 = vadd.xlane.f32.xlu0 %v5536_v40  ;;  %5543 = vadd.xlane.f32.xlu1 %v5542_v43  ;;  %v5551_v33 = vsel %vm1583_vm4, %v13789_v15, 0.0 }
0x11c7   : > { %v13795_v26 = vpop.eup %10974 }
0x11c8   : > { %v5545_v45 = vsel %vm1583_vm4, %v13795_v26, 0.0 }
0x11c9   : > { %5552 = vadd.xlane.f32.xlu0 %v5551_v33 }
0x11cd   : > { %5546 = vadd.xlane.f32.xlu0 %v5545_v45 }
0x11d6   : > { %5692 = vrot.lane.b32.xlu1 %v13225_v51, %s11308_s21 }
0x11da   : > { %5690 = vrot.lane.b32.xlu1 %v13211_v49, %s11308_s21 }
0x11de   : > { %5688 = vrot.lane.b32.xlu1 %v13199_v27, %s11308_s21 }
0x11e2   : > { %6146 = vrot.lane.b32.xlu1 %v13234_v21, %s11310_s12 }
0x11e6   : > { %v5466_v17 = vpop.xlane.xlu1 %5465  ;;  %6144 = vrot.lane.b32.xlu1 %v13222_v10, %s11310_s12 }
0x11e7   : > { %v5482_v62 = vsub.f32 %v13728_v39, %v5466_v17 }
0x11e9   : > { %v5508_v58 = vmul.f32 1.442695, %v5482_v62 }
0x11ea   : > { %v5595_v4 = vpop.permute.xlu1 %5594  ;;  %6140 = vrot.lane.b32.xlu1 %v13196_v28, %s11310_s12 }
0x11eb   : > { %10976 = vpow2.f32 %v5508_v58  ;;  %10133 = vmatprep.subr.bf16.mxu0 %v5595_v4 }
0x11ec   : > { %10134 = vmatpush3.bf16.msra.mxu0 %v5595_v4 }
0x11ed   : > { %10159 = vmatprep.subr.bf16.mxu0 %v16091_v57 }
0x11ee   : > { %6134 = vrot.lane.b32.xlu1 %v13241_v35, %s11311_s8 }
0x11f2   : > { %6138 = vrot.lane.b32.xlu1 %v13234_v21, %s11311_s8 }
0x11f6   : > { %6040 = vrot.lane.b32.xlu1 %v13167_v2, %s11310_s12 }
0x11f8   : > { %v13819_v39 = vpop.eup %10976 }
0x11f9   : > { %v5548_v23 = vsel %vm1583_vm4, %v13819_v39, 0.0 }
0x11fa   : > { %5549 = vadd.xlane.f32.xlu0 %v5548_v23  ;;  %6036 = vrot.lane.b32.xlu1 %v13156_v3, %s11310_s12 }
0x11fe   : > { %6030 = vrot.lane.b32.xlu1 %v13186_v56, %s11311_s8 }
0x1202   : > { %6034 = vrot.lane.b32.xlu1 %v13176_v6, %s11311_s8 }
0x1206   : > { %6506 = vrot.lane.b32.xlu1 %v13225_v51, %s11311_s8 }
0x120a   : > { %6504 = vrot.lane.b32.xlu1 %v13211_v49, %s11311_s8 }
0x120e   : > { %6754 = vrot.lane.b32.xlu1 %v13176_v6, %s11313_s25 }
0x1210   : > { %5694 = vrot.lane.b32.xlu0 %v13309_v48, %s11308_s21 }
0x1212   : > { %6752 = vrot.lane.b32.xlu1 %v13167_v2, %s11313_s25 }
0x1214   : > { %6142 = vrot.lane.b32.xlu0 %v13241_v35, %s11310_s12 }
0x1216   : > { %6748 = vrot.lane.b32.xlu1 %v13156_v3, %s11313_s25 }
0x1218   : > { %6132 = vrot.lane.b32.xlu0 %v13196_v28, %s11311_s8  ;;  %v5523_v16 = vpop.xlane.xlu0 %5522 }
0x121a   : > { %6858 = vrot.lane.b32.xlu1 %v13234_v21, %s11313_s25 }
0x121b   : > { %v5520_v1 = vpop.xlane.xlu1 %5519 }
0x121c   : > { %6136 = vrot.lane.b32.xlu0 %v13222_v10, %s11311_s8  ;;  %v5517_v42 = vpop.xlane.xlu0 %5516  ;;  %10978 = vrcp.f32 %v5520_v1 }
0x121d   : > { %10980 = vrcp.f32 %v5517_v42 }
0x121e   : > { %10982 = vrcp.f32 %v5523_v16  ;;  %v10654_v16 = vld [vmem:[%s11529_s24 + $0x8] sm:$0xff]  }
0x121f   : > { %v5514_v63 = vpop.xlane.xlu1 %5513 }
0x1220   : > { %10984 = vrcp.f32 %v5514_v63  ;;  %6042 = vrot.lane.b32.xlu0 %v13176_v6, %s11310_s12 }
0x1224   : > { %6038 = vrot.lane.b32.xlu0 %v13186_v56, %s11310_s12  ;;  %s16220_s12 = sld [smem:[#allocation61_spill]] }
0x1228   : > { %6028 = vrot.lane.b32.xlu0 %v13156_v3, %s11311_s8 }
0x1229   : > { %v10979_v22 = vpop.eup %10978 }
0x122a   : > { %v10981_v40 = vpop.eup %10980  ;;  %v5570_v45 = vmul.f32 %v10979_v22, %v13740_v24 }
0x122b   : > { %v10983_v43 = vpop.eup %10982  ;;  %v5569_v62 = vmul.f32 %v10981_v40, %v13744_v9 }
0x122c   : > { %6032 = vrot.lane.b32.xlu0 %v13167_v2, %s11311_s8  ;;  %v5571_v58 = vmul.f32 %v10983_v43, %v13738_v60 }
0x122d   : > { %v10985_v33 = vpop.eup %10984 }
0x122e   : > { %v5568_v17 = vmul.f32 %v10985_v33, %v13748_v55  ;;  %v5583_v1 = vpack.c.bf16 %v5571_v58, %v5570_v45 }
0x122f   : > { %v5532_v4 = vpop.xlane.xlu0 %5531 }
0x1230   : > { %6508 = vrot.lane.b32.xlu0 %v13309_v48, %s11311_s8  ;;  %v5582_v23 = vpack.c.bf16 %v5569_v62, %v5568_v17  ;;  %10986 = vrcp.f32 %v5532_v4 }
0x1232   : > { %10135 = vmatprep.mubr.msk.bf16.mxu0 %vm1583_vm4, %v5582_v23 }
0x1233   : > { %10136 = vmatmul.mubr.msk.bf16.vlgmr.msra.gmra.mxu0 %vm1583_vm4, %v5583_v1  ;;  %v5526_v42 = vpop.xlane.xlu0 %5525 }
0x1234   : > { %6502 = vrot.lane.b32.xlu0 %v13199_v27, %s11311_s8  ;;  %10160 = vmatpush3.bf16.msra.mxu0 %v10654_v16  ;;  %10988 = vrcp.f32 %v5526_v42 }
0x1237   : > { %v5529_v24 = vpop.xlane.xlu0 %5528 }
0x1238   : > { %10990 = vrcp.f32 %v5529_v24  ;;  %6750 = vrot.lane.b32.xlu0 %v13186_v56, %s11313_s25 }
0x123c   : > { %6740 = vrot.lane.b32.xlu0 %v13156_v3, %s11314_s1 }
0x123d   : > { %v10987_v60 = vpop.eup %10986 }
0x123e   : > { %v5574_v63 = vmul.f32 %v10987_v60, %v13757_v31 }
0x1240   : > { %v5585_v45 = vpack.c.bf16 %v5574_v63, %v5574_v63 }
0x1241   : > { %v10989_v9 = vpop.eup %10988 }
0x1242   : > { %v5572_v40 = vmul.f32 %v10989_v9, %v13761_v13 }
0x1245   : > { %v10991_v55 = vpop.eup %10990 }
0x1246   : > { %v5541_v22 = vpop.xlane.xlu1 %5540  ;;  %v5573_v43 = vmul.f32 %v10991_v55, %v13765_v54 }
0x1248   : > { %v5584_v33 = vpack.c.bf16 %v5573_v43, %v5572_v40 }
0x124a   : > { %10139 = vmatprep.mubr.msk.bf16.mxu0 %vm1583_vm4, %v5584_v33  ;;  %v5535_v17 = vpop.xlane.xlu1 %5534 }
0x124b   : > { %10140 = vmatmul.mubr.msk.bf16.gmra.mxu0 %vm1583_vm4, %v5585_v45  ;;  %10992 = vrcp.f32 %v5535_v17 }
0x124c   : > { %10161 = vmatprep.mubr.msk.bf16.mxu0 %vm11312_vm5, %v16091_v57 }
0x124e   : > { %v5538_v3 = vpop.xlane.xlu0 %5537  ;;  %v5544_v23 = vpop.xlane.xlu1 %5543 }
0x124f   : > { %10994 = vrcp.f32 %v5538_v3 }
0x1250   : > { %10996 = vrcp.f32 %v5544_v23 }
0x1251   : > { %10998 = vrcp.f32 %v5541_v22 }
0x1252   : > { %v5553_v4 = vpop.xlane.xlu0 %5552  ;;  %v5693_v42 = vpop.permute.xlu1 %5692 }
0x1256   : > { %v5547_v16 = vpop.xlane.xlu0 %5546 }
0x1258   : > { %v10993_v62 = vpop.eup %10992 }
0x1259   : > { %v5575_v58 = vmul.f32 %v10993_v62, %v13779_v7  ;;  %v5691_v7 = vpop.permute.xlu1 %5690 }
0x125c   : > { %v10995_v31 = vpop.eup %10994 }
0x125d   : > { %v5576_v13 = vmul.f32 %v10995_v31, %v13785_v8  ;;  %v10997_v9 = vpop.eup %10996  ;;  %v5689_v40 = vpop.permute.xlu1 %5688  ;;  %v10655_v31 = vld [vmem:[%s11529_s24] sm:$0xff]  }
0x125e   : > { %v10999_v63 = vpop.eup %10998  ;;  %v5578_v33 = vmul.f32 %v10997_v9, %v13783_v19 }
0x125f   : > { %v5586_v54 = vpack.c.bf16 %v5576_v13, %v5575_v58  ;;  %v5577_v3 = vmul.f32 %v10999_v63, %v13775_v12 }
0x1261   : > { %10151 = vmatprep.mubr.msk.bf16.mxu1 %vm1583_vm4, %v5586_v54  ;;  %v5587_v58 = vpack.c.bf16 %v5578_v33, %v5577_v3  ;;  %v6147_v19 = vpop.permute.xlu1 %6146 }
0x1262   : > { %v6170_v23 = vsel %vm1368_vm3, %v6147_v19, 0 }
0x1283   : > { %v5550_v1 = vpop.xlane.xlu0 %5549 }
0x1284   : > { %11000 = vrcp.f32 %v5550_v1  ;;  %v16126_v1 = vpack.c.bf16 %v13607_v0, %v13603_v29 }
0x1285   : > { %11002 = vrcp.f32 %v5547_v16  ;;  %v6145_v16 = vpop.permute.xlu1 %6144 }
0x1286   : > { %11004 = vrcp.f32 %v5553_v4 }
0x1287   : > { %v5695_v24 = vpop.permute.xlu0 %5694 }
0x1288   : > { %10554 = vmatprep.subr.msk.bf16.mxu1 %vm1766_vm2, %v5695_v24  ;;  %v5712_v60 = vsel %vm1766_vm2, %v5695_v24, 0  ;;  %v5191_v24 = vpack.c.bf16 %v13623_v25, %v13615_v11 }
0x1289   : > { %10144 = vmatpush3.bf16.msra.mxu1 %v5712_v60 }
0x128a   : > { %10145 = vmatprep.subr.bf16.mxu1 %v5693_v42 }
0x128b   : > { %v6143_v8 = vpop.permute.xlu0 %6142 }
0x128c   : > { %v6164_v29 = vsel %vm1368_vm3, %v6143_v8, 0 }
0x128d   : > { %10146 = vmatpush3.bf16.msra.mxu1 %v5693_v42 }
0x128e   : > { %10147 = vmatprep.subr.bf16.mxu1 %v5691_v7 }
0x128f   : > { %v13884_v55 = vpop.permute.xlu0 %6132 }
0x1291   : > { %v11001_v22 = vpop.eup %11000  ;;  %10148 = vmatpush3.bf16.msra.mxu1 %v5691_v7  ;;  %v16127_v7 = vpack.c.bf16 %v13619_v41, %v13613_v52  ;;  %v16128_v41 = vpack.c.bf16 %v13687_v44, %v13674_v47 }
0x1292   : > { %v11003_v43 = vpop.eup %11002  ;;  %10149 = vmatprep.subr.bf16.mxu1 %v5689_v40  ;;  %v5580_v17 = vmul.f32 %v11001_v22, %v13819_v39  ;;  %v5189_v39 = vpack.c.bf16 %v13611_v37, %v13605_v59  ;;  %v6167_v59 = vsel %vm1368_vm3, %v6145_v16, 0  ;;  %v6141_v37 = vpop.permute.xlu1 %6140 }
0x1293   : > { %v13887_v45 = vpop.permute.xlu0 %6136  ;;  %v5579_v62 = vmul.f32 %v11003_v43, %v13795_v26  ;;  %v11005_v13 = vpop.eup %11004  ;;  %v6161_v11 = vsel %vm1368_vm3, %v6141_v37, 0 }
0x1294   : > { %v5581_v12 = vmul.f32 %v11005_v13, %v13789_v15 }
0x1295   : > { %10150 = vmatpush3.bf16.msra.mxu1 %v5689_v40  ;;  %v5588_v4 = vpack.c.bf16 %v5580_v17, %v5579_v62 }
0x1296   : > { %10189 = vmatprep.subr.bf16.mxu1 %v16091_v57  ;;  %v5589_v26 = vpack.c.bf16 %v5581_v12, %v5581_v12  ;;  %v6135_v0 = vpop.permute.xlu1 %6134 }
0x1297   : > { %v13894_v54 = vpop.permute.xlu0 %6042 }
0x1298   : > { %10152 = vmatmul.mubr.msk.bf16.vlgmr.msra.gmra.mxu1 %vm1583_vm4, %v5587_v58  ;;  %10555 = vmatprep.subr.msk.bf16.mxu0 %vm1368_vm3, %v13894_v54  ;;  %v6066_v3 = vsel %vm1368_vm3, %v13894_v54, 0 }
0x1299   : > { %10155 = vmatprep.mubr.msk.bf16.mxu1 %vm1583_vm4, %v5588_v4  ;;  %10190 = vmatpush3.bf16.msra.mxu1 %v10655_v31 }
0x129a   : > { %10559 = vmatprep.subr.msk.bf16.mxu1 %vm1368_vm3, %v6147_v19  ;;  %v6139_v25 = vpop.permute.xlu1 %6138 }
0x129b   : > { %v13912_v15 = vpop.permute.xlu0 %6038 }
0x129c   : > { %v6060_v13 = vsel %vm1368_vm3, %v13912_v15, 0 }
0x129e   : > { %v6041_v63 = vpop.permute.xlu1 %6040 }
0x129f   : > { %v13922_v42 = vpop.permute.xlu0 %6028  ;;  %v6063_v31 = vsel %vm1368_vm3, %v6041_v63, 0 }
0x12a0   : > { %10156 = vmatmul.mubr.msk.bf16.gmra.mxu1 %vm1583_vm4, %v5589_v26 }
0x12a1   : > { %10191 = vmatprep.mubr.msk.bf16.mxu1 %vm11312_vm5, %v16091_v57 }
0x12a2   : > { %v6037_v52 = vpop.permute.xlu1 %6036 }
0x12a3   : > { %v13931_v60 = vpop.permute.xlu0 %6032  ;;  %v6057_v26 = vsel %vm1368_vm3, %v6037_v52, 0 }
0x12a6   : > { %v13952_v22 = vpop.permute.xlu1 %6030 }
0x12a7   : > { %v6509_v9 = vpop.permute.xlu0 %6508 }
0x12a8   : > { %10192 = vmatmul.mubr.msk.bf16.vlgmr.msra.gmra.mxu1 %vm1368_vm3, %v5189_v39  ;;  %v6526_v47 = vsel %vm1766_vm2, %v6509_v9, 0 }
0x12a9   : > { %10236 = vmatpush3.bf16.xpose.msra.mxu1 %v6170_v23  ;;  %10195 = vmatprep.mubr.msk.bf16.mxu1 %vm11312_vm5, %v16091_v57 }
0x12aa   : > { %10560 = vmatprep.subr.msk.bf16.mxu1 %vm1368_vm3, %v6145_v16 }
0x12b0   : > { %10196 = vmatmul.mubr.msk.bf16.gmra.mxu1 %vm1368_vm3, %v16126_v1 }
0x12b1   : > { %10238 = vmatpush3.bf16.xpose.msra.mxu1 %v6167_v59  ;;  %10199 = vmatprep.mubr.msk.bf16.mxu1 %vm11312_vm5, %v16091_v57 }
0x12b2   : > { %10561 = vmatprep.subr.msk.bf16.mxu1 %vm1368_vm3, %v6143_v8  ;;  %v5193_v8 = vpack.c.bf16 %v13617_v34, %v13683_v32  ;;  %v5195_v34 = vpack.c.bf16 %v13685_v46, %v13691_v61  ;;  %v13957_v32 = vpop.permute.xlu1 %6034  ;;  %v6503_v46 = vpop.permute.xlu0 %6502 }
0x12b6   : > { %v6507_v40 = vpop.permute.xlu1 %6506 }
0x12b8   : > { %10200 = vmatmul.mubr.msk.bf16.gmra.mxu1 %vm1368_vm3, %v5191_v24 }
0x12b9   : > { %10240 = vmatpush3.bf16.xpose.msra.mxu1 %v6164_v29  ;;  %10203 = vmatprep.mubr.msk.bf16.mxu1 %vm11312_vm5, %v16091_v57 }
0x12ba   : > { %10562 = vmatprep.subr.msk.bf16.mxu1 %vm1368_vm3, %v6141_v37  ;;  %v6505_v44 = vpop.permute.xlu1 %6504 }
0x12be   : > { %v13966_v61 = vpop.permute.xlu1 %6754 }
0x12c0   : > { %10204 = vmatmul.mubr.msk.bf16.gmra.mxu1 %vm1368_vm3, %v16127_v7 }
0x12c1   : > { %10242 = vmatpush3.bf16.xpose.msra.mxu1 %v6161_v11  ;;  %10207 = vmatprep.mubr.msk.bf16.mxu1 %vm11312_vm5, %v16091_v57 }
0x12c2   : > { %10564 = vmatprep.subr.msk.bf16.mxu1 %vm1766_vm2, %v6509_v9 }
0x12c8   : > { %10208 = vmatmul.mubr.msk.bf16.gmra.mxu1 %vm1368_vm3, %v5193_v8 }
0x12c9   : > { %10211 = vmatprep.mubr.msk.bf16.mxu1 %vm11312_vm5, %v16091_v57 }
0x12d0   : > { %10212 = vmatmul.mubr.msk.bf16.gmra.mxu1 %vm1368_vm3, %v16128_v41 }
0x12d1   : > { %10215 = vmatprep.mubr.msk.bf16.mxu1 %vm11312_vm5, %v16091_v57 }
0x12d8   : > { %10216 = vmatmul.mubr.msk.bf16.gmra.mxu1 %vm1368_vm3, %v5195_v34 }
0x12d9   : > { %10243 = vmatprep.mubr.msk.bf16.mxu1 %vm1368_vm3, %v13884_v55 }
0x12e0   : > { %10244 = vmatmul.mubr.msk.bf16.vlgmr.msra.gmra.mxu1 %vm1368_vm3, %v6135_v0 }
0x12e1   : > { %10268 = vmatpush3.bf16.msra.mxu1 %v6526_v47  ;;  %10247 = vmatprep.mubr.msk.bf16.mxu1 %vm1368_vm3, %v13887_v45 }
0x12e2   : > { %10269 = vmatprep.subr.bf16.mxu1 %v6507_v40 }
0x12e5   : > { %10270 = vmatpush3.bf16.msra.mxu1 %v6507_v40 }
0x12e6   : > { %10271 = vmatprep.subr.bf16.mxu1 %v6505_v44 }
0x12e8   : > { %10248 = vmatmul.mubr.msk.bf16.gmra.mxu1 %vm1368_vm3, %v6139_v25 }
0x12e9   : > { %10272 = vmatpush3.bf16.msra.mxu1 %v6505_v44 }
0x12ea   : > { %10273 = vmatprep.subr.bf16.mxu1 %v6503_v46 }
0x12ed   : > { %10274 = vmatpush3.bf16.msra.mxu1 %v6503_v46 }
0x12ee   : > { %10565 = vmatprep.subr.msk.bf16.mxu1 %vm1368_vm3, %v13966_v61 }
0x12f3   : > { %v10137_v55 = vpop.f32.mrf.mxu0 }
0x12f5   : > { %v5654_v43 = vpop.f32.mrf.mxu0 }
0x12f7   : > { %v10138_v33 = vpop.f32.mrf.mxu0 }
0x12f8   : > { %v5779_v62 = vpack.c.bf16 %v10138_v33, %v10137_v55 }
0x12f9   : > { %v5657_v17 = vpop.f32.mrf.mxu0 }
0x12fa   : > { %v5778_v45 = vpack.c.bf16 %v5657_v17, %v5654_v43 }
0x12fc   : > { %10162 = vmatmul.mubr.msk.bf16.vlgmr.msra.gmra.mxu0 %vm1368_vm3, %v5778_v45 }
0x12fd   : > { %10220 = vmatpush3.bf16.xpose.msra.mxu0 %v6066_v3  ;;  %10165 = vmatprep.mubr.msk.bf16.mxu0 %vm11312_vm5, %v16091_v57 }
0x12fe   : > { %10556 = vmatprep.subr.msk.bf16.mxu0 %vm1368_vm3, %v6041_v63 }
0x1304   : > { %10166 = vmatmul.mubr.msk.bf16.gmra.mxu0 %vm1368_vm3, %v5779_v62 }
0x1305   : > { %10222 = vmatpush3.bf16.xpose.msra.mxu0 %v6063_v31  ;;  %10169 = vmatprep.mubr.msk.bf16.mxu0 %vm11312_vm5, %v16091_v57 }
0x1306   : > { %10557 = vmatprep.subr.msk.bf16.mxu0 %vm1368_vm3, %v13912_v15 }
0x130b   : > { %v10141_v58 = vpop.f32.mrf.mxu0 }
0x130d   : > { %10224 = vmatpush3.bf16.xpose.msra.mxu0 %v6060_v13  ;;  %v5670_v54 = vpop.f32.mrf.mxu0 }
0x130e   : > { %10558 = vmatprep.subr.msk.bf16.mxu0 %vm1368_vm3, %v6037_v52 }
0x130f   : > { %v10142_v4 = vpop.f32.mrf.mxu0 }
0x1311   : > { %v5673_v19 = vpop.f32.mrf.mxu0 }
0x1312   : > { %v5780_v12 = vpack.c.bf16 %v5673_v19, %v5670_v54 }
0x1314   : > { %10170 = vmatmul.mubr.msk.bf16.gmra.mxu0 %vm1368_vm3, %v5780_v12  ;;  %v14038_v12 = vld [vmem:[%s16125_s29 + $0x80] sm:$0xff] }
0x1315   : > { %10226 = vmatpush3.bf16.xpose.msra.mxu0 %v6057_v26  ;;  %10173 = vmatprep.mubr.msk.bf16.mxu0 %vm11312_vm5, %v16091_v57 }
0x1358   : > { %v10153_v39 = vpop.f32.mrf.mxu1 }
0x135a   : > { %v5748_v23 = vpop.f32.mrf.mxu1 }
0x135b   : > { %v5781_v16 = vpack.c.bf16 %v5748_v23, %v10141_v58 }
0x135c   : > { %v10154_v1 = vpop.f32.mrf.mxu1 }
0x135d   : > { %10174 = vmatmul.mubr.msk.bf16.gmra.mxu0 %vm1368_vm3, %v5781_v16 }
0x135e   : > { %v5751_v15 = vpop.f32.mrf.mxu1  ;;  %10177 = vmatprep.mubr.msk.bf16.mxu0 %vm11312_vm5, %v16091_v57 }
0x135f   : > { %v5782_v24 = vpack.c.bf16 %v10153_v39, %v5751_v15  ;;  %v14043_v39 = vld [vmem:[%s16125_s29 + $0x70] sm:$0xff]  ;;  %v14052_v15 = vld [vmem:[%s16077_s19 + $0x1] ss:$0 sm:$0xff] }
0x1360   : > { %v10157_v59 = vpop.f32.mrf.mxu1 }
0x1362   : > { %v5764_v37 = vpop.f32.mrf.mxu1 }
0x1363   : > { %v5783_v25 = vpack.c.bf16 %v5764_v37, %v10154_v1  ;;  %v14049_v1 = vld [vmem:[%s16125_s29 + $0x88] sm:$0xff] }
0x1364   : > { %v10158_v29 = vpop.f32.mrf.mxu1 }
0x1365   : > { %10178 = vmatmul.mubr.msk.bf16.gmra.mxu0 %vm1368_vm3, %v5782_v24  ;;  %v14061_v29 = vld [vmem:[%s16125_s29 + $0x78] sm:$0xff] }
0x1366   : > { %v5767_v0 = vpop.f32.mrf.mxu1  ;;  %10181 = vmatprep.mubr.msk.bf16.mxu0 %vm11312_vm5, %v16091_v57 }
0x1367   : > { %v5784_v41 = vpack.c.bf16 %v10157_v59, %v5767_v0 }
0x1368   : > { %v13995_v7 = vpop.f32.mrf.mxu1 }
0x136a   : > { %v10193_v11 = vpop.f32.mrf.mxu1 }
0x136c   : > { %v13997_v9 = vpop.f32.mrf.mxu1 }
0x136d   : > { %10182 = vmatmul.mubr.msk.bf16.gmra.mxu0 %vm1368_vm3, %v5783_v25 }
0x136e   : > { %v10194_v8 = vpop.f32.mrf.mxu1  ;;  %10185 = vmatprep.mubr.msk.bf16.mxu0 %vm11312_vm5, %v16091_v57 }
0x1370   : > { %v14002_v63 = vpop.f32.mrf.mxu1 }
0x1372   : > { %v10197_v52 = vpop.f32.mrf.mxu1 }
0x1373   : > { %v14072_v52 = vld [vmem:[%s16125_s29 + $0xa0] sm:$0xff] }
0x1374   : > { %v14004_v34 = vpop.f32.mrf.mxu1 }
0x1375   : > { %16129 = vst [vmem:[#allocation21_spill] sm:$0xff] %v14004_v34  ;;  %10186 = vmatmul.mubr.msk.bf16.gmra.mxu0 %vm1368_vm3, %v5784_v41 }
0x1376   : > { %v10198_v40 = vpop.f32.mrf.mxu1  ;;  %10227 = vmatprep.mubr.msk.bf16.mxu0 %vm1368_vm3, %v13922_v42 }
0x1378   : > { %v14009_v47 = vpop.f32.mrf.mxu1 }
0x1379   : > { %16130 = vst [vmem:[#allocation22_spill] sm:$0xff] %v14009_v47 }
0x137a   : > { %v10201_v44 = vpop.f32.mrf.mxu1 }
0x137b   : > { %v14078_v44 = vld [vmem:[%s16125_s29 + $0x90] sm:$0xff] }
0x137c   : > { %v14011_v46 = vpop.f32.mrf.mxu1 }
0x137d   : > { %16131 = vst [vmem:[#allocation23_spill] sm:$0xff] %v14011_v46  ;;  %10228 = vmatmul.mubr.msk.bf16.vlgmr.msra.gmra.mxu0 %vm1368_vm3, %v13952_v22 }
0x137e   : > { %v10202_v55 = vpop.f32.mrf.mxu1  ;;  %10231 = vmatprep.mubr.msk.bf16.mxu0 %vm1368_vm3, %v13931_v60 }
0x1380   : > { %v14017_v43 = vpop.f32.mrf.mxu1 }
0x1381   : > { %16132 = vst [vmem:[#allocation13_spill] sm:$0xff] %v14017_v43 }
0x1382   : > { %v10205_v33 = vpop.f32.mrf.mxu1 }
0x1384   : > { %v14019_v17 = vpop.f32.mrf.mxu1 }
0x1385   : > { %16133 = vst [vmem:[#allocation15_spill] sm:$0xff] %v14019_v17  ;;  %10232 = vmatmul.mubr.msk.bf16.gmra.mxu0 %vm1368_vm3, %v13957_v32 }
0x1386   : > { %v10206_v42 = vpop.f32.mrf.mxu1 }
0x1388   : > { %v14023_v45 = vpop.f32.mrf.mxu1 }
0x1389   : > { %16134 = vst [vmem:[#allocation17_spill] sm:$0xff] %v14023_v45 }
0x138a   : > { %v10209_v3 = vpop.f32.mrf.mxu1 }
0x138c   : > { %v14025_v62 = vpop.f32.mrf.mxu1 }
0x138d   : > { %16135 = vst [vmem:[#allocation14_spill] sm:$0xff] %v14025_v62 }
0x138e   : > { %v10210_v22 = vpop.f32.mrf.mxu1 }
0x1390   : > { %v14027_v31 = vpop.f32.mrf.mxu1 }
0x1391   : > { %16136 = vst [vmem:[#allocation16_spill] sm:$0xff] %v14027_v31 }
0x1392   : > { %v10213_v58 = vpop.f32.mrf.mxu1 }
0x1394   : > { %v14029_v60 = vpop.f32.mrf.mxu1 }
0x1395   : > { %16137 = vst [vmem:[#allocation18_spill] sm:$0xff] %v14029_v60 }
0x1396   : > { %v10214_v13 = vpop.f32.mrf.mxu1 }
0x1398   : > { %v14031_v54 = vpop.f32.mrf.mxu1 }
0x1399   : > { %16138 = vst [vmem:[#allocation19_spill] sm:$0xff] %v14031_v54 }
0x139a   : > { %v10217_v4 = vpop.f32.mrf.mxu1 }
0x139c   : > { %v14033_v19 = vpop.f32.mrf.mxu1 }
0x139d   : > { %16139 = vst [vmem:[#allocation20_spill] sm:$0xff] %v14033_v19  ;;  %v14139_v19 = vpop.permute.xlu1 %6752 }
0x139e   : > { %v10218_v32 = vpop.f32.mrf.mxu1 }
0x13a0   : > { %v10245_v26 = vpop.f32.mrf.mxu1 }
0x13a1   : > { %v6215_v23 = vadd.f32 %v10245_v26, %v14038_v12  ;;  %v14098_v26 = vld [vmem:[%s16125_s29 + $0x98] sm:$0xff]  ;;  %v14147_v60 = vpop.permute.xlu1 %6748 }
0x13a2   : > { %v6206_v16 = vpop.f32.mrf.mxu1 }
0x13a3   : > { %v14055_v59 = vadd.f32 %v14052_v15, %v6215_v23  ;;  %v6207_v37 = vadd.f32 %v14043_v39, %v6206_v16 }
0x13a4   : > { %v10246_v24 = vpop.f32.mrf.mxu1 }
0x13a5   : > { %v14064_v0 = vadd.f32 %v14052_v15, %v6207_v37  ;;  %v6218_v11 = vadd.f32 %v10246_v24, %v14049_v1  ;;  %v6277_v25 = vsel %vm1583_vm4, %v14055_v59, -inf  ;;  %v14154_v45 = vpop.permute.xlu1 %6858 }
0x13a6   : > { %6278 = vmax.xlane.f32.xlu0 %v6277_v25  ;;  %v6209_v8 = vpop.f32.mrf.mxu1 }
0x13a7   : > { %v6210_v41 = vadd.f32 %v14061_v29, %v6209_v8  ;;  %v14081_v55 = vadd.f32 %v14052_v15, %v6218_v11  ;;  %v6271_v3 = vsel %vm1583_vm4, %v14064_v0, -inf }
0x13a8   : > { %v10249_v40 = vpop.f32.mrf.mxu1 }
0x13a9   : > { %v14084_v33 = vadd.f32 %v14052_v15, %v6210_v41  ;;  %v6231_v42 = vadd.f32 %v10249_v40, %v14072_v52  ;;  %v6280_v23 = vsel %vm1583_vm4, %v14081_v55, -inf }
0x13aa   : > { %6272 = vmax.xlane.f32.xlu0 %v6271_v3  ;;  %v6222_v22 = vpop.f32.mrf.mxu1 }
0x13ab   : > { %v14090_v58 = vadd.f32 %v14052_v15, %v6231_v42  ;;  %v6223_v13 = vadd.f32 %v14078_v44, %v6222_v22  ;;  %v6274_v4 = vsel %vm1583_vm4, %v14084_v33, -inf }
0x13ac   : > { %6275 = vmax.xlane.f32.xlu1 %v6274_v4  ;;  %v10250_v32 = vpop.f32.mrf.mxu1 }
0x13ad   : > { %v14103_v37 = vadd.f32 %v14052_v15, %v6223_v13  ;;  %v6289_v11 = vsel %vm1583_vm4, %v14090_v58, -inf }
0x13ae   : > { %6281 = vmax.xlane.f32.xlu0 %v6280_v23  ;;  %v6225_v16 = vpop.f32.mrf.mxu1 }
0x13af   : > { %v6226_v24 = vadd.f32 %v14098_v26, %v6225_v16  ;;  %v6283_v41 = vsel %vm1583_vm4, %v14103_v37, -inf }
0x13b0   : > { %6290 = vmax.xlane.f32.xlu1 %v6289_v11 }
0x13b1   : > { %v14109_v25 = vadd.f32 %v14052_v15, %v6226_v24 }
0x13b3   : > { %v6286_v8 = vsel %vm1583_vm4, %v14109_v25, -inf }
0x13b4   : > { %6287 = vmax.xlane.f32.xlu0 %v6286_v8  ;;  %6284 = vmax.xlane.f32.xlu1 %v6283_v41 }
0x13bc   : > { %v14115_v40 = vpop.f32.mrf.mxu0 }
0x13be   : > { %v10163_v42 = vpop.f32.mrf.mxu0 }
0x13c0   : > { %v14117_v3 = vpop.f32.mrf.mxu0 }
0x13c2   : > { %v10164_v22 = vpop.f32.mrf.mxu0 }
0x13c4   : > { %v14119_v13 = vpop.f32.mrf.mxu0 }
0x13c5   : > { %6856 = vrot.lane.b32.xlu1 %v13222_v10, %s11313_s25 }
0x13c6   : > { %v10167_v4 = vpop.f32.mrf.mxu0 }
0x13c8   : > { %v14123_v32 = vpop.f32.mrf.mxu0 }
0x13c9   : > { %6854 = vrot.lane.b32.xlu1 %v13241_v35, %s11313_s25 }
0x13ca   : > { %v10168_v23 = vpop.f32.mrf.mxu0  ;;  %6742 = vrot.lane.b32.xlu0 %v13186_v56, %s11314_s1 }
0x13cb   : > { %v14141_v23 = vpop.permute.xlu0 %6750 }
0x13cd   : > { %6746 = vrot.lane.b32.xlu1 %v13176_v6, %s11314_s1 }
0x13d4   : > { %v14131_v16 = vpop.f32.mrf.mxu0 }
0x13d5   : > { %16140 = vst [vmem:[#allocation33_spill] sm:$0xff] %v14131_v16 }
0x13d6   : > { %v10171_v24 = vpop.f32.mrf.mxu0 }
0x13d7   : > { %v14149_v24 = vpop.permute.xlu0 %6740 }
0x13d8   : > { %v14133_v11 = vpop.f32.mrf.mxu0 }
0x13d9   : > { %16141 = vst [vmem:[#allocation34_spill] sm:$0xff] %v14133_v11 }
0x13da   : > { %v10172_v8 = vpop.f32.mrf.mxu0 }
0x141d   : > { %v14135_v41 = vpop.f32.mrf.mxu0 }
0x141e   : > { %16142 = vst [vmem:[#allocation35_spill] sm:$0xff] %v14135_v41 }
0x141f   : > { %v10175_v42 = vpop.f32.mrf.mxu0 }
0x1421   : > { %v14137_v22 = vpop.f32.mrf.mxu0 }
0x1422   : > { %16143 = vst [vmem:[#allocation36_spill] sm:$0xff] %v14137_v22 }
0x1423   : > { %v10176_v4 = vpop.f32.mrf.mxu0 }
0x1425   : > { %v14143_v56 = vpop.f32.mrf.mxu0 }
0x1426   : > { %16144 = vst [vmem:[#allocation37_spill] sm:$0xff] %v14143_v56 }
0x1427   : > { %v10179_v54 = vpop.f32.mrf.mxu0 }
0x1429   : > { %v14145_v6 = vpop.f32.mrf.mxu0 }
0x142a   : > { %16145 = vst [vmem:[#allocation38_spill] sm:$0xff] %v14145_v6 }
0x142b   : > { %v10180_v8 = vpop.f32.mrf.mxu0 }
0x142d   : > { %v14151_v31 = vpop.f32.mrf.mxu0 }
0x142e   : > { %16146 = vst [vmem:[#allocation39_spill] sm:$0xff] %v14151_v31 }
0x142f   : > { %v10183_v42 = vpop.f32.mrf.mxu0  ;;  %v6279_v62 = vpop.xlane.xlu0 %6278 }
0x1430   : > { %v6301_v4 = vsub.f32 %v14055_v59, %v6279_v62 }
0x1431   : > { %v14156_v17 = vpop.f32.mrf.mxu0 }
0x1432   : > { %16147 = vst [vmem:[#allocation40_spill] sm:$0xff] %v14156_v17  ;;  %v6324_v22 = vmul.f32 1.442695, %v6301_v4 }
0x1433   : > { %v10184_v56 = vpop.f32.mrf.mxu0  ;;  %v6273_v54 = vpop.xlane.xlu0 %6272 }
0x1434   : > { %11006 = vpow2.f32 %v6324_v22  ;;  %v6299_v6 = vsub.f32 %v14064_v0, %v6273_v54 }
0x1435   : > { %v14159_v43 = vpop.f32.mrf.mxu0  ;;  %v6276_v41 = vpop.xlane.xlu1 %6275 }
0x1436   : > { %16148 = vst [vmem:[#allocation41_spill] sm:$0xff] %v14159_v43  ;;  %v6320_v8 = vmul.f32 1.442695, %v6299_v6  ;;  %v6300_v31 = vsub.f32 %v14084_v33, %v6276_v41  ;;  %v14169_v41 = vld [vmem:[%s16077_s19] ss:$0 sm:$0xff]  ;;  %s16151_s19 = scalar_lea.vmem %s16150_s30, %s11474_s7  ;;  %s16216_s30 = sld [smem:[#allocation12_spill]] }
0x1437   : > { %v10187_v42 = vpop.f32.mrf.mxu0  ;;  %v6282_v46 = vpop.xlane.xlu0 %6281 }
0x1438   : > { %v6302_v62 = vsub.f32 %v14081_v55, %v6282_v46  ;;  %11008 = vpow2.f32 %v6320_v8  ;;  %v6322_v4 = vmul.f32 1.442695, %v6300_v31 }
0x1439   : > { %v14163_v59 = vpop.f32.mrf.mxu0 }
0x143a   : > { %16149 = vst [vmem:[#allocation42_spill] sm:$0xff] %v14163_v59  ;;  %v6326_v56 = vmul.f32 1.442695, %v6302_v62 }
0x143b   : > { %v10188_v17 = vpop.f32.mrf.mxu0 }
0x143c   : > { %11010 = vpow2.f32 %v6326_v56 }
0x143d   : > { %v10229_v22 = vpop.f32.mrf.mxu0  ;;  %11012 = vpow2.f32 %v6322_v4 }
0x143e   : > { %v6111_v0 = vadd.f32 %v10229_v22, %v14038_v12 }
0x143f   : > { %v6102_v54 = vpop.f32.mrf.mxu0 }
0x1440   : > { %v14172_v42 = vadd.f32 %v14169_v41, %v6111_v0 }
0x1441   : > { %v14166_v6 = vpop.eup %11006  ;;  %v10230_v33 = vpop.f32.mrf.mxu0 }
0x1442   : > { %v6361_v46 = vsel %vm1583_vm4, %v14166_v6, 0.0  ;;  %v6256_v55 = vsel %vm1583_vm4, %v14172_v42, -inf }
0x1443   : > { %v6105_v31 = vpop.f32.mrf.mxu0  ;;  %6362 = vadd.xlane.f32.xlu0 %v6361_v46 }
0x1445   : > { %v10233_v17 = vpop.f32.mrf.mxu0  ;;  %v14178_v8 = vpop.eup %11008 }
0x1446   : > { %v6355_v56 = vsel %vm1583_vm4, %v14178_v8, 0.0 }
0x1447   : > { %v6118_v12 = vpop.f32.mrf.mxu0  ;;  %6257 = vmax.xlane.f32.xlu0 %v6256_v55  ;;  %v6291_v55 = vpop.xlane.xlu1 %6290 }
0x1448   : > { %v6305_v59 = vsub.f32 %v14090_v58, %v6291_v55  ;;  %v6106_v58 = vadd.f32 %v14061_v29, %v6105_v31  ;;  %v6127_v29 = vadd.f32 %v10233_v17, %v14072_v52 }
0x1449   : > { %v14180_v62 = vpop.eup %11010  ;;  %v10234_v4 = vpop.f32.mrf.mxu0 }
0x144a   : > { %v6364_v22 = vsel %vm1583_vm4, %v14180_v62, 0.0  ;;  %v14186_v0 = vpop.eup %11012  ;;  %v6288_v4 = vpop.xlane.xlu0 %6287  ;;  %v6332_v47 = vmul.f32 1.442695, %v6305_v59  ;;  %v14207_v59 = vadd.f32 %v14169_v41, %v6106_v58 }
0x144b   : > { %6356 = vadd.xlane.f32.xlu0 %v6355_v56  ;;  %6365 = vadd.xlane.f32.xlu1 %v6364_v22  ;;  %v6358_v46 = vsel %vm1583_vm4, %v14186_v0, 0.0  ;;  %v6304_v43 = vsub.f32 %v14109_v25, %v6288_v4  ;;  %v6285_v11 = vpop.xlane.xlu1 %6284  ;;  %v6121_v17 = vpop.f32.mrf.mxu0 }
0x144c   : > { %v6303_v56 = vsub.f32 %v14103_v37, %v6285_v11  ;;  %11014 = vpow2.f32 %v6332_v47  ;;  %v6122_v55 = vadd.f32 %v14098_v26, %v6121_v17 }
0x144d   : > { %v6330_v22 = vmul.f32 1.442695, %v6304_v43 }
0x144e   : > { %v6328_v16 = vmul.f32 1.442695, %v6303_v56  ;;  %v14239_v4 = vadd.f32 %v14169_v41, %v6122_v55  ;;  %v6119_v56 = vadd.f32 %v14078_v44, %v6118_v12 }
0x144f   : > { %6359 = vadd.xlane.f32.xlu1 %v6358_v46  ;;  %11016 = vpow2.f32 %v6330_v22  ;;  %v6103_v46 = vadd.f32 %v14043_v39, %v6102_v54 }
0x1450   : > { %11018 = vpow2.f32 %v6328_v16  ;;  %v6265_v22 = vsel %vm1583_vm4, %v14239_v4, -inf }
0x1451   : > { %v14199_v34 = vadd.f32 %v14169_v41, %v6103_v46  ;;  %v14245_v46 = vadd.f32 %v14169_v41, %v6119_v56 }
0x1453   : > { %v6250_v47 = vsel %vm1583_vm4, %v14199_v34, -inf }
0x1459   : > { %v14211_v43 = vpop.eup %11014 }
0x145a   : > { %v6373_v16 = vsel %vm1583_vm4, %v14211_v43, 0.0 }
0x145c   : > { %v14217_v37 = vpop.eup %11016 }
0x145d   : > { %v6370_v11 = vsel %vm1583_vm4, %v14217_v37, 0.0  ;;  %v14224_v54 = vpop.eup %11018 }
0x145e   : > { %v6367_v31 = vsel %vm1583_vm4, %v14224_v54, 0.0 }
0x1460   : > { %6852 = vrot.lane.b32.xlu1 %v13196_v28, %s11313_s25 }
0x1461   : > { %6744 = vrot.lane.b32.xlu0 %v13167_v2, %s11314_s1  ;;  %v6114_v2 = vadd.f32 %v10230_v33, %v14049_v1  ;;  %v6253_v1 = vsel %vm1583_vm4, %v14207_v59, -inf  ;;  %v14227_v33 = vadd.f32 %v14169_v41, %v6127_v29 }
0x1463   : > { %v14204_v25 = vadd.f32 %v14169_v41, %v6114_v2  ;;  %v6268_v52 = vsel %vm1583_vm4, %v14227_v33, -inf  ;;  %v14247_v2 = vpop.permute.xlu1 %6856 }
0x1465   : > { %v6259_v39 = vsel %vm1583_vm4, %v14204_v25, -inf }
0x1467   : > { %v14253_v26 = vpop.permute.xlu1 %6854 }
0x146b   : > { %v14257_v44 = vpop.permute.xlu1 %6746 }
0x1480   : > { %6251 = vmax.xlane.f32.xlu0 %v6250_v47 }
0x1484   : > { %6260 = vmax.xlane.f32.xlu0 %v6259_v39  ;;  %6254 = vmax.xlane.f32.xlu1 %v6253_v1 }
0x1488   : > { %6374 = vadd.xlane.f32.xlu0 %v6373_v16  ;;  %6371 = vadd.xlane.f32.xlu1 %v6370_v11 }
0x148c   : > { %6368 = vadd.xlane.f32.xlu0 %v6367_v31 }
0x1490   : > { %6269 = vmax.xlane.f32.xlu0 %v6268_v52 }
0x1499   : > { %6846 = vrot.lane.b32.xlu1 %v13241_v35, %s11314_s1  ;;  %v14251_v35 = vpop.permute.xlu0 %6742 }
0x14a6   : > { %6844 = vrot.lane.b32.xlu0 %v13196_v28, %s11314_s1  ;;  %v6262_v28 = vsel %vm1583_vm4, %v14245_v46, -inf }
0x14bd   : > { %6266 = vmax.xlane.f32.xlu1 %v6265_v22 }
0x14c5   : > { %6263 = vmax.xlane.f32.xlu0 %v6262_v28 }
0x14cc   : > { %v6363_v58 = vpop.xlane.xlu0 %6362 }
0x14ce   : > { %6848 = vrot.lane.b32.xlu1 %v13222_v10, %s11314_s1 }
0x14d0   : > { %v6258_v12 = vpop.xlane.xlu0 %6257 }
0x14d1   : > { %v6294_v10 = vsub.f32 %v14172_v42, %v6258_v12  ;;  %v6775_v42 = vsel %vm1368_vm3, %v14139_v19, 0 }
0x14d3   : > { %v6310_v22 = vmul.f32 1.442695, %v6294_v10 }
0x14d4   : > { %v6366_v47 = vpop.xlane.xlu1 %6365  ;;  %v6357_v39 = vpop.xlane.xlu0 %6356 }
0x14d5   : > { %11020 = vrcp.f32 %v6366_v47 }
0x14d6   : > { %11022 = vrcp.f32 %v6357_v39 }
0x14d7   : > { %11024 = vrcp.f32 %v6363_v58  ;;  %v6778_v58 = vsel %vm1368_vm3, %v13966_v61, 0 }
0x14d8   : > { %v6360_v1 = vpop.xlane.xlu1 %6359 }
0x14d9   : > { %11026 = vrcp.f32 %v6360_v1 }
0x14da   : > { %11028 = vpow2.f32 %v6310_v22 }
0x14db   : > { %6850 = vrot.lane.b32.xlu0 %v13234_v21, %s11314_s1 }
0x14df   : > { %6418 = vrot.lane.b32.xlu0 %v13266_v30, %s11311_s8 }
0x14e2   : > { %v11021_v29 = vpop.eup %11020 }
0x14e3   : > { %v11023_v16 = vpop.eup %11022  ;;  %v6400_v52 = vmul.f32 %v11021_v29, %v14180_v62  ;;  %v6745_v62 = vpop.permute.xlu0 %6744 }
0x14e4   : > { %v11025_v11 = vpop.eup %11024  ;;  %v6397_v17 = vmul.f32 %v11023_v16, %v14178_v8  ;;  %v6772_v8 = vsel %vm1368_vm3, %v14141_v23, 0 }
0x14e5   : > { %v6399_v56 = vmul.f32 %v11025_v11, %v14166_v6 }
0x14e6   : > { %v11027_v31 = vpop.eup %11026 }
0x14e7   : > { %v6398_v55 = vmul.f32 %v11027_v31, %v14186_v0  ;;  %v6409_v21 = vpack.c.bf16 %v6400_v52, %v6399_v56  ;;  %v14278_v6 = vpop.eup %11028  ;;  %v14290_v0 = vpop.permute.xlu1 %6852 }
0x14e8   : > { %v6340_v61 = vsel %vm1583_vm4, %v14278_v6, 0.0 }
0x14e9   : > { %v6408_v28 = vpack.c.bf16 %v6398_v55, %v6397_v17 }
0x14eb   : > { %10275 = vmatprep.mubr.msk.bf16.mxu1 %vm1583_vm4, %v6408_v28 }
0x14ec   : > { %10276 = vmatmul.mubr.msk.bf16.vlgmr.msra.gmra.mxu1 %vm1583_vm4, %v6409_v21 }
0x14ed   : > { %10314 = vmatpush3.bf16.xpose.msra.mxu1 %v6778_v58 }
0x14ee   : > { %10566 = vmatprep.subr.msk.bf16.mxu1 %vm1368_vm3, %v14139_v19  ;;  %v6769_v19 = vsel %vm1368_vm3, %v14147_v60, 0 }
0x14f5   : > { %10316 = vmatpush3.bf16.xpose.msra.mxu1 %v6775_v42 }
0x14f6   : > { %10567 = vmatprep.subr.msk.bf16.mxu1 %vm1368_vm3, %v14141_v23 }
0x14fd   : > { %10318 = vmatpush3.bf16.xpose.msra.mxu1 %v6772_v8 }
0x14fe   : > { %10568 = vmatprep.subr.msk.bf16.mxu1 %vm1368_vm3, %v14147_v60  ;;  %6341 = vadd.xlane.f32.xlu0 %v6340_v61 }
0x1505   : > { %10320 = vmatpush3.bf16.xpose.msra.mxu1 %v6769_v19 }
0x1506   : > { %10569 = vmatprep.subr.msk.bf16.mxu1 %vm1368_vm3, %v14154_v45 }
0x1509   : > { %v6252_v12 = vpop.xlane.xlu0 %6251 }
0x150a   : > { %v6292_v23 = vsub.f32 %v14199_v34, %v6252_v12 }
0x150c   : > { %v6306_v47 = vmul.f32 1.442695, %v6292_v23 }
0x150d   : > { %v6255_v39 = vpop.xlane.xlu1 %6254  ;;  %v6261_v1 = vpop.xlane.xlu0 %6260 }
0x150e   : > { %11030 = vpow2.f32 %v6306_v47  ;;  %v6293_v29 = vsub.f32 %v14207_v59, %v6255_v39  ;;  %v6295_v16 = vsub.f32 %v14204_v25, %v6261_v1 }
0x1510   : > { %v6308_v11 = vmul.f32 1.442695, %v6293_v29  ;;  %v6312_v60 = vmul.f32 1.442695, %v6295_v16 }
0x1511   : > { %v6372_v10 = vpop.xlane.xlu1 %6371  ;;  %v6375_v31 = vpop.xlane.xlu0 %6374 }
0x1512   : > { %11032 = vpow2.f32 %v6308_v11 }
0x1513   : > { %11034 = vpow2.f32 %v6312_v60 }
0x1514   : > { %11036 = vrcp.f32 %v6372_v10 }
0x1515   : > { %11038 = vrcp.f32 %v6375_v31  ;;  %v6369_v52 = vpop.xlane.xlu0 %6368 }
0x1516   : > { %11040 = vrcp.f32 %v6369_v52 }
0x1519   : > { %v6270_v17 = vpop.xlane.xlu0 %6269 }
0x151a   : > { %v6298_v34 = vsub.f32 %v14227_v33, %v6270_v17 }
0x151b   : > { %v14296_v55 = vpop.eup %11030 }
0x151c   : > { %v6318_v56 = vmul.f32 1.442695, %v6298_v34  ;;  %v6334_v59 = vsel %vm1583_vm4, %v14296_v55, 0.0 }
0x151d   : > { %6335 = vadd.xlane.f32.xlu1 %v6334_v59 }
0x151e   : > { %11042 = vpow2.f32 %v6318_v56 }
0x151f   : > { %v14300_v25 = vpop.eup %11032 }
0x1520   : > { %v14302_v22 = vpop.eup %11034  ;;  %v6337_v28 = vsel %vm1583_vm4, %v14300_v25, 0.0 }
0x1521   : > { %v11037_v21 = vpop.eup %11036  ;;  %6338 = vadd.xlane.f32.xlu0 %v6337_v28  ;;  %v6343_v33 = vsel %vm1583_vm4, %v14302_v22, 0.0 }
0x1522   : > { %v11039_v58 = vpop.eup %11038  ;;  %6344 = vadd.xlane.f32.xlu1 %v6343_v33  ;;  %v6402_v19 = vmul.f32 %v11037_v21, %v14217_v37  ;;  %v6879_v37 = vsel %vm1368_vm3, %v14247_v2, 0 }
0x1523   : > { %v11041_v42 = vpop.eup %11040  ;;  %v6403_v8 = vmul.f32 %v11039_v58, %v14211_v43  ;;  %v6882_v43 = vsel %vm1368_vm3, %v14154_v45, 0  ;;  %v6876_v45 = vsel %vm1368_vm3, %v14253_v26, 0 }
0x1524   : > { %v6401_v61 = vmul.f32 %v11041_v42, %v14224_v54  ;;  %v6847_v54 = vpop.permute.xlu1 %6846 }
0x1525   : > { %v6411_v23 = vpack.c.bf16 %v6403_v8, %v6403_v8 }
0x1526   : > { %v6410_v12 = vpack.c.bf16 %v6402_v19, %v6401_v61 }
0x1528   : > { %10279 = vmatprep.mubr.msk.bf16.mxu1 %vm1583_vm4, %v6410_v12 }
0x1529   : > { %10280 = vmatmul.mubr.msk.bf16.gmra.mxu1 %vm1583_vm4, %v6411_v23 }
0x152a   : > { %10321 = vmatprep.mubr.msk.bf16.mxu1 %vm1368_vm3, %v14149_v24  ;;  %v6845_v24 = vpop.permute.xlu0 %6844 }
0x152b   : > { %v14315_v47 = vpop.eup %11042 }
0x152c   : > { %v6352_v39 = vsel %vm1583_vm4, %v14315_v47, 0.0 }
0x152d   : > { %6353 = vadd.xlane.f32.xlu1 %v6352_v39 }
0x1531   : > { %10322 = vmatmul.mubr.msk.bf16.vlgmr.msra.gmra.mxu1 %vm1368_vm3, %v14251_v35 }
0x1532   : > { %10330 = vmatpush3.bf16.xpose.msra.mxu1 %v6882_v43  ;;  %10325 = vmatprep.mubr.msk.bf16.mxu1 %vm1368_vm3, %v6745_v62 }
0x1533   : > { %10570 = vmatprep.subr.msk.bf16.mxu1 %vm1368_vm3, %v14247_v2  ;;  %v6873_v2 = vsel %vm1368_vm3, %v14290_v0, 0 }
0x1537   : > { %6414 = vrot.lane.b32.xlu0 %v13162_v36, %s11311_s8 }
0x1539   : > { %10326 = vmatmul.mubr.msk.bf16.gmra.mxu1 %vm1368_vm3, %v14257_v44 }
0x153a   : > { %10332 = vmatpush3.bf16.xpose.msra.mxu1 %v6879_v37  ;;  %10337 = vmatprep.mubr.msk.bf16.mxu1 %vm1368_vm3, %v6845_v24 }
0x153b   : > { %10571 = vmatprep.subr.msk.bf16.mxu1 %vm1368_vm3, %v14253_v26  ;;  %6412 = vrot.lane.b32.xlu0 %v13152_v5, %s11311_s8 }
0x1542   : > { %10334 = vmatpush3.bf16.xpose.msra.mxu1 %v6876_v45  ;;  %v14386_v45 = vld [vmem:[%s16125_s29 + $0xb8] sm:$0xff] }
0x1543   : > { %10572 = vmatprep.subr.msk.bf16.mxu1 %vm1368_vm3, %v14290_v0 }
0x1546   : > { %v6267_v35 = vpop.xlane.xlu1 %6266 }
0x1547   : > { %v6297_v44 = vsub.f32 %v14239_v4, %v6267_v35  ;;  %v14393_v35 = vld [vmem:[%s16125_s29 + $0xa8] sm:$0xff] }
0x1549   : > { %v6316_v29 = vmul.f32 1.442695, %v6297_v44 }
0x154a   : > { %10336 = vmatpush3.bf16.xpose.msra.mxu1 %v6873_v2  ;;  %v6849_v16 = vpop.permute.xlu1 %6848 }
0x154e   : > { %v6264_v62 = vpop.xlane.xlu0 %6263 }
0x154f   : > { %v6296_v1 = vsub.f32 %v14245_v46, %v6264_v62 }
0x1551   : > { %v6314_v11 = vmul.f32 1.442695, %v6296_v1  ;;  %10338 = vmatmul.mubr.msk.bf16.vlgmr.msra.gmra.mxu1 %vm1368_vm3, %v6847_v54 }
0x1552   : > { %10341 = vmatprep.mubr.msk.bf16.mxu1 %vm1368_vm3, %v6849_v16  ;;  %v6851_v26 = vpop.permute.xlu0 %6850  ;;  %v14399_v16 = vld [vmem:[%s16125_s29 + $0xc0] sm:$0xff] }
0x1553   : > { %11044 = vpow2.f32 %v6314_v11 }
0x1554   : > { %11046 = vpow2.f32 %v6316_v29 }
0x1556   : > { %v6419_v60 = vpop.permute.xlu0 %6418 }
0x1557   : > { %10563 = vmatprep.subr.msk.bf16.mxu0 %vm1766_vm2, %v6419_v60  ;;  %v6436_v0 = vsel %vm1766_vm2, %v6419_v60, 0 }
0x1558   : > { %10252 = vmatpush3.bf16.msra.mxu0 %v6436_v0  ;;  %v14408_v0 = vld [vmem:[%s16125_s29 + $0xb0] sm:$0xff] }
0x1559   : > { %10342 = vmatmul.mubr.msk.bf16.gmra.mxu1 %vm1368_vm3, %v6851_v26 }
0x1560   : > { %v14350_v4 = vpop.eup %11044 }
0x1561   : > { %v6346_v46 = vsel %vm1583_vm4, %v14350_v4, 0.0  ;;  %v14354_v10 = vpop.eup %11046 }
0x1562   : > { %6347 = vadd.xlane.f32.xlu1 %v6346_v46  ;;  %v6349_v31 = vsel %vm1583_vm4, %v14354_v10, 0.0 }
0x1566   : > { %6350 = vadd.xlane.f32.xlu1 %v6349_v31 }
0x1577   : > { %6416 = vrot.lane.b32.xlu1 %v13170_v18, %s11311_s8  ;;  %s16195_s8 = sld [smem:[#allocation55_spill]] }
0x157b   : > { %7130 = vrot.lane.b32.xlu1 %v13266_v30, %s11314_s1 }
0x157d   : > { %s16196_s25 = scalar_lea.vmem %s16195_s8, %s11474_s7 }
0x1587   : > { %v6342_v52 = vpop.xlane.xlu0 %6341 }
0x15a6   : > { %v6336_v17 = vpop.xlane.xlu1 %6335 }
0x15a7   : > { %11048 = vrcp.f32 %v6336_v17 }
0x15aa   : > { %v6339_v34 = vpop.xlane.xlu0 %6338 }
0x15ab   : > { %11050 = vrcp.f32 %v6339_v34  ;;  %v6345_v19 = vpop.xlane.xlu1 %6344 }
0x15ac   : > { %v14362_v56 = vpop.f32.mrf.mxu1  ;;  %11052 = vrcp.f32 %v6345_v19 }
0x15ad   : > { %11054 = vrcp.f32 %v6342_v52 }
0x15ae   : > { %v14364_v59 = vpop.f32.mrf.mxu1  ;;  %v6415_v44 = vpop.permute.xlu0 %6414 }
0x15b0   : > { %v14366_v28 = vpop.f32.mrf.mxu1 }
0x15b2   : > { %v14368_v21 = vpop.f32.mrf.mxu1 }
0x15b3   : > { %v6596_v33 = vpack.c.bf16 %v14362_v56, %v14368_v21  ;;  %v14640_v56 = vld [vmem:[%s16151_s19] ss:$0 sm:$0xff] }
0x15b4   : > { %v11049_v58 = vpop.eup %11048  ;;  %v14647_v21 = vld [vmem:[%s11580_s20] sm:$0xff] }
0x15b5   : > { %v6390_v30 = vmul.f32 %v11049_v58, %v14296_v55  ;;  %v14419_v58 = vld [vmem:[%s16125_s29 + $0xd8] sm:$0xff] }
0x15b6   : > { %v6354_v12 = vpop.xlane.xlu1 %6353 }
0x15b8   : > { %v11051_v42 = vpop.eup %11050 }
0x15b9   : > { %v6391_v8 = vmul.f32 %v11051_v42, %v14300_v25  ;;  %v11053_v46 = vpop.eup %11052 }
0x15bb   : > { %v6404_v61 = vpack.c.bf16 %v6391_v8, %v6390_v30  ;;  %v11055_v30 = vpop.eup %11054  ;;  %v6393_v8 = vmul.f32 %v11053_v46, %v14302_v22 }
0x15bd   : > { %10259 = vmatprep.mubr.msk.bf16.mxu0 %vm1583_vm4, %v6404_v61  ;;  %v6413_v61 = vpop.permute.xlu0 %6412 }
0x15e9   : > { %v14375_v23 = vpop.f32.mrf.mxu1 }
0x15eb   : > { %v14377_v39 = vpop.f32.mrf.mxu1  ;;  %v6348_v43 = vpop.xlane.xlu1 %6347 }
0x15ec   : > { %v6597_v24 = vpack.c.bf16 %v14377_v39, %v14366_v28  ;;  %11056 = vrcp.f32 %v6348_v43  ;;  %v4176_v28 = vadd.f32 %v14640_v56, %v13202_v50  ;;  %v14665_v50 = vld [vmem:[%s11580_s20 + $0x18] sm:$0xff] }
0x15ed   : > { %v10282_v37 = vpop.f32.mrf.mxu1 }
0x15ef   : > { %v14381_v55 = vpop.f32.mrf.mxu1  ;;  %v6351_v25 = vpop.xlane.xlu1 %6350 }
0x15f0   : > { %v6598_v54 = vpack.c.bf16 %v14375_v23, %v14381_v55  ;;  %11058 = vrcp.f32 %v6351_v25  ;;  %v4178_v23 = vadd.f32 %v14640_v56, %v13214_v20  ;;  %v4177_v20 = vadd.f32 %v14640_v56, %v13207_v38 }
0x15f1   : > { %v10323_v2 = vpop.f32.mrf.mxu1  ;;  %11060 = vrcp.f32 %v6354_v12  ;;  %v14426_v12 = vld [vmem:[%s16125_s29 + $0xc8] sm:$0xff] }
0x15f2   : > { %v6823_v62 = vadd.f32 %v10323_v2, %v14386_v45 }
0x15f3   : > { %v6814_v1 = vpop.f32.mrf.mxu1  ;;  %v6417_v29 = vpop.permute.xlu1 %6416 }
0x15f4   : > { %v14402_v11 = vadd.f32 %v14169_v41, %v6823_v62  ;;  %v6815_v26 = vadd.f32 %v14393_v35, %v6814_v1  ;;  %10253 = vmatprep.subr.bf16.mxu0 %v6417_v29  ;;  %v6392_v62 = vmul.f32 %v11055_v30, %v14278_v6 }
0x15f5   : > { %10254 = vmatpush3.bf16.msra.mxu0 %v6417_v29  ;;  %v10324_v60 = vpop.f32.mrf.mxu1 }
0x15f6   : > { %v14411_v31 = vadd.f32 %v14169_v41, %v6815_v26  ;;  %v6826_v52 = vadd.f32 %v10324_v60, %v14399_v16  ;;  %10255 = vmatprep.subr.bf16.mxu0 %v6415_v44  ;;  %v6968_v17 = vsel %vm1583_vm4, %v14402_v11, -inf }
0x15f7   : > { %6969 = vmax.xlane.f32.xlu0 %v6968_v17  ;;  %v6817_v34 = vpop.f32.mrf.mxu1  ;;  %v10656_v17 = vld [vmem:[%s11529_s24 + $0x10] sm:$0xff]  }
0x15f8   : > { %v6818_v42 = vadd.f32 %v14408_v0, %v6817_v34  ;;  %v14429_v43 = vadd.f32 %v14169_v41, %v6826_v52  ;;  %v6962_v22 = vsel %vm1583_vm4, %v14411_v31, -inf  ;;  %v9245_v52 = vld [vmem:[%s16125_s29 + $0xd0] sm:$0xff]  ;;  %v6405_v34 = vpack.c.bf16 %v6393_v8, %v6392_v62  ;;  %v14459_v62 = vpop.permute.xlu1 %7130 }
0x15f9   : > { %10256 = vmatpush3.bf16.msra.mxu0 %v6415_v44  ;;  %v10327_v19 = vpop.f32.mrf.mxu1  ;;  %v11057_v2 = vpop.eup %11056 }
0x15fa   : > { %v14432_v37 = vadd.f32 %v14169_v41, %v6818_v42  ;;  %v6839_v25 = vadd.f32 %v10327_v19, %v14419_v58  ;;  %10257 = vmatprep.subr.bf16.mxu0 %v6413_v61  ;;  %v6971_v6 = vsel %vm1583_vm4, %v14429_v43, -inf  ;;  %v6394_v42 = vmul.f32 %v11057_v2, %v14350_v4 }
0x15fb   : > { %v6830_v44 = vpop.f32.mrf.mxu1  ;;  %6963 = vmax.xlane.f32.xlu0 %v6962_v22 }
0x15fc   : > { %v14439_v1 = vadd.f32 %v14169_v41, %v6839_v25  ;;  %v6831_v29 = vadd.f32 %v14426_v12, %v6830_v44  ;;  %v6965_v26 = vsel %vm1583_vm4, %v14432_v37, -inf }
0x15fd   : > { %v11059_v60 = vpop.eup %11058  ;;  %v10328_v46 = vpop.f32.mrf.mxu1  ;;  %6966 = vmax.xlane.f32.xlu1 %v6965_v26  ;;  %10258 = vmatpush3.bf16.msra.mxu0 %v6413_v61 }
0x15fe   : > { %10283 = vmatprep.subr.bf16.mxu0 %v16091_v57  ;;  %v6395_v30 = vmul.f32 %v11059_v60, %v14354_v10  ;;  %v11061_v19 = vpop.eup %11060  ;;  %v14454_v61 = vadd.f32 %v14169_v41, %v6831_v29  ;;  %v6980_v8 = vsel %vm1583_vm4, %v14439_v1, -inf }
0x15ff   : > { %v6833_v25 = vpop.f32.mrf.mxu1  ;;  %6972 = vmax.xlane.f32.xlu0 %v6971_v6  ;;  %v6396_v10 = vmul.f32 %v11061_v19, %v14315_v47 }
0x1600   : > { %v6834_v22 = vadd.f32 %v9245_v52, %v6833_v25  ;;  %10260 = vmatmul.mubr.msk.bf16.vlgmr.msra.gmra.mxu0 %vm1583_vm4, %v6405_v34  ;;  %v6406_v44 = vpack.c.bf16 %v6395_v30, %v6394_v42  ;;  %v6974_v29 = vsel %vm1583_vm4, %v14454_v61, -inf }
0x1601   : > { %6981 = vmax.xlane.f32.xlu1 %v6980_v8  ;;  %10284 = vmatpush3.bf16.msra.mxu0 %v10656_v17  ;;  %v6407_v26 = vpack.c.bf16 %v6396_v10, %v6396_v10 }
0x1602   : > { %v14462_v4 = vadd.f32 %v14169_v41, %v6834_v22  ;;  %10263 = vmatprep.mubr.msk.bf16.mxu0 %vm1583_vm4, %v6406_v44  ;;  %10573 = vmatprep.subr.msk.bf16.mxu0 %vm1766_vm2, %v14459_v62 }
0x1604   : > { %v6977_v2 = vsel %vm1583_vm4, %v14462_v4, -inf }
0x1605   : > { %6978 = vmax.xlane.f32.xlu0 %v6977_v2  ;;  %6975 = vmax.xlane.f32.xlu1 %v6974_v29 }
0x1608   : > { %10264 = vmatmul.mubr.msk.bf16.gmra.mxu0 %vm1583_vm4, %v6407_v26 }
0x1609   : > { %10285 = vmatprep.mubr.msk.bf16.mxu0 %vm11312_vm5, %v16091_v57 }
0x1611   : > { %v10339_v41 = vpop.f32.mrf.mxu1 }
0x1612   : > { %v6927_v42 = vadd.f32 %v10339_v41, %v14386_v45 }
0x1613   : > { %v6918_v60 = vpop.f32.mrf.mxu1 }
0x1614   : > { %v14482_v19 = vadd.f32 %v14052_v15, %v6927_v42  ;;  %v6919_v25 = vadd.f32 %v14393_v35, %v6918_v60 }
0x1615   : > { %v10340_v46 = vpop.f32.mrf.mxu1 }
0x1616   : > { %7126 = vrot.lane.b32.xlu1 %v13162_v36, %s11314_s1  ;;  %v6930_v30 = vadd.f32 %v10340_v46, %v14399_v16  ;;  %v14490_v44 = vadd.f32 %v14052_v15, %v6919_v25 }
0x1617   : > { %v6921_v47 = vpop.f32.mrf.mxu1 }
0x1618   : > { %v14486_v22 = vadd.f32 %v14052_v15, %v6930_v30  ;;  %v6922_v36 = vadd.f32 %v14408_v0, %v6921_v47  ;;  %v6983_v0 = vsel %vm1583_vm4, %v14490_v44, -inf }
0x1619   : > { %v10343_v17 = vpop.f32.mrf.mxu1 }
0x161a   : > { %v14495_v45 = vadd.f32 %v14052_v15, %v6922_v36  ;;  %v6943_v16 = vadd.f32 %v10343_v17, %v14419_v58  ;;  %v6992_v35 = vsel %vm1583_vm4, %v14486_v22, -inf }
0x161b   : > { %v6934_v34 = vpop.f32.mrf.mxu1  ;;  %7128 = vrot.lane.b32.xlu0 %v13170_v18, %s11314_s1  ;;  %v6989_v18 = vsel %vm1583_vm4, %v14482_v19, -inf }
0x161c   : > { %v14503_v2 = vadd.f32 %v14052_v15, %v6943_v16  ;;  %v6935_v29 = vadd.f32 %v14426_v12, %v6934_v34  ;;  %v6986_v58 = vsel %vm1583_vm4, %v14495_v45, -inf }
0x161d   : > { %v10344_v6 = vpop.f32.mrf.mxu1 }
0x161e   : > { %v7001_v41 = vsel %vm1583_vm4, %v14503_v2, -inf }
0x161f   : > { %v6937_v8 = vpop.f32.mrf.mxu1 }
0x1620   : > { %v6938_v10 = vadd.f32 %v9245_v52, %v6937_v8  ;;  %v14512_v52 = vadd.f32 %v14052_v15, %v6935_v29 }
0x1622   : > { %v14507_v26 = vadd.f32 %v14052_v15, %v6938_v10  ;;  %v6995_v12 = vsel %vm1583_vm4, %v14512_v52, -inf }
0x1624   : > { %v6998_v60 = vsel %vm1583_vm4, %v14507_v26, -inf }
0x163a   : > { %6990 = vmax.xlane.f32.xlu0 %v6989_v18  ;;  %6993 = vmax.xlane.f32.xlu1 %v6992_v35 }
0x163e   : > { %6984 = vmax.xlane.f32.xlu0 %v6983_v0  ;;  %6987 = vmax.xlane.f32.xlu1 %v6986_v58 }
0x1642   : > { %7002 = vmax.xlane.f32.xlu0 %v7001_v41  ;;  %6999 = vmax.xlane.f32.xlu1 %v6998_v60 }
0x1646   : > { %6996 = vmax.xlane.f32.xlu0 %v6995_v12 }
0x1653   : > { %7124 = vrot.lane.b32.xlu1 %v13152_v5, %s11314_s1 }
0x1680   : > { %v6970_v46 = vpop.xlane.xlu0 %6969 }
0x1681   : > { %v7006_v47 = vsub.f32 %v14402_v11, %v6970_v46 }
0x1683   : > { %v7022_v15 = vmul.f32 1.442695, %v7006_v47 }
0x1684   : > { %v6964_v17 = vpop.xlane.xlu0 %6963 }
0x1685   : > { %11062 = vpow2.f32 %v7022_v15  ;;  %v7004_v34 = vsub.f32 %v14411_v31, %v6964_v17 }
0x1686   : > { %v6967_v6 = vpop.xlane.xlu1 %6966 }
0x1687   : > { %v7018_v42 = vmul.f32 1.442695, %v7004_v34  ;;  %v7005_v30 = vsub.f32 %v14432_v37, %v6967_v6 }
0x1688   : > { %v6973_v25 = vpop.xlane.xlu0 %6972 }
0x1689   : > { %11064 = vpow2.f32 %v7018_v42  ;;  %v7007_v36 = vsub.f32 %v14429_v43, %v6973_v25  ;;  %v7020_v8 = vmul.f32 1.442695, %v7005_v30 }
0x168a   : > { %v6982_v0 = vpop.xlane.xlu1 %6981 }
0x168b   : > { %v7024_v18 = vmul.f32 1.442695, %v7007_v36  ;;  %v7010_v41 = vsub.f32 %v14439_v1, %v6982_v0 }
0x168d   : > { %11066 = vpow2.f32 %v7024_v18  ;;  %v7030_v46 = vmul.f32 1.442695, %v7010_v41 }
0x168e   : > { %11068 = vpow2.f32 %v7020_v8  ;;  %v6976_v29 = vpop.xlane.xlu1 %6975  ;;  %v6979_v58 = vpop.xlane.xlu0 %6978 }
0x168f   : > { %v7008_v47 = vsub.f32 %v14454_v61, %v6976_v29  ;;  %11070 = vpow2.f32 %v7030_v46  ;;  %v7009_v30 = vsub.f32 %v14462_v4, %v6979_v58  ;;  %v7148_v4 = vsel %vm1766_vm2, %v14459_v62, 0 }
0x1691   : > { %v7026_v42 = vmul.f32 1.442695, %v7008_v47  ;;  %v7028_v61 = vmul.f32 1.442695, %v7009_v30 }
0x1692   : > { %v14526_v5 = vpop.eup %11062  ;;  %v7127_v60 = vpop.permute.xlu1 %7126 }
0x1693   : > { %v7052_v11 = vsel %vm1583_vm4, %v14526_v5, 0.0  ;;  %v7129_v12 = vpop.permute.xlu0 %7128  ;;  %11072 = vpow2.f32 %v7026_v42 }
0x1694   : > { %7053 = vadd.xlane.f32.xlu1 %v7052_v11 }
0x1696   : > { %v14530_v16 = vpop.eup %11064 }
0x1697   : > { %v7046_v31 = vsel %vm1583_vm4, %v14530_v16, 0.0 }
0x1698   : > { %7047 = vadd.xlane.f32.xlu1 %v7046_v31 }
0x169a   : > { %v14534_v37 = vpop.eup %11066 }
0x169b   : > { %v7055_v43 = vsel %vm1583_vm4, %v14534_v37, 0.0  ;;  %v14538_v10 = vpop.eup %11068 }
0x169c   : > { %7056 = vadd.xlane.f32.xlu0 %v7055_v43  ;;  %v7049_v35 = vsel %vm1583_vm4, %v14538_v10, 0.0 }
0x16a0   : > { %7050 = vadd.xlane.f32.xlu0 %v7049_v35 }
0x16b6   : > { %7220 = vrot.lane.b32.xlu0 %v13309_v48, %s11314_s1 }
0x16c0   : > { %v10261_v15 = vpop.f32.mrf.mxu0 }
0x16c2   : > { %v6472_v17 = vpop.f32.mrf.mxu0 }
0x16c3   : > { %v6994_v34 = vpop.xlane.xlu1 %6993  ;;  %v6991_v6 = vpop.xlane.xlu0 %6990 }
0x16c4   : > { %v7013_v25 = vsub.f32 %v14482_v19, %v6991_v6  ;;  %v10262_v48 = vpop.f32.mrf.mxu0  ;;  %v7014_v1 = vsub.f32 %v14486_v22, %v6994_v34  ;;  %v14560_v6 = vpop.eup %11070 }
0x16c5   : > { %v6593_v47 = vpack.c.bf16 %v10262_v48, %v10261_v15  ;;  %v7064_v30 = vsel %vm1583_vm4, %v14560_v6, 0.0 }
0x16c6   : > { %v7036_v36 = vmul.f32 1.442695, %v7013_v25  ;;  %v6475_v8 = vpop.f32.mrf.mxu0  ;;  %v7038_v29 = vmul.f32 1.442695, %v7014_v1  ;;  %v14568_v25 = vpop.eup %11072 }
0x16c7   : > { %v6592_v18 = vpack.c.bf16 %v6475_v8, %v6472_v17  ;;  %v6988_v11 = vpop.xlane.xlu1 %6987  ;;  %v6985_v31 = vpop.xlane.xlu0 %6984 }
0x16c8   : > { %v7012_v43 = vsub.f32 %v14495_v45, %v6988_v11  ;;  %v7011_v35 = vsub.f32 %v14490_v44, %v6985_v31  ;;  %v14551_v0 = vpop.f32.mrf.mxu0  ;;  %11074 = vpow2.f32 %v7036_v36 }
0x16c9   : > { %10286 = vmatmul.mubr.msk.bf16.vlgmr.msra.gmra.mxu0 %vm1368_vm3, %v6592_v18  ;;  %11076 = vpow2.f32 %v7028_v61 }
0x16ca   : > { %v7032_v19 = vmul.f32 1.442695, %v7011_v35  ;;  %10346 = vmatpush3.bf16.msra.mxu0 %v7148_v4  ;;  %v6488_v22 = vpop.f32.mrf.mxu0  ;;  %10289 = vmatprep.mubr.msk.bf16.mxu0 %vm11312_vm5, %v16091_v57  ;;  %v7034_v45 = vmul.f32 1.442695, %v7012_v43  ;;  %v6595_v43 = vpack.c.bf16 %v14364_v59, %v14551_v0 }
0x16cb   : > { %10347 = vmatprep.subr.bf16.mxu0 %v7129_v12  ;;  %v7003_v58 = vpop.xlane.xlu0 %7002  ;;  %v7000_v44 = vpop.xlane.xlu1 %6999 }
0x16cc   : > { %v7017_v41 = vsub.f32 %v14503_v2, %v7003_v58  ;;  %v10266_v46 = vpop.f32.mrf.mxu0  ;;  %11078 = vpow2.f32 %v7032_v19  ;;  %v7016_v2 = vsub.f32 %v14507_v26, %v7000_v44  ;;  %v7058_v26 = vsel %vm1583_vm4, %v14568_v25, 0.0 }
0x16cd   : > { %11080 = vpow2.f32 %v7038_v29 }
0x16ce   : > { %10348 = vmatpush3.bf16.msra.mxu0 %v7129_v12  ;;  %v7044_v62 = vmul.f32 1.442695, %v7017_v41  ;;  %11082 = vpow2.f32 %v7034_v45  ;;  %v6491_v15 = vpop.f32.mrf.mxu0  ;;  %v7042_v48 = vmul.f32 1.442695, %v7016_v2  ;;  %v4180_v41 = vadd.f32 %v14640_v56, %v13229_v14 }
0x16cf   : > { %10349 = vmatprep.subr.bf16.mxu0 %v7127_v60  ;;  %v6997_v17 = vpop.xlane.xlu0 %6996  ;;  %v7125_v42 = vpop.permute.xlu1 %7124 }
0x16d0   : > { %v7015_v34 = vsub.f32 %v14512_v52, %v6997_v17  ;;  %11084 = vpow2.f32 %v7044_v62  ;;  %v14684_v62 = vld [vmem:[%s11580_s20 + $0x10] sm:$0xff] }
0x16d1   : > { %10290 = vmatmul.mubr.msk.bf16.gmra.mxu0 %vm1368_vm3, %v6593_v47  ;;  %v14687_v38 = vadd.f32 %v14684_v62, %v4177_v20  ;;  %v16159_v20 = vld [vmem:[#allocation26_spill] sm:$0xff] }
0x16d2   : > { %10350 = vmatpush3.bf16.msra.mxu0 %v7127_v60  ;;  %10293 = vmatprep.mubr.msk.bf16.mxu0 %vm11312_vm5, %v16091_v57  ;;  %v7040_v12 = vmul.f32 1.442695, %v7015_v34  ;;  %v6594_v60 = vpack.c.bf16 %v6491_v15, %v6488_v22  ;;  %v14691_v34 = vld [vmem:[%s11580_s20 + $0x28] sm:$0xff]  ;;  %v16156_v15 = vld [vmem:[#allocation24_spill] sm:$0xff] }
0x16d3   : > { %10351 = vmatprep.subr.bf16.mxu0 %v7125_v42  ;;  %16155 = vst [vmem:[#allocation46_spill] sm:$0xff] %v14687_v38 }
0x16d4   : > { %11086 = vpow2.f32 %v7040_v12 }
0x16d5   : > { %7065 = vadd.xlane.f32.xlu0 %v7064_v30  ;;  %v14570_v52 = vpop.eup %11074  ;;  %11088 = vpow2.f32 %v7042_v48  ;;  %v4179_v30 = vadd.f32 %v14640_v56, %v16156_v15  ;;  %v4209_v48 = vsel %vm1216_vm1, %v14687_v38, 0.0 }
0x16d6   : > { %10352 = vmatpush3.bf16.msra.mxu0 %v7125_v42  ;;  %v7073_v36 = vsel %vm1583_vm4, %v14570_v52, 0.0  ;;  %v14577_v8 = vpop.eup %11076  ;;  %v14694_v42 = vadd.f32 %v14691_v34, %v4180_v41 }
0x16d7   : > { %10377 = vmatprep.subr.bf16.mxu0 %v16091_v57  ;;  %7074 = vadd.xlane.f32.xlu1 %v7073_v36  ;;  %v7061_v31 = vsel %vm1583_vm4, %v14577_v8, 0.0  ;;  %v16157_v36 = vld [vmem:[#allocation25_spill] sm:$0xff] }
0x16d9   : > { %10294 = vmatmul.mubr.msk.bf16.gmra.mxu0 %vm1368_vm3, %v6594_v60  ;;  %7059 = vadd.xlane.f32.xlu0 %v7058_v26  ;;  %v14580_v1 = vpop.eup %11078  ;;  %v4261_v60 = vmul.f32 %v14687_v38, %v14687_v38  ;;  %v4182_v26 = vadd.f32 %v14640_v56, %v16157_v36 }
0x16da   : > { %10297 = vmatprep.mubr.msk.bf16.mxu0 %vm11312_vm5, %v16091_v57  ;;  %v7067_v18 = vsel %vm1583_vm4, %v14580_v1, 0.0  ;;  %v14586_v11 = vpop.eup %11080 }
0x16db   : > { %7068 = vadd.xlane.f32.xlu1 %v7067_v18  ;;  %v14590_v61 = vpop.eup %11082  ;;  %v7076_v35 = vsel %vm1583_vm4, %v14586_v11, 0.0 }
0x16dc   : > { %v7070_v19 = vsel %vm1583_vm4, %v14590_v61, 0.0 }
0x16dd   : > { %7062 = vadd.xlane.f32.xlu0 %v7061_v31  ;;  %v14596_v4 = vpop.eup %11084  ;;  %v4218_v31 = vsel %vm1216_vm1, %v14694_v42, 0.0 }
0x16de   : > { %v7085_v22 = vsel %vm1583_vm4, %v14596_v4, 0.0 }
0x16df   : > { %7077 = vadd.xlane.f32.xlu1 %v7076_v35  ;;  %v14710_v35 = vld [vmem:[%s11580_s20 + $0x20] sm:$0xff] }
0x16e1   : > { %10298 = vmatmul.mubr.msk.bf16.gmra.mxu0 %vm1368_vm3, %v6595_v43  ;;  %7071 = vadd.xlane.f32.xlu0 %v7070_v19  ;;  %v14605_v59 = vpop.eup %11086  ;;  %v4264_v43 = vmul.f32 %v14694_v42, %v14694_v42  ;;  %v14713_v19 = vadd.f32 %v14710_v35, %v4179_v30 }
0x16e2   : > { %10301 = vmatprep.mubr.msk.bf16.mxu0 %vm11312_vm5, %v16091_v57  ;;  %v7079_v0 = vsel %vm1583_vm4, %v14605_v59, 0.0  ;;  %v14609_v29 = vpop.eup %11088 }
0x16e3   : > { %7086 = vadd.xlane.f32.xlu1 %v7085_v22  ;;  %v7082_v58 = vsel %vm1583_vm4, %v14609_v29, 0.0  ;;  %v4279_v22 = vsel %vm1216_vm1, %v4261_v60, 0.0 }
0x16e7   : > { %7080 = vadd.xlane.f32.xlu1 %v7079_v0  ;;  %v14717_v0 = vld [vmem:[%s11580_s20 + $0x38] sm:$0xff] }
0x16e9   : > { %10302 = vmatmul.mubr.msk.bf16.gmra.mxu0 %vm1368_vm3, %v6596_v33 }
0x16ea   : > { %10305 = vmatprep.mubr.msk.bf16.mxu0 %vm11312_vm5, %v16091_v57 }
0x16eb   : > { %7083 = vadd.xlane.f32.xlu1 %v7082_v58  ;;  %v14720_v58 = vadd.f32 %v14717_v0, %v4182_v26 }
0x16ed   : > { %v4266_v41 = vmul.f32 %v14720_v58, %v14720_v58 }
0x16ef   : > { %v4294_v30 = vsel %vm1216_vm1, %v4266_v41, 0.0  ;;  %v16162_v41 = vld [vmem:[#allocation31_spill] sm:$0xff] }
0x16f1   : > { %10306 = vmatmul.mubr.msk.bf16.gmra.mxu0 %vm1368_vm3, %v6597_v24  ;;  %v14668_v24 = vadd.f32 %v14665_v50, %v4178_v23 }
0x16f2   : > { %10309 = vmatprep.mubr.msk.bf16.mxu0 %vm11312_vm5, %v16091_v57 }
0x16f3   : > { %16154 = vst [vmem:[#allocation45_spill] sm:$0xff] %v14668_v24  ;;  %v4212_v46 = vsel %vm1216_vm1, %v14668_v24, 0.0  ;;  %v4262_v47 = vmul.f32 %v14668_v24, %v14668_v24 }
0x16f5   : > { %v4282_v12 = vsel %vm1216_vm1, %v4262_v47, 0.0 }
0x16f7   : > { %7216 = vrot.lane.b32.xlu0 %v13211_v49, %s11314_s1  ;;  %v4175_v49 = vadd.f32 %v14640_v56, %v13191_v53 }
0x16f9   : > { %10310 = vmatmul.mubr.msk.bf16.gmra.mxu0 %vm1368_vm3, %v6598_v54  ;;  %v14650_v33 = vadd.f32 %v14647_v21, %v4175_v49 }
0x16fb   : > { %7214 = vrot.lane.b32.xlu0 %v13199_v27, %s11314_s1  ;;  %16152 = vst [vmem:[#allocation43_spill] sm:$0xff] %v14650_v33  ;;  %v14653_v27 = vld [vmem:[%s11580_s20 + $0x8] sm:$0xff]  ;;  %v4203_v39 = vsel %vm1216_vm1, %v14650_v33, 0.0  ;;  %v4259_v44 = vmul.f32 %v14650_v33, %v14650_v33 }
0x16fc   : > { %7218 = vrot.lane.b32.xlu1 %v13225_v51, %s11314_s1  ;;  %v14656_v51 = vadd.f32 %v14653_v27, %v4176_v28  ;;  %v4288_v28 = vsel %vm1216_vm1, %v4264_v43, 0.0  ;;  %s16218_s1 = sld [smem:[#allocation60_spill]] }
0x16fd   : > { %v4273_v17 = vsel %vm1216_vm1, %v4259_v44, 0.0  ;;  %v4224_v44 = vsel %vm1216_vm1, %v14720_v58, 0.0 }
0x16fe   : > { %16153 = vst [vmem:[#allocation44_spill] sm:$0xff] %v14656_v51  ;;  %v4260_v53 = vmul.f32 %v14656_v51, %v14656_v51  ;;  %v4206_v45 = vsel %vm1216_vm1, %v14656_v51, 0.0 }
0x1700   : > { %v4276_v55 = vsel %vm1216_vm1, %v4260_v53, 0.0 }
0x1702   : > { %s16219_s8 = scalar_lea.vmem %s16218_s1, %s11474_s7 }
0x171a   : > { %4204 = vadd.xlane.f32.xlu0 %v4203_v39  ;;  %v16158_v39 = vld [vmem:[#allocation29_spill] sm:$0xff] }
0x171b   : > { %v4181_v53 = vadd.f32 %v14640_v56, %v16158_v39 }
0x171d   : > { %v7054_v54 = vpop.xlane.xlu1 %7053 }
0x171e   : > { %4277 = vadd.xlane.f32.xlu0 %v4276_v55  ;;  %v4215_v55 = vsel %vm1216_vm1, %v14713_v19, 0.0 }
0x1720   : > { %4207 = vadd.xlane.f32.xlu1 %v4206_v45  ;;  %v4184_v45 = vadd.f32 %v14640_v56, %v16159_v20  ;;  %v14768_v20 = vld [vmem:[%s11580_s20 + $0x40] sm:$0xff] }
0x1721   : > { %v7048_v14 = vpop.xlane.xlu1 %7047 }
0x1722   : > { %4213 = vadd.xlane.f32.xlu0 %v4212_v46  ;;  %v14738_v46 = vld [vmem:[%s11580_s20 + $0x30] sm:$0xff] }
0x1723   : > { %v14741_v47 = vadd.f32 %v14738_v46, %v4181_v53 }
0x1724   : > { %4274 = vadd.xlane.f32.xlu1 %v4273_v17 }
0x1725   : > { %v7057_v2 = vpop.xlane.xlu0 %7056  ;;  %v4221_v26 = vsel %vm1216_vm1, %v14741_v47, 0.0  ;;  %v4265_v43 = vmul.f32 %v14741_v47, %v14741_v47 }
0x1726   : > { %4283 = vadd.xlane.f32.xlu0 %v4282_v12  ;;  %11090 = vrcp.f32 %v7057_v2  ;;  %v14745_v12 = vld [vmem:[%s11580_s20 + $0x48] sm:$0xff] }
0x1727   : > { %11092 = vrcp.f32 %v7048_v14  ;;  %v14748_v15 = vadd.f32 %v14745_v12, %v4184_v45 }
0x1728   : > { %11094 = vrcp.f32 %v7054_v54  ;;  %4210 = vadd.xlane.f32.xlu1 %v4209_v48  ;;  %v4263_v54 = vmul.f32 %v14713_v19, %v14713_v19 }
0x1729   : > { %v7051_v18 = vpop.xlane.xlu0 %7050  ;;  %v4268_v53 = vmul.f32 %v14748_v15, %v14748_v15 }
0x172a   : > { %11096 = vrcp.f32 %v7051_v18  ;;  %4219 = vadd.xlane.f32.xlu0 %v4218_v31  ;;  %v4285_v14 = vsel %vm1216_vm1, %v4263_v54, 0.0  ;;  %v16160_v18 = vld [vmem:[#allocation30_spill] sm:$0xff] }
0x172b   : > { %v4183_v31 = vadd.f32 %v14640_v56, %v16160_v18 }
0x172c   : > { %4280 = vadd.xlane.f32.xlu1 %v4279_v22 }
0x172d   : > { %v7221_v49 = vpop.permute.xlu0 %7220 }
0x172e   : > { %4289 = vadd.xlane.f32.xlu0 %v4288_v28  ;;  %10574 = vmatprep.subr.msk.bf16.mxu1 %vm1766_vm2, %v7221_v49  ;;  %v7238_v23 = vsel %vm1766_vm2, %v7221_v49, 0  ;;  %v16161_v28 = vld [vmem:[#allocation27_spill] sm:$0xff] }
0x172f   : > { %10362 = vmatpush3.bf16.msra.mxu1 %v7238_v23  ;;  %v4186_v23 = vadd.f32 %v14640_v56, %v16161_v28  ;;  %v16165_v28 = vld [vmem:[#allocation32_spill] sm:$0xff] }
0x1730   : > { %4216 = vadd.xlane.f32.xlu1 %v4215_v55 }
0x1732   : > { %4225 = vadd.xlane.f32.xlu0 %v4224_v44  ;;  %v4300_v44 = vsel %vm1216_vm1, %v4268_v53, 0.0 }
0x1733   : > { %v11091_v17 = vpop.eup %11090 }
0x1734   : > { %v11093_v2 = vpop.eup %11092  ;;  %4286 = vadd.xlane.f32.xlu1 %v4285_v14  ;;  %v7105_v36 = vmul.f32 %v11091_v17, %v14534_v37  ;;  %v4230_v37 = vsel %vm1216_vm1, %v14748_v15, 0.0  ;;  %v4185_v17 = vadd.f32 %v14640_v56, %v16162_v41 }
0x1735   : > { %v11095_v48 = vpop.eup %11094  ;;  %v7102_v22 = vmul.f32 %v11093_v2, %v14530_v16  ;;  %v14771_v16 = vadd.f32 %v14768_v20, %v4183_v31 }
0x1736   : > { %4295 = vadd.xlane.f32.xlu0 %v4294_v30  ;;  %v7104_v39 = vmul.f32 %v11095_v48, %v14526_v5  ;;  %v14776_v5 = vld [vmem:[%s11580_s20 + $0x58] sm:$0xff] }
0x1737   : > { %v11097_v60 = vpop.eup %11096  ;;  %v14779_v45 = vadd.f32 %v14776_v5, %v4186_v23  ;;  %v4227_v14 = vsel %vm1216_vm1, %v14771_v16, 0.0  ;;  %v4267_v2 = vmul.f32 %v14771_v16, %v14771_v16  ;;  %v16163_v30 = vld [vmem:[#allocation28_spill] sm:$0xff]  ;;  %v4187_v23 = vadd.f32 %v14640_v56, %v16165_v28 }
0x1738   : > { %v7103_v49 = vmul.f32 %v11097_v60, %v14538_v10  ;;  %4222 = vadd.xlane.f32.xlu1 %v4221_v26  ;;  %v7117_v54 = vpack.c.bf16 %v7105_v36, %v7104_v39  ;;  %v4291_v10 = vsel %vm1216_vm1, %v4265_v43, 0.0  ;;  %v4188_v48 = vadd.f32 %v14640_v56, %v16163_v30  ;;  %v14796_v26 = vld [vmem:[%s11580_s20 + $0x50] sm:$0xff]  ;;  %v14803_v43 = vld [vmem:[%s11580_s20 + $0x68] sm:$0xff] }
0x1739   : > { %v4236_v60 = vsel %vm1216_vm1, %v14779_v45, 0.0  ;;  %v4270_v36 = vmul.f32 %v14779_v45, %v14779_v45  ;;  %v14799_v18 = vadd.f32 %v14796_v26, %v4185_v17  ;;  %v4297_v31 = vsel %vm1216_vm1, %v4267_v2, 0.0  ;;  %16164 = vst [vmem:[#allocation24_spill] sm:$0xff] %v14803_v43 }
0x173a   : > { %4231 = vadd.xlane.f32.xlu0 %v4230_v37  ;;  %v7116_v55 = vpack.c.bf16 %v7103_v49, %v7102_v22  ;;  %v14806_v22 = vadd.f32 %v14803_v43, %v4188_v48 }
0x173b   : > { %v4306_v49 = vsel %vm1216_vm1, %v4270_v36, 0.0  ;;  %v4233_v39 = vsel %vm1216_vm1, %v14799_v18, 0.0  ;;  %v4269_v37 = vmul.f32 %v14799_v18, %v14799_v18 }
0x173c   : > { %10353 = vmatprep.mubr.msk.bf16.mxu0 %vm1583_vm4, %v7116_v55  ;;  %4292 = vadd.xlane.f32.xlu1 %v4291_v10  ;;  %v4242_v53 = vsel %vm1216_vm1, %v14806_v22, 0.0  ;;  %v4272_v55 = vmul.f32 %v14806_v22, %v14806_v22 }
0x173d   : > { %10354 = vmatmul.mubr.msk.bf16.vlgmr.msra.gmra.mxu0 %vm1583_vm4, %v7117_v54  ;;  %v14820_v54 = vld [vmem:[%s11580_s20 + $0x60] sm:$0xff]  ;;  %v4303_v56 = vsel %vm1216_vm1, %v4269_v37, 0.0 }
0x173e   : > { %4301 = vadd.xlane.f32.xlu0 %v4300_v44  ;;  %v14823_v10 = vadd.f32 %v14820_v54, %v4187_v23  ;;  %v4312_v44 = vsel %vm1216_vm1, %v4272_v55, 0.0 }
0x1740   : > { %4228 = vadd.xlane.f32.xlu1 %v4227_v14  ;;  %v4239_v41 = vsel %vm1216_vm1, %v14823_v10, 0.0  ;;  %v4271_v17 = vmul.f32 %v14823_v10, %v14823_v10 }
0x1742   : > { %4237 = vadd.xlane.f32.xlu0 %v4236_v60  ;;  %v4309_v14 = vsel %vm1216_vm1, %v4271_v17, 0.0 }
0x1744   : > { %4298 = vadd.xlane.f32.xlu1 %v4297_v31 }
0x1746   : > { %4307 = vadd.xlane.f32.xlu0 %v4306_v49 }
0x1748   : > { %4234 = vadd.xlane.f32.xlu1 %v4233_v39 }
0x174a   : > { %4243 = vadd.xlane.f32.xlu0 %v4242_v53 }
0x174c   : > { %4304 = vadd.xlane.f32.xlu1 %v4303_v56 }
0x174e   : > { %4313 = vadd.xlane.f32.xlu0 %v4312_v44 }
0x1750   : > { %4240 = vadd.xlane.f32.xlu1 %v4239_v41 }
0x1754   : > { %4310 = vadd.xlane.f32.xlu1 %v4309_v14 }
0x175e   : > { %v7066_v2 = vpop.xlane.xlu0 %7065 }
0x175f   : > { %11098 = vrcp.f32 %v7066_v2 }
0x1760   : > { %v7075_v30 = vpop.xlane.xlu1 %7074 }
0x1762   : > { %v7060_v48 = vpop.xlane.xlu0 %7059 }
0x1763   : > { %11100 = vrcp.f32 %v7060_v48 }
0x1764   : > { %v7069_v60 = vpop.xlane.xlu1 %7068 }
0x1766   : > { %v7063_v36 = vpop.xlane.xlu0 %7062 }
0x1767   : > { %11102 = vrcp.f32 %v7063_v36 }
0x1768   : > { %11104 = vrcp.f32 %v7069_v60  ;;  %v7078_v31 = vpop.xlane.xlu1 %7077 }
0x176a   : > { %v7072_v49 = vpop.xlane.xlu0 %7071 }
0x176b   : > { %11106 = vrcp.f32 %v7072_v49 }
0x176c   : > { %v7087_v28 = vpop.xlane.xlu1 %7086  ;;  %11108 = vrcp.f32 %v7078_v31  ;;  %v11099_v23 = vpop.eup %11098 }
0x176d   : > { %11110 = vrcp.f32 %v7075_v30  ;;  %v7108_v55 = vmul.f32 %v11099_v23, %v14560_v6 }
0x176e   : > { %v7217_v60 = vpop.permute.xlu0 %7216 }
0x176f   : > { %v7119_v48 = vpack.c.bf16 %v7108_v55, %v7108_v55  ;;  %v10657_v55 = vld [vmem:[%s11529_s24 + $0x18] sm:$0xff]  }
0x1770   : > { %v7081_v39 = vpop.xlane.xlu1 %7080  ;;  %v11101_v37 = vpop.eup %11100  ;;  %10378 = vmatpush3.bf16.msra.mxu0 %v10657_v55  ;;  %v16171_v55 = vld [vmem:[#allocation35_spill] sm:$0xff] }
0x1771   : > { %11112 = vrcp.f32 %v7081_v39  ;;  %v7106_v44 = vmul.f32 %v11101_v37, %v14568_v25  ;;  %10443 = vmatprep.subr.bf16.mxu0 %v16091_v57 }
0x1772   : > { %v7215_v49 = vpop.permute.xlu0 %7214 }
0x1774   : > { %v11103_v53 = vpop.eup %11102  ;;  %v7084_v56 = vpop.xlane.xlu1 %7083 }
0x1775   : > { %v7107_v41 = vmul.f32 %v11103_v53, %v14577_v8  ;;  %v11105_v17 = vpop.eup %11104  ;;  %11114 = vrcp.f32 %v7084_v56 }
0x1776   : > { %11116 = vrcp.f32 %v7087_v28  ;;  %v7109_v30 = vmul.f32 %v11105_v17, %v14580_v1  ;;  %v5969_v17 = vadd.f32 %v13997_v9, %v14117_v3 }
0x1777   : > { %v7118_v14 = vpack.c.bf16 %v7107_v41, %v7106_v44 }
0x1778   : > { %v11107_v2 = vpop.eup %11106  ;;  %v7219_v36 = vpop.permute.xlu1 %7218 }
0x1779   : > { %10357 = vmatprep.mubr.msk.bf16.mxu0 %vm1583_vm4, %v7118_v14  ;;  %v7110_v31 = vmul.f32 %v11107_v2, %v14590_v61  ;;  %10363 = vmatprep.subr.bf16.mxu1 %v7219_v36  ;;  %v11109_v25 = vpop.eup %11108 }
0x177a   : > { %10358 = vmatmul.mubr.msk.bf16.gmra.mxu0 %vm1583_vm4, %v7119_v48  ;;  %10364 = vmatpush3.bf16.msra.mxu1 %v7219_v36  ;;  %v11111_v8 = vpop.eup %11110  ;;  %v7112_v1 = vmul.f32 %v11109_v25, %v14586_v11  ;;  %v16167_v25 = vld [vmem:[#allocation33_spill] sm:$0xff] }
0x177b   : > { %v7120_v6 = vpack.c.bf16 %v7110_v31, %v7109_v30  ;;  %10379 = vmatprep.mubr.msk.bf16.mxu0 %vm11312_vm5, %v16091_v57  ;;  %10365 = vmatprep.subr.bf16.mxu1 %v7217_v60  ;;  %v7111_v28 = vmul.f32 %v11111_v8, %v14570_v52  ;;  %v5966_v52 = vadd.f32 %v13995_v7, %v14115_v40  ;;  %v16166_v30 = vld [vmem:[#allocation21_spill] sm:$0xff]  ;;  %v16168_v8 = vld [vmem:[#allocation22_spill] sm:$0xff] }
0x177c   : > { %v5974_v7 = vadd.f32 %v14002_v63, %v14119_v13  ;;  %v5977_v9 = vadd.f32 %v16166_v30, %v14123_v32  ;;  %v16170_v63 = vld [vmem:[#allocation23_spill] sm:$0xff]  ;;  %v16172_v32 = vld [vmem:[#allocation13_spill] sm:$0xff] }
0x177d   : > { %10369 = vmatprep.mubr.msk.bf16.mxu1 %vm1583_vm4, %v7120_v6  ;;  %v7121_v39 = vpack.c.bf16 %v7112_v1, %v7111_v28  ;;  %v16178_v30 = vld [vmem:[#allocation17_spill] sm:$0xff] }
0x177e   : > { %10366 = vmatpush3.bf16.msra.mxu1 %v7217_v60  ;;  %v11113_v61 = vpop.eup %11112 }
0x177f   : > { %10367 = vmatprep.subr.bf16.mxu1 %v7215_v49  ;;  %v7113_v37 = vmul.f32 %v11113_v61, %v14605_v59 }
0x1782   : > { %v11115_v23 = vpop.eup %11114  ;;  %10368 = vmatpush3.bf16.msra.mxu1 %v7215_v49  ;;  %v5982_v49 = vadd.f32 %v16168_v8, %v16167_v25 }
0x1783   : > { %v7114_v53 = vmul.f32 %v11115_v23, %v14609_v29  ;;  %10407 = vmatprep.subr.bf16.mxu1 %v16091_v57  ;;  %v11117_v56 = vpop.eup %11116  ;;  %v16169_v23 = vld [vmem:[#allocation34_spill] sm:$0xff] }
0x1784   : > { %v7115_v11 = vmul.f32 %v11117_v56, %v14596_v4  ;;  %v5985_v13 = vadd.f32 %v16170_v63, %v16169_v23  ;;  %v5990_v56 = vadd.f32 %v16172_v32, %v16171_v55  ;;  %v16185_v32 = vld [vmem:[#allocation39_spill] sm:$0xff] }
0x1785   : > { %10370 = vmatmul.mubr.msk.bf16.vlgmr.msra.gmra.mxu1 %vm1583_vm4, %v7121_v39  ;;  %v7122_v44 = vpack.c.bf16 %v7114_v53, %v7113_v37 }
0x1786   : > { %v7123_v14 = vpack.c.bf16 %v7115_v11, %v7115_v11 }
0x1787   : > { %10373 = vmatprep.mubr.msk.bf16.mxu1 %vm1583_vm4, %v7122_v44 }
0x1789   : > { %v6663_v59 = vpop.f32.mrf.mxu0 }
0x178a   : > { %v14854_v41 = vadd.f32 %v6663_v59, %v5966_v52 }
0x178b   : > { %v10287_v29 = vpop.f32.mrf.mxu0 }
0x178c   : > { %v16174_v29 = vld [vmem:[#allocation36_spill] sm:$0xff] }
0x178d   : > { %v6666_v2 = vpop.f32.mrf.mxu0  ;;  %10374 = vmatmul.mubr.msk.bf16.gmra.mxu1 %vm1583_vm4, %v7123_v14 }
0x178e   : > { %v14858_v48 = vadd.f32 %v6666_v2, %v5969_v17  ;;  %10415 = vmatprep.mubr.msk.bf16.mxu1 %vm11312_vm5, %v16091_v57  ;;  %v16175_v17 = vld [vmem:[#allocation15_spill] sm:$0xff] }
0x178f   : > { %v10288_v60 = vpop.f32.mrf.mxu0  ;;  %v5993_v14 = vadd.f32 %v16175_v17, %v16174_v29 }
0x1791   : > { %v6671_v40 = vpop.f32.mrf.mxu0 }
0x1792   : > { %v14865_v4 = vadd.f32 %v6671_v40, %v5974_v7 }
0x1793   : > { %v10291_v36 = vpop.f32.mrf.mxu0 }
0x1794   : > { %v16177_v36 = vld [vmem:[#allocation37_spill] sm:$0xff] }
0x1795   : > { %v6674_v3 = vpop.f32.mrf.mxu0 }
0x1796   : > { %v14869_v31 = vadd.f32 %v6674_v3, %v5977_v9  ;;  %v5998_v9 = vadd.f32 %v16178_v30, %v16177_v36  ;;  %v16189_v36 = vld [vmem:[#allocation18_spill] sm:$0xff] }
0x1797   : > { %v10292_v6 = vpop.f32.mrf.mxu0 }
0x1799   : > { %v6679_v1 = vpop.f32.mrf.mxu0 }
0x179a   : > { %v14873_v61 = vadd.f32 %v6679_v1, %v5982_v49  ;;  %v16181_v1 = vld [vmem:[#allocation38_spill] sm:$0xff] }
0x179b   : > { %v10295_v28 = vpop.f32.mrf.mxu0 }
0x179c   : > { %v16182_v28 = vld [vmem:[#allocation14_spill] sm:$0xff] }
0x179d   : > { %v6682_v39 = vpop.f32.mrf.mxu0  ;;  %v6001_v23 = vadd.f32 %v16182_v28, %v16181_v1 }
0x179e   : > { %v14877_v37 = vadd.f32 %v6682_v39, %v5985_v13 }
0x179f   : > { %v10296_v53 = vpop.f32.mrf.mxu0 }
0x17a1   : > { %v6687_v44 = vpop.f32.mrf.mxu0 }
0x17a2   : > { %v14881_v52 = vadd.f32 %v6687_v44, %v5990_v56  ;;  %v16186_v56 = vld [vmem:[#allocation16_spill] sm:$0xff] }
0x17a3   : > { %v10299_v11 = vpop.f32.mrf.mxu0  ;;  %v14883_v59 = vpop.xlane.xlu0 %4204  ;;  %v6006_v44 = vadd.f32 %v16186_v56, %v16185_v32 }
0x17a4   : > { %16173 = vst [vmem:[#allocation25_spill] sm:$0xff] %v14883_v59 }
0x17a5   : > { %v6690_v2 = vpop.f32.mrf.mxu0 }
0x17a6   : > { %v14887_v60 = vadd.f32 %v6690_v2, %v5993_v14 }
0x17a7   : > { %v10300_v7 = vpop.f32.mrf.mxu0  ;;  %v14889_v40 = vpop.xlane.xlu0 %4277 }
0x17a8   : > { %16176 = vst [vmem:[#allocation29_spill] sm:$0xff] %v14889_v40  ;;  %v16188_v7 = vld [vmem:[#allocation40_spill] sm:$0xff] }
0x17a9   : > { %v6695_v3 = vpop.f32.mrf.mxu0  ;;  %v14895_v25 = vpop.xlane.xlu1 %4207  ;;  %v6009_v30 = vadd.f32 %v16189_v36, %v16188_v7  ;;  %v16193_v36 = vld [vmem:[#allocation42_spill] sm:$0xff] }
0x17aa   : > { %v14893_v6 = vadd.f32 %v6695_v3, %v5998_v9  ;;  %16179 = vst [vmem:[#allocation26_spill] sm:$0xff] %v14895_v25 }
0x17ab   : > { %v10303_v8 = vpop.f32.mrf.mxu0  ;;  %v14897_v49 = vpop.xlane.xlu0 %4213 }
0x17ac   : > { %16180 = vst [vmem:[#allocation30_spill] sm:$0xff] %v14897_v49 }
0x17ad   : > { %v6698_v63 = vpop.f32.mrf.mxu0  ;;  %v14903_v39 = vpop.xlane.xlu1 %4274 }
0x17ae   : > { %v14901_v13 = vadd.f32 %v6698_v63, %v6001_v23  ;;  %16183 = vst [vmem:[#allocation27_spill] sm:$0xff] %v14903_v39  ;;  %v16191_v63 = vld [vmem:[#allocation41_spill] sm:$0xff] }
0x17af   : > { %v10304_v53 = vpop.f32.mrf.mxu0  ;;  %v14905_v55 = vpop.xlane.xlu0 %4283 }
0x17b0   : > { %16184 = vst [vmem:[#allocation31_spill] sm:$0xff] %v14905_v55  ;;  %v16192_v53 = vld [vmem:[#allocation19_spill] sm:$0xff] }
0x17b1   : > { %v6703_v11 = vpop.f32.mrf.mxu0  ;;  %v14911_v17 = vpop.xlane.xlu1 %4210  ;;  %v6014_v32 = vadd.f32 %v16192_v53, %v16191_v63 }
0x17b2   : > { %v14909_v29 = vadd.f32 %v6703_v11, %v6006_v44  ;;  %16187 = vst [vmem:[#allocation28_spill] sm:$0xff] %v14911_v17 }
0x17b3   : > { %v10307_v14 = vpop.f32.mrf.mxu0  ;;  %v4220_v2 = vpop.xlane.xlu0 %4219 }
0x17b4   : > { %v4250_v9 = vmul.f32 0.015625, %v4220_v2 }
0x17b5   : > { %v6706_v3 = vpop.f32.mrf.mxu0  ;;  %v14917_v1 = vpop.xlane.xlu1 %4280 }
0x17b6   : > { %v14915_v8 = vadd.f32 %v6706_v3, %v6009_v30  ;;  %16190 = vst [vmem:[#allocation32_spill] sm:$0xff] %v14917_v1  ;;  %v4334_v56 = vmul.f32 %v4250_v9, %v4250_v9  ;;  %v16194_v30 = vld [vmem:[#allocation20_spill] sm:$0xff] }
0x17b7   : > { %v10308_v28 = vpop.f32.mrf.mxu0  ;;  %v4290_v23 = vpop.xlane.xlu0 %4289  ;;  %v6017_v3 = vadd.f32 %v16194_v30, %v16193_v36 }
0x17b8   : > { %v4320_v44 = vmul.f32 0.015625, %v4290_v23 }
0x17b9   : > { %v6711_v11 = vpop.f32.mrf.mxu0  ;;  %v4217_v38 = vpop.xlane.xlu1 %4216 }
0x17ba   : > { %v4348_v24 = vsub.f32 %v4320_v44, %v4334_v56  ;;  %v14921_v14 = vadd.f32 %v6711_v11, %v6014_v32  ;;  %v14923_v51 = vmul.f32 0.015625, %v4217_v38 }
0x17bb   : > { %v10311_v2 = vpop.f32.mrf.mxu0  ;;  %v4226_v7 = vpop.xlane.xlu0 %4225 }
0x17bc   : > { %v4362_v33 = vmax.f32 %v4348_v24, 0.0  ;;  %v14927_v28 = vmul.f32 0.015625, %v4226_v7  ;;  %v4333_v53 = vmul.f32 %v14923_v51, %v14923_v51 }
0x17bd   : > { %v6714_v55 = vpop.f32.mrf.mxu0  ;;  %v4287_v23 = vpop.xlane.xlu1 %4286 }
0x17be   : > { %v4390_v49 = vadd.f32 1e-05, %v4362_v33  ;;  %v14929_v63 = vadd.f32 %v6714_v55, %v6017_v3  ;;  %v4319_v32 = vmul.f32 0.015625, %v4287_v23  ;;  %v4336_v44 = vmul.f32 %v14927_v28, %v14927_v28 }
0x17bf   : > { %v10312_v56 = vpop.f32.mrf.mxu0  ;;  %v4296_v38 = vpop.xlane.xlu0 %4295 }
0x17c0   : > { %11118 = vrsqrt.f32 %v4390_v49  ;;  %v4322_v11 = vmul.f32 0.015625, %v4296_v38  ;;  %v4347_v2 = vsub.f32 %v4319_v32, %v4333_v53 }
0x17c1   : > { %v4223_v7 = vpop.xlane.xlu1 %4222 }
0x17c2   : > { %v4350_v24 = vsub.f32 %v4322_v11, %v4336_v44  ;;  %v4361_v36 = vmax.f32 %v4347_v2, 0.0  ;;  %v14935_v30 = vmul.f32 0.015625, %v4223_v7 }
0x17c3   : > { %v4232_v33 = vpop.xlane.xlu0 %4231 }
0x17c4   : > { %v4364_v55 = vmax.f32 %v4350_v24, 0.0  ;;  %v14937_v3 = vmul.f32 0.015625, %v4232_v33  ;;  %v4389_v1 = vadd.f32 1e-05, %v4361_v36  ;;  %v4335_v49 = vmul.f32 %v14935_v30, %v14935_v30 }
0x17c5   : > { %v4293_v23 = vpop.xlane.xlu1 %4292 }
0x17c6   : > { %v4392_v17 = vadd.f32 1e-05, %v4364_v55  ;;  %11120 = vrsqrt.f32 %v4389_v1  ;;  %v4321_v56 = vmul.f32 0.015625, %v4293_v23  ;;  %v4338_v53 = vmul.f32 %v14937_v3, %v14937_v3 }
0x17c7   : > { %v4302_v40 = vpop.xlane.xlu0 %4301  ;;  %v4376_v1 = vsub.f32 %v14694_v42, %v4250_v9 }
0x17c8   : > { %11122 = vrsqrt.f32 %v4392_v17  ;;  %v4324_v32 = vmul.f32 0.015625, %v4302_v40  ;;  %v4349_v38 = vsub.f32 %v4321_v56, %v4335_v49  ;;  %v14953_v40 = vld [vmem:[%s16196_s25] ss:$0 sm:$0xff] }
0x17c9   : > { %v4229_v11 = vpop.xlane.xlu1 %4228 }
0x17ca   : > { %v4352_v44 = vsub.f32 %v4324_v32, %v4338_v53  ;;  %v4363_v2 = vmax.f32 %v4349_v38, 0.0  ;;  %v14943_v24 = vmul.f32 0.015625, %v4229_v11  ;;  %v14965_v38 = vld [vmem:[%s16197_s4] ss:$0 sm:$0xff]  ;;  %s16221_s4 = scalar_lea.vmem %s16220_s12, %s11474_s7 }
0x17cb   : > { %v4238_v7 = vpop.xlane.xlu0 %4237 }
0x17cc   : > { %v4366_v36 = vmax.f32 %v4352_v44, 0.0  ;;  %v14946_v33 = vmul.f32 0.015625, %v4238_v7  ;;  %v4391_v17 = vadd.f32 1e-05, %v4363_v2  ;;  %v4337_v49 = vmul.f32 %v14943_v24, %v14943_v24 }
0x17cd   : > { %v11119_v55 = vpop.eup %11118  ;;  %v4299_v25 = vpop.xlane.xlu1 %4298 }
0x17ce   : > { %v4394_v23 = vadd.f32 1e-05, %v4366_v36  ;;  %v4418_v39 = vmul.f32 %v11119_v55, %v4376_v1  ;;  %11124 = vrsqrt.f32 %v4391_v17  ;;  %v4323_v42 = vmul.f32 0.015625, %v4299_v25 }
0x17cf   : > { %v4308_v9 = vpop.xlane.xlu0 %4307  ;;  %v4340_v56 = vmul.f32 %v14946_v33, %v14946_v33  ;;  %v4375_v25 = vsub.f32 %v14713_v19, %v14923_v51  ;;  %v4378_v17 = vsub.f32 %v14720_v58, %v14927_v28 }
0x17d0   : > { %11126 = vrsqrt.f32 %v4394_v23  ;;  %v4326_v53 = vmul.f32 0.015625, %v4308_v9  ;;  %v4439_v32 = vmul.f32 %v14953_v40, %v4418_v39  ;;  %v4351_v44 = vsub.f32 %v4323_v42, %v4337_v49 }
0x17d1   : > { %v4235_v2 = vpop.xlane.xlu1 %4234 }
0x17d2   : > { %v4354_v11 = vsub.f32 %v4326_v53, %v4340_v56  ;;  %v14968_v7 = vadd.f32 %v14965_v38, %v4439_v32  ;;  %v4365_v1 = vmax.f32 %v4351_v44, 0.0  ;;  %v14972_v36 = vmul.f32 0.015625, %v4235_v2 }
0x17d3   : > { %v4244_v55 = vpop.xlane.xlu0 %4243  ;;  %v11121_v39 = vpop.eup %11120 }
0x17d4   : > { %16198 = vst [vmem:[#allocation21_spill] sm:$0xff] %v14968_v7  ;;  %v4368_v23 = vmax.f32 %v4354_v11, 0.0  ;;  %v4258_v9 = vmul.f32 0.015625, %v4244_v55  ;;  %v4393_v49 = vadd.f32 1e-05, %v4365_v1  ;;  %v4417_v42 = vmul.f32 %v11121_v39, %v4375_v25 }
0x17d5   : > { %v11123_v59 = vpop.eup %11122  ;;  %v4305_v53 = vpop.xlane.xlu1 %4304  ;;  %v4339_v51 = vmul.f32 %v14972_v36, %v14972_v36  ;;  %v4377_v55 = vsub.f32 %v14741_v47, %v14935_v30 }
0x17d6   : > { %v4396_v56 = vadd.f32 1e-05, %v4368_v23  ;;  %v4420_v32 = vmul.f32 %v11123_v59, %v4378_v17  ;;  %11128 = vrsqrt.f32 %v4393_v49  ;;  %v4325_v19 = vmul.f32 0.015625, %v4305_v53 }
0x17d7   : > { %v4314_v44 = vpop.xlane.xlu0 %4313  ;;  %v4438_v2 = vmul.f32 %v14953_v40, %v4417_v42  ;;  %v4342_v7 = vmul.f32 %v4258_v9, %v4258_v9  ;;  %v4380_v49 = vsub.f32 %v14748_v15, %v14937_v3  ;;  %v4379_v3 = vsub.f32 %v14771_v16, %v14943_v24 }
0x17d8   : > { %11130 = vrsqrt.f32 %v4396_v56  ;;  %v4328_v43 = vmul.f32 0.015625, %v4314_v44  ;;  %v4441_v58 = vmul.f32 %v14953_v40, %v4420_v32  ;;  %v4353_v28 = vsub.f32 %v4325_v19, %v4339_v51 }
0x17d9   : > { %v14981_v11 = vadd.f32 %v14965_v38, %v4438_v2  ;;  %v4241_v1 = vpop.xlane.xlu1 %4240  ;;  %v4381_v16 = vsub.f32 %v14799_v18, %v14972_v36 }
0x17da   : > { %v4356_v25 = vsub.f32 %v4328_v43, %v4342_v7  ;;  %v14984_v59 = vadd.f32 %v14965_v38, %v4441_v58  ;;  %v4367_v39 = vmax.f32 %v4353_v28, 0.0  ;;  %v4257_v17 = vmul.f32 0.015625, %v4241_v1 }
0x17db   : > { %v11125_v23 = vpop.eup %11124  ;;  %v4382_v1 = vsub.f32 %v14779_v45, %v14946_v33  ;;  %v4384_v45 = vsub.f32 %v14806_v22, %v4258_v9 }
0x17dc   : > { %v4370_v42 = vmax.f32 %v4356_v25, 0.0  ;;  %v4395_v53 = vadd.f32 1e-05, %v4367_v39  ;;  %v4419_v32 = vmul.f32 %v11125_v23, %v4377_v55  ;;  %v4341_v7 = vmul.f32 %v4257_v17, %v4257_v17 }
0x17dd   : > { %v11127_v56 = vpop.eup %11126  ;;  %v4311_v19 = vpop.xlane.xlu1 %4310 }
0x17de   : > { %v4398_v51 = vadd.f32 1e-05, %v4370_v42  ;;  %v4422_v43 = vmul.f32 %v11127_v56, %v4380_v49  ;;  %11132 = vrsqrt.f32 %v4395_v53  ;;  %v4327_v44 = vmul.f32 0.015625, %v4311_v19 }
0x17df   : > { %v4440_v2 = vmul.f32 %v14953_v40, %v4419_v32 }
0x17e0   : > { %11134 = vrsqrt.f32 %v4398_v51  ;;  %v4443_v47 = vmul.f32 %v14953_v40, %v4422_v43  ;;  %v4355_v30 = vsub.f32 %v4327_v44, %v4341_v7 }
0x17e1   : > { %v14993_v58 = vadd.f32 %v14965_v38, %v4440_v2 }
0x17e2   : > { %v14996_v15 = vadd.f32 %v14965_v38, %v4443_v47  ;;  %v4369_v28 = vmax.f32 %v4355_v30, 0.0  ;;  %v4383_v47 = vsub.f32 %v14823_v10, %v4257_v17 }
0x17e3   : > { %v11129_v25 = vpop.eup %11128 }
0x17e4   : > { %v4397_v39 = vadd.f32 1e-05, %v4369_v28  ;;  %v4421_v23 = vmul.f32 %v11129_v25, %v4379_v3 }
0x17e5   : > { %v11131_v55 = vpop.eup %11130 }
0x17e6   : > { %v4424_v49 = vmul.f32 %v11131_v55, %v4382_v1  ;;  %11136 = vrsqrt.f32 %v4397_v39  ;;  %v4442_v42 = vmul.f32 %v14953_v40, %v4421_v23 }
0x17e8   : > { %v4445_v56 = vmul.f32 %v14953_v40, %v4424_v49  ;;  %v15005_v53 = vadd.f32 %v14965_v38, %v4442_v42 }
0x17ea   : > { %v15008_v32 = vadd.f32 %v14965_v38, %v4445_v56 }
0x17eb   : > { %v11133_v24 = vpop.eup %11132 }
0x17ec   : > { %v4423_v51 = vmul.f32 %v11133_v24, %v4381_v16 }
0x17ed   : > { %v11135_v33 = vpop.eup %11134 }
0x17ee   : > { %v4426_v19 = vmul.f32 %v11135_v33, %v4384_v45  ;;  %v4444_v43 = vmul.f32 %v14953_v40, %v4423_v51 }
0x17f0   : > { %v4447_v7 = vmul.f32 %v14953_v40, %v4426_v19  ;;  %v15016_v44 = vadd.f32 %v14965_v38, %v4444_v43 }
0x17f2   : > { %v15019_v2 = vadd.f32 %v14965_v38, %v4447_v7 }
0x17f3   : > { %v11137_v30 = vpop.eup %11136 }
0x17f4   : > { %v4425_v18 = vmul.f32 %v11137_v30, %v4383_v47 }
0x17f6   : > { %v4446_v36 = vmul.f32 %v14953_v40, %v4425_v18 }
0x17f8   : > { %v15024_v22 = vadd.f32 %v14965_v38, %v4446_v36  ;;  %v15052_v36 = vld [vmem:[%s16199_s11] ss:$0 sm:$0xff] }
0x17fd   : > { %v10355_v9 = vpop.f32.mrf.mxu0 }
0x17ff   : > { %v7184_v3 = vpop.f32.mrf.mxu0 }
0x1801   : > { %v10356_v28 = vpop.f32.mrf.mxu0 }
0x1802   : > { %v7305_v55 = vpack.c.bf16 %v10356_v28, %v10355_v9 }
0x1803   : > { %v7187_v25 = vpop.f32.mrf.mxu0 }
0x1804   : > { %v7304_v1 = vpack.c.bf16 %v7187_v25, %v7184_v3 }
0x1806   : > { %10380 = vmatmul.mubr.msk.bf16.vlgmr.msra.gmra.mxu0 %vm1368_vm3, %v7304_v1 }
0x1807   : > { %10383 = vmatprep.mubr.msk.bf16.mxu0 %vm11312_vm5, %v16091_v57 }
0x180e   : > { %10384 = vmatmul.mubr.msk.bf16.gmra.mxu0 %vm1368_vm3, %v7305_v55 }
0x180f   : > { %10387 = vmatprep.mubr.msk.bf16.mxu0 %vm11312_vm5, %v16091_v57 }
0x183a   : > { %v10359_v10 = vpop.f32.mrf.mxu0 }
0x183c   : > { %v7200_v17 = vpop.f32.mrf.mxu0 }
0x183e   : > { %v10360_v39 = vpop.f32.mrf.mxu0 }
0x1840   : > { %v7203_v23 = vpop.f32.mrf.mxu0 }
0x1841   : > { %v7306_v49 = vpack.c.bf16 %v7203_v23, %v7200_v17 }
0x1843   : > { %10388 = vmatmul.mubr.msk.bf16.gmra.mxu0 %vm1368_vm3, %v7306_v49 }
0x1844   : > { %10391 = vmatprep.mubr.msk.bf16.mxu0 %vm11312_vm5, %v16091_v57 }
0x1845   : > { %v10371_v42 = vpop.f32.mrf.mxu1 }
0x1847   : > { %v7274_v56 = vpop.f32.mrf.mxu1 }
0x1848   : > { %v7307_v16 = vpack.c.bf16 %v7274_v56, %v10359_v10 }
0x1849   : > { %v10372_v24 = vpop.f32.mrf.mxu1 }
0x184b   : > { %10392 = vmatmul.mubr.msk.bf16.gmra.mxu0 %vm1368_vm3, %v7307_v16  ;;  %v7277_v45 = vpop.f32.mrf.mxu1 }
0x184c   : > { %10395 = vmatprep.mubr.msk.bf16.mxu0 %vm11312_vm5, %v16091_v57  ;;  %v7308_v19 = vpack.c.bf16 %v10371_v42, %v7277_v45 }
0x184d   : > { %v10375_v33 = vpop.f32.mrf.mxu1 }
0x184f   : > { %v7290_v51 = vpop.f32.mrf.mxu1 }
0x1850   : > { %v7309_v7 = vpack.c.bf16 %v7290_v51, %v10372_v24 }
0x1851   : > { %v10376_v43 = vpop.f32.mrf.mxu1 }
0x1853   : > { %10396 = vmatmul.mubr.msk.bf16.gmra.mxu0 %vm1368_vm3, %v7308_v19  ;;  %v7293_v47 = vpop.f32.mrf.mxu1 }
0x1854   : > { %10399 = vmatprep.mubr.msk.bf16.mxu0 %vm11312_vm5, %v16091_v57  ;;  %v7310_v30 = vpack.c.bf16 %v10375_v33, %v7293_v47 }
0x185b   : > { %10400 = vmatmul.mubr.msk.bf16.gmra.mxu0 %vm1368_vm3, %v7309_v7 }
0x185c   : > { %10403 = vmatprep.mubr.msk.bf16.mxu0 %vm11312_vm5, %v16091_v57 }
0x1863   : > { %10404 = vmatmul.mubr.msk.bf16.gmra.mxu0 %vm1368_vm3, %v7310_v30 }
0x1864   : > { %10459 = vmatprep.mubr.msk.bf16.mxu0 %vm11312_vm5, %v16091_v57 }
0x18c6   : > { %v7375_v18 = vpop.f32.mrf.mxu0 }
0x18c7   : > { %v7430_v9 = vadd.f32 %v7375_v18, %v14854_v41 }
0x18c8   : > { %v10381_v3 = vpop.f32.mrf.mxu0 }
0x18c9   : > { %v7451_v28 = vadd.f32 %v15052_v36, %v7430_v9 }
0x18ca   : > { %v7378_v25 = vpop.f32.mrf.mxu0 }
0x18cb   : > { %v15057_v1 = vadd.f32 %v14647_v21, %v7451_v28  ;;  %v7431_v55 = vadd.f32 %v7378_v25, %v14858_v48 }
0x18cc   : > { %v10382_v10 = vpop.f32.mrf.mxu0 }
0x18cd   : > { %v7452_v17 = vadd.f32 %v15052_v36, %v7431_v55  ;;  %v7479_v39 = vsel %vm1216_vm1, %v15057_v1, 0.0  ;;  %v7535_v23 = vmul.f32 %v15057_v1, %v15057_v1 }
0x18ce   : > { %7480 = vadd.xlane.f32.xlu0 %v7479_v39  ;;  %v7383_v41 = vpop.f32.mrf.mxu0 }
0x18cf   : > { %v15066_v49 = vadd.f32 %v14653_v27, %v7452_v17  ;;  %v7432_v42 = vadd.f32 %v7383_v41, %v14865_v4  ;;  %v7549_v21 = vsel %vm1216_vm1, %v7535_v23, 0.0 }
0x18d0   : > { %7550 = vadd.xlane.f32.xlu1 %v7549_v21  ;;  %v10385_v48 = vpop.f32.mrf.mxu0 }
0x18d1   : > { %v7453_v56 = vadd.f32 %v15052_v36, %v7432_v42  ;;  %v7482_v16 = vsel %vm1216_vm1, %v15066_v49, 0.0  ;;  %v7536_v24 = vmul.f32 %v15066_v49, %v15066_v49 }
0x18d2   : > { %7483 = vadd.xlane.f32.xlu0 %v7482_v16  ;;  %v7386_v45 = vpop.f32.mrf.mxu0 }
0x18d3   : > { %v15076_v33 = vadd.f32 %v14684_v62, %v7453_v56  ;;  %v7433_v27 = vadd.f32 %v7386_v45, %v14869_v31  ;;  %v7552_v19 = vsel %vm1216_vm1, %v7536_v24, 0.0 }
0x18d4   : > { %v10386_v4 = vpop.f32.mrf.mxu0 }
0x18d5   : > { %v7454_v51 = vadd.f32 %v15052_v36, %v7433_v27  ;;  %v7485_v43 = vsel %vm1216_vm1, %v15076_v33, 0.0  ;;  %v7537_v7 = vmul.f32 %v15076_v33, %v15076_v33 }
0x18d6   : > { %7553 = vadd.xlane.f32.xlu0 %v7552_v19  ;;  %7486 = vadd.xlane.f32.xlu1 %v7485_v43 }
0x18d7   : > { %v15086_v47 = vadd.f32 %v14665_v50, %v7454_v51  ;;  %v7555_v62 = vsel %vm1216_vm1, %v7537_v7, 0.0 }
0x18d9   : > { %v7488_v31 = vsel %vm1216_vm1, %v15086_v47, 0.0  ;;  %v7538_v30 = vmul.f32 %v15086_v47, %v15086_v47 }
0x18da   : > { %7556 = vadd.xlane.f32.xlu1 %v7555_v62  ;;  %7489 = vadd.xlane.f32.xlu0 %v7488_v31 }
0x18db   : > { %v7558_v18 = vsel %vm1216_vm1, %v7538_v30, 0.0 }
0x18de   : > { %7559 = vadd.xlane.f32.xlu0 %v7558_v18 }
0x1903   : > { %v7391_v9 = vpop.f32.mrf.mxu0 }
0x1904   : > { %v7434_v3 = vadd.f32 %v7391_v9, %v14873_v61 }
0x1905   : > { %v10389_v28 = vpop.f32.mrf.mxu0 }
0x1906   : > { %v7455_v50 = vadd.f32 %v15052_v36, %v7434_v3 }
0x1907   : > { %v7394_v25 = vpop.f32.mrf.mxu0 }
0x1908   : > { %v15097_v55 = vadd.f32 %v14710_v35, %v7455_v50  ;;  %v7435_v10 = vadd.f32 %v7394_v25, %v14877_v37 }
0x1909   : > { %v10390_v17 = vpop.f32.mrf.mxu0 }
0x190a   : > { %v7456_v39 = vadd.f32 %v15052_v36, %v7435_v10  ;;  %v7491_v23 = vsel %vm1216_vm1, %v15097_v55, 0.0  ;;  %v7539_v41 = vmul.f32 %v15097_v55, %v15097_v55 }
0x190b   : > { %7492 = vadd.xlane.f32.xlu1 %v7491_v23  ;;  %v7399_v61 = vpop.f32.mrf.mxu0 }
0x190c   : > { %v15106_v42 = vadd.f32 %v14691_v34, %v7456_v39  ;;  %v7436_v21 = vadd.f32 %v7399_v61, %v14881_v52  ;;  %v7561_v37 = vsel %vm1216_vm1, %v7539_v41, 0.0 }
0x190d   : > { %v10393_v35 = vpop.f32.mrf.mxu0 }
0x190e   : > { %v7457_v48 = vadd.f32 %v15052_v36, %v7436_v21  ;;  %v7494_v56 = vsel %vm1216_vm1, %v15106_v42, 0.0  ;;  %v7540_v16 = vmul.f32 %v15106_v42, %v15106_v42 }
0x190f   : > { %7562 = vadd.xlane.f32.xlu1 %v7561_v37  ;;  %7495 = vadd.xlane.f32.xlu0 %v7494_v56  ;;  %v7402_v24 = vpop.f32.mrf.mxu0 }
0x1910   : > { %v15116_v45 = vadd.f32 %v14738_v46, %v7457_v48  ;;  %v7437_v34 = vadd.f32 %v7402_v24, %v14887_v60  ;;  %v7564_v4 = vsel %vm1216_vm1, %v7540_v16, 0.0 }
0x1911   : > { %v10394_v52 = vpop.f32.mrf.mxu0 }
0x1912   : > { %v7458_v27 = vadd.f32 %v15052_v36, %v7437_v34  ;;  %v7497_v51 = vsel %vm1216_vm1, %v15116_v45, 0.0  ;;  %v7541_v19 = vmul.f32 %v15116_v45, %v15116_v45 }
0x1913   : > { %7565 = vadd.xlane.f32.xlu0 %v7564_v4  ;;  %7498 = vadd.xlane.f32.xlu1 %v7497_v51  ;;  %v7407_v43 = vpop.f32.mrf.mxu0 }
0x1914   : > { %v15126_v7 = vadd.f32 %v14717_v0, %v7458_v27  ;;  %v7438_v46 = vadd.f32 %v7407_v43, %v14893_v6  ;;  %v7567_v31 = vsel %vm1216_vm1, %v7541_v19, 0.0 }
0x1915   : > { %v10397_v60 = vpop.f32.mrf.mxu0 }
0x1916   : > { %v7459_v62 = vadd.f32 %v15052_v36, %v7438_v46  ;;  %v7500_v30 = vsel %vm1216_vm1, %v15126_v7, 0.0  ;;  %v7542_v18 = vmul.f32 %v15126_v7, %v15126_v7 }
0x1917   : > { %7568 = vadd.xlane.f32.xlu1 %v7567_v31  ;;  %7501 = vadd.xlane.f32.xlu0 %v7500_v30  ;;  %v7410_v9 = vpop.f32.mrf.mxu0 }
0x1918   : > { %v15136_v3 = vadd.f32 %v14768_v20, %v7459_v62  ;;  %v7439_v0 = vadd.f32 %v7410_v9, %v14901_v13  ;;  %v7570_v50 = vsel %vm1216_vm1, %v7542_v18, 0.0  ;;  %v16200_v18 = vld [vmem:[#allocation24_spill] sm:$0xff] }
0x1919   : > { %v10398_v6 = vpop.f32.mrf.mxu0 }
0x191a   : > { %v7460_v28 = vadd.f32 %v15052_v36, %v7439_v0  ;;  %v7503_v25 = vsel %vm1216_vm1, %v15136_v3, 0.0  ;;  %v7543_v10 = vmul.f32 %v15136_v3, %v15136_v3  ;;  %v16201_v6 = vld [vmem:[#allocation25_spill] sm:$0xff] }
0x191b   : > { %7571 = vadd.xlane.f32.xlu0 %v7570_v50  ;;  %7504 = vadd.xlane.f32.xlu1 %v7503_v25  ;;  %v7415_v17 = vpop.f32.mrf.mxu0  ;;  %v16202_v50 = vld [vmem:[#allocation27_spill] sm:$0xff] }
0x191c   : > { %v15146_v39 = vadd.f32 %v14745_v12, %v7460_v28  ;;  %v7440_v20 = vadd.f32 %v7415_v17, %v14909_v29  ;;  %v7573_v41 = vsel %vm1216_vm1, %v7543_v10, 0.0  ;;  %v15195_v28 = vmul.f32 0.015625, %v16201_v6  ;;  %v16203_v10 = vld [vmem:[#allocation26_spill] sm:$0xff] }
0x191d   : > { %v10401_v13 = vpop.f32.mrf.mxu0  ;;  %v4315_v25 = vmul.f32 0.015625, %v16202_v50  ;;  %v15199_v17 = vmul.f32 0.015625, %v16203_v10 }
0x191e   : > { %v7461_v23 = vadd.f32 %v15052_v36, %v7440_v20  ;;  %v7506_v61 = vsel %vm1216_vm1, %v15146_v39, 0.0  ;;  %v7544_v21 = vmul.f32 %v15146_v39, %v15146_v39  ;;  %v4329_v20 = vmul.f32 %v15195_v28, %v15195_v28 }
0x191f   : > { %7574 = vadd.xlane.f32.xlu1 %v7573_v41  ;;  %7507 = vadd.xlane.f32.xlu0 %v7506_v61  ;;  %v7418_v35 = vpop.f32.mrf.mxu0  ;;  %v16204_v41 = vld [vmem:[#allocation29_spill] sm:$0xff] }
0x1920   : > { %v15156_v48 = vadd.f32 %v14796_v26, %v7461_v23  ;;  %v7441_v12 = vadd.f32 %v7418_v35, %v14915_v8  ;;  %v7576_v56 = vsel %vm1216_vm1, %v7544_v21, 0.0  ;;  %v4343_v13 = vsub.f32 %v4315_v25, %v4329_v20  ;;  %v16205_v35 = vld [vmem:[#allocation28_spill] sm:$0xff] }
0x1921   : > { %v10402_v29 = vpop.f32.mrf.mxu0  ;;  %v4330_v23 = vmul.f32 %v15199_v17, %v15199_v17  ;;  %v4316_v61 = vmul.f32 0.015625, %v16204_v41 }
0x1922   : > { %v7462_v37 = vadd.f32 %v15052_v36, %v7441_v12  ;;  %v7509_v16 = vsel %vm1216_vm1, %v15156_v48, 0.0  ;;  %v7545_v24 = vmul.f32 %v15156_v48, %v15156_v48  ;;  %v4357_v21 = vmax.f32 %v4343_v13, 0.0 }
0x1923   : > { %7577 = vadd.xlane.f32.xlu0 %v7576_v56  ;;  %7510 = vadd.xlane.f32.xlu1 %v7509_v16  ;;  %v7423_v34 = vpop.f32.mrf.mxu0  ;;  %v15207_v12 = vmul.f32 0.015625, %v16205_v35  ;;  %v4344_v29 = vsub.f32 %v4316_v61, %v4330_v23  ;;  %v16207_v16 = vld [vmem:[#allocation30_spill] sm:$0xff] }
0x1924   : > { %v15166_v52 = vadd.f32 %v14776_v5, %v7462_v37  ;;  %v7442_v26 = vadd.f32 %v7423_v34, %v14921_v14  ;;  %v7579_v4 = vsel %vm1216_vm1, %v7545_v24, 0.0  ;;  %v16206_v37 = vld [vmem:[#allocation32_spill] sm:$0xff]  ;;  %v15211_v24 = vmul.f32 0.015625, %v16207_v16 }
0x1925   : > { %v10405_v8 = vpop.f32.mrf.mxu0  ;;  %v4317_v56 = vmul.f32 0.015625, %v16206_v37 }
0x1926   : > { %v7463_v27 = vadd.f32 %v15052_v36, %v7442_v26  ;;  %v7512_v51 = vsel %vm1216_vm1, %v15166_v52, 0.0  ;;  %v7546_v19 = vmul.f32 %v15166_v52, %v15166_v52  ;;  %v4385_v26 = vadd.f32 1e-05, %v4357_v21 }
0x1927   : > { %7580 = vadd.xlane.f32.xlu1 %v7579_v4  ;;  %7513 = vadd.xlane.f32.xlu0 %v7512_v51  ;;  %v7426_v43 = vpop.f32.mrf.mxu0  ;;  %v4331_v8 = vmul.f32 %v15207_v12, %v15207_v12  ;;  %v4358_v4 = vmax.f32 %v4344_v29, 0.0  ;;  %v16208_v51 = vld [vmem:[#allocation31_spill] sm:$0xff] }
0x1928   : > { %v15176_v46 = vadd.f32 %v14820_v54, %v7463_v27  ;;  %v7443_v5 = vadd.f32 %v7426_v43, %v14929_v63  ;;  %v7582_v62 = vsel %vm1216_vm1, %v7546_v19, 0.0  ;;  %v4318_v19 = vmul.f32 0.015625, %v16208_v51 }
0x1929   : > { %v10406_v14 = vpop.f32.mrf.mxu0  ;;  %11138 = vrsqrt.f32 %v4385_v26 }
0x192a   : > { %v7464_v60 = vadd.f32 %v15052_v36, %v7443_v5  ;;  %v7515_v31 = vsel %vm1216_vm1, %v15176_v46, 0.0  ;;  %v7547_v30 = vmul.f32 %v15176_v46, %v15176_v46  ;;  %v4345_v5 = vsub.f32 %v4317_v56, %v4331_v8 }
0x192b   : > { %7583 = vadd.xlane.f32.xlu0 %v7582_v62  ;;  %7516 = vadd.xlane.f32.xlu1 %v7515_v31  ;;  %v4332_v62 = vmul.f32 %v15211_v24, %v15211_v24 }
0x192c   : > { %v15186_v9 = vadd.f32 %v16200_v18, %v7464_v60  ;;  %v7585_v54 = vsel %vm1216_vm1, %v7547_v30, 0.0 }
0x192e   : > { %v7518_v63 = vsel %vm1216_vm1, %v15186_v9, 0.0  ;;  %v7548_v36 = vmul.f32 %v15186_v9, %v15186_v9 }
0x192f   : > { %7586 = vadd.xlane.f32.xlu1 %v7585_v54  ;;  %7519 = vadd.xlane.f32.xlu0 %v7518_v63  ;;  %v4386_v54 = vadd.f32 1e-05, %v4358_v4  ;;  %v4346_v63 = vsub.f32 %v4318_v19, %v4332_v62 }
0x1930   : > { %v7588_v0 = vsel %vm1216_vm1, %v7548_v36, 0.0  ;;  %v4359_v36 = vmax.f32 %v4345_v5, 0.0 }
0x1931   : > { %11140 = vrsqrt.f32 %v4386_v54  ;;  %v4360_v23 = vmax.f32 %v4346_v63, 0.0 }
0x1932   : > { %v4387_v41 = vadd.f32 1e-05, %v4359_v36 }
0x1933   : > { %7589 = vadd.xlane.f32.xlu0 %v7588_v0 }
0x1936   : > { %v11139_v5 = vpop.eup %11138 }
0x193e   : > { %v11141_v63 = vpop.eup %11140 }
0x1957   : > { %v7481_v34 = vpop.xlane.xlu0 %7480 }
0x1958   : > { %v7521_v27 = vmul.f32 0.015625, %v7481_v34  ;;  %v4388_v34 = vadd.f32 1e-05, %v4360_v23 }
0x1959   : > { %v7551_v43 = vpop.xlane.xlu1 %7550 }
0x195a   : > { %v7605_v14 = vmul.f32 %v7521_v27, %v7521_v27  ;;  %v7591_v60 = vmul.f32 0.015625, %v7551_v43  ;;  %v7647_v36 = vsub.f32 %v15057_v1, %v7521_v27  ;;  %v15244_v1 = vld [vmem:[%s16213_s6] ss:$0 sm:$0xff] }
0x195b   : > { %v7484_v31 = vpop.xlane.xlu0 %7483 }
0x195c   : > { %v7619_v30 = vsub.f32 %v7591_v60, %v7605_v14  ;;  %v7522_v18 = vmul.f32 0.015625, %v7484_v31  ;;  %v16209_v14 = vld [vmem:[#allocation43_spill] sm:$0xff] }
0x195d   : > { %v4371_v60 = vsub.f32 %v16209_v14, %v15195_v28 }
0x195e   : > { %v7633_v0 = vmax.f32 %v7619_v30, 0.0  ;;  %v7606_v10 = vmul.f32 %v7522_v18, %v7522_v18 }
0x195f   : > { %v7487_v6 = vpop.xlane.xlu1 %7486  ;;  %v7554_v50 = vpop.xlane.xlu0 %7553  ;;  %v4413_v54 = vmul.f32 %v11139_v5, %v4371_v60  ;;  %v11251_v60 = vld [vmem:[%s11580_s20] sm:$0xff] }
0x1960   : > { %v7661_v25 = vadd.f32 1e-05, %v7633_v0  ;;  %v15218_v20 = vmul.f32 0.015625, %v7487_v6  ;;  %v7592_v13 = vmul.f32 0.015625, %v7554_v50  ;;  %v16210_v50 = vld [vmem:[#allocation44_spill] sm:$0xff] }
0x1961   : > { %v4434_v28 = vmul.f32 %v14953_v40, %v4413_v54 }
0x1962   : > { %11142 = vrsqrt.f32 %v7661_v25  ;;  %v7620_v61 = vsub.f32 %v7592_v13, %v7606_v10  ;;  %v7607_v29 = vmul.f32 %v15218_v20, %v15218_v20  ;;  %v4372_v25 = vsub.f32 %v16210_v50, %v15199_v17  ;;  %v15236_v10 = vld [vmem:[%s16212_s0] ss:$0 sm:$0xff] }
0x1963   : > { %v7557_v21 = vpop.xlane.xlu1 %7556  ;;  %v7490_v35 = vpop.xlane.xlu0 %7489  ;;  %11144 = vrsqrt.f32 %v4387_v41  ;;  %v16214_v41 = vld [vmem:[#allocation46_spill] sm:$0xff] }
0x1964   : > { %v7634_v37 = vmax.f32 %v7620_v61, 0.0  ;;  %v7593_v56 = vmul.f32 0.015625, %v7557_v21  ;;  %v15222_v16 = vmul.f32 0.015625, %v7490_v35  ;;  %v4414_v23 = vmul.f32 %v11141_v63, %v4372_v25 }
0x1965   : > { %v4373_v61 = vsub.f32 %v16214_v41, %v15207_v12  ;;  %v7648_v21 = vsub.f32 %v15066_v49, %v7522_v18  ;;  %v4455_v35 = vadd.f32 %v14965_v38, %v4434_v28  ;;  %v7649_v12 = vsub.f32 %v15076_v33, %v15218_v20 }
0x1966   : > { %v7662_v26 = vadd.f32 1e-05, %v7634_v37  ;;  %v7621_v8 = vsub.f32 %v7593_v56, %v7607_v29  ;;  %v7608_v19 = vmul.f32 %v15222_v16, %v15222_v16  ;;  %v4435_v56 = vmul.f32 %v14953_v40, %v4414_v23 }
0x1967   : > { %v7560_v4 = vpop.xlane.xlu0 %7559 }
0x1968   : > { %11146 = vrsqrt.f32 %v7662_v26  ;;  %v7635_v51 = vmax.f32 %v7621_v8, 0.0  ;;  %v7594_v43 = vmul.f32 0.015625, %v7560_v4  ;;  %v4456_v5 = vadd.f32 %v14965_v38, %v4435_v56 }
0x1969   : > { %11148 = vrsqrt.f32 %v4388_v34 }
0x196a   : > { %v7663_v62 = vadd.f32 1e-05, %v7635_v51  ;;  %v7622_v31 = vsub.f32 %v7594_v43, %v7608_v19  ;;  %v16215_v51 = vld [vmem:[#allocation45_spill] sm:$0xff] }
0x196b   : > { %v4374_v19 = vsub.f32 %v16215_v51, %v15211_v24  ;;  %v7650_v24 = vsub.f32 %v15086_v47, %v15222_v16 }
0x196c   : > { %11150 = vrsqrt.f32 %v7663_v62  ;;  %v7636_v30 = vmax.f32 %v7622_v31, 0.0 }
0x196e   : > { %v7664_v0 = vadd.f32 1e-05, %v7636_v30 }
0x196f   : > { %v11143_v6 = vpop.eup %11142 }
0x1970   : > { %11152 = vrsqrt.f32 %v7664_v0  ;;  %v7689_v13 = vmul.f32 %v11143_v6, %v7647_v36  ;;  %v11145_v17 = vpop.eup %11144 }
0x1971   : > { %v4415_v4 = vmul.f32 %v11145_v17, %v4373_v61 }
0x1972   : > { %v7710_v27 = vmul.f32 %v15236_v10, %v7689_v13  ;;  %v11252_v13 = vld [vmem:[%s11580_s20 + $0x8] sm:$0xff] }
0x1973   : > { %v4436_v30 = vmul.f32 %v14953_v40, %v4415_v4  ;;  %v11254_v4 = vld [vmem:[%s11580_s20 + $0x18] sm:$0xff] }
0x1974   : > { %v7731_v29 = vadd.f32 %v15244_v1, %v7710_v27 }
0x1975   : > { %v11147_v37 = vpop.eup %11146  ;;  %v4457_v25 = vadd.f32 %v14965_v38, %v4436_v30 }
0x1976   : > { %v11149_v34 = vpop.eup %11148  ;;  %v7745_v26 = vadd.f32 %v7731_v29, %v4455_v35  ;;  %v7690_v8 = vmul.f32 %v11147_v37, %v7648_v21  ;;  %v11253_v29 = vld [vmem:[%s11580_s20 + $0x10] sm:$0xff] }
0x1977   : > { %v4416_v14 = vmul.f32 %v11149_v34, %v4374_v19 }
0x1978   : > { %v7759_v43 = vmul.f32 0.5, %v7745_v26  ;;  %v7711_v49 = vmul.f32 %v15236_v10, %v7690_v8 }
0x1979   : > { %v11151_v18 = vpop.eup %11150  ;;  %v4437_v6 = vmul.f32 %v14953_v40, %v4416_v14 }
0x197a   : > { %v15260_v62 = vadd.f32 %v11251_v60, %v7759_v43  ;;  %v7732_v31 = vadd.f32 %v15244_v1, %v7711_v49  ;;  %v7691_v54 = vmul.f32 %v11151_v18, %v7649_v12 }
0x197b   : > { %v4458_v41 = vadd.f32 %v14965_v38, %v4437_v6 }
0x197c   : > { %v7787_v33 = vsel %vm1216_vm1, %v15260_v62, 0.0  ;;  %v7843_v20 = vmul.f32 %v15260_v62, %v15260_v62  ;;  %v7746_v63 = vadd.f32 %v7732_v31, %v4456_v5  ;;  %v7712_v36 = vmul.f32 %v15236_v10, %v7691_v54 }
0x197d   : > { %v11153_v0 = vpop.eup %11152  ;;  %7788 = vadd.xlane.f32.xlu1 %v7787_v33 }
0x197e   : > { %v7760_v50 = vmul.f32 0.5, %v7746_v63  ;;  %v7733_v28 = vadd.f32 %v15244_v1, %v7712_v36  ;;  %v7692_v47 = vmul.f32 %v11153_v0, %v7650_v24  ;;  %v7857_v16 = vsel %vm1216_vm1, %v7843_v20, 0.0 }
0x1980   : > { %v15276_v23 = vadd.f32 %v11252_v13, %v7760_v50  ;;  %v7747_v27 = vadd.f32 %v7733_v28, %v4457_v25  ;;  %v7713_v17 = vmul.f32 %v15236_v10, %v7692_v47 }
0x1981   : > { %7858 = vadd.xlane.f32.xlu1 %v7857_v16 }
0x1982   : > { %v7790_v40 = vsel %vm1216_vm1, %v15276_v23, 0.0  ;;  %v7761_v61 = vmul.f32 0.5, %v7747_v27  ;;  %v7844_v21 = vmul.f32 %v15276_v23, %v15276_v23  ;;  %v7734_v35 = vadd.f32 %v15244_v1, %v7713_v17 }
0x1983   : > { %7791 = vadd.xlane.f32.xlu0 %v7790_v40 }
0x1984   : > { %v15286_v37 = vadd.f32 %v11253_v29, %v7761_v61  ;;  %v7748_v56 = vadd.f32 %v7734_v35, %v4458_v41  ;;  %v7860_v26 = vsel %vm1216_vm1, %v7844_v21, 0.0  ;;  %v10658_v41 = vld [vmem:[%s16216_s30 + $0x18] sm:$0xff]  }
0x1985   : > { %10408 = vmatpush3.bf16.msra.mxu1 %v10658_v41 }
0x1986   : > { %v7793_v34 = vsel %vm1216_vm1, %v15286_v37, 0.0  ;;  %v7845_v38 = vmul.f32 %v15286_v37, %v15286_v37  ;;  %v7762_v8 = vmul.f32 0.5, %v7748_v56  ;;  %10409 = vmatprep.subr.bf16.mxu1 %v16091_v57 }
0x1987   : > { %7794 = vadd.xlane.f32.xlu1 %v7793_v34  ;;  %7861 = vadd.xlane.f32.xlu0 %v7860_v26 }
0x1988   : > { %v15294_v51 = vadd.f32 %v11254_v4, %v7762_v8  ;;  %v7863_v19 = vsel %vm1216_vm1, %v7845_v38, 0.0  ;;  %v10659_v38 = vld [vmem:[%s16216_s30 + $0x10] sm:$0xff]  }
0x1989   : > { %10410 = vmatpush3.bf16.msra.mxu1 %v10659_v38 }
0x198a   : > { %v7796_v12 = vsel %vm1216_vm1, %v15294_v51, 0.0  ;;  %v7846_v43 = vmul.f32 %v15294_v51, %v15294_v51  ;;  %10411 = vmatprep.subr.bf16.mxu1 %v16091_v57 }
0x198b   : > { %7864 = vadd.xlane.f32.xlu1 %v7863_v19  ;;  %7797 = vadd.xlane.f32.xlu0 %v7796_v12 }
0x198c   : > { %v7866_v49 = vsel %vm1216_vm1, %v7846_v43, 0.0 }
0x198f   : > { %7867 = vadd.xlane.f32.xlu0 %v7866_v49 }
0x1994   : > { %v7493_v18 = vpop.xlane.xlu1 %7492 }
0x1995   : > { %v15302_v5 = vmul.f32 0.015625, %v7493_v18 }
0x1997   : > { %v7609_v31 = vmul.f32 %v15302_v5, %v15302_v5 }
0x1998   : > { %v7563_v14 = vpop.xlane.xlu1 %7562  ;;  %v7496_v60 = vpop.xlane.xlu0 %7495 }
0x1999   : > { %v7595_v30 = vmul.f32 0.015625, %v7563_v14  ;;  %v15306_v54 = vmul.f32 0.015625, %v7496_v60  ;;  %v10660_v60 = vld [vmem:[%s16216_s30 + $0x8] sm:$0xff]  }
0x199a   : > { %10412 = vmatpush3.bf16.msra.mxu1 %v10660_v60 }
0x199b   : > { %v7623_v24 = vsub.f32 %v7595_v30, %v7609_v31  ;;  %v7610_v36 = vmul.f32 %v15306_v54, %v15306_v54  ;;  %10413 = vmatprep.subr.bf16.mxu1 %v16091_v57 }
0x199c   : > { %v7499_v33 = vpop.xlane.xlu1 %7498  ;;  %v7566_v20 = vpop.xlane.xlu0 %7565 }
0x199d   : > { %v7637_v63 = vmax.f32 %v7623_v24, 0.0  ;;  %v15310_v0 = vmul.f32 0.015625, %v7499_v33  ;;  %v7596_v6 = vmul.f32 0.015625, %v7566_v20  ;;  %v10661_v24 = vld [vmem:[%s16216_s30] sm:$0xff]  }
0x199e   : > { %10414 = vmatpush3.bf16.msra.mxu1 %v10661_v24 }
0x199f   : > { %v7665_v50 = vadd.f32 1e-05, %v7637_v63  ;;  %v7624_v25 = vsub.f32 %v7596_v6, %v7610_v36  ;;  %v7611_v28 = vmul.f32 %v15310_v0, %v15310_v0 }
0x19a0   : > { %v7569_v47 = vpop.xlane.xlu1 %7568  ;;  %v7502_v16 = vpop.xlane.xlu0 %7501 }
0x19a1   : > { %11154 = vrsqrt.f32 %v7665_v50  ;;  %v7638_v13 = vmax.f32 %v7624_v25, 0.0  ;;  %v7597_v27 = vmul.f32 0.015625, %v7569_v47  ;;  %v15314_v17 = vmul.f32 0.015625, %v7502_v16 }
0x19a3   : > { %v7666_v40 = vadd.f32 1e-05, %v7638_v13  ;;  %v7625_v61 = vsub.f32 %v7597_v27, %v7611_v28  ;;  %v7612_v21 = vmul.f32 %v15314_v17, %v15314_v17  ;;  %v7651_v28 = vsub.f32 %v15097_v55, %v15302_v5 }
0x19a4   : > { %v7505_v35 = vpop.xlane.xlu1 %7504  ;;  %v7572_v29 = vpop.xlane.xlu0 %7571 }
0x19a5   : > { %11156 = vrsqrt.f32 %v7666_v40  ;;  %v7639_v56 = vmax.f32 %v7625_v61, 0.0  ;;  %v15320_v34 = vmul.f32 0.015625, %v7505_v35  ;;  %v7598_v26 = vmul.f32 0.015625, %v7572_v29 }
0x19a7   : > { %v7667_v8 = vadd.f32 1e-05, %v7639_v56  ;;  %v7626_v4 = vsub.f32 %v7598_v26, %v7612_v21  ;;  %v7613_v19 = vmul.f32 %v15320_v34, %v15320_v34  ;;  %v7652_v56 = vsub.f32 %v15106_v42, %v15306_v54 }
0x19a8   : > { %v7575_v12 = vpop.xlane.xlu1 %7574  ;;  %v7508_v43 = vpop.xlane.xlu0 %7507  ;;  %v7653_v42 = vsub.f32 %v15116_v45, %v15310_v0  ;;  %v7654_v0 = vsub.f32 %v15126_v7, %v15314_v17 }
0x19a9   : > { %11158 = vrsqrt.f32 %v7667_v8  ;;  %v7640_v49 = vmax.f32 %v7626_v4, 0.0  ;;  %v7599_v18 = vmul.f32 0.015625, %v7575_v12  ;;  %v15326_v14 = vmul.f32 0.015625, %v7508_v43 }
0x19ab   : > { %v7668_v31 = vadd.f32 1e-05, %v7640_v49  ;;  %v7627_v30 = vsub.f32 %v7599_v18, %v7613_v19  ;;  %v7614_v33 = vmul.f32 %v15326_v14, %v15326_v14 }
0x19ac   : > { %v7511_v20 = vpop.xlane.xlu1 %7510  ;;  %v7578_v63 = vpop.xlane.xlu0 %7577 }
0x19ad   : > { %11160 = vrsqrt.f32 %v7668_v31  ;;  %v7641_v36 = vmax.f32 %v7627_v30, 0.0  ;;  %v15333_v6 = vmul.f32 0.015625, %v7511_v20  ;;  %v7600_v50 = vmul.f32 0.015625, %v7578_v63 }
0x19ae   : > { %v11155_v25 = vpop.eup %11154 }
0x19af   : > { %v7669_v47 = vadd.f32 1e-05, %v7641_v36  ;;  %v7628_v16 = vsub.f32 %v7600_v50, %v7614_v33  ;;  %v7615_v13 = vmul.f32 %v15333_v6, %v15333_v6  ;;  %v7693_v40 = vmul.f32 %v11155_v25, %v7651_v28 }
0x19b0   : > { %v7581_v27 = vpop.xlane.xlu1 %7580  ;;  %v7514_v41 = vpop.xlane.xlu0 %7513 }
0x19b1   : > { %11162 = vrsqrt.f32 %v7669_v47  ;;  %v7642_v61 = vmax.f32 %v7628_v16, 0.0  ;;  %v7601_v21 = vmul.f32 0.015625, %v7581_v27  ;;  %v15339_v35 = vmul.f32 0.015625, %v7514_v41  ;;  %v11255_v16 = vld [vmem:[%s11580_s20 + $0x20] sm:$0xff] }
0x19b2   : > { %v11157_v29 = vpop.eup %11156  ;;  %v7714_v55 = vmul.f32 %v15236_v10, %v7693_v40  ;;  %v16217_v27 = vld [vmem:[#allocation21_spill] sm:$0xff] }
0x19b3   : > { %v7670_v5 = vadd.f32 1e-05, %v7642_v61  ;;  %v7629_v26 = vsub.f32 %v7601_v21, %v7615_v13  ;;  %v7616_v38 = vmul.f32 %v15339_v35, %v15339_v35  ;;  %v7694_v12 = vmul.f32 %v11157_v29, %v7652_v56 }
0x19b4   : > { %v7517_v8 = vpop.xlane.xlu1 %7516  ;;  %v7584_v4 = vpop.xlane.xlu0 %7583  ;;  %v7735_v19 = vadd.f32 %v15244_v1, %v7714_v55  ;;  %v7655_v61 = vsub.f32 %v15136_v3, %v15320_v34 }
0x19b5   : > { %11164 = vrsqrt.f32 %v7670_v5  ;;  %v7643_v43 = vmax.f32 %v7629_v26, 0.0  ;;  %v15347_v49 = vmul.f32 0.015625, %v7517_v8  ;;  %v7602_v18 = vmul.f32 0.015625, %v7584_v4 }
0x19b6   : > { %v11159_v60 = vpop.eup %11158  ;;  %v7749_v54 = vadd.f32 %v7735_v19, %v14981_v11  ;;  %v7715_v31 = vmul.f32 %v15236_v10, %v7694_v12  ;;  %v7656_v4 = vsub.f32 %v15146_v39, %v15326_v14  ;;  %v11256_v19 = vld [vmem:[%s11580_s20 + $0x28] sm:$0xff] }
0x19b7   : > { %v7671_v30 = vadd.f32 1e-05, %v7643_v43  ;;  %v7630_v24 = vsub.f32 %v7602_v18, %v7616_v38  ;;  %v7617_v33 = vmul.f32 %v15347_v49, %v15347_v49  ;;  %v7695_v25 = vmul.f32 %v11159_v60, %v7653_v42 }
0x19b8   : > { %v7587_v20 = vpop.xlane.xlu1 %7586  ;;  %v7520_v63 = vpop.xlane.xlu0 %7519  ;;  %v7763_v36 = vmul.f32 0.5, %v7749_v54  ;;  %v7736_v50 = vadd.f32 %v15244_v1, %v7715_v31 }
0x19b9   : > { %11166 = vrsqrt.f32 %v7671_v30  ;;  %v7644_v28 = vmax.f32 %v7630_v24, 0.0  ;;  %v7603_v47 = vmul.f32 0.015625, %v7587_v20  ;;  %v15356_v45 = vmul.f32 0.015625, %v7520_v63  ;;  %v11257_v63 = vld [vmem:[%s11580_s20 + $0x30] sm:$0xff] }
0x19ba   : > { %v11161_v11 = vpop.eup %11160  ;;  %v15361_v13 = vadd.f32 %v11255_v16, %v7763_v36  ;;  %v7750_v41 = vadd.f32 %v7736_v50, %v16217_v27  ;;  %v7716_v40 = vmul.f32 %v15236_v10, %v7695_v25 }
0x19bb   : > { %v7672_v21 = vadd.f32 1e-05, %v7644_v28  ;;  %v7631_v29 = vsub.f32 %v7603_v47, %v7617_v33  ;;  %v7618_v56 = vmul.f32 %v15356_v45, %v15356_v45  ;;  %v7696_v34 = vmul.f32 %v11161_v11, %v7654_v0 }
0x19bc   : > { %v7799_v55 = vsel %vm1216_vm1, %v15361_v13, 0.0  ;;  %v7590_v7 = vpop.xlane.xlu0 %7589  ;;  %v7847_v17 = vmul.f32 %v15361_v13, %v15361_v13  ;;  %v7764_v5 = vmul.f32 0.5, %v7750_v41  ;;  %v7737_v26 = vadd.f32 %v15244_v1, %v7716_v40 }
0x19bd   : > { %11168 = vrsqrt.f32 %v7672_v21  ;;  %v7645_v38 = vmax.f32 %v7631_v29, 0.0  ;;  %7800 = vadd.xlane.f32.xlu1 %v7799_v55  ;;  %v7604_v3 = vmul.f32 0.015625, %v7590_v7  ;;  %v7717_v42 = vmul.f32 %v15236_v10, %v7696_v34  ;;  %v11258_v21 = vld [vmem:[%s11580_s20 + $0x38] sm:$0xff] }
0x19be   : > { %v11163_v8 = vpop.eup %11162  ;;  %v15377_v12 = vadd.f32 %v11256_v19, %v7764_v5  ;;  %v7751_v43 = vadd.f32 %v7737_v26, %v14993_v58  ;;  %v7869_v31 = vsel %vm1216_vm1, %v7847_v17, 0.0  ;;  %v7657_v11 = vsub.f32 %v15156_v48, %v15333_v6  ;;  %v11259_v17 = vld [vmem:[%s11580_s20 + $0x40] sm:$0xff] }
0x19bf   : > { %v7673_v18 = vadd.f32 1e-05, %v7645_v38  ;;  %v7632_v60 = vsub.f32 %v7604_v3, %v7618_v56  ;;  %v7697_v54 = vmul.f32 %v11163_v8, %v7655_v61  ;;  %v7738_v58 = vadd.f32 %v15244_v1, %v7717_v42 }
0x19c0   : > { %v7802_v30 = vsel %vm1216_vm1, %v15377_v12, 0.0  ;;  %v7765_v24 = vmul.f32 0.5, %v7751_v43  ;;  %v7848_v39 = vmul.f32 %v15377_v12, %v15377_v12  ;;  %v7658_v3 = vsub.f32 %v15166_v52, %v15339_v35  ;;  %v11260_v52 = vld [vmem:[%s11580_s20 + $0x48] sm:$0xff] }
0x19c1   : > { %11170 = vrsqrt.f32 %v7673_v18  ;;  %v7646_v14 = vmax.f32 %v7632_v60, 0.0  ;;  %7870 = vadd.xlane.f32.xlu1 %v7869_v31  ;;  %7803 = vadd.xlane.f32.xlu0 %v7802_v30  ;;  %v7718_v33 = vmul.f32 %v15236_v10, %v7697_v54  ;;  %v7752_v25 = vadd.f32 %v7738_v58, %v14984_v59 }
0x19c2   : > { %v11165_v20 = vpop.eup %11164  ;;  %v15389_v36 = vadd.f32 %v11257_v63, %v7765_v24  ;;  %v7872_v16 = vsel %vm1216_vm1, %v7848_v39, 0.0 }
0x19c3   : > { %v7674_v50 = vadd.f32 1e-05, %v7646_v14  ;;  %v7739_v28 = vadd.f32 %v15244_v1, %v7718_v33  ;;  %v7698_v47 = vmul.f32 %v11165_v20, %v7656_v4  ;;  %v7766_v41 = vmul.f32 0.5, %v7752_v25  ;;  %v11261_v20 = vld [vmem:[%s11580_s20 + $0x50] sm:$0xff] }
0x19c4   : > { %v7805_v0 = vsel %vm1216_vm1, %v15389_v36, 0.0  ;;  %v7849_v27 = vmul.f32 %v15389_v36, %v15389_v36  ;;  %v7660_v14 = vsub.f32 %v15186_v9, %v15356_v45 }
0x19c5   : > { %11172 = vrsqrt.f32 %v7674_v50  ;;  %7806 = vadd.xlane.f32.xlu1 %v7805_v0  ;;  %7873 = vadd.xlane.f32.xlu0 %v7872_v16  ;;  %v7753_v59 = vadd.f32 %v7739_v28, %v15005_v53  ;;  %v7719_v40 = vmul.f32 %v15236_v10, %v7698_v47  ;;  %v15403_v48 = vadd.f32 %v11258_v21, %v7766_v41  ;;  %v11263_v21 = vld [vmem:[%s11580_s20 + $0x60] sm:$0xff] }
0x19c6   : > { %v11167_v61 = vpop.eup %11166  ;;  %v7875_v55 = vsel %vm1216_vm1, %v7849_v27, 0.0 }
0x19c7   : > { %v7767_v6 = vmul.f32 0.5, %v7753_v59  ;;  %v7740_v29 = vadd.f32 %v15244_v1, %v7719_v40  ;;  %v7699_v56 = vmul.f32 %v11167_v61, %v7657_v11  ;;  %v7808_v7 = vsel %vm1216_vm1, %v15403_v48, 0.0 }
0x19c8   : > { %v7850_v53 = vmul.f32 %v15403_v48, %v15403_v48 }
0x19c9   : > { %7876 = vadd.xlane.f32.xlu1 %v7875_v55  ;;  %v15410_v5 = vadd.f32 %v11259_v17, %v7767_v6  ;;  %v7754_v26 = vadd.f32 %v7740_v29, %v14996_v15  ;;  %7809 = vadd.xlane.f32.xlu0 %v7808_v7  ;;  %v7720_v34 = vmul.f32 %v15236_v10, %v7699_v56  ;;  %v11264_v7 = vld [vmem:[%s11580_s20 + $0x68] sm:$0xff] }
0x19ca   : > { %v11169_v38 = vpop.eup %11168  ;;  %v7659_v15 = vsub.f32 %v15176_v46, %v15347_v49  ;;  %v7878_v60 = vsel %vm1216_vm1, %v7850_v53, 0.0 }
0x19cb   : > { %v7811_v8 = vsel %vm1216_vm1, %v15410_v5, 0.0  ;;  %v7768_v4 = vmul.f32 0.5, %v7754_v26  ;;  %v7851_v19 = vmul.f32 %v15410_v5, %v15410_v5  ;;  %v7741_v43 = vadd.f32 %v15244_v1, %v7720_v34 }
0x19cc   : > { %v7700_v18 = vmul.f32 %v11169_v38, %v7658_v3 }
0x19cd   : > { %7812 = vadd.xlane.f32.xlu1 %v7811_v8  ;;  %v15427_v35 = vadd.f32 %v11260_v52, %v7768_v4  ;;  %7879 = vadd.xlane.f32.xlu0 %v7878_v60  ;;  %v7755_v54 = vadd.f32 %v7741_v43, %v15016_v44  ;;  %v7881_v39 = vsel %vm1216_vm1, %v7851_v19, 0.0  ;;  %v10662_v60 = vld [vmem:[%s11563_s5 + $0x38] sm:$0xff]  }
0x19ce   : > { %v11171_v42 = vpop.eup %11170  ;;  %v7721_v31 = vmul.f32 %v15236_v10, %v7700_v18  ;;  %10444 = vmatpush3.bf16.msra.mxu0 %v10662_v60 }
0x19cf   : > { %v7814_v30 = vsel %vm1216_vm1, %v15427_v35, 0.0  ;;  %v7701_v24 = vmul.f32 %v11171_v42, %v7659_v15  ;;  %v7769_v46 = vmul.f32 0.5, %v7755_v54  ;;  %v7852_v58 = vmul.f32 %v15427_v35, %v15427_v35  ;;  %10445 = vmatprep.subr.bf16.mxu0 %v16091_v57 }
0x19d0   : > { %v7742_v49 = vadd.f32 %v15244_v1, %v7721_v31  ;;  %v10663_v31 = vld [vmem:[%s11563_s5 + $0x30] sm:$0xff]  }
0x19d1   : > { %7882 = vadd.xlane.f32.xlu1 %v7881_v39  ;;  %v7722_v44 = vmul.f32 %v15236_v10, %v7701_v24  ;;  %7815 = vadd.xlane.f32.xlu0 %v7814_v30  ;;  %v15441_v63 = vadd.f32 %v11261_v20, %v7769_v46  ;;  %v7884_v11 = vsel %vm1216_vm1, %v7852_v58, 0.0 }
0x19d2   : > { %v11173_v33 = vpop.eup %11172  ;;  %v7756_v50 = vadd.f32 %v7742_v49, %v15008_v32  ;;  %v11262_v32 = vld [vmem:[%s11580_s20 + $0x58] sm:$0xff]  ;;  %10446 = vmatpush3.bf16.msra.mxu0 %v10663_v31 }
0x19d3   : > { %v7743_v25 = vadd.f32 %v15244_v1, %v7722_v44  ;;  %v7702_v28 = vmul.f32 %v11173_v33, %v7660_v14  ;;  %v7817_v9 = vsel %vm1216_vm1, %v15441_v63, 0.0  ;;  %v7853_v45 = vmul.f32 %v15441_v63, %v15441_v63  ;;  %v10664_v44 = vld [vmem:[%s11563_s5 + $0x28] sm:$0xff]   ;;  %10447 = vmatprep.subr.bf16.mxu0 %v16091_v57 }
0x19d4   : > { %v7770_v47 = vmul.f32 0.5, %v7756_v50 }
0x19d5   : > { %7818 = vadd.xlane.f32.xlu1 %v7817_v9  ;;  %v7757_v0 = vadd.f32 %v7743_v25, %v15024_v22  ;;  %v7723_v16 = vmul.f32 %v15236_v10, %v7702_v28  ;;  %7885 = vadd.xlane.f32.xlu0 %v7884_v11  ;;  %v7887_v40 = vsel %vm1216_vm1, %v7853_v45, 0.0 }
0x19d6   : > { %v15453_v27 = vadd.f32 %v11262_v32, %v7770_v47  ;;  %10448 = vmatpush3.bf16.msra.mxu0 %v10664_v44  ;;  %v10665_v47 = vld [vmem:[%s11563_s5 + $0x20] sm:$0xff]  }
0x19d7   : > { %v7771_v41 = vmul.f32 0.5, %v7757_v0  ;;  %v7744_v59 = vadd.f32 %v15244_v1, %v7723_v16  ;;  %10449 = vmatprep.subr.bf16.mxu0 %v16091_v57 }
0x19d8   : > { %v7820_v61 = vsel %vm1216_vm1, %v15453_v27, 0.0  ;;  %v7854_v22 = vmul.f32 %v15453_v27, %v15453_v27 }
0x19d9   : > { %7888 = vadd.xlane.f32.xlu1 %v7887_v40  ;;  %v15460_v6 = vadd.f32 %v11263_v21, %v7771_v41  ;;  %v7758_v10 = vadd.f32 %v7744_v59, %v15019_v2  ;;  %7821 = vadd.xlane.f32.xlu0 %v7820_v61  ;;  %v10666_v59 = vld [vmem:[%s11563_s5 + $0x18] sm:$0xff]  }
0x19da   : > { %v7890_v55 = vsel %vm1216_vm1, %v7854_v22, 0.0  ;;  %10450 = vmatpush3.bf16.msra.mxu0 %v10665_v47 }
0x19db   : > { %v7823_v29 = vsel %vm1216_vm1, %v15460_v6, 0.0  ;;  %v7772_v56 = vmul.f32 0.5, %v7758_v10  ;;  %v7855_v1 = vmul.f32 %v15460_v6, %v15460_v6  ;;  %10451 = vmatprep.subr.bf16.mxu0 %v16091_v57 }
0x19dd   : > { %7824 = vadd.xlane.f32.xlu1 %v7823_v29  ;;  %v15471_v17 = vadd.f32 %v11264_v7, %v7772_v56  ;;  %7891 = vadd.xlane.f32.xlu0 %v7890_v55  ;;  %v7893_v2 = vsel %vm1216_vm1, %v7855_v1, 0.0  ;;  %v15495_v29 = vld [vmem:[%s16219_s8] ss:$0 sm:$0xff] }
0x19de   : > { %10452 = vmatpush3.bf16.msra.mxu0 %v10666_v59 }
0x19df   : > { %v7826_v53 = vsel %vm1216_vm1, %v15471_v17, 0.0  ;;  %v7856_v26 = vmul.f32 %v15471_v17, %v15471_v17  ;;  %10453 = vmatprep.subr.bf16.mxu0 %v16091_v57 }
0x19e1   : > { %7894 = vadd.xlane.f32.xlu1 %v7893_v2  ;;  %7827 = vadd.xlane.f32.xlu0 %v7826_v53  ;;  %v7896_v38 = vsel %vm1216_vm1, %v7856_v26, 0.0 }
0x19e5   : > { %7897 = vadd.xlane.f32.xlu0 %v7896_v38 }
0x1a06   : > { %v7789_v3 = vpop.xlane.xlu1 %7788 }
0x1a07   : > { %v7829_v34 = vmul.f32 0.015625, %v7789_v3 }
0x1a09   : > { %v7913_v4 = vmul.f32 %v7829_v34, %v7829_v34  ;;  %v7955_v22 = vsub.f32 %v15260_v62, %v7829_v34  ;;  %v15504_v62 = vld [vmem:[%s16221_s4] ss:$0 sm:$0xff] }
0x1a0a   : > { %v7859_v8 = vpop.xlane.xlu1 %7858 }
0x1a0b   : > { %v7899_v19 = vmul.f32 0.015625, %v7859_v8 }
0x1a0c   : > { %v7792_v43 = vpop.xlane.xlu0 %7791 }
0x1a0d   : > { %v7927_v18 = vsub.f32 %v7899_v19, %v7913_v4  ;;  %v7830_v15 = vmul.f32 0.015625, %v7792_v43 }
0x1a0f   : > { %v7941_v52 = vmax.f32 %v7927_v18, 0.0  ;;  %v7914_v24 = vmul.f32 %v7830_v15, %v7830_v15  ;;  %v7956_v56 = vsub.f32 %v15276_v23, %v7830_v15 }
0x1a10   : > { %v7795_v42 = vpop.xlane.xlu1 %7794  ;;  %v7862_v54 = vpop.xlane.xlu0 %7861 }
0x1a11   : > { %v7969_v30 = vadd.f32 1e-05, %v7941_v52  ;;  %v7831_v39 = vmul.f32 0.015625, %v7795_v42  ;;  %v7900_v46 = vmul.f32 0.015625, %v7862_v54 }
0x1a13   : > { %11174 = vrsqrt.f32 %v7969_v30  ;;  %v7928_v49 = vsub.f32 %v7900_v46, %v7914_v24  ;;  %v7915_v33 = vmul.f32 %v7831_v39, %v7831_v39  ;;  %v7957_v53 = vsub.f32 %v15286_v37, %v7831_v39 }
0x1a14   : > { %v7865_v14 = vpop.xlane.xlu1 %7864  ;;  %v7798_v58 = vpop.xlane.xlu0 %7797 }
0x1a15   : > { %v7942_v20 = vmax.f32 %v7928_v49, 0.0  ;;  %v7901_v50 = vmul.f32 0.015625, %v7865_v14  ;;  %v7832_v25 = vmul.f32 0.015625, %v7798_v58 }
0x1a17   : > { %v7970_v28 = vadd.f32 1e-05, %v7942_v20  ;;  %v7929_v9 = vsub.f32 %v7901_v50, %v7915_v33  ;;  %v7916_v0 = vmul.f32 %v7832_v25, %v7832_v25  ;;  %v7958_v34 = vsub.f32 %v15294_v51, %v7832_v25 }
0x1a18   : > { %v7868_v45 = vpop.xlane.xlu0 %7867 }
0x1a19   : > { %11176 = vrsqrt.f32 %v7970_v28  ;;  %v7943_v11 = vmax.f32 %v7929_v9, 0.0  ;;  %v7902_v16 = vmul.f32 0.015625, %v7868_v45 }
0x1a1b   : > { %v7971_v32 = vadd.f32 1e-05, %v7943_v11  ;;  %v7930_v41 = vsub.f32 %v7902_v16, %v7916_v0 }
0x1a1d   : > { %11178 = vrsqrt.f32 %v7971_v32  ;;  %v7944_v40 = vmax.f32 %v7930_v41, 0.0 }
0x1a1f   : > { %v7972_v61 = vadd.f32 1e-05, %v7944_v40 }
0x1a20   : > { %v11175_v21 = vpop.eup %11174 }
0x1a21   : > { %11180 = vrsqrt.f32 %v7972_v61  ;;  %v7997_v10 = vmul.f32 %v11175_v21, %v7955_v22 }
0x1a23   : > { %v8018_v55 = vmul.f32 %v15495_v29, %v7997_v10 }
0x1a25   : > { %v15509_v38 = vadd.f32 %v15504_v62, %v8018_v55 }
0x1a26   : > { %v11177_v1 = vpop.eup %11176 }
0x1a27   : > { %v7998_v7 = vmul.f32 %v11177_v1, %v7956_v56 }
0x1a29   : > { %v8019_v2 = vmul.f32 %v15495_v29, %v7998_v7 }
0x1a2a   : > { %v11179_v26 = vpop.eup %11178 }
0x1a2b   : > { %v15512_v23 = vadd.f32 %v15504_v62, %v8019_v2  ;;  %v7999_v3 = vmul.f32 %v11179_v26, %v7957_v53 }
0x1a2d   : > { %v8053_v8 = vpack.c.bf16 %v15512_v23, %v15509_v38  ;;  %v8020_v37 = vmul.f32 %v15495_v29, %v7999_v3 }
0x1a2e   : > { %v11181_v4 = vpop.eup %11180 }
0x1a2f   : > { %10416 = vmatmul.mubr.msk.bf16.vlgmr.msra.gmra.mxu1 %vm1216_vm1, %v8053_v8  ;;  %v8000_v19 = vmul.f32 %v11181_v4, %v7958_v34  ;;  %v15523_v18 = vadd.f32 %v15504_v62, %v8020_v37 }
0x1a30   : > { %10419 = vmatprep.mubr.msk.bf16.mxu1 %vm11312_vm5, %v16091_v57 }
0x1a31   : > { %v8021_v43 = vmul.f32 %v15495_v29, %v8000_v19 }
0x1a33   : > { %v15526_v15 = vadd.f32 %v15504_v62, %v8021_v43 }
0x1a35   : > { %v8054_v51 = vpack.c.bf16 %v15526_v15, %v15523_v18 }
0x1a37   : > { %10420 = vmatmul.mubr.msk.bf16.gmra.mxu1 %vm1216_vm1, %v8054_v51 }
0x1a38   : > { %10423 = vmatprep.mubr.msk.bf16.mxu1 %vm11312_vm5, %v16091_v57 }
0x1a46   : > { %v7801_v60 = vpop.xlane.xlu1 %7800 }
0x1a47   : > { %v7833_v52 = vmul.f32 0.015625, %v7801_v60 }
0x1a49   : > { %v7917_v31 = vmul.f32 %v7833_v52, %v7833_v52  ;;  %v7959_v8 = vsub.f32 %v15361_v13, %v7833_v52 }
0x1a4a   : > { %v7871_v42 = vpop.xlane.xlu1 %7870  ;;  %v7804_v54 = vpop.xlane.xlu0 %7803 }
0x1a4b   : > { %v7903_v30 = vmul.f32 0.015625, %v7871_v42  ;;  %v7834_v24 = vmul.f32 0.015625, %v7804_v54 }
0x1a4d   : > { %v7931_v39 = vsub.f32 %v7903_v30, %v7917_v31  ;;  %v7918_v58 = vmul.f32 %v7834_v24, %v7834_v24 }
0x1a4e   : > { %v7807_v46 = vpop.xlane.xlu1 %7806  ;;  %v7874_v49 = vpop.xlane.xlu0 %7873 }
0x1a4f   : > { %v7945_v14 = vmax.f32 %v7931_v39, 0.0  ;;  %v15533_v44 = vmul.f32 0.015625, %v7807_v46  ;;  %v7904_v33 = vmul.f32 0.015625, %v7874_v49  ;;  %v7960_v39 = vsub.f32 %v15377_v12, %v7834_v24 }
0x1a51   : > { %v7973_v20 = vadd.f32 1e-05, %v7945_v14  ;;  %v7932_v50 = vsub.f32 %v7904_v33, %v7918_v58  ;;  %v7919_v28 = vmul.f32 %v15533_v44, %v15533_v44 }
0x1a52   : > { %v7877_v25 = vpop.xlane.xlu1 %7876  ;;  %v7810_v47 = vpop.xlane.xlu0 %7809 }
0x1a53   : > { %11182 = vrsqrt.f32 %v7973_v20  ;;  %v7946_v9 = vmax.f32 %v7932_v50, 0.0  ;;  %v7905_v45 = vmul.f32 0.015625, %v7877_v25  ;;  %v15537_v11 = vmul.f32 0.015625, %v7810_v47 }
0x1a55   : > { %v7974_v0 = vadd.f32 1e-05, %v7946_v9  ;;  %v7933_v16 = vsub.f32 %v7905_v45, %v7919_v28  ;;  %v7920_v61 = vmul.f32 %v15537_v11, %v15537_v11 }
0x1a56   : > { %v7813_v32 = vpop.xlane.xlu1 %7812  ;;  %v7880_v40 = vpop.xlane.xlu0 %7879 }
0x1a57   : > { %11184 = vrsqrt.f32 %v7974_v0  ;;  %v7947_v41 = vmax.f32 %v7933_v16, 0.0  ;;  %v15539_v59 = vmul.f32 0.015625, %v7813_v32  ;;  %v7906_v21 = vmul.f32 0.015625, %v7880_v40 }
0x1a58   : > { %v7961_v0 = vsub.f32 %v15389_v36, %v15533_v44 }
0x1a59   : > { %v7975_v22 = vadd.f32 1e-05, %v7947_v41  ;;  %v7934_v10 = vsub.f32 %v7906_v21, %v7920_v61  ;;  %v7921_v1 = vmul.f32 %v15539_v59, %v15539_v59 }
0x1a5a   : > { %v7883_v56 = vpop.xlane.xlu1 %7882  ;;  %v7816_v7 = vpop.xlane.xlu0 %7815 }
0x1a5b   : > { %11186 = vrsqrt.f32 %v7975_v22  ;;  %v7907_v55 = vmul.f32 0.015625, %v7883_v56  ;;  %v7948_v53 = vmax.f32 %v7934_v10, 0.0  ;;  %v15545_v2 = vmul.f32 0.015625, %v7816_v7 }
0x1a5d   : > { %v7935_v26 = vsub.f32 %v7907_v55, %v7921_v1  ;;  %v7976_v3 = vadd.f32 1e-05, %v7948_v53  ;;  %v7922_v51 = vmul.f32 %v15545_v2, %v15545_v2  ;;  %v7962_v55 = vsub.f32 %v15403_v48, %v15537_v11 }
0x1a5e   : > { %v7819_v34 = vpop.xlane.xlu1 %7818  ;;  %v7886_v37 = vpop.xlane.xlu0 %7885 }
0x1a5f   : > { %v7949_v4 = vmax.f32 %v7935_v26, 0.0  ;;  %v15548_v19 = vmul.f32 0.015625, %v7819_v34  ;;  %11188 = vrsqrt.f32 %v7976_v3  ;;  %v7908_v60 = vmul.f32 0.015625, %v7886_v37 }
0x1a60   : > { %v11183_v43 = vpop.eup %11182  ;;  %v7963_v37 = vsub.f32 %v15410_v5, %v15539_v59  ;;  %v7964_v59 = vsub.f32 %v15427_v35, %v15545_v2 }
0x1a61   : > { %v7977_v42 = vadd.f32 1e-05, %v7949_v4  ;;  %v8001_v54 = vmul.f32 %v11183_v43, %v7959_v8  ;;  %v7936_v31 = vsub.f32 %v7908_v60, %v7922_v51  ;;  %v7923_v13 = vmul.f32 %v15548_v19, %v15548_v19 }
0x1a62   : > { %v7889_v30 = vpop.xlane.xlu1 %7888  ;;  %v7822_v46 = vpop.xlane.xlu0 %7821  ;;  %v7965_v2 = vsub.f32 %v15441_v63, %v15548_v19 }
0x1a63   : > { %11190 = vrsqrt.f32 %v7977_v42  ;;  %v7909_v52 = vmul.f32 0.015625, %v7889_v30  ;;  %v7950_v14 = vmax.f32 %v7936_v31, 0.0  ;;  %v15555_v58 = vmul.f32 0.015625, %v7822_v46 }
0x1a64   : > { %v11185_v49 = vpop.eup %11184  ;;  %v8022_v50 = vmul.f32 %v15495_v29, %v8001_v54  ;;  %v10667_v54 = vld [vmem:[%s11563_s5 + $0x10] sm:$0xff]  }
0x1a65   : > { %v7937_v33 = vsub.f32 %v7909_v52, %v7923_v13  ;;  %v8002_v20 = vmul.f32 %v11185_v49, %v7960_v39  ;;  %v7978_v25 = vadd.f32 1e-05, %v7950_v14  ;;  %v7924_v16 = vmul.f32 %v15555_v58, %v15555_v58  ;;  %10454 = vmatpush3.bf16.msra.mxu0 %v10667_v54  ;;  %v10668_v49 = vld [vmem:[%s11563_s5 + $0x8] sm:$0xff]  }
0x1a66   : > { %v7825_v28 = vpop.xlane.xlu1 %7824  ;;  %v7892_v12 = vpop.xlane.xlu0 %7891  ;;  %v15566_v40 = vadd.f32 %v15504_v62, %v8022_v50  ;;  %10455 = vmatprep.subr.bf16.mxu0 %v16091_v57 }
0x1a67   : > { %v7951_v9 = vmax.f32 %v7937_v33, 0.0  ;;  %v15558_v45 = vmul.f32 0.015625, %v7825_v28  ;;  %v8023_v24 = vmul.f32 %v15495_v29, %v8002_v20  ;;  %11192 = vrsqrt.f32 %v7978_v25  ;;  %v10669_v28 = vld [vmem:[%s11563_s5] sm:$0xff]  }
0x1a68   : > { %v11187_v47 = vpop.eup %11186  ;;  %v7910_v32 = vmul.f32 0.015625, %v7892_v12 }
0x1a69   : > { %v7979_v41 = vadd.f32 1e-05, %v7951_v9  ;;  %v15569_v61 = vadd.f32 %v15504_v62, %v8023_v24  ;;  %v8003_v10 = vmul.f32 %v11187_v47, %v7961_v0  ;;  %v7925_v56 = vmul.f32 %v15558_v45, %v15558_v45  ;;  %10456 = vmatpush3.bf16.msra.mxu0 %v10668_v49 }
0x1a6a   : > { %v7938_v21 = vsub.f32 %v7910_v32, %v7924_v16  ;;  %v7895_v22 = vpop.xlane.xlu1 %7894  ;;  %v7828_v44 = vpop.xlane.xlu0 %7827  ;;  %10457 = vmatprep.subr.bf16.mxu0 %v16091_v57  ;;  %v7966_v47 = vsub.f32 %v15453_v27, %v15555_v58 }
0x1a6b   : > { %11194 = vrsqrt.f32 %v7979_v41  ;;  %v7911_v36 = vmul.f32 0.015625, %v7895_v22  ;;  %v8055_v1 = vpack.c.bf16 %v15569_v61, %v15566_v40  ;;  %v15577_v53 = vmul.f32 0.015625, %v7828_v44 }
0x1a6c   : > { %v7952_v7 = vmax.f32 %v7938_v21, 0.0  ;;  %v11189_v26 = vpop.eup %11188  ;;  %v8024_v4 = vmul.f32 %v15495_v29, %v8003_v10  ;;  %v7967_v41 = vsub.f32 %v15460_v6, %v15558_v45 }
0x1a6d   : > { %v7939_v3 = vsub.f32 %v7911_v36, %v7925_v56  ;;  %10424 = vmatmul.mubr.msk.bf16.gmra.mxu1 %vm1216_vm1, %v8055_v1  ;;  %v8004_v8 = vmul.f32 %v11189_v26, %v7962_v55  ;;  %v7926_v51 = vmul.f32 %v15577_v53, %v15577_v53  ;;  %10458 = vmatpush3.bf16.msra.mxu0 %v10669_v28 }
0x1a6e   : > { %v7980_v34 = vadd.f32 1e-05, %v7952_v7  ;;  %10427 = vmatprep.mubr.msk.bf16.mxu1 %vm11312_vm5, %v16091_v57  ;;  %v7898_v48 = vpop.xlane.xlu0 %7897  ;;  %v15590_v39 = vadd.f32 %v15504_v62, %v8024_v4  ;;  %v7968_v10 = vsub.f32 %v15471_v17, %v15577_v53  ;;  %v15656_v7 = vld [vmem:[%s1077_s18] ss:$0 sm:$0xff] }
0x1a6f   : > { %v7953_v43 = vmax.f32 %v7939_v3, 0.0  ;;  %v7912_v60 = vmul.f32 0.015625, %v7898_v48  ;;  %v8025_v42 = vmul.f32 %v15495_v29, %v8004_v8 }
0x1a70   : > { %v11191_v11 = vpop.eup %11190  ;;  %11196 = vrsqrt.f32 %v7980_v34 }
0x1a71   : > { %v7981_v31 = vadd.f32 1e-05, %v7953_v43  ;;  %v7940_v30 = vsub.f32 %v7912_v60, %v7926_v51  ;;  %v15593_v13 = vadd.f32 %v15504_v62, %v8025_v42  ;;  %v8005_v5 = vmul.f32 %v11191_v11, %v7963_v37 }
0x1a73   : > { %11198 = vrsqrt.f32 %v7981_v31  ;;  %v7954_v52 = vmax.f32 %v7940_v30, 0.0  ;;  %v8056_v46 = vpack.c.bf16 %v15593_v13, %v15590_v39  ;;  %v8026_v50 = vmul.f32 %v15495_v29, %v8005_v5 }
0x1a74   : > { %v11193_v14 = vpop.eup %11192 }
0x1a75   : > { %v7982_v33 = vadd.f32 1e-05, %v7954_v52  ;;  %10428 = vmatmul.mubr.msk.bf16.gmra.mxu1 %vm1216_vm1, %v8056_v46  ;;  %v8006_v20 = vmul.f32 %v11193_v14, %v7964_v59  ;;  %v15611_v9 = vadd.f32 %v15504_v62, %v8026_v50 }
0x1a76   : > { %10431 = vmatprep.mubr.msk.bf16.mxu1 %vm11312_vm5, %v16091_v57 }
0x1a77   : > { %11200 = vrsqrt.f32 %v7982_v33  ;;  %v8027_v25 = vmul.f32 %v15495_v29, %v8006_v20 }
0x1a78   : > { %v11195_v35 = vpop.eup %11194 }
0x1a79   : > { %v15614_v12 = vadd.f32 %v15504_v62, %v8027_v25  ;;  %v8007_v24 = vmul.f32 %v11195_v35, %v7965_v2 }
0x1a7b   : > { %v8057_v0 = vpack.c.bf16 %v15614_v12, %v15611_v9  ;;  %v8028_v19 = vmul.f32 %v15495_v29, %v8007_v24 }
0x1a7d   : > { %v11197_v16 = vpop.eup %11196  ;;  %10432 = vmatmul.mubr.msk.bf16.gmra.mxu1 %vm1216_vm1, %v8057_v0  ;;  %v15628_v27 = vadd.f32 %v15504_v62, %v8028_v19 }
0x1a7e   : > { %v8008_v63 = vmul.f32 %v11197_v16, %v7966_v47  ;;  %10435 = vmatprep.mubr.msk.bf16.mxu1 %vm11312_vm5, %v16091_v57 }
0x1a80   : > { %v11199_v32 = vpop.eup %11198  ;;  %v8029_v21 = vmul.f32 %v15495_v29, %v8008_v63 }
0x1a81   : > { %v8009_v22 = vmul.f32 %v11199_v32, %v7967_v41 }
0x1a82   : > { %v15631_v58 = vadd.f32 %v15504_v62, %v8029_v21 }
0x1a83   : > { %v8030_v45 = vmul.f32 %v15495_v29, %v8009_v22 }
0x1a84   : > { %v8058_v56 = vpack.c.bf16 %v15631_v58, %v15628_v27  ;;  %v11201_v36 = vpop.eup %11200 }
0x1a85   : > { %v8010_v6 = vmul.f32 %v11201_v36, %v7968_v10  ;;  %v15643_v1 = vadd.f32 %v15504_v62, %v8030_v45 }
0x1a86   : > { %10436 = vmatmul.mubr.msk.bf16.gmra.mxu1 %vm1216_vm1, %v8058_v56 }
0x1a87   : > { %10439 = vmatprep.mubr.msk.bf16.mxu1 %vm11312_vm5, %v16091_v57  ;;  %v8031_v44 = vmul.f32 %v15495_v29, %v8010_v6 }
0x1a89   : > { %v15646_v55 = vadd.f32 %v15504_v62, %v8031_v44 }
0x1a8b   : > { %v8059_v17 = vpack.c.bf16 %v15646_v55, %v15643_v1 }
0x1a8e   : > { %10440 = vmatmul.mubr.msk.bf16.gmra.mxu1 %vm1216_vm1, %v8059_v17 }
0x1aef   : > { %v8154_v53 = vpop.f32.mrf.mxu1 }
0x1af0   : > { %v8155_v29 = vadd.f32 %v15656_v7, %v8154_v53 }
0x1af1   : > { %v10417_v26 = vpop.f32.mrf.mxu1 }
0x1af2   : > { %v8209_v8 = vmax.f32 %v8155_v29, 0.0 }
0x1af3   : > { %v8157_v3 = vpop.f32.mrf.mxu1 }
0x1af4   : > { %v8158_v34 = vadd.f32 %v15656_v7, %v8157_v3 }
0x1af5   : > { %v10418_v62 = vpop.f32.mrf.mxu1 }
0x1af6   : > { %v8210_v4 = vmax.f32 %v8158_v34, 0.0 }
0x1af7   : > { %v8162_v37 = vpop.f32.mrf.mxu1 }
0x1af8   : > { %v8223_v43 = vpack.c.bf16 %v8210_v4, %v8209_v8  ;;  %v8163_v11 = vadd.f32 %v15656_v7, %v8162_v37 }
0x1af9   : > { %v10421_v48 = vpop.f32.mrf.mxu1 }
0x1afa   : > { %10460 = vmatmul.mubr.bf16.vlgmr.msra.gmra.mxu0 %v8223_v43  ;;  %v8211_v54 = vmax.f32 %v8163_v11, 0.0 }
0x1afb   : > { %v8165_v51 = vpop.f32.mrf.mxu1  ;;  %10463 = vmatprep.mubr.msk.bf16.mxu0 %vm11312_vm5, %v16091_v57 }
0x1afc   : > { %v8166_v60 = vadd.f32 %v15656_v7, %v8165_v51 }
0x1afd   : > { %v10422_v42 = vpop.f32.mrf.mxu1 }
0x1afe   : > { %v8212_v31 = vmax.f32 %v8166_v60, 0.0 }
0x1b00   : > { %v8224_v30 = vpack.c.bf16 %v8212_v31, %v8211_v54  ;;  %v15689_v54 = vld [vmem:[%s1085_s16] ss:$0 sm:$0xff] }
0x1b02   : > { %10464 = vmatmul.mubr.bf16.gmra.mxu0 %v8224_v30 }
0x1b03   : > { %10467 = vmatprep.mubr.msk.bf16.mxu0 %vm11312_vm5, %v16091_v57 }
0x1b2d   : > { %v8170_v5 = vpop.f32.mrf.mxu1 }
0x1b2e   : > { %v8171_v52 = vadd.f32 %v15656_v7, %v8170_v5 }
0x1b2f   : > { %v10425_v59 = vpop.f32.mrf.mxu1 }
0x1b30   : > { %v8213_v33 = vmax.f32 %v8171_v52, 0.0 }
0x1b31   : > { %v8173_v46 = vpop.f32.mrf.mxu1 }
0x1b32   : > { %v8174_v49 = vadd.f32 %v15656_v7, %v8173_v46 }
0x1b33   : > { %v10426_v14 = vpop.f32.mrf.mxu1 }
0x1b34   : > { %v8214_v20 = vmax.f32 %v8174_v49, 0.0 }
0x1b35   : > { %v8178_v35 = vpop.f32.mrf.mxu1 }
0x1b36   : > { %v8225_v50 = vpack.c.bf16 %v8214_v20, %v8213_v33  ;;  %v8179_v25 = vadd.f32 %v15656_v7, %v8178_v35 }
0x1b37   : > { %v10429_v2 = vpop.f32.mrf.mxu1 }
0x1b38   : > { %10468 = vmatmul.mubr.bf16.gmra.mxu0 %v8225_v50  ;;  %v8215_v0 = vmax.f32 %v8179_v25, 0.0 }
0x1b39   : > { %10471 = vmatprep.mubr.msk.bf16.mxu0 %vm11312_vm5, %v16091_v57  ;;  %v8181_v28 = vpop.f32.mrf.mxu1 }
0x1b3a   : > { %v8182_v24 = vadd.f32 %v15656_v7, %v8181_v28 }
0x1b3b   : > { %v10430_v47 = vpop.f32.mrf.mxu1 }
0x1b3c   : > { %v8216_v16 = vmax.f32 %v8182_v24, 0.0 }
0x1b3d   : > { %v8186_v63 = vpop.f32.mrf.mxu1 }
0x1b3e   : > { %v8226_v19 = vpack.c.bf16 %v8216_v16, %v8215_v0  ;;  %v8187_v41 = vadd.f32 %v15656_v7, %v8186_v63 }
0x1b3f   : > { %v10433_v32 = vpop.f32.mrf.mxu1 }
0x1b40   : > { %10472 = vmatmul.mubr.bf16.gmra.mxu0 %v8226_v19  ;;  %v8217_v56 = vmax.f32 %v8187_v41, 0.0 }
0x1b41   : > { %v8189_v21 = vpop.f32.mrf.mxu1  ;;  %10475 = vmatprep.mubr.msk.bf16.mxu0 %vm11312_vm5, %v16091_v57 }
0x1b42   : > { %v8190_v22 = vadd.f32 %v15656_v7, %v8189_v21 }
0x1b43   : > { %v10434_v10 = vpop.f32.mrf.mxu1 }
0x1b44   : > { %v8218_v36 = vmax.f32 %v8190_v22, 0.0 }
0x1b46   : > { %v8194_v6 = vpop.f32.mrf.mxu1  ;;  %v8227_v45 = vpack.c.bf16 %v8218_v36, %v8217_v56 }
0x1b47   : > { %v8195_v17 = vadd.f32 %v15656_v7, %v8194_v6 }
0x1b48   : > { %v10437_v44 = vpop.f32.mrf.mxu1  ;;  %10476 = vmatmul.mubr.bf16.gmra.mxu0 %v8227_v45 }
0x1b49   : > { %10479 = vmatprep.mubr.msk.bf16.mxu0 %vm11312_vm5, %v16091_v57  ;;  %v8219_v3 = vmax.f32 %v8195_v17, 0.0 }
0x1b4a   : > { %v8197_v53 = vpop.f32.mrf.mxu1 }
0x1b4b   : > { %v8198_v26 = vadd.f32 %v15656_v7, %v8197_v53 }
0x1b4c   : > { %v10438_v29 = vpop.f32.mrf.mxu1 }
0x1b4d   : > { %v8220_v34 = vmax.f32 %v8198_v26, 0.0 }
0x1b4e   : > { %v8202_v62 = vpop.f32.mrf.mxu1 }
0x1b4f   : > { %v8228_v8 = vpack.c.bf16 %v8220_v34, %v8219_v3  ;;  %v8203_v37 = vadd.f32 %v15656_v7, %v8202_v62 }
0x1b50   : > { %v10441_v4 = vpop.f32.mrf.mxu1 }
0x1b51   : > { %10480 = vmatmul.mubr.bf16.gmra.mxu0 %v8228_v8  ;;  %v8221_v51 = vmax.f32 %v8203_v37, 0.0 }
0x1b52   : > { %v8205_v43 = vpop.f32.mrf.mxu1  ;;  %10483 = vmatprep.mubr.msk.bf16.mxu0 %vm11312_vm5, %v16091_v57 }
0x1b53   : > { %v8206_v48 = vadd.f32 %v15656_v7, %v8205_v43 }
0x1b54   : > { %v10442_v11 = vpop.f32.mrf.mxu1 }
0x1b55   : > { %v8222_v60 = vmax.f32 %v8206_v48, 0.0 }
0x1b57   : > { %v8229_v42 = vpack.c.bf16 %v8222_v60, %v8221_v51 }
0x1b59   : > { %10484 = vmatmul.mubr.bf16.gmra.mxu0 %v8229_v42 }
0x1bba   : > { %v8335_v31 = vpop.f32.mrf.mxu0 }
0x1bbb   : > { %v8336_v30 = vadd.f32 %v15689_v54, %v8335_v31 }
0x1bbc   : > { %v10461_v5 = vpop.f32.mrf.mxu0 }
0x1bbd   : > { %v15693_v59 = vadd.f32 %v8336_v30, %v15509_v38 }
0x1bbe   : > { %v8338_v57 = vpop.f32.mrf.mxu0 }
0x1bbf   : > { %v8339_v7 = vadd.f32 %v15689_v54, %v8338_v57  ;;  %v8404_v52 = vsel %vm1216_vm1, %v15693_v59, 0.0  ;;  %v8460_v46 = vmul.f32 %v15693_v59, %v15693_v59 }
0x1bc0   : > { %8405 = vadd.xlane.f32.xlu1 %v8404_v52  ;;  %v10462_v49 = vpop.f32.mrf.mxu0 }
0x1bc1   : > { %v15701_v14 = vadd.f32 %v8339_v7, %v15512_v23  ;;  %v8474_v38 = vsel %vm1216_vm1, %v8460_v46, 0.0 }
0x1bc2   : > { %v8343_v33 = vpop.f32.mrf.mxu0 }
0x1bc3   : > { %v8344_v20 = vadd.f32 %v15689_v54, %v8343_v33  ;;  %v8407_v50 = vsel %vm1216_vm1, %v15701_v14, 0.0  ;;  %v8461_v35 = vmul.f32 %v15701_v14, %v15701_v14 }
0x1bc4   : > { %8475 = vadd.xlane.f32.xlu1 %v8474_v38  ;;  %8408 = vadd.xlane.f32.xlu0 %v8407_v50  ;;  %v10465_v2 = vpop.f32.mrf.mxu0 }
0x1bc5   : > { %v15710_v25 = vadd.f32 %v8344_v20, %v15523_v18  ;;  %v8477_v24 = vsel %vm1216_vm1, %v8461_v35, 0.0 }
0x1bc6   : > { %v8346_v28 = vpop.f32.mrf.mxu0 }
0x1bc7   : > { %v8347_v23 = vadd.f32 %v15689_v54, %v8346_v28  ;;  %v8410_v47 = vsel %vm1216_vm1, %v15710_v25, 0.0  ;;  %v8462_v0 = vmul.f32 %v15710_v25, %v15710_v25 }
0x1bc8   : > { %8478 = vadd.xlane.f32.xlu0 %v8477_v24  ;;  %8411 = vadd.xlane.f32.xlu1 %v8410_v47  ;;  %v10466_v16 = vpop.f32.mrf.mxu0 }
0x1bc9   : > { %v15719_v63 = vadd.f32 %v8347_v23, %v15526_v15  ;;  %v8480_v18 = vsel %vm1216_vm1, %v8462_v0, 0.0 }
0x1bcb   : > { %v8413_v19 = vsel %vm1216_vm1, %v15719_v63, 0.0  ;;  %v8463_v32 = vmul.f32 %v15719_v63, %v15719_v63 }
0x1bcc   : > { %8481 = vadd.xlane.f32.xlu1 %v8480_v18  ;;  %8414 = vadd.xlane.f32.xlu0 %v8413_v19 }
0x1bcd   : > { %v8483_v41 = vsel %vm1216_vm1, %v8463_v32, 0.0 }
0x1bd0   : > { %8484 = vadd.xlane.f32.xlu0 %v8483_v41 }
0x1bf8   : > { %v8351_v21 = vpop.f32.mrf.mxu0 }
0x1bf9   : > { %v8352_v22 = vadd.f32 %v15689_v54, %v8351_v21 }
0x1bfa   : > { %v10469_v10 = vpop.f32.mrf.mxu0 }
0x1bfb   : > { %v15729_v15 = vadd.f32 %v8352_v22, %v15566_v40 }
0x1bfc   : > { %v8354_v56 = vpop.f32.mrf.mxu0 }
0x1bfd   : > { %v8355_v36 = vadd.f32 %v15689_v54, %v8354_v56  ;;  %v8416_v6 = vsel %vm1216_vm1, %v15729_v15, 0.0  ;;  %v8464_v45 = vmul.f32 %v15729_v15, %v15729_v15 }
0x1bfe   : > { %8417 = vadd.xlane.f32.xlu1 %v8416_v6  ;;  %v10470_v44 = vpop.f32.mrf.mxu0 }
0x1bff   : > { %v15737_v17 = vadd.f32 %v8355_v36, %v15569_v61  ;;  %v8486_v26 = vsel %vm1216_vm1, %v8464_v45, 0.0 }
0x1c00   : > { %v8359_v53 = vpop.f32.mrf.mxu0 }
0x1c01   : > { %v8419_v40 = vsel %vm1216_vm1, %v15737_v17, 0.0  ;;  %v8465_v29 = vmul.f32 %v15737_v17, %v15737_v17  ;;  %v8360_v3 = vadd.f32 %v15689_v54, %v8359_v53 }
0x1c02   : > { %8487 = vadd.xlane.f32.xlu1 %v8486_v26  ;;  %8420 = vadd.xlane.f32.xlu0 %v8419_v40  ;;  %v10473_v34 = vpop.f32.mrf.mxu0 }
0x1c03   : > { %v15746_v62 = vadd.f32 %v8360_v3, %v15590_v39  ;;  %v8489_v61 = vsel %vm1216_vm1, %v8465_v29, 0.0 }
0x1c04   : > { %v8362_v8 = vpop.f32.mrf.mxu0 }
0x1c05   : > { %v8363_v4 = vadd.f32 %v15689_v54, %v8362_v8  ;;  %v8422_v37 = vsel %vm1216_vm1, %v15746_v62, 0.0  ;;  %v8466_v43 = vmul.f32 %v15746_v62, %v15746_v62 }
0x1c06   : > { %8490 = vadd.xlane.f32.xlu0 %v8489_v61  ;;  %8423 = vadd.xlane.f32.xlu1 %v8422_v37  ;;  %v10474_v48 = vpop.f32.mrf.mxu0 }
0x1c07   : > { %v15755_v11 = vadd.f32 %v8363_v4, %v15593_v13  ;;  %v8492_v60 = vsel %vm1216_vm1, %v8466_v43, 0.0 }
0x1c08   : > { %v8367_v51 = vpop.f32.mrf.mxu0 }
0x1c09   : > { %v8368_v39 = vadd.f32 %v15689_v54, %v8367_v51  ;;  %v8425_v42 = vsel %vm1216_vm1, %v15755_v11, 0.0  ;;  %v8467_v31 = vmul.f32 %v15755_v11, %v15755_v11 }
0x1c0a   : > { %8493 = vadd.xlane.f32.xlu1 %v8492_v60  ;;  %8426 = vadd.xlane.f32.xlu0 %v8425_v42  ;;  %v10477_v30 = vpop.f32.mrf.mxu0 }
0x1c0b   : > { %v15764_v5 = vadd.f32 %v8368_v39, %v15611_v9  ;;  %v8495_v7 = vsel %vm1216_vm1, %v8467_v31, 0.0 }
0x1c0c   : > { %v8370_v57 = vpop.f32.mrf.mxu0 }
0x1c0d   : > { %v8371_v13 = vadd.f32 %v15689_v54, %v8370_v57  ;;  %v8428_v52 = vsel %vm1216_vm1, %v15764_v5, 0.0  ;;  %v8468_v46 = vmul.f32 %v15764_v5, %v15764_v5 }
0x1c0e   : > { %8496 = vadd.xlane.f32.xlu0 %v8495_v7  ;;  %8429 = vadd.xlane.f32.xlu1 %v8428_v52  ;;  %v10478_v49 = vpop.f32.mrf.mxu0 }
0x1c0f   : > { %v15773_v33 = vadd.f32 %v8371_v13, %v15614_v12  ;;  %v8498_v38 = vsel %vm1216_vm1, %v8468_v46, 0.0 }
0x1c11   : > { %v8375_v20 = vpop.f32.mrf.mxu0  ;;  %v8431_v50 = vsel %vm1216_vm1, %v15773_v33, 0.0  ;;  %v8469_v35 = vmul.f32 %v15773_v33, %v15773_v33 }
0x1c12   : > { %v8376_v9 = vadd.f32 %v15689_v54, %v8375_v20  ;;  %8499 = vadd.xlane.f32.xlu1 %v8498_v38  ;;  %8432 = vadd.xlane.f32.xlu0 %v8431_v50 }
0x1c13   : > { %v10481_v2 = vpop.f32.mrf.mxu0  ;;  %v8501_v24 = vsel %vm1216_vm1, %v8469_v35, 0.0 }
0x1c14   : > { %v15782_v28 = vadd.f32 %v8376_v9, %v15628_v27 }
0x1c15   : > { %v8378_v23 = vpop.f32.mrf.mxu0 }
0x1c16   : > { %v8379_v12 = vadd.f32 %v15689_v54, %v8378_v23  ;;  %v8434_v47 = vsel %vm1216_vm1, %v15782_v28, 0.0  ;;  %v8470_v0 = vmul.f32 %v15782_v28, %v15782_v28  ;;  %8502 = vadd.xlane.f32.xlu0 %v8501_v24 }
0x1c17   : > { %8435 = vadd.xlane.f32.xlu1 %v8434_v47  ;;  %v10482_v16 = vpop.f32.mrf.mxu0 }
0x1c18   : > { %v15791_v18 = vadd.f32 %v8379_v12, %v15631_v58  ;;  %v8504_v32 = vsel %vm1216_vm1, %v8470_v0, 0.0 }
0x1c19   : > { %v8383_v19 = vpop.f32.mrf.mxu0 }
0x1c1a   : > { %v8384_v27 = vadd.f32 %v15689_v54, %v8383_v19  ;;  %v8437_v41 = vsel %vm1216_vm1, %v15791_v18, 0.0  ;;  %v8471_v21 = vmul.f32 %v15791_v18, %v15791_v18  ;;  %v15823_v19 = vld [vmem:[%s1088_s17] ss:$0 sm:$0xff] }
0x1c1b   : > { %8505 = vadd.xlane.f32.xlu1 %v8504_v32  ;;  %8438 = vadd.xlane.f32.xlu0 %v8437_v41  ;;  %v10485_v22 = vpop.f32.mrf.mxu0  ;;  %v15830_v32 = vld [vmem:[%s1091_s23] ss:$0 sm:$0xff] }
0x1c1c   : > { %v15800_v10 = vadd.f32 %v8384_v27, %v15643_v1  ;;  %v8507_v36 = vsel %vm1216_vm1, %v8471_v21, 0.0 }
0x1c1d   : > { %v8386_v56 = vpop.f32.mrf.mxu0 }
0x1c1e   : > { %v8387_v58 = vadd.f32 %v15689_v54, %v8386_v56  ;;  %v8440_v6 = vsel %vm1216_vm1, %v15800_v10, 0.0  ;;  %v8472_v45 = vmul.f32 %v15800_v10, %v15800_v10 }
0x1c1f   : > { %8508 = vadd.xlane.f32.xlu0 %v8507_v36  ;;  %8441 = vadd.xlane.f32.xlu1 %v8440_v6  ;;  %v10486_v44 = vpop.f32.mrf.mxu0 }
0x1c20   : > { %v15809_v53 = vadd.f32 %v8387_v58, %v15646_v55  ;;  %v8510_v1 = vsel %vm1216_vm1, %v8472_v45, 0.0 }
0x1c22   : > { %v8443_v26 = vsel %vm1216_vm1, %v15809_v53, 0.0  ;;  %v8473_v54 = vmul.f32 %v15809_v53, %v15809_v53 }
0x1c23   : > { %8511 = vadd.xlane.f32.xlu1 %v8510_v1  ;;  %8444 = vadd.xlane.f32.xlu0 %v8443_v26 }
0x1c24   : > { %v8513_v40 = vsel %vm1216_vm1, %v8473_v54, 0.0 }
0x1c27   : > { %8514 = vadd.xlane.f32.xlu0 %v8513_v40 }
0x1c49   : > { %v8406_v29 = vpop.xlane.xlu1 %8405 }
0x1c4a   : > { %v8446_v3 = vmul.f32 0.015625, %v8406_v29 }
0x1c4c   : > { %v8530_v61 = vmul.f32 %v8446_v3, %v8446_v3  ;;  %v8572_v0 = vsub.f32 %v15693_v59, %v8446_v3 }
0x1c4d   : > { %v8476_v34 = vpop.xlane.xlu1 %8475  ;;  %v8409_v8 = vpop.xlane.xlu0 %8408 }
0x1c4e   : > { %v8516_v55 = vmul.f32 0.015625, %v8476_v34  ;;  %v8447_v4 = vmul.f32 0.015625, %v8409_v8 }
0x1c50   : > { %v8544_v37 = vsub.f32 %v8516_v55, %v8530_v61  ;;  %v8531_v39 = vmul.f32 %v8447_v4, %v8447_v4  ;;  %v8573_v59 = vsub.f32 %v15701_v14, %v8447_v4 }
0x1c51   : > { %v8412_v43 = vpop.xlane.xlu1 %8411  ;;  %v8479_v48 = vpop.xlane.xlu0 %8478 }
0x1c52   : > { %v8558_v51 = vmax.f32 %v8544_v37, 0.0  ;;  %v8448_v60 = vmul.f32 0.015625, %v8412_v43  ;;  %v8517_v42 = vmul.f32 0.015625, %v8479_v48 }
0x1c54   : > { %v8586_v31 = vadd.f32 1e-05, %v8558_v51  ;;  %v8545_v30 = vsub.f32 %v8517_v42, %v8531_v39  ;;  %v8532_v57 = vmul.f32 %v8448_v60, %v8448_v60  ;;  %v8574_v58 = vsub.f32 %v15710_v25, %v8448_v60 }
0x1c55   : > { %v8482_v13 = vpop.xlane.xlu1 %8481  ;;  %v8415_v7 = vpop.xlane.xlu0 %8414 }
0x1c56   : > { %11202 = vrsqrt.f32 %v8586_v31  ;;  %v8559_v52 = vmax.f32 %v8545_v30, 0.0  ;;  %v8518_v46 = vmul.f32 0.015625, %v8482_v13  ;;  %v8449_v49 = vmul.f32 0.015625, %v8415_v7 }
0x1c58   : > { %v8587_v20 = vadd.f32 1e-05, %v8559_v52  ;;  %v8546_v9 = vsub.f32 %v8518_v46, %v8532_v57  ;;  %v8533_v35 = vmul.f32 %v8449_v49, %v8449_v49  ;;  %v8575_v1 = vsub.f32 %v15719_v63, %v8449_v49 }
0x1c59   : > { %v8485_v38 = vpop.xlane.xlu0 %8484 }
0x1c5a   : > { %11204 = vrsqrt.f32 %v8587_v20  ;;  %v8560_v50 = vmax.f32 %v8546_v9, 0.0  ;;  %v8519_v2 = vmul.f32 0.015625, %v8485_v38 }
0x1c5c   : > { %v8588_v23 = vadd.f32 1e-05, %v8560_v50  ;;  %v8547_v12 = vsub.f32 %v8519_v2, %v8533_v35 }
0x1c5e   : > { %11206 = vrsqrt.f32 %v8588_v23  ;;  %v8561_v24 = vmax.f32 %v8547_v12, 0.0 }
0x1c60   : > { %v8589_v47 = vadd.f32 1e-05, %v8561_v24 }
0x1c62   : > { %11208 = vrsqrt.f32 %v8589_v47 }
0x1c63   : > { %v11203_v16 = vpop.eup %11202 }
0x1c64   : > { %v8614_v27 = vmul.f32 %v11203_v16, %v8572_v0 }
0x1c66   : > { %v8635_v41 = vmul.f32 %v15823_v19, %v8614_v27 }
0x1c67   : > { %v11205_v21 = vpop.eup %11204 }
0x1c68   : > { %v8656_v22 = vadd.f32 %v15830_v32, %v8635_v41  ;;  %v8615_v56 = vmul.f32 %v11205_v21, %v8573_v59 }
0x1c6a   : > { %8670 = vst.msk [vmem:[%s11580_s20] sm:$0xff] %vm1216_vm1, %v8656_v22  ;;  %v8636_v36 = vmul.f32 %v15823_v19, %v8615_v56 }
0x1c6b   : > { %v11207_v6 = vpop.eup %11206 }
0x1c6c   : > { %v8657_v45 = vadd.f32 %v15830_v32, %v8636_v36  ;;  %v8616_v44 = vmul.f32 %v11207_v6, %v8574_v58 }
0x1c6e   : > { %8671 = vst.msk [vmem:[%s11580_s20 + $0x8] sm:$0xff] %vm1216_vm1, %v8657_v45  ;;  %v8637_v14 = vmul.f32 %v15823_v19, %v8616_v44 }
0x1c6f   : > { %v11209_v26 = vpop.eup %11208 }
0x1c70   : > { %v8658_v54 = vadd.f32 %v15830_v32, %v8637_v14  ;;  %v8617_v40 = vmul.f32 %v11209_v26, %v8575_v1 }
0x1c72   : > { %8672 = vst.msk [vmem:[%s11580_s20 + $0x10] sm:$0xff] %vm1216_vm1, %v8658_v54  ;;  %v8638_v25 = vmul.f32 %v15823_v19, %v8617_v40 }
0x1c74   : > { %v8659_v29 = vadd.f32 %v15830_v32, %v8638_v25 }
0x1c76   : > { %8673 = vst.msk [vmem:[%s11580_s20 + $0x18] sm:$0xff] %vm1216_vm1, %v8659_v29 }
0x1c87   : > { %v8418_v3 = vpop.xlane.xlu1 %8417 }
0x1c88   : > { %v8450_v34 = vmul.f32 0.015625, %v8418_v3 }
0x1c8a   : > { %v8534_v55 = vmul.f32 %v8450_v34, %v8450_v34  ;;  %v8576_v58 = vsub.f32 %v15729_v15, %v8450_v34 }
0x1c8b   : > { %v8488_v8 = vpop.xlane.xlu1 %8487  ;;  %v8421_v61 = vpop.xlane.xlu0 %8420 }
0x1c8c   : > { %v8520_v4 = vmul.f32 0.015625, %v8488_v8  ;;  %v8451_v37 = vmul.f32 0.015625, %v8421_v61 }
0x1c8e   : > { %v8548_v63 = vsub.f32 %v8520_v4, %v8534_v55  ;;  %v8535_v51 = vmul.f32 %v8451_v37, %v8451_v37  ;;  %v8577_v3 = vsub.f32 %v15737_v17, %v8451_v37 }
0x1c8f   : > { %v8491_v43 = vpop.xlane.xlu0 %8490  ;;  %v8424_v39 = vpop.xlane.xlu1 %8423 }
0x1c90   : > { %v8562_v48 = vmax.f32 %v8548_v63, 0.0  ;;  %v8521_v60 = vmul.f32 0.015625, %v8491_v43  ;;  %v15851_v42 = vmul.f32 0.015625, %v8424_v39 }
0x1c92   : > { %v8590_v31 = vadd.f32 1e-05, %v8562_v48  ;;  %v8549_v30 = vsub.f32 %v8521_v60, %v8535_v51  ;;  %v8536_v52 = vmul.f32 %v15851_v42, %v15851_v42  ;;  %v8578_v17 = vsub.f32 %v15746_v62, %v15851_v42 }
0x1c93   : > { %v8494_v13 = vpop.xlane.xlu1 %8493  ;;  %v8427_v7 = vpop.xlane.xlu0 %8426 }
0x1c94   : > { %11210 = vrsqrt.f32 %v8590_v31  ;;  %v8563_v57 = vmax.f32 %v8549_v30, 0.0  ;;  %v8522_v46 = vmul.f32 0.015625, %v8494_v13  ;;  %v15855_v49 = vmul.f32 0.015625, %v8427_v7 }
0x1c96   : > { %v8591_v20 = vadd.f32 1e-05, %v8563_v57  ;;  %v8550_v9 = vsub.f32 %v8522_v46, %v8536_v52  ;;  %v8537_v2 = vmul.f32 %v15855_v49, %v15855_v49  ;;  %v8579_v62 = vsub.f32 %v15755_v11, %v15855_v49 }
0x1c97   : > { %v8430_v38 = vpop.xlane.xlu1 %8429  ;;  %v8497_v50 = vpop.xlane.xlu0 %8496 }
0x1c98   : > { %11212 = vrsqrt.f32 %v8591_v20  ;;  %v8564_v35 = vmax.f32 %v8550_v9, 0.0  ;;  %v15859_v23 = vmul.f32 0.015625, %v8430_v38  ;;  %v8523_v12 = vmul.f32 0.015625, %v8497_v50 }
0x1c9a   : > { %v8592_v24 = vadd.f32 1e-05, %v8564_v35  ;;  %v8551_v47 = vsub.f32 %v8523_v12, %v8537_v2  ;;  %v8538_v0 = vmul.f32 %v15859_v23, %v15859_v23  ;;  %v8580_v11 = vsub.f32 %v15764_v5, %v15859_v23 }
0x1c9b   : > { %v8500_v16 = vpop.xlane.xlu1 %8499  ;;  %v8433_v27 = vpop.xlane.xlu0 %8432 }
0x1c9c   : > { %11214 = vrsqrt.f32 %v8592_v24  ;;  %v8565_v41 = vmax.f32 %v8551_v47, 0.0  ;;  %v8524_v59 = vmul.f32 0.015625, %v8500_v16  ;;  %v15863_v21 = vmul.f32 0.015625, %v8433_v27 }
0x1c9e   : > { %v8593_v22 = vadd.f32 1e-05, %v8565_v41  ;;  %v8552_v56 = vsub.f32 %v8524_v59, %v8538_v0  ;;  %v8539_v36 = vmul.f32 %v15863_v21, %v15863_v21  ;;  %v8581_v23 = vsub.f32 %v15773_v33, %v15863_v21 }
0x1c9f   : > { %v8503_v45 = vpop.xlane.xlu0 %8502 }
0x1ca0   : > { %v8436_v6 = vpop.xlane.xlu1 %8435  ;;  %11216 = vrsqrt.f32 %v8593_v22  ;;  %v8566_v14 = vmax.f32 %v8552_v56, 0.0  ;;  %v8525_v26 = vmul.f32 0.015625, %v8503_v45 }
0x1ca1   : > { %v11211_v44 = vpop.eup %11210  ;;  %v15868_v1 = vmul.f32 0.015625, %v8436_v6 }
0x1ca2   : > { %v8618_v54 = vmul.f32 %v11211_v44, %v8576_v58  ;;  %v8594_v40 = vadd.f32 1e-05, %v8566_v14  ;;  %v8553_v25 = vsub.f32 %v8525_v26, %v8539_v36 }
0x1ca3   : > { %v8540_v61 = vmul.f32 %v15868_v1, %v15868_v1 }
0x1ca4   : > { %v8639_v29 = vmul.f32 %v15823_v19, %v8618_v54  ;;  %v8506_v15 = vpop.xlane.xlu1 %8505  ;;  %v8439_v34 = vpop.xlane.xlu0 %8438  ;;  %11218 = vrsqrt.f32 %v8594_v40  ;;  %v8567_v55 = vmax.f32 %v8553_v25, 0.0 }
0x1ca5   : > { %v11213_v8 = vpop.eup %11212  ;;  %v8526_v4 = vmul.f32 0.015625, %v8506_v15  ;;  %v15875_v48 = vmul.f32 0.015625, %v8439_v34  ;;  %v8582_v15 = vsub.f32 %v15782_v28, %v15868_v1 }
0x1ca6   : > { %v8660_v63 = vadd.f32 %v15830_v32, %v8639_v29  ;;  %v8619_v43 = vmul.f32 %v11213_v8, %v8577_v3  ;;  %v8595_v51 = vadd.f32 1e-05, %v8567_v55 }
0x1ca7   : > { %v8554_v39 = vsub.f32 %v8526_v4, %v8540_v61  ;;  %v8541_v46 = vmul.f32 %v15875_v48, %v15875_v48  ;;  %v8583_v55 = vsub.f32 %v15791_v18, %v15875_v48 }
0x1ca8   : > { %8674 = vst.msk [vmem:[%s11580_s20 + $0x20] sm:$0xff] %vm1216_vm1, %v8660_v63  ;;  %v8640_v37 = vmul.f32 %v15823_v19, %v8619_v43  ;;  %v8442_v60 = vpop.xlane.xlu1 %8441  ;;  %v8509_v31 = vpop.xlane.xlu0 %8508  ;;  %11220 = vrsqrt.f32 %v8595_v51 }
0x1ca9   : > { %v8568_v30 = vmax.f32 %v8554_v39, 0.0  ;;  %v15882_v57 = vmul.f32 0.015625, %v8442_v60  ;;  %v8527_v13 = vmul.f32 0.015625, %v8509_v31  ;;  %v11215_v7 = vpop.eup %11214 }
0x1caa   : > { %v8661_v52 = vadd.f32 %v15830_v32, %v8640_v37  ;;  %v8620_v20 = vmul.f32 %v11215_v7, %v8578_v17 }
0x1cab   : > { %v8596_v9 = vadd.f32 1e-05, %v8568_v30  ;;  %v8542_v42 = vmul.f32 %v15882_v57, %v15882_v57  ;;  %v8555_v38 = vsub.f32 %v8527_v13, %v8541_v46  ;;  %v8584_v1 = vsub.f32 %v15800_v10, %v15882_v57 }
0x1cac   : > { %8675 = vst.msk [vmem:[%s11580_s20 + $0x28] sm:$0xff] %vm1216_vm1, %v8661_v52  ;;  %v8512_v50 = vpop.xlane.xlu1 %8511  ;;  %v8445_v35 = vpop.xlane.xlu0 %8444  ;;  %v8641_v2 = vmul.f32 %v15823_v19, %v8620_v20 }
0x1cad   : > { %11222 = vrsqrt.f32 %v8596_v9  ;;  %v8528_v12 = vmul.f32 0.015625, %v8512_v50  ;;  %v8459_v24 = vmul.f32 0.015625, %v8445_v35  ;;  %v11217_v47 = vpop.eup %11216  ;;  %v8569_v0 = vmax.f32 %v8555_v38, 0.0 }
0x1cae   : > { %v8662_v16 = vadd.f32 %v15830_v32, %v8641_v2  ;;  %v8621_v27 = vmul.f32 %v11217_v47, %v8579_v62 }
0x1caf   : > { %v8556_v41 = vsub.f32 %v8528_v12, %v8542_v42  ;;  %v8597_v49 = vadd.f32 1e-05, %v8569_v0  ;;  %v8543_v58 = vmul.f32 %v8459_v24, %v8459_v24  ;;  %v8585_v18 = vsub.f32 %v15809_v53, %v8459_v24 }
0x1cb0   : > { %v8515_v59 = vpop.xlane.xlu0 %8514  ;;  %8676 = vst.msk [vmem:[%s11580_s20 + $0x30] sm:$0xff] %vm1216_vm1, %v8662_v16  ;;  %v8642_v22 = vmul.f32 %v15823_v19, %v8621_v27 }
0x1cb1   : > { %v8570_v56 = vmax.f32 %v8556_v41, 0.0  ;;  %v8529_v36 = vmul.f32 0.015625, %v8515_v59  ;;  %v11219_v6 = vpop.eup %11218  ;;  %11224 = vrsqrt.f32 %v8597_v49 }
0x1cb2   : > { %v8663_v45 = vadd.f32 %v15830_v32, %v8642_v22  ;;  %v8622_v44 = vmul.f32 %v11219_v6, %v8580_v11 }
0x1cb3   : > { %v8598_v14 = vadd.f32 1e-05, %v8570_v56  ;;  %v8557_v26 = vsub.f32 %v8529_v36, %v8543_v58 }
0x1cb4   : > { %8677 = vst.msk [vmem:[%s11580_s20 + $0x38] sm:$0xff] %vm1216_vm1, %v8663_v45  ;;  %v8643_v5 = vmul.f32 %v15823_v19, %v8622_v44 }
0x1cb5   : > { %11226 = vrsqrt.f32 %v8598_v14  ;;  %v8571_v54 = vmax.f32 %v8557_v26, 0.0  ;;  %v11221_v40 = vpop.eup %11220 }
0x1cb6   : > { %v8664_v25 = vadd.f32 %v15830_v32, %v8643_v5  ;;  %v8623_v29 = vmul.f32 %v11221_v40, %v8581_v23 }
0x1cb7   : > { %v8599_v3 = vadd.f32 1e-05, %v8571_v54 }
0x1cb8   : > { %8678 = vst.msk [vmem:[%s11580_s20 + $0x40] sm:$0xff] %vm1216_vm1, %v8664_v25  ;;  %v8644_v34 = vmul.f32 %v15823_v19, %v8623_v29 }
0x1cb9   : > { %11228 = vrsqrt.f32 %v8599_v3 }
0x1cba   : > { %v11223_v8 = vpop.eup %11222  ;;  %v8665_v61 = vadd.f32 %v15830_v32, %v8644_v34 }
0x1cbb   : > { %v8624_v33 = vmul.f32 %v11223_v8, %v8582_v15 }
0x1cbc   : > { %8679 = vst.msk [vmem:[%s11580_s20 + $0x48] sm:$0xff] %vm1216_vm1, %v8665_v61 }
0x1cbd   : > { %v8645_v21 = vmul.f32 %v15823_v19, %v8624_v33 }
0x1cbe   : > { %v11225_v4 = vpop.eup %11224 }
0x1cbf   : > { %v8666_v63 = vadd.f32 %v15830_v32, %v8645_v21  ;;  %v8625_v28 = vmul.f32 %v11225_v4, %v8583_v55 }
0x1cc1   : > { %8680 = vst.msk [vmem:[%s11580_s20 + $0x50] sm:$0xff] %vm1216_vm1, %v8666_v63  ;;  %v8646_v51 = vmul.f32 %v15823_v19, %v8625_v28 }
0x1cc2   : > { %v11227_v43 = vpop.eup %11226 }
0x1cc3   : > { %v8626_v39 = vmul.f32 %v11227_v43, %v8584_v1  ;;  %v8667_v17 = vadd.f32 %v15830_v32, %v8646_v51 }
0x1cc5   : > { %v8647_v37 = vmul.f32 %v15823_v19, %v8626_v39  ;;  %8681 = vst.msk [vmem:[%s11580_s20 + $0x58] sm:$0xff] %vm1216_vm1, %v8667_v17 }
0x1cc6   : > { %v11229_v48 = vpop.eup %11228 }
0x1cc7   : > { %v8668_v60 = vadd.f32 %v15830_v32, %v8647_v37  ;;  %v8627_v31 = vmul.f32 %v11229_v48, %v8585_v18 }
0x1cc9   : > { %8682 = vst.msk [vmem:[%s11580_s20 + $0x60] sm:$0xff] %vm1216_vm1, %v8668_v60  ;;  %v8648_v10 = vmul.f32 %v15823_v19, %v8627_v31 }
0x1ccb   : > { %v8669_v30 = vadd.f32 %v15830_v32, %v8648_v10 }
0x1ccd   : > { %8683 = vst.msk [vmem:[%s11580_s20 + $0x68] sm:$0xff] %vm1216_vm1, %v8669_v30 }
0x1cce PF: > { %s16226_s17 = sld [smem:[#allocation5_spill]] }
0x1ccf   : > { %s16227_s5 = sld [smem:[#allocation3_spill]] }
0x1cd0   : > { %s16228_s26 = sld [smem:[#allocation4_spill]] }
0x1cd1   : > { %s16229_s27 = sld [smem:[#allocation6_spill]] }
0x1cd2   : > { %s16230_s28 = sld [smem:[#allocation7_spill]] }
0x1cd4   : > { %s34_s6 = sadd.s32 1, %s16226_s17  }
0x1cd5   : > { %p31_p8 = scmp.ge.s32.totalorder %s34_s6, 6  }
0x1cd7   :  { %33 = sbr.rel (!%p31_p8) target bundleno = 23 (0x17), region = 225 }

</bundles_post_ra>
